<compile_context>
chip_gen: v7x
topology: tpu7x:2x2x1
jax: 0.10.0
libtpu: 0.0.40
codegen_flags: <defaults>
</compile_context>

<pallas_src>
import numpy as np

import jax
import jax.numpy as jnp
from jax.experimental import pallas as pl
from jax.experimental.pallas import tpu as pltpu

BN_EPS = 1e-5
FIRST_K_PAD = 128   # first conv im2col K (9*Cin = 18) padded to a full 128-lane operand


# ------------------------------- fused kernel --------------------------------

def _fused_forward_kernel(
        patches_ref,    # (M, 128)       f32  first-conv im2col patches, col 18 == 1.0 (bias)
        conv1_w_ref,    # (128, C)       f32  first-conv weight, row 18 == bias
        conv1_gb_ref,   # (2, C)         f32  gamma / beta
        s_ref,          # (9, M, M)      f32  0/1 shift matrices for the 3x3 taps
        res_w_ref,      # (L, 9, C, C)   bf16 res-conv weights (L = 2*numResBlocks)
        res_bgb_ref,    # (L, 3, C)      f32  bias / gamma / beta
        hconv_w_ref,    # (C, 3)         f32  [value conv | policy conv c0 | c1]
        hconv_bgb_ref,  # (3, 3)         f32
        at_ref,         # (N, M)         f32  sample selector A^T
        bpos_ref,       # (M, G)         f32  board-position selector B (G = H*W)
        w1_ref, b1_ref,    # (G, 256), (1, 256)
        w2_ref, b2_ref,    # (256, 1), (1, 1)
        w3a_ref, w3b_ref,  # (G, A), (G, A)   lin3 weight split by policy channel
        b3_ref,            # (1, A)
        p_ref,             # out (N, A)
        v_ref):            # out (N, 1)
    f32 = jnp.float32

    def bn_relu(y, gamma, beta, residual=None):
        # BatchNorm with batch statistics (biased variance), centered second pass.
        mean = jnp.mean(y, axis=0, keepdims=True)
        cent = y - mean
        var = jnp.mean(cent * cent, axis=0, keepdims=True)
        out = cent * jax.lax.rsqrt(var + BN_EPS) * gamma + beta
        if residual is not None:
            out = out + residual
        return jnp.maximum(out, 0.0)

    # ---- ConvBlock: 3x3 conv (bias folded into padded K row) + BN + ReLU
    x = jnp.dot(patches_ref[...], conv1_w_ref[...], preferred_element_type=f32)
    x = bn_relu(x, conv1_gb_ref[0:1, :], conv1_gb_ref[1:2, :])

    # ---- ResBlocks: 3x3 conv as 9 shifted MXU matmuls (in-kernel im2col), bf16 weights
    def conv3x3(act, layer):
        act_b = act.astype(jnp.bfloat16)
        acc = None
        for o in range(9):
            tap = jnp.dot(act_b, res_w_ref[layer, o], preferred_element_type=f32)
            tap = jnp.dot(s_ref[o], tap, preferred_element_type=f32)   # exact 0/1 shift
            acc = tap if acc is None else acc + tap
        return acc

    num_convs = res_w_ref.shape[0]
    for rb in range(num_convs // 2):
        l1, l2 = 2 * rb, 2 * rb + 1
        bgb1 = res_bgb_ref[l1]
        bgb2 = res_bgb_ref[l2]
        residual = x
        y = bn_relu(conv3x3(x, l1) + bgb1[0:1, :], bgb1[1:2, :], bgb1[2:3, :])
        x = bn_relu(conv3x3(y, l2) + bgb2[0:1, :], bgb2[1:2, :], bgb2[2:3, :],
                    residual=residual)

    # ---- Heads: both 1x1 convs fused (3 output channels) + BN + ReLU
    hbgb = hconv_bgb_ref[...]
    hact = jnp.dot(x, hconv_w_ref[...], preferred_element_type=f32) + hbgb[0:1, :]
    hact = bn_relu(hact, hbgb[1:2, :], hbgb[2:3, :])                      # (M, 3)

    # ---- NCHW .view() flattens as tiny selection matmuls: out[n, j] = hact[n*G + j, c]
    a_t = at_ref[...]
    bpos = bpos_ref[...]
    v_in = jnp.dot(a_t, bpos * hact[:, 0:1], preferred_element_type=f32)  # (N, G)
    p_c0 = jnp.dot(a_t, bpos * hact[:, 1:2], preferred_element_type=f32)  # (N, G)
    p_c1 = jnp.dot(a_t, bpos * hact[:, 2:3], preferred_element_type=f32)  # (N, G)

    # ---- Value MLP: lin1 -> ReLU -> lin2 -> tanh
    hidden = jnp.maximum(
        jnp.dot(v_in, w1_ref[...], preferred_element_type=f32) + b1_ref[...], 0.0)
    v_ref[...] = jnp.tanh(
        jnp.dot(hidden, w2_ref[...], preferred_element_type=f32) + b2_ref[...])

    # ---- Policy linear + softmax (exact divide keeps sum(p) == 1)
    logits = (jnp.dot(p_c0, w3a_ref[...], preferred_element_type=f32)
              + jnp.dot(p_c1, w3b_ref[...], preferred_element_type=f32)
              + b3_ref[...])
    logits = logits - jnp.max(logits, axis=1, keepdims=True)
    e = jnp.exp(logits)
    p_ref[...] = e / jnp.sum(e, axis=1, keepdims=True)


# ------------------------------- host wrapper ---------------------------------

def _first_conv_patches(x_nhwc, k_pad):
    """(N,H,W,Cin) -> (N*H*W, k_pad) im2col patches ordered (kh,kw,cin); col 9*Cin = 1.0."""
    n, h, w, cin = x_nhwc.shape
    xp = jnp.pad(x_nhwc, ((0, 0), (1, 1), (1, 1), (0, 0)))
    cols = [xp[:, kh:kh + h, kw:kw + w, :] for kh in range(3) for kw in range(3)]
    patches = jnp.stack(cols, axis=3).reshape(n * h * w, 9 * cin)
    patches = jnp.pad(patches, ((0, 0), (0, k_pad - 9 * cin)))
    return patches.at[:, 9 * cin].set(1.0)            # ones column -> folded conv bias


def _selection_constants(n, h, w):
    """Trace-time 0/1 constants: 3x3 shift matrices S, sample selector A^T, position B."""
    hw = h * w
    m = n * hw
    s = np.zeros((9, m, m), np.float32)
    for kh in range(3):
        for kw in range(3):
            o = kh * 3 + kw
            for ni in range(n):
                for hi in range(h):
                    for wi in range(w):
                        hj, wj = hi + kh - 1, wi + kw - 1
                        if 0 <= hj < h and 0 <= wj < w:
                            s[o, ni * hw + hi * w + wi, ni * hw + hj * w + wj] = 1.0
    a_t = np.zeros((n, m), np.float32)
    for ni in range(n):
        a_t[ni, ni * hw:(ni + 1) * hw] = 1.0
    bpos = np.tile(np.eye(hw, dtype=np.float32), (n, 1))
    return jnp.asarray(s), jnp.asarray(a_t), jnp.asarray(bpos)


@jax.jit
def tictactoe_forward(kparams, x_nchw):
    """Full TicTacToeNN forward in a single fused pallas_call.  Returns (p, v)."""
    n, _, h, w = x_nchw.shape
    x_nhwc = jnp.transpose(x_nchw, (0, 2, 3, 1)).astype(jnp.float32)
    patches = _first_conv_patches(x_nhwc, FIRST_K_PAD)
    s_mats, a_t, bpos = _selection_constants(n, h, w)
    hd = kparams["heads"]
    num_actions = hd["b3"].shape[1]

    p, v = pl.pallas_call(
        _fused_forward_kernel,
        out_shape=(jax.ShapeDtypeStruct((n, num_actions), jnp.float32),
                   jax.ShapeDtypeStruct((n, 1), jnp.float32)),
        compiler_params=pltpu.CompilerParams(vmem_limit_bytes=64 * 1024 * 1024),
    )(patches, kparams["conv1_w"], kparams["conv1_gb"], s_mats,
      kparams["res_w"], kparams["res_bgb"], hd["w_conv"], hd["bgb_conv"],
      a_t, bpos, hd["w1"], hd["b1"], hd["w2"], hd["b2"], hd["w3a"], hd["w3b"], hd["b3"])
    return p, v


# -------------------------------- parameters ----------------------------------

def init_raw_params(key, num_res_blocks):
    """PyTorch-layout parameters with the module's init scheme."""
    keys = iter(jax.random.split(key, 12 + 4 * num_res_blocks))

    def conv_params(cin, cout, ksize):
        w = 0.01 * jax.random.normal(next(keys), (cout, cin, ksize, ksize), dtype=jnp.float32)
        bound = 1.0 / ((cin * ksize * ksize) ** 0.5)
        b = jax.random.uniform(next(keys), (cout,), minval=-bound, maxval=bound,
                               dtype=jnp.float32)
        return dict(w=w, b=b, gamma=jnp.ones((cout,), jnp.float32),
                    beta=jnp.zeros((cout,), jnp.float32))

    def lin_params(fin, fout):
        w = 0.01 * jax.random.normal(next(keys), (fout, fin), dtype=jnp.float32)
        bound = 1.0 / (fin ** 0.5)
        b = jax.random.uniform(next(keys), (fout,), minval=-bound, maxval=bound,
                               dtype=jnp.float32)
        return dict(w=w, b=b)

    return dict(
        conv=conv_params(2, 256, 3),
        res=[dict(c1=conv_params(256, 256, 3), c2=conv_params(256, 256, 3))
             for _ in range(num_res_blocks)],
        heads=dict(vconv=conv_params(256, 1, 1), pconv=conv_params(256, 2, 1),
                   lin1=lin_params(9, 256), lin2=lin_params(256, 1), lin3=lin_params(18, 9)),
    )


def prepare_kernel_params(raw):
    """One-time reformat of PyTorch-layout params into the fused-kernel layout."""
    # First conv: im2col weight (K = 9*Cin -> padded to 128), bias folded into row K.
    c1 = raw["conv"]
    cout, cin, kh, kw = c1["w"].shape
    k = kh * kw * cin
    assert k < FIRST_K_PAD
    w1m = jnp.transpose(c1["w"], (2, 3, 1, 0)).reshape(k, cout).astype(jnp.float32)
    conv1_w = (jnp.zeros((FIRST_K_PAD, cout), jnp.float32)
               .at[:k].set(w1m).at[k].set(c1["b"].astype(jnp.float32)))
    conv1_gb = jnp.stack([c1["gamma"], c1["beta"]], axis=0).astype(jnp.float32)

    # Res convs: (L, 9, C, C) bf16 per-tap weights + (L, 3, C) f32 bias/gamma/beta.
    def res_conv_prep(p):
        co, ci, ah, aw = p["w"].shape
        wmat = jnp.transpose(p["w"], (2, 3, 1, 0)).reshape(ah * aw, ci, co)
        bgb = jnp.stack([p["b"], p["gamma"], p["beta"]], axis=0)
        return wmat.astype(jnp.bfloat16), bgb.astype(jnp.float32)

    ws, bgbs = [], []
    for rb in raw["res"]:
        for conv in (rb["c1"], rb["c2"]):
            wmat, bgb = res_conv_prep(conv)
            ws.append(wmat)
            bgbs.append(bgb)
    res_w = jnp.stack(ws, axis=0)
    res_bgb = jnp.stack(bgbs, axis=0)

    # Heads: fused 1x1 conv (3 channels), value MLP, policy linear (split by channel).
    hv, hp = raw["heads"]["vconv"], raw["heads"]["pconv"]
    hconv_w = jnp.concatenate([hv["w"].reshape(1, -1).T, hp["w"].reshape(2, -1).T], axis=1)
    hconv_bgb = jnp.stack(
        [jnp.concatenate([hv["b"], hp["b"]]),
         jnp.concatenate([hv["gamma"], hp["gamma"]]),
         jnp.concatenate([hv["beta"], hp["beta"]])], axis=0)              # (3, 3)

    def lin_prep(p):
        return p["w"].T.astype(jnp.float32), p["b"].reshape(1, -1).astype(jnp.float32)

    w1, b1 = lin_prep(raw["heads"]["lin1"])
    w2, b2 = lin_prep(raw["heads"]["lin2"])
    w3, b3 = lin_prep(raw["heads"]["lin3"])
    g = w3.shape[0] // 2
    heads = dict(w_conv=hconv_w.astype(jnp.float32), bgb_conv=hconv_bgb.astype(jnp.float32),
                 w1=w1, b1=b1, w2=w2, b2=b2, w3a=w3[:g], w3b=w3[g:], b3=b3)
    return dict(conv1_w=conv1_w, conv1_gb=conv1_gb, res_w=res_w, res_bgb=res_bgb,
                heads=heads)


# ----------------------------- pure-JAX reference ------------------------------

def _ref_conv_bn(x, p, relu=True, padding=0):
    cout = p["w"].shape[0]
    y = jax.lax.conv_general_dilated(
        x, p["w"], window_strides=(1, 1), padding=((padding, padding), (padding, padding)),
        dimension_numbers=("NCHW", "OIHW", "NCHW"), precision=jax.lax.Precision.HIGHEST)
    y = y + p["b"].reshape(1, cout, 1, 1)
    mean = jnp.mean(y, axis=(0, 2, 3), keepdims=True)
    var = jnp.mean((y - mean) ** 2, axis=(0, 2, 3), keepdims=True)
    y = (y - mean) / jnp.sqrt(var + BN_EPS)
    y = y * p["gamma"].reshape(1, cout, 1, 1) + p["beta"].reshape(1, cout, 1, 1)
    return jnp.maximum(y, 0.0) if relu else y


def reference_forward(raw, x):
    hi = jax.lax.Precision.HIGHEST
    y = _ref_conv_bn(x, raw["conv"], padding=1)
    for rb in raw["res"]:
        t = _ref_conv_bn(y, rb["c1"], padding=1)
        t = _ref_conv_bn(t, rb["c2"], relu=False, padding=1)
        y = jnp.maximum(t + y, 0.0)
    n = x.shape[0]
    v = _ref_conv_bn(y, raw["heads"]["vconv"], padding=0).reshape(n, -1)          # (N, 9)
    v = jnp.maximum(jnp.dot(v, raw["heads"]["lin1"]["w"].T, precision=hi)
                    + raw["heads"]["lin1"]["b"], 0.0)
    v = jnp.tanh(jnp.dot(v, raw["heads"]["lin2"]["w"].T, precision=hi)
                 + raw["heads"]["lin2"]["b"])
    p = _ref_conv_bn(y, raw["heads"]["pconv"], padding=0).reshape(n, -1)          # (N, 18)
    logits = jnp.dot(p, raw["heads"]["lin3"]["w"].T, precision=hi) + raw["heads"]["lin3"]["b"]
    return jax.nn.softmax(logits, axis=1), v


# ----------------------------------- main --------------------------------------

if __name__ == "__main__":
    key = jax.random.PRNGKey(0)
    k_x, k_params = jax.random.split(key)

    N, CIN, H, W = 2, 2, 3, 3          # batch of 2 tic-tac-toe boards, 2 input planes
    NUM_RES_BLOCKS = 2

    x = jax.random.normal(k_x, (N, CIN, H, W), dtype=jnp.float32)
    raw_params = init_raw_params(k_params, NUM_RES_BLOCKS)
    kparams = prepare_kernel_params(raw_params)      # one-time layout prep (hoisted)

    p, v = tictactoe_forward(kparams, x)
    p, v = jax.block_until_ready((p, v))

    p_ref, v_ref = reference_forward(raw_params, x)
    assert p.shape == (N, 9) and v.shape == (N, 1)
    assert jnp.allclose(jnp.sum(p, axis=1), 1.0, atol=1e-5)
    # Tolerance covers the bf16 storage of the res-conv weights (f32 accumulation).
    assert jnp.allclose(p, p_ref, atol=2e-3, rtol=2e-3), (p, p_ref)
    assert jnp.allclose(v, v_ref, atol=2e-3, rtol=2e-3), (v, v_ref)

    print("KERNEL_OK")
</pallas_src>

<mosaic_0001>
module attributes {stable_mosaic.version = 11 : i64} {
  func.func @_fused_forward_kernel(%arg0: memref<18x128xf32, #tpu.memory_space<vmem>>, %arg1: memref<128x256xf32, #tpu.memory_space<vmem>>, %arg2: memref<2x256xf32, #tpu.memory_space<vmem>>, %arg3: memref<9x18x18xf32, #tpu.memory_space<vmem>>, %arg4: memref<4x9x256x256xbf16, #tpu.memory_space<vmem>>, %arg5: memref<4x3x256xf32, #tpu.memory_space<vmem>>, %arg6: memref<256x3xf32, #tpu.memory_space<vmem>>, %arg7: memref<3x3xf32, #tpu.memory_space<vmem>>, %arg8: memref<2x18xf32, #tpu.memory_space<vmem>>, %arg9: memref<18x9xf32, #tpu.memory_space<vmem>>, %arg10: memref<9x256xf32, #tpu.memory_space<vmem>>, %arg11: memref<1x256xf32, #tpu.memory_space<vmem>>, %arg12: memref<256x1xf32, #tpu.memory_space<vmem>>, %arg13: memref<1x1xf32, #tpu.memory_space<vmem>>, %arg14: memref<9x9xf32, #tpu.memory_space<vmem>>, %arg15: memref<9x9xf32, #tpu.memory_space<vmem>>, %arg16: memref<1x9xf32, #tpu.memory_space<vmem>>, %arg17: memref<2x9xf32, #tpu.memory_space<vmem>>, %arg18: memref<2x1xf32, #tpu.memory_space<vmem>>) attributes {dimension_semantics = [], scalar_prefetch = 0 : i64, scratch_operands = 0 : i64, tpu.core_type = #tpu.core_type<tc>} {
    %c0 = arith.constant 0 : index
    %c0_0 = arith.constant 0 : index
    %0 = vector.load %arg0[%c0, %c0_0] : memref<18x128xf32, #tpu.memory_space<vmem>>, vector<18x128xf32>
    %c0_1 = arith.constant 0 : index
    %c0_2 = arith.constant 0 : index
    %1 = vector.load %arg1[%c0_1, %c0_2] : memref<128x256xf32, #tpu.memory_space<vmem>>, vector<128x256xf32>
    %cst = arith.constant dense<0.000000e+00> : vector<18x256xf32>
    %2 = tpu.matmul %0, %1, %cst {dimension_numbers = #tpu.dot_dimension_numbers<[1], [0], [0], [1], [0, 0, 1, 1], [], []>} : vector<18x128xf32>, vector<128x256xf32>, vector<18x256xf32> -> vector<18x256xf32>
    %c0_3 = arith.constant 0 : index
    %c0_4 = arith.constant 0 : index
    %3 = vector.load %arg2[%c0_3, %c0_4] : memref<2x256xf32, #tpu.memory_space<vmem>>, vector<1x256xf32>
    %c1 = arith.constant 1 : index
    %c0_5 = arith.constant 0 : index
    %4 = vector.load %arg2[%c1, %c0_5] : memref<2x256xf32, #tpu.memory_space<vmem>>, vector<1x256xf32>
    %cst_6 = arith.constant dense<0.000000e+00> : vector<256xf32>
    %5 = vector.multi_reduction <add>, %2, %cst_6 [0] : vector<18x256xf32> to vector<256xf32>
    %6 = vector.shape_cast %5 : vector<256xf32> to vector<1x256xf32>
    %cst_7 = arith.constant 1.800000e+01 : f32
    %7 = vector.broadcast %cst_7 : f32 to vector<1x256xf32>
    %8 = arith.divf %6, %7 : vector<1x256xf32>
    %9 = vector.broadcast %8 : vector<1x256xf32> to vector<18x256xf32>
    %10 = arith.subf %2, %9 : vector<18x256xf32>
    %11 = arith.mulf %10, %10 : vector<18x256xf32>
    %cst_8 = arith.constant dense<0.000000e+00> : vector<256xf32>
    %12 = vector.multi_reduction <add>, %11, %cst_8 [0] : vector<18x256xf32> to vector<256xf32>
    %13 = vector.shape_cast %12 : vector<256xf32> to vector<1x256xf32>
    %cst_9 = arith.constant 1.800000e+01 : f32
    %14 = vector.broadcast %cst_9 : f32 to vector<1x256xf32>
    %15 = arith.divf %13, %14 : vector<1x256xf32>
    %cst_10 = arith.constant 9.99999974E-6 : f32
    %16 = vector.broadcast %cst_10 : f32 to vector<1x256xf32>
    %17 = arith.addf %15, %16 : vector<1x256xf32>
    %18 = math.rsqrt %17 : vector<1x256xf32>
    %19 = vector.broadcast %18 : vector<1x256xf32> to vector<18x256xf32>
    %20 = arith.mulf %10, %19 : vector<18x256xf32>
    %21 = vector.broadcast %3 : vector<1x256xf32> to vector<18x256xf32>
    %22 = arith.mulf %20, %21 : vector<18x256xf32>
    %23 = vector.broadcast %4 : vector<1x256xf32> to vector<18x256xf32>
    %24 = arith.addf %22, %23 : vector<18x256xf32>
    %cst_11 = arith.constant 0.000000e+00 : f32
    %25 = vector.broadcast %cst_11 : f32 to vector<18x256xf32>
    %26 = arith.maximumf %24, %25 : vector<18x256xf32>
    %c0_12 = arith.constant 0 : index
    %c0_13 = arith.constant 0 : index
    %c0_14 = arith.constant 0 : index
    %27 = vector.load %arg5[%c0_12, %c0_13, %c0_14] : memref<4x3x256xf32, #tpu.memory_space<vmem>>, vector<1x3x256xf32>
    %28 = vector.shape_cast %27 : vector<1x3x256xf32> to vector<3x256xf32>
    %c1_15 = arith.constant 1 : index
    %c0_16 = arith.constant 0 : index
    %c0_17 = arith.constant 0 : index
    %29 = vector.load %arg5[%c1_15, %c0_16, %c0_17] : memref<4x3x256xf32, #tpu.memory_space<vmem>>, vector<1x3x256xf32>
    %30 = vector.shape_cast %29 : vector<1x3x256xf32> to vector<3x256xf32>
    %31 = arith.truncf %26 : vector<18x256xf32> to vector<18x256xbf16>
    %c0_18 = arith.constant 0 : index
    %c0_19 = arith.constant 0 : index
    %c0_20 = arith.constant 0 : index
    %c0_21 = arith.constant 0 : index
    %32 = vector.load %arg4[%c0_18, %c0_19, %c0_20, %c0_21] : memref<4x9x256x256xbf16, #tpu.memory_space<vmem>>, vector<1x1x256x256xbf16>
    %33 = vector.shape_cast %32 : vector<1x1x256x256xbf16> to vector<256x256xbf16>
    %cst_22 = arith.constant dense<0.000000e+00> : vector<18x256xf32>
    %34 = tpu.matmul %31, %33, %cst_22 {dimension_numbers = #tpu.dot_dimension_numbers<[1], [0], [0], [1], [0, 0, 1, 1], [], []>} : vector<18x256xbf16>, vector<256x256xbf16>, vector<18x256xf32> -> vector<18x256xf32>
    %c0_23 = arith.constant 0 : index
    %c0_24 = arith.constant 0 : index
    %c0_25 = arith.constant 0 : index
    %35 = vector.load %arg3[%c0_23, %c0_24, %c0_25] : memref<9x18x18xf32, #tpu.memory_space<vmem>>, vector<1x18x18xf32>
    %36 = vector.shape_cast %35 : vector<1x18x18xf32> to vector<18x18xf32>
    %cst_26 = arith.constant dense<0.000000e+00> : vector<18x256xf32>
    %37 = tpu.matmul %36, %34, %cst_26 {dimension_numbers = #tpu.dot_dimension_numbers<[1], [0], [0], [1], [0, 0, 1, 1], [], []>} : vector<18x18xf32>, vector<18x256xf32>, vector<18x256xf32> -> vector<18x256xf32>
    %c0_27 = arith.constant 0 : index
    %c1_28 = arith.constant 1 : index
    %c0_29 = arith.constant 0 : index
    %c0_30 = arith.constant 0 : index
    %38 = vector.load %arg4[%c0_27, %c1_28, %c0_29, %c0_30] : memref<4x9x256x256xbf16, #tpu.memory_space<vmem>>, vector<1x1x256x256xbf16>
    %39 = vector.shape_cast %38 : vector<1x1x256x256xbf16> to vector<256x256xbf16>
    %cst_31 = arith.constant dense<0.000000e+00> : vector<18x256xf32>
    %40 = tpu.matmul %31, %39, %cst_31 {dimension_numbers = #tpu.dot_dimension_numbers<[1], [0], [0], [1], [0, 0, 1, 1], [], []>} : vector<18x256xbf16>, vector<256x256xbf16>, vector<18x256xf32> -> vector<18x256xf32>
    %c1_32 = arith.constant 1 : index
    %c0_33 = arith.constant 0 : index
    %c0_34 = arith.constant 0 : index
    %41 = vector.load %arg3[%c1_32, %c0_33, %c0_34] : memref<9x18x18xf32, #tpu.memory_space<vmem>>, vector<1x18x18xf32>
    %42 = vector.shape_cast %41 : vector<1x18x18xf32> to vector<18x18xf32>
    %cst_35 = arith.constant dense<0.000000e+00> : vector<18x256xf32>
    %43 = tpu.matmul %42, %40, %cst_35 {dimension_numbers = #tpu.dot_dimension_numbers<[1], [0], [0], [1], [0, 0, 1, 1], [], []>} : vector<18x18xf32>, vector<18x256xf32>, vector<18x256xf32> -> vector<18x256xf32>
    %44 = arith.addf %37, %43 : vector<18x256xf32>
    %c0_36 = arith.constant 0 : index
    %c2 = arith.constant 2 : index
    %c0_37 = arith.constant 0 : index
    %c0_38 = arith.constant 0 : index
    %45 = vector.load %arg4[%c0_36, %c2, %c0_37, %c0_38] : memref<4x9x256x256xbf16, #tpu.memory_space<vmem>>, vector<1x1x256x256xbf16>
    %46 = vector.shape_cast %45 : vector<1x1x256x256xbf16> to vector<256x256xbf16>
    %cst_39 = arith.constant dense<0.000000e+00> : vector<18x256xf32>
    %47 = tpu.matmul %31, %46, %cst_39 {dimension_numbers = #tpu.dot_dimension_numbers<[1], [0], [0], [1], [0, 0, 1, 1], [], []>} : vector<18x256xbf16>, vector<256x256xbf16>, vector<18x256xf32> -> vector<18x256xf32>
    %c2_40 = arith.constant 2 : index
    %c0_41 = arith.constant 0 : index
    %c0_42 = arith.constant 0 : index
    %48 = vector.load %arg3[%c2_40, %c0_41, %c0_42] : memref<9x18x18xf32, #tpu.memory_space<vmem>>, vector<1x18x18xf32>
    %49 = vector.shape_cast %48 : vector<1x18x18xf32> to vector<18x18xf32>
    %cst_43 = arith.constant dense<0.000000e+00> : vector<18x256xf32>
    %50 = tpu.matmul %49, %47, %cst_43 {dimension_numbers = #tpu.dot_dimension_numbers<[1], [0], [0], [1], [0, 0, 1, 1], [], []>} : vector<18x18xf32>, vector<18x256xf32>, vector<18x256xf32> -> vector<18x256xf32>
    %51 = arith.addf %44, %50 : vector<18x256xf32>
    %c0_44 = arith.constant 0 : index
    %c3 = arith.constant 3 : index
    %c0_45 = arith.constant 0 : index
    %c0_46 = arith.constant 0 : index
    %52 = vector.load %arg4[%c0_44, %c3, %c0_45, %c0_46] : memref<4x9x256x256xbf16, #tpu.memory_space<vmem>>, vector<1x1x256x256xbf16>
    %53 = vector.shape_cast %52 : vector<1x1x256x256xbf16> to vector<256x256xbf16>
    %cst_47 = arith.constant dense<0.000000e+00> : vector<18x256xf32>
    %54 = tpu.matmul %31, %53, %cst_47 {dimension_numbers = #tpu.dot_dimension_numbers<[1], [0], [0], [1], [0, 0, 1, 1], [], []>} : vector<18x256xbf16>, vector<256x256xbf16>, vector<18x256xf32> -> vector<18x256xf32>
    %c3_48 = arith.constant 3 : index
    %c0_49 = arith.constant 0 : index
    %c0_50 = arith.constant 0 : index
    %55 = vector.load %arg3[%c3_48, %c0_49, %c0_50] : memref<9x18x18xf32, #tpu.memory_space<vmem>>, vector<1x18x18xf32>
    %56 = vector.shape_cast %55 : vector<1x18x18xf32> to vector<18x18xf32>
    %cst_51 = arith.constant dense<0.000000e+00> : vector<18x256xf32>
    %57 = tpu.matmul %56, %54, %cst_51 {dimension_numbers = #tpu.dot_dimension_numbers<[1], [0], [0], [1], [0, 0, 1, 1], [], []>} : vector<18x18xf32>, vector<18x256xf32>, vector<18x256xf32> -> vector<18x256xf32>
    %58 = arith.addf %51, %57 : vector<18x256xf32>
    %c0_52 = arith.constant 0 : index
    %c4 = arith.constant 4 : index
    %c0_53 = arith.constant 0 : index
    %c0_54 = arith.constant 0 : index
    %59 = vector.load %arg4[%c0_52, %c4, %c0_53, %c0_54] : memref<4x9x256x256xbf16, #tpu.memory_space<vmem>>, vector<1x1x256x256xbf16>
    %60 = vector.shape_cast %59 : vector<1x1x256x256xbf16> to vector<256x256xbf16>
    %cst_55 = arith.constant dense<0.000000e+00> : vector<18x256xf32>
    %61 = tpu.matmul %31, %60, %cst_55 {dimension_numbers = #tpu.dot_dimension_numbers<[1], [0], [0], [1], [0, 0, 1, 1], [], []>} : vector<18x256xbf16>, vector<256x256xbf16>, vector<18x256xf32> -> vector<18x256xf32>
    %c4_56 = arith.constant 4 : index
    %c0_57 = arith.constant 0 : index
    %c0_58 = arith.constant 0 : index
    %62 = vector.load %arg3[%c4_56, %c0_57, %c0_58] : memref<9x18x18xf32, #tpu.memory_space<vmem>>, vector<1x18x18xf32>
    %63 = vector.shape_cast %62 : vector<1x18x18xf32> to vector<18x18xf32>
    %cst_59 = arith.constant dense<0.000000e+00> : vector<18x256xf32>
    %64 = tpu.matmul %63, %61, %cst_59 {dimension_numbers = #tpu.dot_dimension_numbers<[1], [0], [0], [1], [0, 0, 1, 1], [], []>} : vector<18x18xf32>, vector<18x256xf32>, vector<18x256xf32> -> vector<18x256xf32>
    %65 = arith.addf %58, %64 : vector<18x256xf32>
    %c0_60 = arith.constant 0 : index
    %c5 = arith.constant 5 : index
    %c0_61 = arith.constant 0 : index
    %c0_62 = arith.constant 0 : index
    %66 = vector.load %arg4[%c0_60, %c5, %c0_61, %c0_62] : memref<4x9x256x256xbf16, #tpu.memory_space<vmem>>, vector<1x1x256x256xbf16>
    %67 = vector.shape_cast %66 : vector<1x1x256x256xbf16> to vector<256x256xbf16>
    %cst_63 = arith.constant dense<0.000000e+00> : vector<18x256xf32>
    %68 = tpu.matmul %31, %67, %cst_63 {dimension_numbers = #tpu.dot_dimension_numbers<[1], [0], [0], [1], [0, 0, 1, 1], [], []>} : vector<18x256xbf16>, vector<256x256xbf16>, vector<18x256xf32> -> vector<18x256xf32>
    %c5_64 = arith.constant 5 : index
    %c0_65 = arith.constant 0 : index
    %c0_66 = arith.constant 0 : index
    %69 = vector.load %arg3[%c5_64, %c0_65, %c0_66] : memref<9x18x18xf32, #tpu.memory_space<vmem>>, vector<1x18x18xf32>
    %70 = vector.shape_cast %69 : vector<1x18x18xf32> to vector<18x18xf32>
    %cst_67 = arith.constant dense<0.000000e+00> : vector<18x256xf32>
    %71 = tpu.matmul %70, %68, %cst_67 {dimension_numbers = #tpu.dot_dimension_numbers<[1], [0], [0], [1], [0, 0, 1, 1], [], []>} : vector<18x18xf32>, vector<18x256xf32>, vector<18x256xf32> -> vector<18x256xf32>
    %72 = arith.addf %65, %71 : vector<18x256xf32>
    %c0_68 = arith.constant 0 : index
    %c6 = arith.constant 6 : index
    %c0_69 = arith.constant 0 : index
    %c0_70 = arith.constant 0 : index
    %73 = vector.load %arg4[%c0_68, %c6, %c0_69, %c0_70] : memref<4x9x256x256xbf16, #tpu.memory_space<vmem>>, vector<1x1x256x256xbf16>
    %74 = vector.shape_cast %73 : vector<1x1x256x256xbf16> to vector<256x256xbf16>
    %cst_71 = arith.constant dense<0.000000e+00> : vector<18x256xf32>
    %75 = tpu.matmul %31, %74, %cst_71 {dimension_numbers = #tpu.dot_dimension_numbers<[1], [0], [0], [1], [0, 0, 1, 1], [], []>} : vector<18x256xbf16>, vector<256x256xbf16>, vector<18x256xf32> -> vector<18x256xf32>
    %c6_72 = arith.constant 6 : index
    %c0_73 = arith.constant 0 : index
    %c0_74 = arith.constant 0 : index
    %76 = vector.load %arg3[%c6_72, %c0_73, %c0_74] : memref<9x18x18xf32, #tpu.memory_space<vmem>>, vector<1x18x18xf32>
    %77 = vector.shape_cast %76 : vector<1x18x18xf32> to vector<18x18xf32>
    %cst_75 = arith.constant dense<0.000000e+00> : vector<18x256xf32>
    %78 = tpu.matmul %77, %75, %cst_75 {dimension_numbers = #tpu.dot_dimension_numbers<[1], [0], [0], [1], [0, 0, 1, 1], [], []>} : vector<18x18xf32>, vector<18x256xf32>, vector<18x256xf32> -> vector<18x256xf32>
    %79 = arith.addf %72, %78 : vector<18x256xf32>
    %c0_76 = arith.constant 0 : index
    %c7 = arith.constant 7 : index
    %c0_77 = arith.constant 0 : index
    %c0_78 = arith.constant 0 : index
    %80 = vector.load %arg4[%c0_76, %c7, %c0_77, %c0_78] : memref<4x9x256x256xbf16, #tpu.memory_space<vmem>>, vector<1x1x256x256xbf16>
    %81 = vector.shape_cast %80 : vector<1x1x256x256xbf16> to vector<256x256xbf16>
    %cst_79 = arith.constant dense<0.000000e+00> : vector<18x256xf32>
    %82 = tpu.matmul %31, %81, %cst_79 {dimension_numbers = #tpu.dot_dimension_numbers<[1], [0], [0], [1], [0, 0, 1, 1], [], []>} : vector<18x256xbf16>, vector<256x256xbf16>, vector<18x256xf32> -> vector<18x256xf32>
    %c7_80 = arith.constant 7 : index
    %c0_81 = arith.constant 0 : index
    %c0_82 = arith.constant 0 : index
    %83 = vector.load %arg3[%c7_80, %c0_81, %c0_82] : memref<9x18x18xf32, #tpu.memory_space<vmem>>, vector<1x18x18xf32>
    %84 = vector.shape_cast %83 : vector<1x18x18xf32> to vector<18x18xf32>
    %cst_83 = arith.constant dense<0.000000e+00> : vector<18x256xf32>
    %85 = tpu.matmul %84, %82, %cst_83 {dimension_numbers = #tpu.dot_dimension_numbers<[1], [0], [0], [1], [0, 0, 1, 1], [], []>} : vector<18x18xf32>, vector<18x256xf32>, vector<18x256xf32> -> vector<18x256xf32>
    %86 = arith.addf %79, %85 : vector<18x256xf32>
    %c0_84 = arith.constant 0 : index
    %c8 = arith.constant 8 : index
    %c0_85 = arith.constant 0 : index
    %c0_86 = arith.constant 0 : index
    %87 = vector.load %arg4[%c0_84, %c8, %c0_85, %c0_86] : memref<4x9x256x256xbf16, #tpu.memory_space<vmem>>, vector<1x1x256x256xbf16>
    %88 = vector.shape_cast %87 : vector<1x1x256x256xbf16> to vector<256x256xbf16>
    %cst_87 = arith.constant dense<0.000000e+00> : vector<18x256xf32>
    %89 = tpu.matmul %31, %88, %cst_87 {dimension_numbers = #tpu.dot_dimension_numbers<[1], [0], [0], [1], [0, 0, 1, 1], [], []>} : vector<18x256xbf16>, vector<256x256xbf16>, vector<18x256xf32> -> vector<18x256xf32>
    %c8_88 = arith.constant 8 : index
    %c0_89 = arith.constant 0 : index
    %c0_90 = arith.constant 0 : index
    %90 = vector.load %arg3[%c8_88, %c0_89, %c0_90] : memref<9x18x18xf32, #tpu.memory_space<vmem>>, vector<1x18x18xf32>
    %91 = vector.shape_cast %90 : vector<1x18x18xf32> to vector<18x18xf32>
    %cst_91 = arith.constant dense<0.000000e+00> : vector<18x256xf32>
    %92 = tpu.matmul %91, %89, %cst_91 {dimension_numbers = #tpu.dot_dimension_numbers<[1], [0], [0], [1], [0, 0, 1, 1], [], []>} : vector<18x18xf32>, vector<18x256xf32>, vector<18x256xf32> -> vector<18x256xf32>
    %93 = arith.addf %86, %92 : vector<18x256xf32>
    %94 = vector.extract_strided_slice %28 {offsets = [0, 0], sizes = [1, 256], strides = [1, 1]} : vector<3x256xf32> to vector<1x256xf32>
    %95 = vector.broadcast %94 : vector<1x256xf32> to vector<18x256xf32>
    %96 = arith.addf %93, %95 : vector<18x256xf32>
    %97 = vector.extract_strided_slice %28 {offsets = [1, 0], sizes = [1, 256], strides = [1, 1]} : vector<3x256xf32> to vector<1x256xf32>
    %98 = vector.extract_strided_slice %28 {offsets = [2, 0], sizes = [1, 256], strides = [1, 1]} : vector<3x256xf32> to vector<1x256xf32>
    %cst_92 = arith.constant dense<0.000000e+00> : vector<256xf32>
    %99 = vector.multi_reduction <add>, %96, %cst_92 [0] : vector<18x256xf32> to vector<256xf32>
    %100 = vector.shape_cast %99 : vector<256xf32> to vector<1x256xf32>
    %cst_93 = arith.constant 1.800000e+01 : f32
    %101 = vector.broadcast %cst_93 : f32 to vector<1x256xf32>
    %102 = arith.divf %100, %101 : vector<1x256xf32>
    %103 = vector.broadcast %102 : vector<1x256xf32> to vector<18x256xf32>
    %104 = arith.subf %96, %103 : vector<18x256xf32>
    %105 = arith.mulf %104, %104 : vector<18x256xf32>
    %cst_94 = arith.constant dense<0.000000e+00> : vector<256xf32>
    %106 = vector.multi_reduction <add>, %105, %cst_94 [0] : vector<18x256xf32> to vector<256xf32>
    %107 = vector.shape_cast %106 : vector<256xf32> to vector<1x256xf32>
    %cst_95 = arith.constant 1.800000e+01 : f32
    %108 = vector.broadcast %cst_95 : f32 to vector<1x256xf32>
    %109 = arith.divf %107, %108 : vector<1x256xf32>
    %cst_96 = arith.constant 9.99999974E-6 : f32
    %110 = vector.broadcast %cst_96 : f32 to vector<1x256xf32>
    %111 = arith.addf %109, %110 : vector<1x256xf32>
    %112 = math.rsqrt %111 : vector<1x256xf32>
    %113 = vector.broadcast %112 : vector<1x256xf32> to vector<18x256xf32>
    %114 = arith.mulf %104, %113 : vector<18x256xf32>
    %115 = vector.broadcast %97 : vector<1x256xf32> to vector<18x256xf32>
    %116 = arith.mulf %114, %115 : vector<18x256xf32>
    %117 = vector.broadcast %98 : vector<1x256xf32> to vector<18x256xf32>
    %118 = arith.addf %116, %117 : vector<18x256xf32>
    %cst_97 = arith.constant 0.000000e+00 : f32
    %119 = vector.broadcast %cst_97 : f32 to vector<18x256xf32>
    %120 = arith.maximumf %118, %119 : vector<18x256xf32>
    %121 = arith.truncf %120 : vector<18x256xf32> to vector<18x256xbf16>
    %c1_98 = arith.constant 1 : index
    %c0_99 = arith.constant 0 : index
    %c0_100 = arith.constant 0 : index
    %c0_101 = arith.constant 0 : index
    %122 = vector.load %arg4[%c1_98, %c0_99, %c0_100, %c0_101] : memref<4x9x256x256xbf16, #tpu.memory_space<vmem>>, vector<1x1x256x256xbf16>
    %123 = vector.shape_cast %122 : vector<1x1x256x256xbf16> to vector<256x256xbf16>
    %cst_102 = arith.constant dense<0.000000e+00> : vector<18x256xf32>
    %124 = tpu.matmul %121, %123, %cst_102 {dimension_numbers = #tpu.dot_dimension_numbers<[1], [0], [0], [1], [0, 0, 1, 1], [], []>} : vector<18x256xbf16>, vector<256x256xbf16>, vector<18x256xf32> -> vector<18x256xf32>
    %c0_103 = arith.constant 0 : index
    %c0_104 = arith.constant 0 : index
    %c0_105 = arith.constant 0 : index
    %125 = vector.load %arg3[%c0_103, %c0_104, %c0_105] : memref<9x18x18xf32, #tpu.memory_space<vmem>>, vector<1x18x18xf32>
    %126 = vector.shape_cast %125 : vector<1x18x18xf32> to vector<18x18xf32>
    %cst_106 = arith.constant dense<0.000000e+00> : vector<18x256xf32>
    %127 = tpu.matmul %126, %124, %cst_106 {dimension_numbers = #tpu.dot_dimension_numbers<[1], [0], [0], [1], [0, 0, 1, 1], [], []>} : vector<18x18xf32>, vector<18x256xf32>, vector<18x256xf32> -> vector<18x256xf32>
    %c1_107 = arith.constant 1 : index
    %c1_108 = arith.constant 1 : index
    %c0_109 = arith.constant 0 : index
    %c0_110 = arith.constant 0 : index
    %128 = vector.load %arg4[%c1_107, %c1_108, %c0_109, %c0_110] : memref<4x9x256x256xbf16, #tpu.memory_space<vmem>>, vector<1x1x256x256xbf16>
    %129 = vector.shape_cast %128 : vector<1x1x256x256xbf16> to vector<256x256xbf16>
    %cst_111 = arith.constant dense<0.000000e+00> : vector<18x256xf32>
    %130 = tpu.matmul %121, %129, %cst_111 {dimension_numbers = #tpu.dot_dimension_numbers<[1], [0], [0], [1], [0, 0, 1, 1], [], []>} : vector<18x256xbf16>, vector<256x256xbf16>, vector<18x256xf32> -> vector<18x256xf32>
    %c1_112 = arith.constant 1 : index
    %c0_113 = arith.constant 0 : index
    %c0_114 = arith.constant 0 : index
    %131 = vector.load %arg3[%c1_112, %c0_113, %c0_114] : memref<9x18x18xf32, #tpu.memory_space<vmem>>, vector<1x18x18xf32>
    %132 = vector.shape_cast %131 : vector<1x18x18xf32> to vector<18x18xf32>
    %cst_115 = arith.constant dense<0.000000e+00> : vector<18x256xf32>
    %133 = tpu.matmul %132, %130, %cst_115 {dimension_numbers = #tpu.dot_dimension_numbers<[1], [0], [0], [1], [0, 0, 1, 1], [], []>} : vector<18x18xf32>, vector<18x256xf32>, vector<18x256xf32> -> vector<18x256xf32>
    %134 = arith.addf %127, %133 : vector<18x256xf32>
    %c1_116 = arith.constant 1 : index
    %c2_117 = arith.constant 2 : index
    %c0_118 = arith.constant 0 : index
    %c0_119 = arith.constant 0 : index
    %135 = vector.load %arg4[%c1_116, %c2_117, %c0_118, %c0_119] : memref<4x9x256x256xbf16, #tpu.memory_space<vmem>>, vector<1x1x256x256xbf16>
    %136 = vector.shape_cast %135 : vector<1x1x256x256xbf16> to vector<256x256xbf16>
    %cst_120 = arith.constant dense<0.000000e+00> : vector<18x256xf32>
    %137 = tpu.matmul %121, %136, %cst_120 {dimension_numbers = #tpu.dot_dimension_numbers<[1], [0], [0], [1], [0, 0, 1, 1], [], []>} : vector<18x256xbf16>, vector<256x256xbf16>, vector<18x256xf32> -> vector<18x256xf32>
    %c2_121 = arith.constant 2 : index
    %c0_122 = arith.constant 0 : index
    %c0_123 = arith.constant 0 : index
    %138 = vector.load %arg3[%c2_121, %c0_122, %c0_123] : memref<9x18x18xf32, #tpu.memory_space<vmem>>, vector<1x18x18xf32>
    %139 = vector.shape_cast %138 : vector<1x18x18xf32> to vector<18x18xf32>
    %cst_124 = arith.constant dense<0.000000e+00> : vector<18x256xf32>
    %140 = tpu.matmul %139, %137, %cst_124 {dimension_numbers = #tpu.dot_dimension_numbers<[1], [0], [0], [1], [0, 0, 1, 1], [], []>} : vector<18x18xf32>, vector<18x256xf32>, vector<18x256xf32> -> vector<18x256xf32>
    %141 = arith.addf %134, %140 : vector<18x256xf32>
    %c1_125 = arith.constant 1 : index
    %c3_126 = arith.constant 3 : index
    %c0_127 = arith.constant 0 : index
    %c0_128 = arith.constant 0 : index
    %142 = vector.load %arg4[%c1_125, %c3_126, %c0_127, %c0_128] : memref<4x9x256x256xbf16, #tpu.memory_space<vmem>>, vector<1x1x256x256xbf16>
    %143 = vector.shape_cast %142 : vector<1x1x256x256xbf16> to vector<256x256xbf16>
    %cst_129 = arith.constant dense<0.000000e+00> : vector<18x256xf32>
    %144 = tpu.matmul %121, %143, %cst_129 {dimension_numbers = #tpu.dot_dimension_numbers<[1], [0], [0], [1], [0, 0, 1, 1], [], []>} : vector<18x256xbf16>, vector<256x256xbf16>, vector<18x256xf32> -> vector<18x256xf32>
    %c3_130 = arith.constant 3 : index
    %c0_131 = arith.constant 0 : index
    %c0_132 = arith.constant 0 : index
    %145 = vector.load %arg3[%c3_130, %c0_131, %c0_132] : memref<9x18x18xf32, #tpu.memory_space<vmem>>, vector<1x18x18xf32>
    %146 = vector.shape_cast %145 : vector<1x18x18xf32> to vector<18x18xf32>
    %cst_133 = arith.constant dense<0.000000e+00> : vector<18x256xf32>
    %147 = tpu.matmul %146, %144, %cst_133 {dimension_numbers = #tpu.dot_dimension_numbers<[1], [0], [0], [1], [0, 0, 1, 1], [], []>} : vector<18x18xf32>, vector<18x256xf32>, vector<18x256xf32> -> vector<18x256xf32>
    %148 = arith.addf %141, %147 : vector<18x256xf32>
    %c1_134 = arith.constant 1 : index
    %c4_135 = arith.constant 4 : index
    %c0_136 = arith.constant 0 : index
    %c0_137 = arith.constant 0 : index
    %149 = vector.load %arg4[%c1_134, %c4_135, %c0_136, %c0_137] : memref<4x9x256x256xbf16, #tpu.memory_space<vmem>>, vector<1x1x256x256xbf16>
    %150 = vector.shape_cast %149 : vector<1x1x256x256xbf16> to vector<256x256xbf16>
    %cst_138 = arith.constant dense<0.000000e+00> : vector<18x256xf32>
    %151 = tpu.matmul %121, %150, %cst_138 {dimension_numbers = #tpu.dot_dimension_numbers<[1], [0], [0], [1], [0, 0, 1, 1], [], []>} : vector<18x256xbf16>, vector<256x256xbf16>, vector<18x256xf32> -> vector<18x256xf32>
    %c4_139 = arith.constant 4 : index
    %c0_140 = arith.constant 0 : index
    %c0_141 = arith.constant 0 : index
    %152 = vector.load %arg3[%c4_139, %c0_140, %c0_141] : memref<9x18x18xf32, #tpu.memory_space<vmem>>, vector<1x18x18xf32>
    %153 = vector.shape_cast %152 : vector<1x18x18xf32> to vector<18x18xf32>
    %cst_142 = arith.constant dense<0.000000e+00> : vector<18x256xf32>
    %154 = tpu.matmul %153, %151, %cst_142 {dimension_numbers = #tpu.dot_dimension_numbers<[1], [0], [0], [1], [0, 0, 1, 1], [], []>} : vector<18x18xf32>, vector<18x256xf32>, vector<18x256xf32> -> vector<18x256xf32>
    %155 = arith.addf %148, %154 : vector<18x256xf32>
    %c1_143 = arith.constant 1 : index
    %c5_144 = arith.constant 5 : index
    %c0_145 = arith.constant 0 : index
    %c0_146 = arith.constant 0 : index
    %156 = vector.load %arg4[%c1_143, %c5_144, %c0_145, %c0_146] : memref<4x9x256x256xbf16, #tpu.memory_space<vmem>>, vector<1x1x256x256xbf16>
    %157 = vector.shape_cast %156 : vector<1x1x256x256xbf16> to vector<256x256xbf16>
    %cst_147 = arith.constant dense<0.000000e+00> : vector<18x256xf32>
    %158 = tpu.matmul %121, %157, %cst_147 {dimension_numbers = #tpu.dot_dimension_numbers<[1], [0], [0], [1], [0, 0, 1, 1], [], []>} : vector<18x256xbf16>, vector<256x256xbf16>, vector<18x256xf32> -> vector<18x256xf32>
    %c5_148 = arith.constant 5 : index
    %c0_149 = arith.constant 0 : index
    %c0_150 = arith.constant 0 : index
    %159 = vector.load %arg3[%c5_148, %c0_149, %c0_150] : memref<9x18x18xf32, #tpu.memory_space<vmem>>, vector<1x18x18xf32>
    %160 = vector.shape_cast %159 : vector<1x18x18xf32> to vector<18x18xf32>
    %cst_151 = arith.constant dense<0.000000e+00> : vector<18x256xf32>
    %161 = tpu.matmul %160, %158, %cst_151 {dimension_numbers = #tpu.dot_dimension_numbers<[1], [0], [0], [1], [0, 0, 1, 1], [], []>} : vector<18x18xf32>, vector<18x256xf32>, vector<18x256xf32> -> vector<18x256xf32>
    %162 = arith.addf %155, %161 : vector<18x256xf32>
    %c1_152 = arith.constant 1 : index
    %c6_153 = arith.constant 6 : index
    %c0_154 = arith.constant 0 : index
    %c0_155 = arith.constant 0 : index
    %163 = vector.load %arg4[%c1_152, %c6_153, %c0_154, %c0_155] : memref<4x9x256x256xbf16, #tpu.memory_space<vmem>>, vector<1x1x256x256xbf16>
    %164 = vector.shape_cast %163 : vector<1x1x256x256xbf16> to vector<256x256xbf16>
    %cst_156 = arith.constant dense<0.000000e+00> : vector<18x256xf32>
    %165 = tpu.matmul %121, %164, %cst_156 {dimension_numbers = #tpu.dot_dimension_numbers<[1], [0], [0], [1], [0, 0, 1, 1], [], []>} : vector<18x256xbf16>, vector<256x256xbf16>, vector<18x256xf32> -> vector<18x256xf32>
    %c6_157 = arith.constant 6 : index
    %c0_158 = arith.constant 0 : index
    %c0_159 = arith.constant 0 : index
    %166 = vector.load %arg3[%c6_157, %c0_158, %c0_159] : memref<9x18x18xf32, #tpu.memory_space<vmem>>, vector<1x18x18xf32>
    %167 = vector.shape_cast %166 : vector<1x18x18xf32> to vector<18x18xf32>
    %cst_160 = arith.constant dense<0.000000e+00> : vector<18x256xf32>
    %168 = tpu.matmul %167, %165, %cst_160 {dimension_numbers = #tpu.dot_dimension_numbers<[1], [0], [0], [1], [0, 0, 1, 1], [], []>} : vector<18x18xf32>, vector<18x256xf32>, vector<18x256xf32> -> vector<18x256xf32>
    %169 = arith.addf %162, %168 : vector<18x256xf32>
    %c1_161 = arith.constant 1 : index
    %c7_162 = arith.constant 7 : index
    %c0_163 = arith.constant 0 : index
    %c0_164 = arith.constant 0 : index
    %170 = vector.load %arg4[%c1_161, %c7_162, %c0_163, %c0_164] : memref<4x9x256x256xbf16, #tpu.memory_space<vmem>>, vector<1x1x256x256xbf16>
    %171 = vector.shape_cast %170 : vector<1x1x256x256xbf16> to vector<256x256xbf16>
    %cst_165 = arith.constant dense<0.000000e+00> : vector<18x256xf32>
    %172 = tpu.matmul %121, %171, %cst_165 {dimension_numbers = #tpu.dot_dimension_numbers<[1], [0], [0], [1], [0, 0, 1, 1], [], []>} : vector<18x256xbf16>, vector<256x256xbf16>, vector<18x256xf32> -> vector<18x256xf32>
    %c7_166 = arith.constant 7 : index
    %c0_167 = arith.constant 0 : index
    %c0_168 = arith.constant 0 : index
    %173 = vector.load %arg3[%c7_166, %c0_167, %c0_168] : memref<9x18x18xf32, #tpu.memory_space<vmem>>, vector<1x18x18xf32>
    %174 = vector.shape_cast %173 : vector<1x18x18xf32> to vector<18x18xf32>
    %cst_169 = arith.constant dense<0.000000e+00> : vector<18x256xf32>
    %175 = tpu.matmul %174, %172, %cst_169 {dimension_numbers = #tpu.dot_dimension_numbers<[1], [0], [0], [1], [0, 0, 1, 1], [], []>} : vector<18x18xf32>, vector<18x256xf32>, vector<18x256xf32> -> vector<18x256xf32>
    %176 = arith.addf %169, %175 : vector<18x256xf32>
    %c1_170 = arith.constant 1 : index
    %c8_171 = arith.constant 8 : index
    %c0_172 = arith.constant 0 : index
    %c0_173 = arith.constant 0 : index
    %177 = vector.load %arg4[%c1_170, %c8_171, %c0_172, %c0_173] : memref<4x9x256x256xbf16, #tpu.memory_space<vmem>>, vector<1x1x256x256xbf16>
    %178 = vector.shape_cast %177 : vector<1x1x256x256xbf16> to vector<256x256xbf16>
    %cst_174 = arith.constant dense<0.000000e+00> : vector<18x256xf32>
    %179 = tpu.matmul %121, %178, %cst_174 {dimension_numbers = #tpu.dot_dimension_numbers<[1], [0], [0], [1], [0, 0, 1, 1], [], []>} : vector<18x256xbf16>, vector<256x256xbf16>, vector<18x256xf32> -> vector<18x256xf32>
    %c8_175 = arith.constant 8 : index
    %c0_176 = arith.constant 0 : index
    %c0_177 = arith.constant 0 : index
    %180 = vector.load %arg3[%c8_175, %c0_176, %c0_177] : memref<9x18x18xf32, #tpu.memory_space<vmem>>, vector<1x18x18xf32>
    %181 = vector.shape_cast %180 : vector<1x18x18xf32> to vector<18x18xf32>
    %cst_178 = arith.constant dense<0.000000e+00> : vector<18x256xf32>
    %182 = tpu.matmul %181, %179, %cst_178 {dimension_numbers = #tpu.dot_dimension_numbers<[1], [0], [0], [1], [0, 0, 1, 1], [], []>} : vector<18x18xf32>, vector<18x256xf32>, vector<18x256xf32> -> vector<18x256xf32>
    %183 = arith.addf %176, %182 : vector<18x256xf32>
    %184 = vector.extract_strided_slice %30 {offsets = [0, 0], sizes = [1, 256], strides = [1, 1]} : vector<3x256xf32> to vector<1x256xf32>
    %185 = vector.broadcast %184 : vector<1x256xf32> to vector<18x256xf32>
    %186 = arith.addf %183, %185 : vector<18x256xf32>
    %187 = vector.extract_strided_slice %30 {offsets = [1, 0], sizes = [1, 256], strides = [1, 1]} : vector<3x256xf32> to vector<1x256xf32>
    %188 = vector.extract_strided_slice %30 {offsets = [2, 0], sizes = [1, 256], strides = [1, 1]} : vector<3x256xf32> to vector<1x256xf32>
    %cst_179 = arith.constant dense<0.000000e+00> : vector<256xf32>
    %189 = vector.multi_reduction <add>, %186, %cst_179 [0] : vector<18x256xf32> to vector<256xf32>
    %190 = vector.shape_cast %189 : vector<256xf32> to vector<1x256xf32>
    %cst_180 = arith.constant 1.800000e+01 : f32
    %191 = vector.broadcast %cst_180 : f32 to vector<1x256xf32>
    %192 = arith.divf %190, %191 : vector<1x256xf32>
    %193 = vector.broadcast %192 : vector<1x256xf32> to vector<18x256xf32>
    %194 = arith.subf %186, %193 : vector<18x256xf32>
    %195 = arith.mulf %194, %194 : vector<18x256xf32>
    %cst_181 = arith.constant dense<0.000000e+00> : vector<256xf32>
    %196 = vector.multi_reduction <add>, %195, %cst_181 [0] : vector<18x256xf32> to vector<256xf32>
    %197 = vector.shape_cast %196 : vector<256xf32> to vector<1x256xf32>
    %cst_182 = arith.constant 1.800000e+01 : f32
    %198 = vector.broadcast %cst_182 : f32 to vector<1x256xf32>
    %199 = arith.divf %197, %198 : vector<1x256xf32>
    %cst_183 = arith.constant 9.99999974E-6 : f32
    %200 = vector.broadcast %cst_183 : f32 to vector<1x256xf32>
    %201 = arith.addf %199, %200 : vector<1x256xf32>
    %202 = math.rsqrt %201 : vector<1x256xf32>
    %203 = vector.broadcast %202 : vector<1x256xf32> to vector<18x256xf32>
    %204 = arith.mulf %194, %203 : vector<18x256xf32>
    %205 = vector.broadcast %187 : vector<1x256xf32> to vector<18x256xf32>
    %206 = arith.mulf %204, %205 : vector<18x256xf32>
    %207 = vector.broadcast %188 : vector<1x256xf32> to vector<18x256xf32>
    %208 = arith.addf %206, %207 : vector<18x256xf32>
    %209 = arith.addf %208, %26 : vector<18x256xf32>
    %cst_184 = arith.constant 0.000000e+00 : f32
    %210 = vector.broadcast %cst_184 : f32 to vector<18x256xf32>
    %211 = arith.maximumf %209, %210 : vector<18x256xf32>
    %c2_185 = arith.constant 2 : index
    %c0_186 = arith.constant 0 : index
    %c0_187 = arith.constant 0 : index
    %212 = vector.load %arg5[%c2_185, %c0_186, %c0_187] : memref<4x3x256xf32, #tpu.memory_space<vmem>>, vector<1x3x256xf32>
    %213 = vector.shape_cast %212 : vector<1x3x256xf32> to vector<3x256xf32>
    %c3_188 = arith.constant 3 : index
    %c0_189 = arith.constant 0 : index
    %c0_190 = arith.constant 0 : index
    %214 = vector.load %arg5[%c3_188, %c0_189, %c0_190] : memref<4x3x256xf32, #tpu.memory_space<vmem>>, vector<1x3x256xf32>
    %215 = vector.shape_cast %214 : vector<1x3x256xf32> to vector<3x256xf32>
    %216 = arith.truncf %211 : vector<18x256xf32> to vector<18x256xbf16>
    %c2_191 = arith.constant 2 : index
    %c0_192 = arith.constant 0 : index
    %c0_193 = arith.constant 0 : index
    %c0_194 = arith.constant 0 : index
    %217 = vector.load %arg4[%c2_191, %c0_192, %c0_193, %c0_194] : memref<4x9x256x256xbf16, #tpu.memory_space<vmem>>, vector<1x1x256x256xbf16>
    %218 = vector.shape_cast %217 : vector<1x1x256x256xbf16> to vector<256x256xbf16>
    %cst_195 = arith.constant dense<0.000000e+00> : vector<18x256xf32>
    %219 = tpu.matmul %216, %218, %cst_195 {dimension_numbers = #tpu.dot_dimension_numbers<[1], [0], [0], [1], [0, 0, 1, 1], [], []>} : vector<18x256xbf16>, vector<256x256xbf16>, vector<18x256xf32> -> vector<18x256xf32>
    %c0_196 = arith.constant 0 : index
    %c0_197 = arith.constant 0 : index
    %c0_198 = arith.constant 0 : index
    %220 = vector.load %arg3[%c0_196, %c0_197, %c0_198] : memref<9x18x18xf32, #tpu.memory_space<vmem>>, vector<1x18x18xf32>
    %221 = vector.shape_cast %220 : vector<1x18x18xf32> to vector<18x18xf32>
    %cst_199 = arith.constant dense<0.000000e+00> : vector<18x256xf32>
    %222 = tpu.matmul %221, %219, %cst_199 {dimension_numbers = #tpu.dot_dimension_numbers<[1], [0], [0], [1], [0, 0, 1, 1], [], []>} : vector<18x18xf32>, vector<18x256xf32>, vector<18x256xf32> -> vector<18x256xf32>
    %c2_200 = arith.constant 2 : index
    %c1_201 = arith.constant 1 : index
    %c0_202 = arith.constant 0 : index
    %c0_203 = arith.constant 0 : index
    %223 = vector.load %arg4[%c2_200, %c1_201, %c0_202, %c0_203] : memref<4x9x256x256xbf16, #tpu.memory_space<vmem>>, vector<1x1x256x256xbf16>
    %224 = vector.shape_cast %223 : vector<1x1x256x256xbf16> to vector<256x256xbf16>
    %cst_204 = arith.constant dense<0.000000e+00> : vector<18x256xf32>
    %225 = tpu.matmul %216, %224, %cst_204 {dimension_numbers = #tpu.dot_dimension_numbers<[1], [0], [0], [1], [0, 0, 1, 1], [], []>} : vector<18x256xbf16>, vector<256x256xbf16>, vector<18x256xf32> -> vector<18x256xf32>
    %c1_205 = arith.constant 1 : index
    %c0_206 = arith.constant 0 : index
    %c0_207 = arith.constant 0 : index
    %226 = vector.load %arg3[%c1_205, %c0_206, %c0_207] : memref<9x18x18xf32, #tpu.memory_space<vmem>>, vector<1x18x18xf32>
    %227 = vector.shape_cast %226 : vector<1x18x18xf32> to vector<18x18xf32>
    %cst_208 = arith.constant dense<0.000000e+00> : vector<18x256xf32>
    %228 = tpu.matmul %227, %225, %cst_208 {dimension_numbers = #tpu.dot_dimension_numbers<[1], [0], [0], [1], [0, 0, 1, 1], [], []>} : vector<18x18xf32>, vector<18x256xf32>, vector<18x256xf32> -> vector<18x256xf32>
    %229 = arith.addf %222, %228 : vector<18x256xf32>
    %c2_209 = arith.constant 2 : index
    %c2_210 = arith.constant 2 : index
    %c0_211 = arith.constant 0 : index
    %c0_212 = arith.constant 0 : index
    %230 = vector.load %arg4[%c2_209, %c2_210, %c0_211, %c0_212] : memref<4x9x256x256xbf16, #tpu.memory_space<vmem>>, vector<1x1x256x256xbf16>
    %231 = vector.shape_cast %230 : vector<1x1x256x256xbf16> to vector<256x256xbf16>
    %cst_213 = arith.constant dense<0.000000e+00> : vector<18x256xf32>
    %232 = tpu.matmul %216, %231, %cst_213 {dimension_numbers = #tpu.dot_dimension_numbers<[1], [0], [0], [1], [0, 0, 1, 1], [], []>} : vector<18x256xbf16>, vector<256x256xbf16>, vector<18x256xf32> -> vector<18x256xf32>
    %c2_214 = arith.constant 2 : index
    %c0_215 = arith.constant 0 : index
    %c0_216 = arith.constant 0 : index
    %233 = vector.load %arg3[%c2_214, %c0_215, %c0_216] : memref<9x18x18xf32, #tpu.memory_space<vmem>>, vector<1x18x18xf32>
    %234 = vector.shape_cast %233 : vector<1x18x18xf32> to vector<18x18xf32>
    %cst_217 = arith.constant dense<0.000000e+00> : vector<18x256xf32>
    %235 = tpu.matmul %234, %232, %cst_217 {dimension_numbers = #tpu.dot_dimension_numbers<[1], [0], [0], [1], [0, 0, 1, 1], [], []>} : vector<18x18xf32>, vector<18x256xf32>, vector<18x256xf32> -> vector<18x256xf32>
    %236 = arith.addf %229, %235 : vector<18x256xf32>
    %c2_218 = arith.constant 2 : index
    %c3_219 = arith.constant 3 : index
    %c0_220 = arith.constant 0 : index
    %c0_221 = arith.constant 0 : index
    %237 = vector.load %arg4[%c2_218, %c3_219, %c0_220, %c0_221] : memref<4x9x256x256xbf16, #tpu.memory_space<vmem>>, vector<1x1x256x256xbf16>
    %238 = vector.shape_cast %237 : vector<1x1x256x256xbf16> to vector<256x256xbf16>
    %cst_222 = arith.constant dense<0.000000e+00> : vector<18x256xf32>
    %239 = tpu.matmul %216, %238, %cst_222 {dimension_numbers = #tpu.dot_dimension_numbers<[1], [0], [0], [1], [0, 0, 1, 1], [], []>} : vector<18x256xbf16>, vector<256x256xbf16>, vector<18x256xf32> -> vector<18x256xf32>
    %c3_223 = arith.constant 3 : index
    %c0_224 = arith.constant 0 : index
    %c0_225 = arith.constant 0 : index
    %240 = vector.load %arg3[%c3_223, %c0_224, %c0_225] : memref<9x18x18xf32, #tpu.memory_space<vmem>>, vector<1x18x18xf32>
    %241 = vector.shape_cast %240 : vector<1x18x18xf32> to vector<18x18xf32>
    %cst_226 = arith.constant dense<0.000000e+00> : vector<18x256xf32>
    %242 = tpu.matmul %241, %239, %cst_226 {dimension_numbers = #tpu.dot_dimension_numbers<[1], [0], [0], [1], [0, 0, 1, 1], [], []>} : vector<18x18xf32>, vector<18x256xf32>, vector<18x256xf32> -> vector<18x256xf32>
    %243 = arith.addf %236, %242 : vector<18x256xf32>
    %c2_227 = arith.constant 2 : index
    %c4_228 = arith.constant 4 : index
    %c0_229 = arith.constant 0 : index
    %c0_230 = arith.constant 0 : index
    %244 = vector.load %arg4[%c2_227, %c4_228, %c0_229, %c0_230] : memref<4x9x256x256xbf16, #tpu.memory_space<vmem>>, vector<1x1x256x256xbf16>
    %245 = vector.shape_cast %244 : vector<1x1x256x256xbf16> to vector<256x256xbf16>
    %cst_231 = arith.constant dense<0.000000e+00> : vector<18x256xf32>
    %246 = tpu.matmul %216, %245, %cst_231 {dimension_numbers = #tpu.dot_dimension_numbers<[1], [0], [0], [1], [0, 0, 1, 1], [], []>} : vector<18x256xbf16>, vector<256x256xbf16>, vector<18x256xf32> -> vector<18x256xf32>
    %c4_232 = arith.constant 4 : index
    %c0_233 = arith.constant 0 : index
    %c0_234 = arith.constant 0 : index
    %247 = vector.load %arg3[%c4_232, %c0_233, %c0_234] : memref<9x18x18xf32, #tpu.memory_space<vmem>>, vector<1x18x18xf32>
    %248 = vector.shape_cast %247 : vector<1x18x18xf32> to vector<18x18xf32>
    %cst_235 = arith.constant dense<0.000000e+00> : vector<18x256xf32>
    %249 = tpu.matmul %248, %246, %cst_235 {dimension_numbers = #tpu.dot_dimension_numbers<[1], [0], [0], [1], [0, 0, 1, 1], [], []>} : vector<18x18xf32>, vector<18x256xf32>, vector<18x256xf32> -> vector<18x256xf32>
    %250 = arith.addf %243, %249 : vector<18x256xf32>
    %c2_236 = arith.constant 2 : index
    %c5_237 = arith.constant 5 : index
    %c0_238 = arith.constant 0 : index
    %c0_239 = arith.constant 0 : index
    %251 = vector.load %arg4[%c2_236, %c5_237, %c0_238, %c0_239] : memref<4x9x256x256xbf16, #tpu.memory_space<vmem>>, vector<1x1x256x256xbf16>
    %252 = vector.shape_cast %251 : vector<1x1x256x256xbf16> to vector<256x256xbf16>
    %cst_240 = arith.constant dense<0.000000e+00> : vector<18x256xf32>
    %253 = tpu.matmul %216, %252, %cst_240 {dimension_numbers = #tpu.dot_dimension_numbers<[1], [0], [0], [1], [0, 0, 1, 1], [], []>} : vector<18x256xbf16>, vector<256x256xbf16>, vector<18x256xf32> -> vector<18x256xf32>
    %c5_241 = arith.constant 5 : index
    %c0_242 = arith.constant 0 : index
    %c0_243 = arith.constant 0 : index
    %254 = vector.load %arg3[%c5_241, %c0_242, %c0_243] : memref<9x18x18xf32, #tpu.memory_space<vmem>>, vector<1x18x18xf32>
    %255 = vector.shape_cast %254 : vector<1x18x18xf32> to vector<18x18xf32>
    %cst_244 = arith.constant dense<0.000000e+00> : vector<18x256xf32>
    %256 = tpu.matmul %255, %253, %cst_244 {dimension_numbers = #tpu.dot_dimension_numbers<[1], [0], [0], [1], [0, 0, 1, 1], [], []>} : vector<18x18xf32>, vector<18x256xf32>, vector<18x256xf32> -> vector<18x256xf32>
    %257 = arith.addf %250, %256 : vector<18x256xf32>
    %c2_245 = arith.constant 2 : index
    %c6_246 = arith.constant 6 : index
    %c0_247 = arith.constant 0 : index
    %c0_248 = arith.constant 0 : index
    %258 = vector.load %arg4[%c2_245, %c6_246, %c0_247, %c0_248] : memref<4x9x256x256xbf16, #tpu.memory_space<vmem>>, vector<1x1x256x256xbf16>
    %259 = vector.shape_cast %258 : vector<1x1x256x256xbf16> to vector<256x256xbf16>
    %cst_249 = arith.constant dense<0.000000e+00> : vector<18x256xf32>
    %260 = tpu.matmul %216, %259, %cst_249 {dimension_numbers = #tpu.dot_dimension_numbers<[1], [0], [0], [1], [0, 0, 1, 1], [], []>} : vector<18x256xbf16>, vector<256x256xbf16>, vector<18x256xf32> -> vector<18x256xf32>
    %c6_250 = arith.constant 6 : index
    %c0_251 = arith.constant 0 : index
    %c0_252 = arith.constant 0 : index
    %261 = vector.load %arg3[%c6_250, %c0_251, %c0_252] : memref<9x18x18xf32, #tpu.memory_space<vmem>>, vector<1x18x18xf32>
    %262 = vector.shape_cast %261 : vector<1x18x18xf32> to vector<18x18xf32>
    %cst_253 = arith.constant dense<0.000000e+00> : vector<18x256xf32>
    %263 = tpu.matmul %262, %260, %cst_253 {dimension_numbers = #tpu.dot_dimension_numbers<[1], [0], [0], [1], [0, 0, 1, 1], [], []>} : vector<18x18xf32>, vector<18x256xf32>, vector<18x256xf32> -> vector<18x256xf32>
    %264 = arith.addf %257, %263 : vector<18x256xf32>
    %c2_254 = arith.constant 2 : index
    %c7_255 = arith.constant 7 : index
    %c0_256 = arith.constant 0 : index
    %c0_257 = arith.constant 0 : index
    %265 = vector.load %arg4[%c2_254, %c7_255, %c0_256, %c0_257] : memref<4x9x256x256xbf16, #tpu.memory_space<vmem>>, vector<1x1x256x256xbf16>
    %266 = vector.shape_cast %265 : vector<1x1x256x256xbf16> to vector<256x256xbf16>
    %cst_258 = arith.constant dense<0.000000e+00> : vector<18x256xf32>
    %267 = tpu.matmul %216, %266, %cst_258 {dimension_numbers = #tpu.dot_dimension_numbers<[1], [0], [0], [1], [0, 0, 1, 1], [], []>} : vector<18x256xbf16>, vector<256x256xbf16>, vector<18x256xf32> -> vector<18x256xf32>
    %c7_259 = arith.constant 7 : index
    %c0_260 = arith.constant 0 : index
    %c0_261 = arith.constant 0 : index
    %268 = vector.load %arg3[%c7_259, %c0_260, %c0_261] : memref<9x18x18xf32, #tpu.memory_space<vmem>>, vector<1x18x18xf32>
    %269 = vector.shape_cast %268 : vector<1x18x18xf32> to vector<18x18xf32>
    %cst_262 = arith.constant dense<0.000000e+00> : vector<18x256xf32>
    %270 = tpu.matmul %269, %267, %cst_262 {dimension_numbers = #tpu.dot_dimension_numbers<[1], [0], [0], [1], [0, 0, 1, 1], [], []>} : vector<18x18xf32>, vector<18x256xf32>, vector<18x256xf32> -> vector<18x256xf32>
    %271 = arith.addf %264, %270 : vector<18x256xf32>
    %c2_263 = arith.constant 2 : index
    %c8_264 = arith.constant 8 : index
    %c0_265 = arith.constant 0 : index
    %c0_266 = arith.constant 0 : index
    %272 = vector.load %arg4[%c2_263, %c8_264, %c0_265, %c0_266] : memref<4x9x256x256xbf16, #tpu.memory_space<vmem>>, vector<1x1x256x256xbf16>
    %273 = vector.shape_cast %272 : vector<1x1x256x256xbf16> to vector<256x256xbf16>
    %cst_267 = arith.constant dense<0.000000e+00> : vector<18x256xf32>
    %274 = tpu.matmul %216, %273, %cst_267 {dimension_numbers = #tpu.dot_dimension_numbers<[1], [0], [0], [1], [0, 0, 1, 1], [], []>} : vector<18x256xbf16>, vector<256x256xbf16>, vector<18x256xf32> -> vector<18x256xf32>
    %c8_268 = arith.constant 8 : index
    %c0_269 = arith.constant 0 : index
    %c0_270 = arith.constant 0 : index
    %275 = vector.load %arg3[%c8_268, %c0_269, %c0_270] : memref<9x18x18xf32, #tpu.memory_space<vmem>>, vector<1x18x18xf32>
    %276 = vector.shape_cast %275 : vector<1x18x18xf32> to vector<18x18xf32>
    %cst_271 = arith.constant dense<0.000000e+00> : vector<18x256xf32>
    %277 = tpu.matmul %276, %274, %cst_271 {dimension_numbers = #tpu.dot_dimension_numbers<[1], [0], [0], [1], [0, 0, 1, 1], [], []>} : vector<18x18xf32>, vector<18x256xf32>, vector<18x256xf32> -> vector<18x256xf32>
    %278 = arith.addf %271, %277 : vector<18x256xf32>
    %279 = vector.extract_strided_slice %213 {offsets = [0, 0], sizes = [1, 256], strides = [1, 1]} : vector<3x256xf32> to vector<1x256xf32>
    %280 = vector.broadcast %279 : vector<1x256xf32> to vector<18x256xf32>
    %281 = arith.addf %278, %280 : vector<18x256xf32>
    %282 = vector.extract_strided_slice %213 {offsets = [1, 0], sizes = [1, 256], strides = [1, 1]} : vector<3x256xf32> to vector<1x256xf32>
    %283 = vector.extract_strided_slice %213 {offsets = [2, 0], sizes = [1, 256], strides = [1, 1]} : vector<3x256xf32> to vector<1x256xf32>
    %cst_272 = arith.constant dense<0.000000e+00> : vector<256xf32>
    %284 = vector.multi_reduction <add>, %281, %cst_272 [0] : vector<18x256xf32> to vector<256xf32>
    %285 = vector.shape_cast %284 : vector<256xf32> to vector<1x256xf32>
    %cst_273 = arith.constant 1.800000e+01 : f32
    %286 = vector.broadcast %cst_273 : f32 to vector<1x256xf32>
    %287 = arith.divf %285, %286 : vector<1x256xf32>
    %288 = vector.broadcast %287 : vector<1x256xf32> to vector<18x256xf32>
    %289 = arith.subf %281, %288 : vector<18x256xf32>
    %290 = arith.mulf %289, %289 : vector<18x256xf32>
    %cst_274 = arith.constant dense<0.000000e+00> : vector<256xf32>
    %291 = vector.multi_reduction <add>, %290, %cst_274 [0] : vector<18x256xf32> to vector<256xf32>
    %292 = vector.shape_cast %291 : vector<256xf32> to vector<1x256xf32>
    %cst_275 = arith.constant 1.800000e+01 : f32
    %293 = vector.broadcast %cst_275 : f32 to vector<1x256xf32>
    %294 = arith.divf %292, %293 : vector<1x256xf32>
    %cst_276 = arith.constant 9.99999974E-6 : f32
    %295 = vector.broadcast %cst_276 : f32 to vector<1x256xf32>
    %296 = arith.addf %294, %295 : vector<1x256xf32>
    %297 = math.rsqrt %296 : vector<1x256xf32>
    %298 = vector.broadcast %297 : vector<1x256xf32> to vector<18x256xf32>
    %299 = arith.mulf %289, %298 : vector<18x256xf32>
    %300 = vector.broadcast %282 : vector<1x256xf32> to vector<18x256xf32>
    %301 = arith.mulf %299, %300 : vector<18x256xf32>
    %302 = vector.broadcast %283 : vector<1x256xf32> to vector<18x256xf32>
    %303 = arith.addf %301, %302 : vector<18x256xf32>
    %cst_277 = arith.constant 0.000000e+00 : f32
    %304 = vector.broadcast %cst_277 : f32 to vector<18x256xf32>
    %305 = arith.maximumf %303, %304 : vector<18x256xf32>
    %306 = arith.truncf %305 : vector<18x256xf32> to vector<18x256xbf16>
    %c3_278 = arith.constant 3 : index
    %c0_279 = arith.constant 0 : index
    %c0_280 = arith.constant 0 : index
    %c0_281 = arith.constant 0 : index
    %307 = vector.load %arg4[%c3_278, %c0_279, %c0_280, %c0_281] : memref<4x9x256x256xbf16, #tpu.memory_space<vmem>>, vector<1x1x256x256xbf16>
    %308 = vector.shape_cast %307 : vector<1x1x256x256xbf16> to vector<256x256xbf16>
    %cst_282 = arith.constant dense<0.000000e+00> : vector<18x256xf32>
    %309 = tpu.matmul %306, %308, %cst_282 {dimension_numbers = #tpu.dot_dimension_numbers<[1], [0], [0], [1], [0, 0, 1, 1], [], []>} : vector<18x256xbf16>, vector<256x256xbf16>, vector<18x256xf32> -> vector<18x256xf32>
    %c0_283 = arith.constant 0 : index
    %c0_284 = arith.constant 0 : index
    %c0_285 = arith.constant 0 : index
    %310 = vector.load %arg3[%c0_283, %c0_284, %c0_285] : memref<9x18x18xf32, #tpu.memory_space<vmem>>, vector<1x18x18xf32>
    %311 = vector.shape_cast %310 : vector<1x18x18xf32> to vector<18x18xf32>
    %cst_286 = arith.constant dense<0.000000e+00> : vector<18x256xf32>
    %312 = tpu.matmul %311, %309, %cst_286 {dimension_numbers = #tpu.dot_dimension_numbers<[1], [0], [0], [1], [0, 0, 1, 1], [], []>} : vector<18x18xf32>, vector<18x256xf32>, vector<18x256xf32> -> vector<18x256xf32>
    %c3_287 = arith.constant 3 : index
    %c1_288 = arith.constant 1 : index
    %c0_289 = arith.constant 0 : index
    %c0_290 = arith.constant 0 : index
    %313 = vector.load %arg4[%c3_287, %c1_288, %c0_289, %c0_290] : memref<4x9x256x256xbf16, #tpu.memory_space<vmem>>, vector<1x1x256x256xbf16>
    %314 = vector.shape_cast %313 : vector<1x1x256x256xbf16> to vector<256x256xbf16>
    %cst_291 = arith.constant dense<0.000000e+00> : vector<18x256xf32>
    %315 = tpu.matmul %306, %314, %cst_291 {dimension_numbers = #tpu.dot_dimension_numbers<[1], [0], [0], [1], [0, 0, 1, 1], [], []>} : vector<18x256xbf16>, vector<256x256xbf16>, vector<18x256xf32> -> vector<18x256xf32>
    %c1_292 = arith.constant 1 : index
    %c0_293 = arith.constant 0 : index
    %c0_294 = arith.constant 0 : index
    %316 = vector.load %arg3[%c1_292, %c0_293, %c0_294] : memref<9x18x18xf32, #tpu.memory_space<vmem>>, vector<1x18x18xf32>
    %317 = vector.shape_cast %316 : vector<1x18x18xf32> to vector<18x18xf32>
    %cst_295 = arith.constant dense<0.000000e+00> : vector<18x256xf32>
    %318 = tpu.matmul %317, %315, %cst_295 {dimension_numbers = #tpu.dot_dimension_numbers<[1], [0], [0], [1], [0, 0, 1, 1], [], []>} : vector<18x18xf32>, vector<18x256xf32>, vector<18x256xf32> -> vector<18x256xf32>
    %319 = arith.addf %312, %318 : vector<18x256xf32>
    %c3_296 = arith.constant 3 : index
    %c2_297 = arith.constant 2 : index
    %c0_298 = arith.constant 0 : index
    %c0_299 = arith.constant 0 : index
    %320 = vector.load %arg4[%c3_296, %c2_297, %c0_298, %c0_299] : memref<4x9x256x256xbf16, #tpu.memory_space<vmem>>, vector<1x1x256x256xbf16>
    %321 = vector.shape_cast %320 : vector<1x1x256x256xbf16> to vector<256x256xbf16>
    %cst_300 = arith.constant dense<0.000000e+00> : vector<18x256xf32>
    %322 = tpu.matmul %306, %321, %cst_300 {dimension_numbers = #tpu.dot_dimension_numbers<[1], [0], [0], [1], [0, 0, 1, 1], [], []>} : vector<18x256xbf16>, vector<256x256xbf16>, vector<18x256xf32> -> vector<18x256xf32>
    %c2_301 = arith.constant 2 : index
    %c0_302 = arith.constant 0 : index
    %c0_303 = arith.constant 0 : index
    %323 = vector.load %arg3[%c2_301, %c0_302, %c0_303] : memref<9x18x18xf32, #tpu.memory_space<vmem>>, vector<1x18x18xf32>
    %324 = vector.shape_cast %323 : vector<1x18x18xf32> to vector<18x18xf32>
    %cst_304 = arith.constant dense<0.000000e+00> : vector<18x256xf32>
    %325 = tpu.matmul %324, %322, %cst_304 {dimension_numbers = #tpu.dot_dimension_numbers<[1], [0], [0], [1], [0, 0, 1, 1], [], []>} : vector<18x18xf32>, vector<18x256xf32>, vector<18x256xf32> -> vector<18x256xf32>
    %326 = arith.addf %319, %325 : vector<18x256xf32>
    %c3_305 = arith.constant 3 : index
    %c3_306 = arith.constant 3 : index
    %c0_307 = arith.constant 0 : index
    %c0_308 = arith.constant 0 : index
    %327 = vector.load %arg4[%c3_305, %c3_306, %c0_307, %c0_308] : memref<4x9x256x256xbf16, #tpu.memory_space<vmem>>, vector<1x1x256x256xbf16>
    %328 = vector.shape_cast %327 : vector<1x1x256x256xbf16> to vector<256x256xbf16>
    %cst_309 = arith.constant dense<0.000000e+00> : vector<18x256xf32>
    %329 = tpu.matmul %306, %328, %cst_309 {dimension_numbers = #tpu.dot_dimension_numbers<[1], [0], [0], [1], [0, 0, 1, 1], [], []>} : vector<18x256xbf16>, vector<256x256xbf16>, vector<18x256xf32> -> vector<18x256xf32>
    %c3_310 = arith.constant 3 : index
    %c0_311 = arith.constant 0 : index
    %c0_312 = arith.constant 0 : index
    %330 = vector.load %arg3[%c3_310, %c0_311, %c0_312] : memref<9x18x18xf32, #tpu.memory_space<vmem>>, vector<1x18x18xf32>
    %331 = vector.shape_cast %330 : vector<1x18x18xf32> to vector<18x18xf32>
    %cst_313 = arith.constant dense<0.000000e+00> : vector<18x256xf32>
    %332 = tpu.matmul %331, %329, %cst_313 {dimension_numbers = #tpu.dot_dimension_numbers<[1], [0], [0], [1], [0, 0, 1, 1], [], []>} : vector<18x18xf32>, vector<18x256xf32>, vector<18x256xf32> -> vector<18x256xf32>
    %333 = arith.addf %326, %332 : vector<18x256xf32>
    %c3_314 = arith.constant 3 : index
    %c4_315 = arith.constant 4 : index
    %c0_316 = arith.constant 0 : index
    %c0_317 = arith.constant 0 : index
    %334 = vector.load %arg4[%c3_314, %c4_315, %c0_316, %c0_317] : memref<4x9x256x256xbf16, #tpu.memory_space<vmem>>, vector<1x1x256x256xbf16>
    %335 = vector.shape_cast %334 : vector<1x1x256x256xbf16> to vector<256x256xbf16>
    %cst_318 = arith.constant dense<0.000000e+00> : vector<18x256xf32>
    %336 = tpu.matmul %306, %335, %cst_318 {dimension_numbers = #tpu.dot_dimension_numbers<[1], [0], [0], [1], [0, 0, 1, 1], [], []>} : vector<18x256xbf16>, vector<256x256xbf16>, vector<18x256xf32> -> vector<18x256xf32>
    %c4_319 = arith.constant 4 : index
    %c0_320 = arith.constant 0 : index
    %c0_321 = arith.constant 0 : index
    %337 = vector.load %arg3[%c4_319, %c0_320, %c0_321] : memref<9x18x18xf32, #tpu.memory_space<vmem>>, vector<1x18x18xf32>
    %338 = vector.shape_cast %337 : vector<1x18x18xf32> to vector<18x18xf32>
    %cst_322 = arith.constant dense<0.000000e+00> : vector<18x256xf32>
    %339 = tpu.matmul %338, %336, %cst_322 {dimension_numbers = #tpu.dot_dimension_numbers<[1], [0], [0], [1], [0, 0, 1, 1], [], []>} : vector<18x18xf32>, vector<18x256xf32>, vector<18x256xf32> -> vector<18x256xf32>
    %340 = arith.addf %333, %339 : vector<18x256xf32>
    %c3_323 = arith.constant 3 : index
    %c5_324 = arith.constant 5 : index
    %c0_325 = arith.constant 0 : index
    %c0_326 = arith.constant 0 : index
    %341 = vector.load %arg4[%c3_323, %c5_324, %c0_325, %c0_326] : memref<4x9x256x256xbf16, #tpu.memory_space<vmem>>, vector<1x1x256x256xbf16>
    %342 = vector.shape_cast %341 : vector<1x1x256x256xbf16> to vector<256x256xbf16>
    %cst_327 = arith.constant dense<0.000000e+00> : vector<18x256xf32>
    %343 = tpu.matmul %306, %342, %cst_327 {dimension_numbers = #tpu.dot_dimension_numbers<[1], [0], [0], [1], [0, 0, 1, 1], [], []>} : vector<18x256xbf16>, vector<256x256xbf16>, vector<18x256xf32> -> vector<18x256xf32>
    %c5_328 = arith.constant 5 : index
    %c0_329 = arith.constant 0 : index
    %c0_330 = arith.constant 0 : index
    %344 = vector.load %arg3[%c5_328, %c0_329, %c0_330] : memref<9x18x18xf32, #tpu.memory_space<vmem>>, vector<1x18x18xf32>
    %345 = vector.shape_cast %344 : vector<1x18x18xf32> to vector<18x18xf32>
    %cst_331 = arith.constant dense<0.000000e+00> : vector<18x256xf32>
    %346 = tpu.matmul %345, %343, %cst_331 {dimension_numbers = #tpu.dot_dimension_numbers<[1], [0], [0], [1], [0, 0, 1, 1], [], []>} : vector<18x18xf32>, vector<18x256xf32>, vector<18x256xf32> -> vector<18x256xf32>
    %347 = arith.addf %340, %346 : vector<18x256xf32>
    %c3_332 = arith.constant 3 : index
    %c6_333 = arith.constant 6 : index
    %c0_334 = arith.constant 0 : index
    %c0_335 = arith.constant 0 : index
    %348 = vector.load %arg4[%c3_332, %c6_333, %c0_334, %c0_335] : memref<4x9x256x256xbf16, #tpu.memory_space<vmem>>, vector<1x1x256x256xbf16>
    %349 = vector.shape_cast %348 : vector<1x1x256x256xbf16> to vector<256x256xbf16>
    %cst_336 = arith.constant dense<0.000000e+00> : vector<18x256xf32>
    %350 = tpu.matmul %306, %349, %cst_336 {dimension_numbers = #tpu.dot_dimension_numbers<[1], [0], [0], [1], [0, 0, 1, 1], [], []>} : vector<18x256xbf16>, vector<256x256xbf16>, vector<18x256xf32> -> vector<18x256xf32>
    %c6_337 = arith.constant 6 : index
    %c0_338 = arith.constant 0 : index
    %c0_339 = arith.constant 0 : index
    %351 = vector.load %arg3[%c6_337, %c0_338, %c0_339] : memref<9x18x18xf32, #tpu.memory_space<vmem>>, vector<1x18x18xf32>
    %352 = vector.shape_cast %351 : vector<1x18x18xf32> to vector<18x18xf32>
    %cst_340 = arith.constant dense<0.000000e+00> : vector<18x256xf32>
    %353 = tpu.matmul %352, %350, %cst_340 {dimension_numbers = #tpu.dot_dimension_numbers<[1], [0], [0], [1], [0, 0, 1, 1], [], []>} : vector<18x18xf32>, vector<18x256xf32>, vector<18x256xf32> -> vector<18x256xf32>
    %354 = arith.addf %347, %353 : vector<18x256xf32>
    %c3_341 = arith.constant 3 : index
    %c7_342 = arith.constant 7 : index
    %c0_343 = arith.constant 0 : index
    %c0_344 = arith.constant 0 : index
    %355 = vector.load %arg4[%c3_341, %c7_342, %c0_343, %c0_344] : memref<4x9x256x256xbf16, #tpu.memory_space<vmem>>, vector<1x1x256x256xbf16>
    %356 = vector.shape_cast %355 : vector<1x1x256x256xbf16> to vector<256x256xbf16>
    %cst_345 = arith.constant dense<0.000000e+00> : vector<18x256xf32>
    %357 = tpu.matmul %306, %356, %cst_345 {dimension_numbers = #tpu.dot_dimension_numbers<[1], [0], [0], [1], [0, 0, 1, 1], [], []>} : vector<18x256xbf16>, vector<256x256xbf16>, vector<18x256xf32> -> vector<18x256xf32>
    %c7_346 = arith.constant 7 : index
    %c0_347 = arith.constant 0 : index
    %c0_348 = arith.constant 0 : index
    %358 = vector.load %arg3[%c7_346, %c0_347, %c0_348] : memref<9x18x18xf32, #tpu.memory_space<vmem>>, vector<1x18x18xf32>
    %359 = vector.shape_cast %358 : vector<1x18x18xf32> to vector<18x18xf32>
    %cst_349 = arith.constant dense<0.000000e+00> : vector<18x256xf32>
    %360 = tpu.matmul %359, %357, %cst_349 {dimension_numbers = #tpu.dot_dimension_numbers<[1], [0], [0], [1], [0, 0, 1, 1], [], []>} : vector<18x18xf32>, vector<18x256xf32>, vector<18x256xf32> -> vector<18x256xf32>
    %361 = arith.addf %354, %360 : vector<18x256xf32>
    %c3_350 = arith.constant 3 : index
    %c8_351 = arith.constant 8 : index
    %c0_352 = arith.constant 0 : index
    %c0_353 = arith.constant 0 : index
    %362 = vector.load %arg4[%c3_350, %c8_351, %c0_352, %c0_353] : memref<4x9x256x256xbf16, #tpu.memory_space<vmem>>, vector<1x1x256x256xbf16>
    %363 = vector.shape_cast %362 : vector<1x1x256x256xbf16> to vector<256x256xbf16>
    %cst_354 = arith.constant dense<0.000000e+00> : vector<18x256xf32>
    %364 = tpu.matmul %306, %363, %cst_354 {dimension_numbers = #tpu.dot_dimension_numbers<[1], [0], [0], [1], [0, 0, 1, 1], [], []>} : vector<18x256xbf16>, vector<256x256xbf16>, vector<18x256xf32> -> vector<18x256xf32>
    %c8_355 = arith.constant 8 : index
    %c0_356 = arith.constant 0 : index
    %c0_357 = arith.constant 0 : index
    %365 = vector.load %arg3[%c8_355, %c0_356, %c0_357] : memref<9x18x18xf32, #tpu.memory_space<vmem>>, vector<1x18x18xf32>
    %366 = vector.shape_cast %365 : vector<1x18x18xf32> to vector<18x18xf32>
    %cst_358 = arith.constant dense<0.000000e+00> : vector<18x256xf32>
    %367 = tpu.matmul %366, %364, %cst_358 {dimension_numbers = #tpu.dot_dimension_numbers<[1], [0], [0], [1], [0, 0, 1, 1], [], []>} : vector<18x18xf32>, vector<18x256xf32>, vector<18x256xf32> -> vector<18x256xf32>
    %368 = arith.addf %361, %367 : vector<18x256xf32>
    %369 = vector.extract_strided_slice %215 {offsets = [0, 0], sizes = [1, 256], strides = [1, 1]} : vector<3x256xf32> to vector<1x256xf32>
    %370 = vector.broadcast %369 : vector<1x256xf32> to vector<18x256xf32>
    %371 = arith.addf %368, %370 : vector<18x256xf32>
    %372 = vector.extract_strided_slice %215 {offsets = [1, 0], sizes = [1, 256], strides = [1, 1]} : vector<3x256xf32> to vector<1x256xf32>
    %373 = vector.extract_strided_slice %215 {offsets = [2, 0], sizes = [1, 256], strides = [1, 1]} : vector<3x256xf32> to vector<1x256xf32>
    %cst_359 = arith.constant dense<0.000000e+00> : vector<256xf32>
    %374 = vector.multi_reduction <add>, %371, %cst_359 [0] : vector<18x256xf32> to vector<256xf32>
    %375 = vector.shape_cast %374 : vector<256xf32> to vector<1x256xf32>
    %cst_360 = arith.constant 1.800000e+01 : f32
    %376 = vector.broadcast %cst_360 : f32 to vector<1x256xf32>
    %377 = arith.divf %375, %376 : vector<1x256xf32>
    %378 = vector.broadcast %377 : vector<1x256xf32> to vector<18x256xf32>
    %379 = arith.subf %371, %378 : vector<18x256xf32>
    %380 = arith.mulf %379, %379 : vector<18x256xf32>
    %cst_361 = arith.constant dense<0.000000e+00> : vector<256xf32>
    %381 = vector.multi_reduction <add>, %380, %cst_361 [0] : vector<18x256xf32> to vector<256xf32>
    %382 = vector.shape_cast %381 : vector<256xf32> to vector<1x256xf32>
    %cst_362 = arith.constant 1.800000e+01 : f32
    %383 = vector.broadcast %cst_362 : f32 to vector<1x256xf32>
    %384 = arith.divf %382, %383 : vector<1x256xf32>
    %cst_363 = arith.constant 9.99999974E-6 : f32
    %385 = vector.broadcast %cst_363 : f32 to vector<1x256xf32>
    %386 = arith.addf %384, %385 : vector<1x256xf32>
    %387 = math.rsqrt %386 : vector<1x256xf32>
    %388 = vector.broadcast %387 : vector<1x256xf32> to vector<18x256xf32>
    %389 = arith.mulf %379, %388 : vector<18x256xf32>
    %390 = vector.broadcast %372 : vector<1x256xf32> to vector<18x256xf32>
    %391 = arith.mulf %389, %390 : vector<18x256xf32>
    %392 = vector.broadcast %373 : vector<1x256xf32> to vector<18x256xf32>
    %393 = arith.addf %391, %392 : vector<18x256xf32>
    %394 = arith.addf %393, %211 : vector<18x256xf32>
    %cst_364 = arith.constant 0.000000e+00 : f32
    %395 = vector.broadcast %cst_364 : f32 to vector<18x256xf32>
    %396 = arith.maximumf %394, %395 : vector<18x256xf32>
    %c0_365 = arith.constant 0 : index
    %c0_366 = arith.constant 0 : index
    %397 = vector.load %arg7[%c0_365, %c0_366] : memref<3x3xf32, #tpu.memory_space<vmem>>, vector<3x3xf32>
    %c0_367 = arith.constant 0 : index
    %c0_368 = arith.constant 0 : index
    %398 = vector.load %arg6[%c0_367, %c0_368] : memref<256x3xf32, #tpu.memory_space<vmem>>, vector<256x3xf32>
    %cst_369 = arith.constant dense<0.000000e+00> : vector<18x3xf32>
    %399 = tpu.matmul %396, %398, %cst_369 {dimension_numbers = #tpu.dot_dimension_numbers<[1], [0], [0], [1], [0, 0, 1, 1], [], []>} : vector<18x256xf32>, vector<256x3xf32>, vector<18x3xf32> -> vector<18x3xf32>
    %400 = vector.extract_strided_slice %397 {offsets = [0, 0], sizes = [1, 3], strides = [1, 1]} : vector<3x3xf32> to vector<1x3xf32>
    %401 = vector.broadcast %400 : vector<1x3xf32> to vector<18x3xf32>
    %402 = arith.addf %399, %401 : vector<18x3xf32>
    %403 = vector.extract_strided_slice %397 {offsets = [1, 0], sizes = [1, 3], strides = [1, 1]} : vector<3x3xf32> to vector<1x3xf32>
    %404 = vector.extract_strided_slice %397 {offsets = [2, 0], sizes = [1, 3], strides = [1, 1]} : vector<3x3xf32> to vector<1x3xf32>
    %cst_370 = arith.constant dense<0.000000e+00> : vector<3xf32>
    %405 = vector.multi_reduction <add>, %402, %cst_370 [0] : vector<18x3xf32> to vector<3xf32>
    %406 = vector.shape_cast %405 : vector<3xf32> to vector<1x3xf32>
    %cst_371 = arith.constant 1.800000e+01 : f32
    %407 = vector.broadcast %cst_371 : f32 to vector<1x3xf32>
    %408 = arith.divf %406, %407 : vector<1x3xf32>
    %409 = vector.broadcast %408 : vector<1x3xf32> to vector<18x3xf32>
    %410 = arith.subf %402, %409 : vector<18x3xf32>
    %411 = arith.mulf %410, %410 : vector<18x3xf32>
    %cst_372 = arith.constant dense<0.000000e+00> : vector<3xf32>
    %412 = vector.multi_reduction <add>, %411, %cst_372 [0] : vector<18x3xf32> to vector<3xf32>
    %413 = vector.shape_cast %412 : vector<3xf32> to vector<1x3xf32>
    %cst_373 = arith.constant 1.800000e+01 : f32
    %414 = vector.broadcast %cst_373 : f32 to vector<1x3xf32>
    %415 = arith.divf %413, %414 : vector<1x3xf32>
    %cst_374 = arith.constant 9.99999974E-6 : f32
    %416 = vector.broadcast %cst_374 : f32 to vector<1x3xf32>
    %417 = arith.addf %415, %416 : vector<1x3xf32>
    %418 = math.rsqrt %417 : vector<1x3xf32>
    %419 = vector.broadcast %418 : vector<1x3xf32> to vector<18x3xf32>
    %420 = arith.mulf %410, %419 : vector<18x3xf32>
    %421 = vector.broadcast %403 : vector<1x3xf32> to vector<18x3xf32>
    %422 = arith.mulf %420, %421 : vector<18x3xf32>
    %423 = vector.broadcast %404 : vector<1x3xf32> to vector<18x3xf32>
    %424 = arith.addf %422, %423 : vector<18x3xf32>
    %cst_375 = arith.constant 0.000000e+00 : f32
    %425 = vector.broadcast %cst_375 : f32 to vector<18x3xf32>
    %426 = arith.maximumf %424, %425 : vector<18x3xf32>
    %c0_376 = arith.constant 0 : index
    %c0_377 = arith.constant 0 : index
    %427 = vector.load %arg8[%c0_376, %c0_377] : memref<2x18xf32, #tpu.memory_space<vmem>>, vector<2x18xf32>
    %c0_378 = arith.constant 0 : index
    %c0_379 = arith.constant 0 : index
    %428 = vector.load %arg9[%c0_378, %c0_379] : memref<18x9xf32, #tpu.memory_space<vmem>>, vector<18x9xf32>
    %429 = vector.extract_strided_slice %426 {offsets = [0, 0], sizes = [18, 1], strides = [1, 1]} : vector<18x3xf32> to vector<18x1xf32>
    %430 = vector.broadcast %429 : vector<18x1xf32> to vector<18x9xf32>
    %431 = arith.mulf %428, %430 : vector<18x9xf32>
    %cst_380 = arith.constant dense<0.000000e+00> : vector<2x9xf32>
    %432 = tpu.matmul %427, %431, %cst_380 {dimension_numbers = #tpu.dot_dimension_numbers<[1], [0], [0], [1], [0, 0, 1, 1], [], []>} : vector<2x18xf32>, vector<18x9xf32>, vector<2x9xf32> -> vector<2x9xf32>
    %433 = vector.extract_strided_slice %426 {offsets = [0, 1], sizes = [18, 1], strides = [1, 1]} : vector<18x3xf32> to vector<18x1xf32>
    %434 = vector.broadcast %433 : vector<18x1xf32> to vector<18x9xf32>
    %435 = arith.mulf %428, %434 : vector<18x9xf32>
    %cst_381 = arith.constant dense<0.000000e+00> : vector<2x9xf32>
    %436 = tpu.matmul %427, %435, %cst_381 {dimension_numbers = #tpu.dot_dimension_numbers<[1], [0], [0], [1], [0, 0, 1, 1], [], []>} : vector<2x18xf32>, vector<18x9xf32>, vector<2x9xf32> -> vector<2x9xf32>
    %437 = vector.extract_strided_slice %426 {offsets = [0, 2], sizes = [18, 1], strides = [1, 1]} : vector<18x3xf32> to vector<18x1xf32>
    %438 = vector.broadcast %437 : vector<18x1xf32> to vector<18x9xf32>
    %439 = arith.mulf %428, %438 : vector<18x9xf32>
    %cst_382 = arith.constant dense<0.000000e+00> : vector<2x9xf32>
    %440 = tpu.matmul %427, %439, %cst_382 {dimension_numbers = #tpu.dot_dimension_numbers<[1], [0], [0], [1], [0, 0, 1, 1], [], []>} : vector<2x18xf32>, vector<18x9xf32>, vector<2x9xf32> -> vector<2x9xf32>
    %c0_383 = arith.constant 0 : index
    %c0_384 = arith.constant 0 : index
    %441 = vector.load %arg10[%c0_383, %c0_384] : memref<9x256xf32, #tpu.memory_space<vmem>>, vector<9x256xf32>
    %cst_385 = arith.constant dense<0.000000e+00> : vector<2x256xf32>
    %442 = tpu.matmul %432, %441, %cst_385 {dimension_numbers = #tpu.dot_dimension_numbers<[1], [0], [0], [1], [0, 0, 1, 1], [], []>} : vector<2x9xf32>, vector<9x256xf32>, vector<2x256xf32> -> vector<2x256xf32>
    %c0_386 = arith.constant 0 : index
    %c0_387 = arith.constant 0 : index
    %443 = vector.load %arg11[%c0_386, %c0_387] : memref<1x256xf32, #tpu.memory_space<vmem>>, vector<1x256xf32>
    %444 = vector.broadcast %443 : vector<1x256xf32> to vector<2x256xf32>
    %445 = arith.addf %442, %444 : vector<2x256xf32>
    %cst_388 = arith.constant 0.000000e+00 : f32
    %446 = vector.broadcast %cst_388 : f32 to vector<2x256xf32>
    %447 = arith.maximumf %445, %446 : vector<2x256xf32>
    %c0_389 = arith.constant 0 : index
    %c0_390 = arith.constant 0 : index
    %448 = vector.load %arg12[%c0_389, %c0_390] : memref<256x1xf32, #tpu.memory_space<vmem>>, vector<256x1xf32>
    %cst_391 = arith.constant dense<0.000000e+00> : vector<2x1xf32>
    %449 = tpu.matmul %447, %448, %cst_391 {dimension_numbers = #tpu.dot_dimension_numbers<[1], [0], [0], [1], [0, 0, 1, 1], [], []>} : vector<2x256xf32>, vector<256x1xf32>, vector<2x1xf32> -> vector<2x1xf32>
    %c0_392 = arith.constant 0 : index
    %c0_393 = arith.constant 0 : index
    %450 = vector.load %arg13[%c0_392, %c0_393] : memref<1x1xf32, #tpu.memory_space<vmem>>, vector<1x1xf32>
    %451 = vector.broadcast %450 : vector<1x1xf32> to vector<2x1xf32>
    %452 = arith.addf %449, %451 : vector<2x1xf32>
    %453 = math.tanh %452 : vector<2x1xf32>
    %c0_394 = arith.constant 0 : index
    %c0_395 = arith.constant 0 : index
    %454 = vector.load %arg18[%c0_394, %c0_395] : memref<2x1xf32, #tpu.memory_space<vmem>>, vector<2x1xf32>
    tpu.vector_store %arg18[%c0_394, %c0_395], %453 {strides = array<i32>} : memref<2x1xf32, #tpu.memory_space<vmem>>, vector<2x1xf32>,
    %c0_396 = arith.constant 0 : index
    %c0_397 = arith.constant 0 : index
    %455 = vector.load %arg14[%c0_396, %c0_397] : memref<9x9xf32, #tpu.memory_space<vmem>>, vector<9x9xf32>
    %cst_398 = arith.constant dense<0.000000e+00> : vector<2x9xf32>
    %456 = tpu.matmul %436, %455, %cst_398 {dimension_numbers = #tpu.dot_dimension_numbers<[1], [0], [0], [1], [0, 0, 1, 1], [], []>} : vector<2x9xf32>, vector<9x9xf32>, vector<2x9xf32> -> vector<2x9xf32>
    %c0_399 = arith.constant 0 : index
    %c0_400 = arith.constant 0 : index
    %457 = vector.load %arg15[%c0_399, %c0_400] : memref<9x9xf32, #tpu.memory_space<vmem>>, vector<9x9xf32>
    %cst_401 = arith.constant dense<0.000000e+00> : vector<2x9xf32>
    %458 = tpu.matmul %440, %457, %cst_401 {dimension_numbers = #tpu.dot_dimension_numbers<[1], [0], [0], [1], [0, 0, 1, 1], [], []>} : vector<2x9xf32>, vector<9x9xf32>, vector<2x9xf32> -> vector<2x9xf32>
    %459 = arith.addf %456, %458 : vector<2x9xf32>
    %c0_402 = arith.constant 0 : index
    %c0_403 = arith.constant 0 : index
    %460 = vector.load %arg16[%c0_402, %c0_403] : memref<1x9xf32, #tpu.memory_space<vmem>>, vector<1x9xf32>
    %461 = vector.broadcast %460 : vector<1x9xf32> to vector<2x9xf32>
    %462 = arith.addf %459, %461 : vector<2x9xf32>
    %cst_404 = arith.constant dense<0xFF800000> : vector<2xf32>
    %463 = vector.multi_reduction <maximumf>, %462, %cst_404 [1] : vector<2x9xf32> to vector<2xf32>
    %464 = vector.shape_cast %463 : vector<2xf32> to vector<2x1xf32>
    %465 = vector.broadcast %464 : vector<2x1xf32> to vector<2x9xf32>
    %466 = arith.subf %462, %465 : vector<2x9xf32>
    %467 = math.exp %466 : vector<2x9xf32>
    %cst_405 = arith.constant dense<0.000000e+00> : vector<2xf32>
    %468 = vector.multi_reduction <add>, %467, %cst_405 [1] : vector<2x9xf32> to vector<2xf32>
    %469 = vector.shape_cast %468 : vector<2xf32> to vector<2x1xf32>
    %470 = vector.broadcast %469 : vector<2x1xf32> to vector<2x9xf32>
    %471 = arith.divf %467, %470 : vector<2x9xf32>
    %c0_406 = arith.constant 0 : index
    %c0_407 = arith.constant 0 : index
    %472 = vector.load %arg17[%c0_406, %c0_407] : memref<2x9xf32, #tpu.memory_space<vmem>>, vector<2x9xf32>
    tpu.vector_store %arg17[%c0_406, %c0_407], %471 {strides = array<i32>} : memref<2x9xf32, #tpu.memory_space<vmem>>, vector<2x9xf32>,
    return
  }
}

</mosaic_0001>

<bundles_post_ra>
// kernel: tictactoe_forward.1
= control target key start
LH: loop header
LB: loop body
LE: loop exit
PB: predicated region body
PF: predicated region fallthrough
CT: control target
= control target key end

     0   :  { %s19794_s0 = inlined_call_operand.hbm [shape: f32[18,128], index: 0, kind: input, shape index: {}]   ;;  %s19795_s1 = inlined_call_operand.hbm [shape: f32[128,256], index: 1, kind: input, shape index: {}]   ;;  %s19796_s2 = inlined_call_operand.hbm [shape: f32[2,256], index: 2, kind: input, shape index: {}]   ;;  %s19797_s3 = inlined_call_operand.hbm [shape: f32[9,18,18], index: 3, kind: input, shape index: {}]   ;;  %s19798_s4 = inlined_call_operand.hbm [shape: bf16[4,9,256,256], index: 4, kind: input, shape index: {}]   ;;  %s19799_s5 = inlined_call_operand.hbm [shape: f32[4,3,256], index: 5, kind: input, shape index: {}]   ;;  %s19800_s6 = inlined_call_operand.hbm [shape: f32[256,3], index: 6, kind: input, shape index: {}]   ;;  %s19801_s7 = inlined_call_operand.hbm [shape: f32[3,3], index: 7, kind: input, shape index: {}]   ;;  %s19802_s8 = inlined_call_operand.hbm [shape: f32[2,18], index: 8, kind: input, shape index: {}]   ;;  %s19803_s9 = inlined_call_operand.hbm [shape: f32[18,9], index: 9, kind: input, shape index: {}]   ;;  %s19804_s10 = inlined_call_operand.hbm [shape: f32[9,256], index: 10, kind: input, shape index: {}]   ;;  %s19805_s11 = inlined_call_operand.hbm [shape: f32[1,256], index: 11, kind: input, shape index: {}]   ;;  %s19806_s12 = inlined_call_operand.hbm [shape: f32[256,1], index: 12, kind: input, shape index: {}]   ;;  %s19807_s13 = inlined_call_operand.<no memory space> [shape: f32[1,1], index: 13, kind: input, shape index: {}]   ;;  %s19808_s14 = inlined_call_operand.hbm [shape: f32[9,9], index: 14, kind: input, shape index: {}]   ;;  %s19809_s15 = inlined_call_operand.hbm [shape: f32[9,9], index: 15, kind: input, shape index: {}]   ;;  %s19810_s16 = inlined_call_operand.hbm [shape: f32[1,9], index: 16, kind: input, shape index: {}]   ;;  %s19811_s17 = inlined_call_operand.hbm [shape: f32[2,9], index: 17, kind: output, shape index: {0}]   ;;  %s19812_s18 = inlined_call_operand.hbm [shape: f32[2,1], index: 18, kind: output, shape index: {1}]  }
   0x1   :  { %19817 = sst [smem:[#allocation43_spill]] %s19794_s0  ;;  %v24_v0 = vstv %s19807_s13 }
   0x2   :  { %19818 = sst [smem:[#allocation44_spill]] %s19795_s1  ;;  %25 = vst [vmem:[#allocation2] sm:$0x1] %v24_v0 }
   0x3   :  { %19819 = sst [smem:[#allocation45_spill]] %s19796_s2 }
   0x4   :  { %19820 = sst [smem:[#allocation46_spill]] %s19811_s17 }
   0x5   :  { %26 = vsyncpa [#allocation4], 0 }
   0x6   :  { %27 = vsyncpa [#allocation7], 0 }
   0x7   :  { %28 = vsyncpa [#allocation10], 0 }
   0x8   :  { %29 = vsyncpa [#allocation13], 0 }
   0x9   :  { %30 = vsyncpa [#allocation16], 0 }
   0xa   :  { %31 = vsyncpa [#allocation19], 0 }
   0xb   :  { %32 = vsyncpa [#allocation22], 0 }
   0xc   :  { %33 = vsyncpa [#allocation25], 0 }
   0xd   :  { %34 = vsyncpa [#allocation28], 0 }
   0xe   :  { %35 = vsyncpa [#allocation5], 0 }
   0xf   :  { %36 = vsyncpa [#allocation31], 0  ;;  %s18463_s29 = smov [#allocation6]   ;;  %s19821_s1 = sld [smem:[#allocation44_spill]] }
  0x10   :  { %s54_s30 = sshll.u32 %s18463_s29, 4  ;;  %s55_s30 = int_to_ptr.vmem [resolvable:$true] %s54_s30 }
  0x15   :  { %s18045_s20 = scalar_lea.hbm %s19821_s1, 4096 }
  0x16   :  { %p18046_p0 = scmp.ne.s32.totalorder %s19821_s1, %s18045_s20  ;;  %p18049_p1 = scmp.lt.u32.totalorder %s18045_s20, %s19821_s1 }
  0x18   :  { %p18051_p2 = pnand %p18049_p1, %p18046_p0 }
  0x1a   :  { %18054 = shalt.err (!%p18051_p2)
}
  0x1b   :  { %s18055_s23 = scalar_lea.vmem %s55_s30, 4096  ;;  %p18060_p4 = scmp.lt.s32.totalorder %s55_s30, %s55_s30 }
  0x1c   :  { %p18056_p3 = scmp.ne.s32.totalorder %s55_s30, %s18055_s23  ;;  %p18061_p5 = scmp.lt.s32.totalorder %s18055_s23, %s18055_s23 }
  0x1e   :  { %p18062_p6 = por %p18061_p5, %p18060_p4 }
  0x20   :  { %p18063_p7 = pnand %p18062_p6, %p18056_p3 }
  0x22   :  { %18066 = shalt.err (!%p18063_p7)
}
  0x23   :  { %s18464_s24 = smov 256   ;;  %s18465_s25 = smov 16  }
  0x24   :  { %60 = dma.hbm_to_vmem [thread:$0]  %s19821_s1, 4096, %s55_s30, [#allocation7], %s18464_s24, %s18464_s24, %s18465_s25  }
  0x25   :  { %s18466_s28 = smov [#allocation9]   ;;  %s18467_s0 = smov [#allocation12]  }
  0x26   :  { %s76_s29 = sshll.u32 %s18466_s28, 4  ;;  %s100_s19 = sshll.u32 %s18467_s0, 4  ;;  %s77_s29 = int_to_ptr.vmem [resolvable:$true] %s76_s29  ;;  %s101_s19 = int_to_ptr.vmem [resolvable:$true] %s100_s19 }
  0x27   :  { %s18067_s21 = scalar_lea.hbm %s19797_s3, 3456 }
  0x28   :  { %p18068_p8 = scmp.ne.s32.totalorder %s19797_s3, %s18067_s21  ;;  %p18071_p9 = scmp.lt.u32.totalorder %s18067_s21, %s19797_s3 }
  0x2a   :  { %p18073_p10 = pnand %p18071_p9, %p18068_p8 }
  0x2c   :  { %18076 = shalt.err (!%p18073_p10)
}
  0x2d   :  { %s18077_s30 = scalar_lea.vmem %s77_s29, 3456  ;;  %p18082_p12 = scmp.lt.s32.totalorder %s77_s29, %s77_s29 }
  0x2e   :  { %p18078_p11 = scmp.ne.s32.totalorder %s77_s29, %s18077_s30  ;;  %p18083_p13 = scmp.lt.s32.totalorder %s18077_s30, %s18077_s30 }
  0x30   :  { %p18084_p0 = por %p18083_p13, %p18082_p12 }
  0x32   :  { %p18085_p1 = pnand %p18084_p0, %p18078_p11 }
  0x34   :  { %18088 = shalt.err (!%p18085_p1)
}
  0x35   :  { %s18468_s1 = smov 128   ;;  %s18469_s26 = smov 8  }
  0x36   :  { %82 = dma.hbm_to_vmem [thread:$0]  %s19797_s3, 3456, %s77_s29, [#allocation10], %s18468_s1, %s18468_s1, %s18469_s26  }
  0x37   :  { %s18089_s20 = scalar_lea.hbm %s19799_s5, 512 }
  0x38   :  { %p18090_p2 = scmp.ne.s32.totalorder %s19799_s5, %s18089_s20  ;;  %p18093_p3 = scmp.lt.u32.totalorder %s18089_s20, %s19799_s5 }
  0x3a   :  { %p18095_p4 = pnand %p18093_p3, %p18090_p2 }
  0x3c   :  { %18098 = shalt.err (!%p18095_p4)
}
  0x3d   :  { %s18099_s23 = scalar_lea.vmem %s101_s19, 512  ;;  %p18104_p6 = scmp.lt.s32.totalorder %s101_s19, %s101_s19 }
  0x3e   :  { %p18100_p5 = scmp.ne.s32.totalorder %s101_s19, %s18099_s23  ;;  %p18105_p7 = scmp.lt.s32.totalorder %s18099_s23, %s18099_s23 }
  0x40   :  { %p18106_p8 = por %p18105_p7, %p18104_p6 }
  0x42   :  { %p18107_p9 = pnand %p18106_p8, %p18100_p5 }
  0x44   :  { %18110 = shalt.err (!%p18107_p9)
}
  0x45   :  { %106 = dma.hbm_to_vmem [thread:$0]  %s19799_s5, 512, %s101_s19, [#allocation13], %s18468_s1, %s18468_s1, %s18469_s26  }
  0x46   :  { %s18470_s30 = smov [#allocation15]   ;;  %s18471_s28 = smov [#allocation18]  }
  0x47   :  { %s125_s27 = sshll.u32 %s18470_s30, 4  ;;  %s144_s17 = sshll.u32 %s18471_s28, 4  ;;  %s126_s27 = int_to_ptr.vmem [resolvable:$true] %s125_s27  ;;  %s145_s17 = int_to_ptr.vmem [resolvable:$true] %s144_s17 }
  0x48   :  { %s18111_s13 = scalar_lea.hbm %s19801_s7, 64 }
  0x49   :  { %p18112_p10 = scmp.ne.s32.totalorder %s19801_s7, %s18111_s13  ;;  %p18115_p11 = scmp.lt.u32.totalorder %s18111_s13, %s19801_s7 }
  0x4b   :  { %p18117_p12 = pnand %p18115_p11, %p18112_p10 }
  0x4d   :  { %18120 = shalt.err (!%p18117_p12)
}
  0x4e   :  { %s18121_s5 = scalar_lea.vmem %s126_s27, 64  ;;  %p18126_p0 = scmp.lt.s32.totalorder %s126_s27, %s126_s27 }
  0x4f   :  { %p18122_p13 = scmp.ne.s32.totalorder %s126_s27, %s18121_s5  ;;  %p18127_p1 = scmp.lt.s32.totalorder %s18121_s5, %s18121_s5 }
  0x51   :  { %p18128_p2 = por %p18127_p1, %p18126_p0 }
  0x53   :  { %p18129_p3 = pnand %p18128_p2, %p18122_p13 }
  0x55   :  { %18132 = shalt.err (!%p18129_p3)
}
  0x56   :  { %128 = dma.hbm_to_vmem [thread:$0]  %s19801_s7, 64, %s126_s27, [#allocation16]  }
  0x57   :  { %s18133_s28 = scalar_lea.hbm %s19803_s9, 384 }
  0x58   :  { %p18134_p4 = scmp.ne.s32.totalorder %s19803_s9, %s18133_s28  ;;  %p18137_p5 = scmp.lt.u32.totalorder %s18133_s28, %s19803_s9 }
  0x5a   :  { %p18139_p6 = pnand %p18137_p5, %p18134_p4 }
  0x5c   :  { %18142 = shalt.err (!%p18139_p6)
}
  0x5d   :  { %s18143_s22 = scalar_lea.vmem %s145_s17, 384  ;;  %p18148_p8 = scmp.lt.s32.totalorder %s145_s17, %s145_s17 }
  0x5e   :  { %p18144_p7 = scmp.ne.s32.totalorder %s145_s17, %s18143_s22  ;;  %p18149_p9 = scmp.lt.s32.totalorder %s18143_s22, %s18143_s22 }
  0x60   :  { %p18150_p10 = por %p18149_p9, %p18148_p8 }
  0x62   :  { %p18151_p11 = pnand %p18150_p10, %p18144_p7 }
  0x64   :  { %18154 = shalt.err (!%p18151_p11)
}
  0x65   :  { %150 = dma.hbm_to_vmem [thread:$0]  %s19803_s9, 384, %s145_s17, [#allocation19], %s18468_s1, %s18468_s1, %s18469_s26  }
  0x66   :  { %s18472_s2 = smov [#allocation21]   ;;  %s18473_s5 = smov [#allocation24]  }
  0x67   :  { %s169_s23 = sshll.u32 %s18472_s2, 4  ;;  %s192_s19 = sshll.u32 %s18473_s5, 4  ;;  %s170_s23 = int_to_ptr.vmem [resolvable:$true] %s169_s23  ;;  %s193_s19 = int_to_ptr.vmem [resolvable:$true] %s192_s19 }
  0x68   :  { %s18155_s30 = scalar_lea.hbm %s19805_s11, 32 }
  0x69   :  { %p18156_p12 = scmp.ne.s32.totalorder %s19805_s11, %s18155_s30  ;;  %p18159_p13 = scmp.lt.u32.totalorder %s18155_s30, %s19805_s11 }
  0x6b   :  { %p18161_p0 = pnand %p18159_p13, %p18156_p12 }
  0x6d   :  { %18164 = shalt.err (!%p18161_p0)
}
  0x6e   :  { %s18165_s9 = scalar_lea.vmem %s170_s23, 32  ;;  %p18170_p2 = scmp.lt.s32.totalorder %s170_s23, %s170_s23 }
  0x6f   :  { %p18166_p1 = scmp.ne.s32.totalorder %s170_s23, %s18165_s9  ;;  %p18171_p3 = scmp.lt.s32.totalorder %s18165_s9, %s18165_s9 }
  0x71   :  { %p18172_p4 = por %p18171_p3, %p18170_p2 }
  0x73   :  { %p18173_p5 = pnand %p18172_p4, %p18166_p1 }
  0x75   :  { %18176 = shalt.err (!%p18173_p5)
}
  0x76   :  { %172 = dma.hbm_to_vmem [thread:$0]  %s19805_s11, 32, %s170_s23, [#allocation22]  }
  0x77   :  { %s18177_s27 = scalar_lea.hbm %s19808_s14, 256 }
  0x78   :  { %p18178_p6 = scmp.ne.s32.totalorder %s19808_s14, %s18177_s27  ;;  %p18181_p7 = scmp.lt.u32.totalorder %s18177_s27, %s19808_s14 }
  0x7a   :  { %p18183_p8 = pnand %p18181_p7, %p18178_p6 }
  0x7c   :  { %18186 = shalt.err (!%p18183_p8)
}
  0x7d   :  { %s18187_s30 = scalar_lea.vmem %s193_s19, 256  ;;  %p18192_p10 = scmp.lt.s32.totalorder %s193_s19, %s193_s19 }
  0x7e   :  { %p18188_p9 = scmp.ne.s32.totalorder %s193_s19, %s18187_s30  ;;  %p18193_p11 = scmp.lt.s32.totalorder %s18187_s30, %s18187_s30 }
  0x80   :  { %p18194_p12 = por %p18193_p11, %p18192_p10 }
  0x82   :  { %p18195_p13 = pnand %p18194_p12, %p18188_p9 }
  0x84   :  { %18198 = shalt.err (!%p18195_p13)
}
  0x85   :  { %198 = dma.hbm_to_vmem [thread:$0]  %s19808_s14, 256, %s193_s19, [#allocation25], %s18468_s1, %s18468_s1, %s18469_s26  }
  0x86   :  { %s18474_s28 = smov [#allocation3]   ;;  %s18475_s20 = smov [#allocation8]  }
  0x87   :  { %s42_s0 = sshll.u32 %s18474_s28, 4  ;;  %s67_s13 = sshll.u32 %s18475_s20, 4  ;;  %s43_s0 = int_to_ptr.vmem [resolvable:$true] %s42_s0  ;;  %s68_s13 = int_to_ptr.vmem [resolvable:$true] %s67_s13 }
  0x88   :  { %s19822_s21 = sld [smem:[#allocation43_spill]] }
  0x8e   :  { %s18199_s22 = scalar_lea.hbm %s19822_s21, 384 }
  0x8f   :  { %p18200_p0 = scmp.ne.s32.totalorder %s19822_s21, %s18199_s22  ;;  %p18203_p1 = scmp.lt.u32.totalorder %s18199_s22, %s19822_s21 }
  0x91   :  { %p18205_p2 = pnand %p18203_p1, %p18200_p0 }
  0x93   :  { %18208 = shalt.err (!%p18205_p2)
}
  0x94   :  { %s18209_s14 = scalar_lea.vmem %s43_s0, 384  ;;  %p18214_p4 = scmp.lt.s32.totalorder %s43_s0, %s43_s0 }
  0x95   :  { %p18210_p3 = scmp.ne.s32.totalorder %s43_s0, %s18209_s14  ;;  %p18215_p5 = scmp.lt.s32.totalorder %s18209_s14, %s18209_s14 }
  0x97   :  { %p18216_p6 = por %p18215_p5, %p18214_p4 }
  0x99   :  { %p18217_p7 = pnand %p18216_p6, %p18210_p3 }
  0x9b   :  { %18220 = shalt.err (!%p18217_p7)
}
  0x9c   :  { %48 = dma.hbm_to_vmem [thread:$0]  %s19822_s21, 384, %s43_s0, [#allocation4], %s18468_s1, %s18468_s1, %s18469_s26  }
  0x9d   :  { %s19823_s11 = sld [smem:[#allocation45_spill]] }
  0xa3   :  { %s18221_s23 = scalar_lea.hbm %s19823_s11, 64 }
  0xa4   :  { %p18222_p8 = scmp.ne.s32.totalorder %s19823_s11, %s18221_s23  ;;  %p18225_p9 = scmp.lt.u32.totalorder %s18221_s23, %s19823_s11 }
  0xa6   :  { %p18227_p10 = pnand %p18225_p9, %p18222_p8 }
  0xa8   :  { %18230 = shalt.err (!%p18227_p10)
}
  0xa9   :  { %s18231_s22 = scalar_lea.vmem %s68_s13, 64  ;;  %p18236_p12 = scmp.lt.s32.totalorder %s68_s13, %s68_s13 }
  0xaa   :  { %p18232_p11 = scmp.ne.s32.totalorder %s68_s13, %s18231_s22  ;;  %p18237_p13 = scmp.lt.s32.totalorder %s18231_s22, %s18231_s22 }
  0xac   :  { %p18238_p0 = por %p18237_p13, %p18236_p12 }
  0xae   :  { %p18239_p1 = pnand %p18238_p0, %p18232_p11 }
  0xb0   :  { %18242 = shalt.err (!%p18239_p1)
}
  0xb1   :  { %70 = dma.hbm_to_vmem [thread:$0]  %s19823_s11, 64, %s68_s13, [#allocation7]  }
  0xb2   :  { %s18476_s7 = smov [#allocation11]   ;;  %s18477_s2 = smov [#allocation14]  }
  0xb3   :  { %s88_s27 = sshll.u32 %s18476_s7, 4  ;;  %s112_s5 = sshll.u32 %s18477_s2, 4  ;;  %s89_s27 = int_to_ptr.vmem [resolvable:$true] %s88_s27  ;;  %s113_s5 = int_to_ptr.vmem [resolvable:$true] %s112_s5 }
  0xb4   :  { %s18243_s3 = scalar_lea.hbm %s19798_s4, 147456 }
  0xb5   :  { %p18244_p2 = scmp.ne.s32.totalorder %s19798_s4, %s18243_s3  ;;  %p18247_p3 = scmp.lt.u32.totalorder %s18243_s3, %s19798_s4 }
  0xb7   :  { %p18249_p4 = pnand %p18247_p3, %p18244_p2 }
  0xb9   :  { %18252 = shalt.err (!%p18249_p4)
}
  0xba   :  { %s18253_s13 = scalar_lea.vmem %s89_s27, 147456  ;;  %p18258_p6 = scmp.lt.s32.totalorder %s89_s27, %s89_s27 }
  0xbb   :  { %p18254_p5 = scmp.ne.s32.totalorder %s89_s27, %s18253_s13  ;;  %p18259_p7 = scmp.lt.s32.totalorder %s18253_s13, %s18253_s13 }
  0xbd   :  { %p18260_p8 = por %p18259_p7, %p18258_p6 }
  0xbf   :  { %p18261_p9 = pnand %p18260_p8, %p18254_p5 }
  0xc1   :  { %18264 = shalt.err (!%p18261_p9)
}
  0xc2   :  { %94 = dma.hbm_to_vmem [thread:$0]  %s19798_s4, 147456, %s89_s27, [#allocation10], %s18468_s1, %s18468_s1, %s18469_s26  }
  0xc3   :  { %s18265_s22 = scalar_lea.hbm %s19800_s6, 4096 }
  0xc4   :  { %p18266_p10 = scmp.ne.s32.totalorder %s19800_s6, %s18265_s22  ;;  %p18269_p11 = scmp.lt.u32.totalorder %s18265_s22, %s19800_s6 }
  0xc6   :  { %p18271_p12 = pnand %p18269_p11, %p18266_p10 }
  0xc8   :  { %18274 = shalt.err (!%p18271_p12)
}
  0xc9   :  { %s18275_s14 = scalar_lea.vmem %s113_s5, 4096  ;;  %p18280_p0 = scmp.lt.s32.totalorder %s113_s5, %s113_s5 }
  0xca   :  { %p18276_p13 = scmp.ne.s32.totalorder %s113_s5, %s18275_s14  ;;  %p18281_p1 = scmp.lt.s32.totalorder %s18275_s14, %s18275_s14 }
  0xcc   :  { %p18282_p2 = por %p18281_p1, %p18280_p0 }
  0xce   :  { %p18283_p3 = pnand %p18282_p2, %p18276_p13 }
  0xd0   :  { %18286 = shalt.err (!%p18283_p3)
}
  0xd1   :  { %118 = dma.hbm_to_vmem [thread:$0]  %s19800_s6, 4096, %s113_s5, [#allocation13], %s18468_s1, %s18468_s1, %s18469_s26  }
  0xd2   :  { %s18478_s19 = smov [#allocation17]   ;;  %s18479_s29 = smov [#allocation20]  }
  0xd3   :  { %s135_s3 = sshll.u32 %s18478_s19, 4  ;;  %s156_s30 = sshll.u32 %s18479_s29, 4  ;;  %s136_s3 = int_to_ptr.vmem [resolvable:$true] %s135_s3  ;;  %s157_s30 = int_to_ptr.vmem [resolvable:$true] %s156_s30 }
  0xd4   :  { %s18287_s13 = scalar_lea.hbm %s19802_s8, 32 }
  0xd5   :  { %p18288_p4 = scmp.ne.s32.totalorder %s19802_s8, %s18287_s13  ;;  %p18291_p5 = scmp.lt.u32.totalorder %s18287_s13, %s19802_s8 }
  0xd7   :  { %p18293_p6 = pnand %p18291_p5, %p18288_p4 }
  0xd9   :  { %18296 = shalt.err (!%p18293_p6)
}
  0xda   :  { %s18297_s6 = scalar_lea.vmem %s136_s3, 32  ;;  %p18302_p8 = scmp.lt.s32.totalorder %s136_s3, %s136_s3 }
  0xdb   :  { %p18298_p7 = scmp.ne.s32.totalorder %s136_s3, %s18297_s6  ;;  %p18303_p9 = scmp.lt.s32.totalorder %s18297_s6, %s18297_s6 }
  0xdd   :  { %p18304_p10 = por %p18303_p9, %p18302_p8 }
  0xdf   :  { %p18305_p11 = pnand %p18304_p10, %p18298_p7 }
  0xe1   :  { %18308 = shalt.err (!%p18305_p11)
}
  0xe2   :  { %138 = dma.hbm_to_vmem [thread:$0]  %s19802_s8, 32, %s136_s3, [#allocation16]  }
  0xe3   :  { %s18309_s7 = scalar_lea.hbm %s19804_s10, 512 }
  0xe4   :  { %p18310_p12 = scmp.ne.s32.totalorder %s19804_s10, %s18309_s7  ;;  %p18313_p13 = scmp.lt.u32.totalorder %s18309_s7, %s19804_s10 }
  0xe6   :  { %p18315_p0 = pnand %p18313_p13, %p18310_p12 }
  0xe8   :  { %18318 = shalt.err (!%p18315_p0)
}
  0xe9   :  { %s18319_s19 = scalar_lea.vmem %s157_s30, 512  ;;  %p18324_p2 = scmp.lt.s32.totalorder %s157_s30, %s157_s30 }
  0xea   :  { %p18320_p1 = scmp.ne.s32.totalorder %s157_s30, %s18319_s19  ;;  %p18325_p3 = scmp.lt.s32.totalorder %s18319_s19, %s18319_s19 }
  0xec   :  { %p18326_p4 = por %p18325_p3, %p18324_p2 }
  0xee   :  { %p18327_p5 = pnand %p18326_p4, %p18320_p1 }
  0xf0   :  { %18330 = shalt.err (!%p18327_p5)
}
  0xf1   :  { %162 = dma.hbm_to_vmem [thread:$0]  %s19804_s10, 512, %s157_s30, [#allocation19], %s18464_s24, %s18464_s24, %s18465_s25  }
  0xf2   :  { %s18480_s29 = smov [#allocation23]   ;;  %s18481_s28 = smov [#allocation26]  }
  0xf3   :  { %s178_s23 = sshll.u32 %s18480_s29, 4  ;;  %s204_s13 = sshll.u32 %s18481_s28, 4  ;;  %s179_s23 = int_to_ptr.vmem [resolvable:$true] %s178_s23  ;;  %s205_s13 = int_to_ptr.vmem [resolvable:$true] %s204_s13 }
  0xf4   :  { %s18331_s9 = scalar_lea.hbm %s19806_s12, 4096 }
  0xf5   :  { %p18332_p6 = scmp.ne.s32.totalorder %s19806_s12, %s18331_s9  ;;  %p18335_p7 = scmp.lt.u32.totalorder %s18331_s9, %s19806_s12 }
  0xf7   :  { %p18337_p8 = pnand %p18335_p7, %p18332_p6 }
  0xf9   :  { %18340 = shalt.err (!%p18337_p8)
}
  0xfa   :  { %s18341_s10 = scalar_lea.vmem %s179_s23, 4096  ;;  %p18346_p10 = scmp.lt.s32.totalorder %s179_s23, %s179_s23 }
  0xfb   :  { %p18342_p9 = scmp.ne.s32.totalorder %s179_s23, %s18341_s10  ;;  %p18347_p11 = scmp.lt.s32.totalorder %s18341_s10, %s18341_s10 }
  0xfd   :  { %p18348_p12 = por %p18347_p11, %p18346_p10 }
  0xff   :  { %p18349_p13 = pnand %p18348_p12, %p18342_p9 }
 0x101   :  { %18352 = shalt.err (!%p18349_p13)
}
 0x102   :  { %184 = dma.hbm_to_vmem [thread:$0]  %s19806_s12, 4096, %s179_s23, [#allocation22], %s18468_s1, %s18468_s1, %s18469_s26  }
 0x103   :  { %s18353_s21 = scalar_lea.hbm %s19809_s15, 256 }
 0x104   :  { %p18354_p0 = scmp.ne.s32.totalorder %s19809_s15, %s18353_s21  ;;  %p18357_p1 = scmp.lt.u32.totalorder %s18353_s21, %s19809_s15 }
 0x106   :  { %p18359_p2 = pnand %p18357_p1, %p18354_p0 }
 0x108   :  { %18362 = shalt.err (!%p18359_p2)
}
 0x109   :  { %s18363_s27 = scalar_lea.vmem %s205_s13, 256  ;;  %p18368_p4 = scmp.lt.s32.totalorder %s205_s13, %s205_s13 }
 0x10a   :  { %p18364_p3 = scmp.ne.s32.totalorder %s205_s13, %s18363_s27  ;;  %p18369_p5 = scmp.lt.s32.totalorder %s18363_s27, %s18363_s27 }
 0x10c   :  { %p18370_p6 = por %p18369_p5, %p18368_p4 }
 0x10e   :  { %p18371_p7 = pnand %p18370_p6, %p18364_p3 }
 0x110   :  { %18374 = shalt.err (!%p18371_p7)
}
 0x111   :  { %210 = dma.hbm_to_vmem [thread:$0]  %s19809_s15, 256, %s205_s13, [#allocation25], %s18468_s1, %s18468_s1, %s18469_s26  }
 0x112   :  { %s18482_s8 = smov [#allocation27]   ;;  %s18375_s28 = scalar_lea.hbm %s19810_s16, 16 }
 0x113   :  { %s217_s3 = sshll.u32 %s18482_s8, 4  ;;  %p18376_p8 = scmp.ne.s32.totalorder %s19810_s16, %s18375_s28  ;;  %s218_s3 = int_to_ptr.vmem [resolvable:$true] %s217_s3 }
 0x114   :  { %p18379_p9 = scmp.lt.u32.totalorder %s18375_s28, %s19810_s16 }
 0x116   :  { %p18381_p10 = pnand %p18379_p9, %p18376_p8 }
 0x118   :  { %18384 = shalt.err (!%p18381_p10)
}
 0x119   :  { %s18385_s6 = scalar_lea.vmem %s218_s3, 16  ;;  %s18389_s15 = scalar_lea.vmem %s218_s3, 32 }
 0x11a   :  { %p18386_p11 = scmp.ne.s32.totalorder %s218_s3, %s18385_s6  ;;  %p18390_p12 = scmp.lt.s32.totalorder %s218_s3, %s218_s3 }
 0x11b   :  { %p18391_p13 = scmp.lt.s32.totalorder %s18389_s15, %s18385_s6 }
 0x11d   :  { %p18392_p0 = por %p18391_p13, %p18390_p12 }
 0x11f   :  { %p18393_p1 = pnand %p18392_p0, %p18386_p11 }
 0x121   :  { %18396 = shalt.err (!%p18393_p1)
}
 0x122   :  { %220 = dma.hbm_to_vmem [thread:$0]  %s19810_s16, 16, %s218_s3, [#allocation28]  }
 0x123   :  { %18441 = dma.done.wait [#allocation4], 384  }
 0x124   :  { %18442 = vsyncadd [#allocation4], 4294966912 }
 0x125   :  { %18443 = dma.done.wait [#allocation7], 4160  }
 0x126   :  { %18444 = vsyncadd [#allocation7], 4294963136 }
 0x127   :  { %18445 = dma.done.wait [#allocation10], 150912  }
 0x128   :  { %18446 = vsyncadd [#allocation10], 4294816384 }
 0x129   :  { %18447 = dma.done.wait [#allocation13], 4608  }
 0x12a   :  { %18448 = vsyncadd [#allocation13], 4294962688 }
 0x12b   :  { %18449 = dma.done.wait [#allocation16], 96  }
 0x12c   :  { %18450 = vsyncadd [#allocation16], 4294967200 }
 0x12d   :  { %18451 = dma.done.wait [#allocation19], 896  }
 0x12e   :  { %18452 = vsyncadd [#allocation19], 4294966400 }
 0x12f   :  { %18453 = dma.done.wait [#allocation22], 4128  }
 0x130   :  { %18454 = vsyncadd [#allocation22], 4294963168 }
 0x131   :  { %18455 = dma.done.wait [#allocation25], 512  }
 0x132   :  { %18456 = vsyncadd [#allocation25], 4294966784 }
 0x133   :  { %18457 = dma.done.wait [#allocation28], 16  }
 0x134   :  { %18458 = vsyncadd [#allocation28], 4294967280  ;;  %v18483_v1 = vmov 0.0   ;;  %v273_v2 = vld [vmem:[#allocation6 + $0x8] sm:$0xff]  ;;  %v275_v3 = vld [vmem:[#allocation6 + $0x18] sm:$0xff]  ;;  %vm391_vm0 = vcmask 1041408  }
 0x135   :  { %368 = vmatprep.mubr.f32.mxu0 %v18483_v1  ;;  %v272_v4 = vld [vmem:[#allocation6] sm:$0xff]  ;;  %v15718_v5 = vpack.c.bf16 %v275_v3, %v273_v2  ;;  %v274_v6 = vld [vmem:[#allocation6 + $0x10] sm:$0xff]  ;;  %v277_v7 = vld [vmem:[#allocation6 + $0x28] sm:$0xff]  ;;  %vm995_vm1 = vcmask 146432   ;;  %vm13482_vm2 = vcmask 23552   ;;  %vm13486_vm3 = vcmask 17408  }
 0x136   :  { %v279_v8 = vld [vmem:[#allocation6 + $0x38] sm:$0xff]  ;;  %v15720_v9 = vpack.c.bf16 %v274_v6, %v272_v4  ;;  %v276_v11 = vld [vmem:[#allocation6 + $0x20] sm:$0xff]  ;;  %v278_v12 = vld [vmem:[#allocation6 + $0x30] sm:$0xff]  ;;  %vm18487_vm4 = vmmov 0   ;;  %vm13830_vm5 = vcmask 1040384   ;;  %vm18489_vm6 = vmmov 1  }
 0x137   :  { %v15722_v10 = vpack.c.bf16 %v279_v8, %v277_v7  ;;  %v281_v13 = vld [vmem:[#allocation6 + $0x48] sm:$0xff]  ;;  %15719 = vmatprep.subr.bf16.mxu0 %v15718_v5  ;;  %v283_v14 = vld [vmem:[#allocation6 + $0x58] sm:$0xff]  ;;  %v15724_v15 = vpack.c.bf16 %v278_v12, %v276_v11  ;;  %v280_v17 = vld [vmem:[#allocation6 + $0x40] sm:$0xff]  ;;  %vm13826_vm8 = vcmask 72704   ;;  %vm14186_vm9 = vcmask 66560   ;;  %s18490_s16 = smov [#allocation30]  }
 0x138   :  { %15721 = vmatpush1.bf16.msra.mxu0 %v15720_v9  ;;  %v15726_v16 = vpack.c.bf16 %v283_v14, %v281_v13  ;;  %v282_v18 = vld [vmem:[#allocation6 + $0x50] sm:$0xff]  ;;  %v285_v19 = vld [vmem:[#allocation6 + $0x68] sm:$0xff]  ;;  %v287_v20 = vld [vmem:[#allocation6 + $0x78] sm:$0xff]  ;;  %vm14020_vm10 = vcmask 1024   ;;  %s14215_s13 = sshll.u32 %s18490_s16, 4  ;;  %s14216_s13 = int_to_ptr.vmem [resolvable:$true] %s14215_s13 }
 0x139   :  { %15723 = vmatprep.subr.bf16.mxu0 %v15722_v10  ;;  %v15728_v21 = vpack.c.bf16 %v282_v18, %v280_v17  ;;  %v15730_v22 = vpack.c.bf16 %v287_v20, %v285_v19  ;;  %v284_v23 = vld [vmem:[#allocation6 + $0x60] sm:$0xff]  ;;  %v286_v24 = vld [vmem:[#allocation6 + $0x70] sm:$0xff]  ;;  %v289_v25 = vld [vmem:[#allocation6 + $0x88] sm:$0xff]  ;;  %s18397_s5 = scalar_lea.vmem %s14216_s13, 32  ;;  %p18402_p3 = scmp.lt.s32.totalorder %s14216_s13, %s14216_s13 }
 0x13a   :  { %v291_v26 = vld [vmem:[#allocation6 + $0x98] sm:$0xff]  ;;  %v288_v27 = vld [vmem:[#allocation6 + $0x80] sm:$0xff]  ;;  %v290_v28 = vld [vmem:[#allocation6 + $0x90] sm:$0xff]  ;;  %v15732_v29 = vpack.c.bf16 %v286_v24, %v284_v23  ;;  %p18398_p2 = scmp.ne.s32.totalorder %s14216_s13, %s18397_s5  ;;  %p18403_p4 = scmp.lt.s32.totalorder %s18397_s5, %s18397_s5 }
 0x13b   :  { %v293_v30 = vld [vmem:[#allocation6 + $0xa8] sm:$0xff]  ;;  %v295_v31 = vld [vmem:[#allocation6 + $0xb8] sm:$0xff]  ;;  %v15734_v32 = vpack.c.bf16 %v291_v26, %v289_v25  ;;  %v292_v33 = vld [vmem:[#allocation6 + $0xa0] sm:$0xff]  ;;  %v15736_v35 = vpack.c.bf16 %v290_v28, %v288_v27 }
 0x13c   :  { %15725 = vmatpush1.bf16.msra.mxu0 %v15724_v15  ;;  %v294_v34 = vld [vmem:[#allocation6 + $0xb0] sm:$0xff]  ;;  %v297_v36 = vld [vmem:[#allocation6 + $0xc8] sm:$0xff]  ;;  %v299_v37 = vld [vmem:[#allocation6 + $0xd8] sm:$0xff]  ;;  %v15738_v38 = vpack.c.bf16 %v295_v31, %v293_v30  ;;  %p18404_p5 = por %p18403_p4, %p18402_p3 }
 0x13d   :  { %15727 = vmatprep.subr.bf16.mxu0 %v15726_v16  ;;  %v296_v39 = vld [vmem:[#allocation6 + $0xc0] sm:$0xff]  ;;  %v298_v40 = vld [vmem:[#allocation6 + $0xd0] sm:$0xff]  ;;  %v15740_v41 = vpack.c.bf16 %v294_v34, %v292_v33  ;;  %v301_v42 = vld [vmem:[#allocation6 + $0xe8] sm:$0xff]  ;;  %v15742_v44 = vpack.c.bf16 %v299_v37, %v297_v36 }
 0x13e   :  { %v303_v43 = vld [vmem:[#allocation6 + $0xf8] sm:$0xff]  ;;  %v300_v45 = vld [vmem:[#allocation6 + $0xe0] sm:$0xff]  ;;  %v302_v46 = vld [vmem:[#allocation6 + $0xf0] sm:$0xff]  ;;  %v15744_v47 = vpack.c.bf16 %v298_v40, %v296_v39  ;;  %p18405_p6 = pnand %p18404_p5, %p18398_p2 }
 0x13f   :  { %v15746_v48 = vpack.c.bf16 %v303_v43, %v301_v42  ;;  %v15748_v49 = vpack.c.bf16 %v302_v46, %v300_v45  ;;  %v269_v50 = vld [vmem:[#allocation3] sm:$0xff]  ;;  %v270_v51 = vld [vmem:[#allocation3 + $0x8] sm:$0xff]  ;;  %v271_v52 = vld [vmem:[#allocation3 + $0x10] sm:$0x3] }
 0x140   :  { %15729 = vmatpush1.bf16.msra.mxu0 %v15728_v21  ;;  %v16208_v53 = vld [vmem:[#allocation11 + $0x4] ss:$8 sps:$4 sm:$0xff]   ;;  %v16210_v55 = vld [vmem:[#allocation11 + $0x100] ss:$8 sps:$4 sm:$0xff]   ;;  %v16214_v57 = vld [vmem:[#allocation11 + $0x14] ss:$8 sps:$4 sm:$0xff]  }
 0x141   :  { %15731 = vmatprep.subr.bf16.mxu0 %v15730_v22  ;;  %v16212_v54 = vld [vmem:[#allocation11 + $0x104] ss:$8 sps:$4 sm:$0xff]   ;;  %693 = vmatprep.subr.bf16.mxu1 %v16208_v53  ;;  %v16213_v56 = vld [vmem:[#allocation11] ss:$8 sps:$4 sm:$0xff]   ;;  %v16218_v58 = vld [vmem:[#allocation11 + $0x114] ss:$8 sps:$4 sm:$0xff]  }
 0x142   :  { %694 = vmatpush1.bf16.msra.mxu1 %v16213_v56  ;;  %v16216_v59 = vld [vmem:[#allocation11 + $0x110] ss:$8 sps:$4 sm:$0xff]   ;;  %v16220_v61 = vld [vmem:[#allocation11 + $0x24] ss:$8 sps:$4 sm:$0xff]   ;;  %v16222_v63 = vld [vmem:[#allocation11 + $0x120] ss:$8 sps:$4 sm:$0xff]  }
 0x143   :  { %v16219_v60 = vld [vmem:[#allocation11 + $0x10] ss:$8 sps:$4 sm:$0xff]   ;;  %695 = vmatprep.subr.bf16.mxu1 %v16214_v57  ;;  %v16224_v62 = vld [vmem:[#allocation11 + $0x124] ss:$8 sps:$4 sm:$0xff]   ;;  %v16225_v0 = vld [vmem:[#allocation11 + $0x20] ss:$8 sps:$4 sm:$0xff]  }
 0x144   :  { %15733 = vmatpush1.bf16.msra.mxu0 %v15732_v29  ;;  %v16226_v2 = vld [vmem:[#allocation11 + $0x34] ss:$8 sps:$4 sm:$0xff]   ;;  %v16228_v4 = vld [vmem:[#allocation11 + $0x130] ss:$8 sps:$4 sm:$0xff]   ;;  %v16232_v6 = vld [vmem:[#allocation11 + $0x44] ss:$8 sps:$4 sm:$0xff]  }
 0x145   :  { %15735 = vmatprep.subr.bf16.mxu0 %v15734_v32  ;;  %v16230_v3 = vld [vmem:[#allocation11 + $0x134] ss:$8 sps:$4 sm:$0xff]   ;;  %v16231_v5 = vld [vmem:[#allocation11 + $0x30] ss:$8 sps:$4 sm:$0xff]   ;;  %v16236_v7 = vld [vmem:[#allocation11 + $0x144] ss:$8 sps:$4 sm:$0xff]  }
 0x146   :  { %696 = vmatpush1.bf16.msra.mxu1 %v16219_v60  ;;  %v16234_v8 = vld [vmem:[#allocation11 + $0x140] ss:$8 sps:$4 sm:$0xff]   ;;  %v16238_v10 = vld [vmem:[#allocation11 + $0x54] ss:$8 sps:$4 sm:$0xff]   ;;  %v16240_v12 = vld [vmem:[#allocation11 + $0x150] ss:$8 sps:$4 sm:$0xff]  }
 0x147   :  { %697 = vmatprep.subr.bf16.mxu1 %v16220_v61  ;;  %v16237_v9 = vld [vmem:[#allocation11 + $0x40] ss:$8 sps:$4 sm:$0xff]   ;;  %v16242_v11 = vld [vmem:[#allocation11 + $0x154] ss:$8 sps:$4 sm:$0xff]   ;;  %v16243_v13 = vld [vmem:[#allocation11 + $0x50] ss:$8 sps:$4 sm:$0xff]  }
 0x148   :  { %15737 = vmatpush1.bf16.msra.mxu0 %v15736_v35  ;;  %v16244_v14 = vld [vmem:[#allocation11 + $0x64] ss:$8 sps:$4 sm:$0xff]   ;;  %v16246_v16 = vld [vmem:[#allocation11 + $0x160] ss:$8 sps:$4 sm:$0xff]   ;;  %v16250_v18 = vld [vmem:[#allocation11 + $0x74] ss:$8 sps:$4 sm:$0xff]  }
 0x149   :  { %15739 = vmatprep.subr.bf16.mxu0 %v15738_v38  ;;  %v16248_v15 = vld [vmem:[#allocation11 + $0x164] ss:$8 sps:$4 sm:$0xff]   ;;  %v16249_v17 = vld [vmem:[#allocation11 + $0x60] ss:$8 sps:$4 sm:$0xff]   ;;  %v16254_v19 = vld [vmem:[#allocation11 + $0x174] ss:$8 sps:$4 sm:$0xff]  }
 0x14a   :  { %698 = vmatpush1.bf16.msra.mxu1 %v16225_v0  ;;  %v16252_v20 = vld [vmem:[#allocation11 + $0x170] ss:$8 sps:$4 sm:$0xff]   ;;  %v16256_v22 = vld [vmem:[#allocation11 + $0x84] ss:$8 sps:$4 sm:$0xff]   ;;  %v16258_v24 = vld [vmem:[#allocation11 + $0x180] ss:$8 sps:$4 sm:$0xff]  }
 0x14b   :  { %699 = vmatprep.subr.bf16.mxu1 %v16226_v2  ;;  %v16255_v21 = vld [vmem:[#allocation11 + $0x70] ss:$8 sps:$4 sm:$0xff]   ;;  %v16260_v23 = vld [vmem:[#allocation11 + $0x184] ss:$8 sps:$4 sm:$0xff]   ;;  %v16261_v25 = vld [vmem:[#allocation11 + $0x80] ss:$8 sps:$4 sm:$0xff]  }
 0x14c   :  { %15741 = vmatpush1.bf16.msra.mxu0 %v15740_v41  ;;  %v16262_v26 = vld [vmem:[#allocation11 + $0x94] ss:$8 sps:$4 sm:$0xff]   ;;  %v16264_v28 = vld [vmem:[#allocation11 + $0x190] ss:$8 sps:$4 sm:$0xff]   ;;  %v16268_v30 = vld [vmem:[#allocation11 + $0xa4] ss:$8 sps:$4 sm:$0xff]  }
 0x14d   :  { %15743 = vmatprep.subr.bf16.mxu0 %v15742_v44  ;;  %v16266_v27 = vld [vmem:[#allocation11 + $0x194] ss:$8 sps:$4 sm:$0xff]   ;;  %v16267_v29 = vld [vmem:[#allocation11 + $0x90] ss:$8 sps:$4 sm:$0xff]   ;;  %v16272_v31 = vld [vmem:[#allocation11 + $0x1a4] ss:$8 sps:$4 sm:$0xff]  }
 0x14e   :  { %700 = vmatpush1.bf16.msra.mxu1 %v16231_v5  ;;  %v16270_v32 = vld [vmem:[#allocation11 + $0x1a0] ss:$8 sps:$4 sm:$0xff]   ;;  %v16274_v34 = vld [vmem:[#allocation11 + $0xb4] ss:$8 sps:$4 sm:$0xff]   ;;  %v16276_v36 = vld [vmem:[#allocation11 + $0x1b0] ss:$8 sps:$4 sm:$0xff]  }
 0x14f   :  { %701 = vmatprep.subr.bf16.mxu1 %v16232_v6  ;;  %v16273_v33 = vld [vmem:[#allocation11 + $0xa0] ss:$8 sps:$4 sm:$0xff]   ;;  %v16278_v35 = vld [vmem:[#allocation11 + $0x1b4] ss:$8 sps:$4 sm:$0xff]   ;;  %v16279_v37 = vld [vmem:[#allocation11 + $0xb0] ss:$8 sps:$4 sm:$0xff]  }
 0x150   :  { %15745 = vmatpush1.bf16.msra.mxu0 %v15744_v47  ;;  %v16280_v38 = vld [vmem:[#allocation11 + $0xc4] ss:$8 sps:$4 sm:$0xff]   ;;  %v16282_v40 = vld [vmem:[#allocation11 + $0x1c0] ss:$8 sps:$4 sm:$0xff]   ;;  %v16286_v42 = vld [vmem:[#allocation11 + $0xd4] ss:$8 sps:$4 sm:$0xff]  }
 0x151   :  { %15747 = vmatprep.subr.bf16.mxu0 %v15746_v48  ;;  %v16284_v39 = vld [vmem:[#allocation11 + $0x1c4] ss:$8 sps:$4 sm:$0xff]   ;;  %v16285_v41 = vld [vmem:[#allocation11 + $0xc0] ss:$8 sps:$4 sm:$0xff]   ;;  %v16290_v43 = vld [vmem:[#allocation11 + $0x1d4] ss:$8 sps:$4 sm:$0xff]  }
 0x152   :  { %702 = vmatpush1.bf16.msra.mxu1 %v16237_v9  ;;  %v16288_v44 = vld [vmem:[#allocation11 + $0x1d0] ss:$8 sps:$4 sm:$0xff]   ;;  %v16292_v46 = vld [vmem:[#allocation11 + $0xe4] ss:$8 sps:$4 sm:$0xff]   ;;  %v16294_v48 = vld [vmem:[#allocation11 + $0x1e0] ss:$8 sps:$4 sm:$0xff]  }
 0x153   :  { %703 = vmatprep.subr.bf16.mxu1 %v16238_v10  ;;  %v16291_v45 = vld [vmem:[#allocation11 + $0xd0] ss:$8 sps:$4 sm:$0xff]   ;;  %v16296_v47 = vld [vmem:[#allocation11 + $0x1e4] ss:$8 sps:$4 sm:$0xff]   ;;  %vm19738_vm7 = vmpackc.low %vm13830_vm5, %vm18489_vm6 }
 0x154   :  { %15749 = vmatpush1.bf16.msra.mxu0 %v15748_v49  ;;  %v16297_v49 = vld [vmem:[#allocation11 + $0xe0] ss:$8 sps:$4 sm:$0xff]   ;;  %v16303_v53 = vld [vmem:[#allocation11 + $0xf0] ss:$8 sps:$4 sm:$0xff]  }
 0x155   :  { %940 = vmatprep.subr.bf16.mxu0 %v16212_v54 }
 0x156   :  { %704 = vmatpush1.bf16.msra.mxu1 %v16243_v13 }
 0x157   :  { %369 = vmatmul.mubr.f32.vlgmr.msra.gmra.mrb[0].mxu0 %v269_v50  ;;  %705 = vmatprep.subr.bf16.mxu1 %v16244_v14  ;;  %v16298_v50 = vld [vmem:[#allocation11 + $0xf4] ss:$8 sps:$4 sm:$0xff]  }
 0x158   :  { %374 = vmatprep.mubr.f32.mxu0 %v18483_v1  ;;  %941 = vmatpush1.bf16.msra.mxu0 %v16210_v55 }
 0x159   :  { %942 = vmatprep.subr.bf16.mxu0 %v16218_v58 }
 0x15a   :  { %706 = vmatpush1.bf16.msra.mxu1 %v16249_v17 }
 0x15b   :  { %375 = vmatmul.mubr.f32.gmra.mrb[2].mxu0 %v270_v51  ;;  %707 = vmatprep.subr.bf16.mxu1 %v16250_v18  ;;  %v16302_v51 = vld [vmem:[#allocation11 + $0x1f4] ss:$8 sps:$4 sm:$0xff]  }
 0x15c   :  { %380 = vmatprep.mubr.f32.mxu0 %v18483_v1  ;;  %943 = vmatpush1.bf16.msra.mxu0 %v16216_v59 }
 0x15d   :  { %944 = vmatprep.subr.bf16.mxu0 %v16224_v62 }
 0x15e   :  { %708 = vmatpush1.bf16.msra.mxu1 %v16255_v21 }
 0x15f   :  { %381 = vmatmul.mubr.f32.gmra.mrb[4].mxu0 %v271_v52  ;;  %709 = vmatprep.subr.bf16.mxu1 %v16256_v22  ;;  %v16300_v52 = vld [vmem:[#allocation11 + $0x1f0] ss:$8 sps:$4 sm:$0xff]  }
 0x160   :  { %945 = vmatpush1.bf16.msra.mxu0 %v16222_v63 }
 0x161   :  { %946 = vmatprep.subr.bf16.mxu0 %v16230_v3 }
 0x162   :  { %710 = vmatpush1.bf16.msra.mxu1 %v16261_v25 }
 0x163   :  { %711 = vmatprep.subr.bf16.mxu1 %v16262_v26 }
 0x164   :  { %947 = vmatpush1.bf16.msra.mxu0 %v16228_v4 }
 0x165   :  { %948 = vmatprep.subr.bf16.mxu0 %v16236_v7 }
 0x166   :  { %712 = vmatpush1.bf16.msra.mxu1 %v16267_v29 }
 0x167   :  { %713 = vmatprep.subr.bf16.mxu1 %v16268_v30 }
 0x168   :  { %949 = vmatpush1.bf16.msra.mxu0 %v16234_v8 }
 0x169   :  { %950 = vmatprep.subr.bf16.mxu0 %v16242_v11 }
 0x16a   :  { %714 = vmatpush1.bf16.msra.mxu1 %v16273_v33 }
 0x16b   :  { %715 = vmatprep.subr.bf16.mxu1 %v16274_v34 }
 0x16c   :  { %951 = vmatpush1.bf16.msra.mxu0 %v16240_v12 }
 0x16d   :  { %952 = vmatprep.subr.bf16.mxu0 %v16248_v15 }
 0x16e   :  { %716 = vmatpush1.bf16.msra.mxu1 %v16279_v37 }
 0x16f   :  { %717 = vmatprep.subr.bf16.mxu1 %v16280_v38 }
 0x170   :  { %953 = vmatpush1.bf16.msra.mxu0 %v16246_v16 }
 0x171   :  { %954 = vmatprep.subr.bf16.mxu0 %v16254_v19 }
 0x172   :  { %718 = vmatpush1.bf16.msra.mxu1 %v16285_v41 }
 0x173   :  { %719 = vmatprep.subr.bf16.mxu1 %v16286_v42 }
 0x174   :  { %955 = vmatpush1.bf16.msra.mxu0 %v16252_v20 }
 0x175   :  { %956 = vmatprep.subr.bf16.mxu0 %v16260_v23 }
 0x176   :  { %720 = vmatpush1.bf16.msra.mxu1 %v16291_v45 }
 0x177   :  { %721 = vmatprep.subr.bf16.mxu1 %v16292_v46 }
 0x178   :  { %957 = vmatpush1.bf16.msra.mxu0 %v16258_v24 }
 0x179   :  { %958 = vmatprep.subr.bf16.mxu0 %v16266_v27 }
 0x17a   :  { %722 = vmatpush1.bf16.msra.mxu1 %v16297_v49 }
 0x17b   :  { %723 = vmatprep.subr.bf16.mxu1 %v16298_v50 }
 0x17c   :  { %959 = vmatpush1.bf16.msra.mxu0 %v16264_v28 }
 0x17d   :  { %960 = vmatprep.subr.bf16.mxu0 %v16272_v31 }
 0x17e   :  { %724 = vmatpush1.bf16.msra.mxu1 %v16303_v53  ;;  %v387_v53 = vld [vmem:[#allocation8] ss:$2 sm:$0x3] }
 0x180   :  { %961 = vmatpush1.bf16.msra.mxu0 %v16270_v32 }
 0x181   :  { %962 = vmatprep.subr.bf16.mxu0 %v16278_v35 }
 0x184   :  { %963 = vmatpush1.bf16.msra.mxu0 %v16276_v36 }
 0x185   :  { %964 = vmatprep.subr.bf16.mxu0 %v16284_v39 }
 0x188   :  { %965 = vmatpush1.bf16.msra.mxu0 %v16282_v40 }
 0x189   :  { %966 = vmatprep.subr.bf16.mxu0 %v16290_v43 }
 0x18c   :  { %967 = vmatpush1.bf16.msra.mxu0 %v16288_v44 }
 0x18d   :  { %968 = vmatprep.subr.bf16.mxu0 %v16296_v47 }
 0x190   :  { %969 = vmatpush1.bf16.msra.mxu0 %v16294_v48  ;;  %v455_v48 = vlaneseq }
 0x191   :  { %970 = vmatprep.subr.bf16.mxu0 %v16302_v51 }
 0x194   :  { %971 = vmatpush1.bf16.msra.mxu0 %v16300_v52  ;;  %v18822_v52 = vshrl.u32 %v455_v48, 7 }
 0x22a   :  { %v370_v54 = vpop.f32.mrb[0].mxu0 }
 0x22b   :  { %v372_v55 = vpop.f32.mrb[1].mxu0 }
 0x22e   :  { %v376_v56 = vpop.f32.mrb[2].mxu0 }
 0x22f   :  { %v390_v57 = vadd.f32 %v376_v56, %v370_v54  ;;  %v378_v58 = vpop.f32.mrb[3].mxu0 }
 0x230   :  { %v400_v59 = vadd.f32 %v378_v58, %v372_v55 }
 0x232   :  { %v382_v60 = vpop.f32.mrb[4].mxu0 }
 0x233   :  { %v392_v61 = vsel %vm391_vm0, %v382_v60, 0.0  ;;  %v384_v62 = vpop.f32.mrb[5].mxu0 }
 0x234   :  { %v393_v63 = vadd.f32 %v392_v61, %v390_v57  ;;  %v401_v0 = vsel %vm391_vm0, %v384_v62, 0.0 }
 0x235   :  { %v402_v2 = vadd.f32 %v401_v0, %v400_v59 }
 0x236   :  { %v394_v3 = vrot.slane %v393_v63, 4 }
 0x237   :  { %v403_v4 = vrot.slane %v402_v2, 4 }
 0x238   :  { %v395_v5 = vadd.f32 %v394_v3, %v393_v63 }
 0x239   :  { %v404_v6 = vadd.f32 %v403_v4, %v402_v2 }
 0x23a   :  { %v396_v7 = vrot.slane %v395_v5, 2 }
 0x23b   :  { %v405_v8 = vrot.slane %v404_v6, 2 }
 0x23c   :  { %v397_v9 = vadd.f32 %v396_v7, %v395_v5 }
 0x23d   :  { %v406_v10 = vadd.f32 %v405_v8, %v404_v6 }
 0x23e   :  { %v398_v11 = vrot.slane %v397_v9, 1 }
 0x23f   :  { %v407_v12 = vrot.slane %v406_v10, 1 }
 0x240   :  { %v399_v13 = vadd.f32 %v398_v11, %v397_v9 }
 0x241   :  { %v408_v14 = vadd.f32 %v407_v12, %v406_v10 }
 0x242   :  { %v410_v15 = vmul.f32 0.055555556, %v399_v13 }
 0x243   :  { %v411_v16 = vmul.f32 0.055555556, %v408_v14 }
 0x244   :  { %v412_v17 = vsub.f32 %v370_v54, %v410_v15  ;;  %v414_v18 = vsub.f32 %v376_v56, %v410_v15  ;;  %v416_v19 = vsub.f32 %v382_v60, %v410_v15  ;;  %v18825_v54 = vsub.s32 0, %v18822_v52 }
 0x245   :  { %v413_v20 = vsub.f32 %v372_v55, %v411_v16  ;;  %v415_v21 = vsub.f32 %v378_v58, %v411_v16  ;;  %v417_v22 = vsub.f32 %v384_v62, %v411_v16  ;;  %v389_v55 = vld [vmem:[#allocation8 + $0x1] ss:$2 sm:$0x3]  ;;  %v18828_v56 = vsub.s32 1, %v18822_v52 }
 0x246   :  { %v418_v23 = vmul.f32 %v412_v17, %v412_v17  ;;  %v420_v24 = vmul.f32 %v414_v18, %v414_v18  ;;  %v422_v25 = vmul.f32 %v416_v19, %v416_v19  ;;  %v458_v57 = vrot.slane %v387_v53, %v18825_v54 }
 0x247   :  { %v419_v26 = vmul.f32 %v413_v20, %v413_v20  ;;  %v421_v27 = vmul.f32 %v415_v21, %v415_v21  ;;  %v423_v28 = vmul.f32 %v417_v22, %v417_v22  ;;  %v462_v59 = vrot.slane %v387_v53, %v18828_v56 }
 0x248   :  { %v424_v29 = vadd.f32 %v420_v24, %v418_v23  ;;  %v425_v30 = vsel %vm391_vm0, %v422_v25, 0.0  ;;  %v475_v0 = vrot.slane %v389_v55, %v18825_v54  ;;  %v479_v5 = vrot.slane %v389_v55, %v18828_v56 }
 0x249   :  { %v433_v31 = vadd.f32 %v421_v27, %v419_v26  ;;  %v434_v32 = vsel %vm391_vm0, %v423_v28, 0.0 }
 0x24a   :  { %v426_v33 = vadd.f32 %v425_v30, %v424_v29 }
 0x24b   :  { %v435_v34 = vadd.f32 %v434_v32, %v433_v31 }
 0x24c   :  { %v427_v35 = vrot.slane %v426_v33, 4 }
 0x24d   :  { %v436_v36 = vrot.slane %v435_v34, 4 }
 0x24e   :  { %v428_v37 = vadd.f32 %v427_v35, %v426_v33 }
 0x24f   :  { %v437_v38 = vadd.f32 %v436_v36, %v435_v34 }
 0x250   :  { %v429_v39 = vrot.slane %v428_v37, 2 }
 0x251   :  { %v438_v40 = vrot.slane %v437_v38, 2 }
 0x252   :  { %v430_v41 = vadd.f32 %v429_v39, %v428_v37 }
 0x253   :  { %v439_v42 = vadd.f32 %v438_v40, %v437_v38 }
 0x254   :  { %v431_v43 = vrot.slane %v430_v41, 1 }
 0x255   :  { %v440_v44 = vrot.slane %v439_v42, 1 }
 0x256   :  { %v432_v45 = vadd.f32 %v431_v43, %v430_v41  ;;  %v16306_v43 = vld [vmem:[#allocation11 + $0x204] ss:$8 sps:$4 sm:$0xff]  }
 0x257   :  { %v441_v46 = vadd.f32 %v440_v44, %v439_v42  ;;  %v992_v42 = vld [vmem:[#allocation9 + $0x18] sm:$0xff] }
 0x258   :  { %v442_v47 = vmul.f32 0.055555556, %v432_v45 }
 0x259   :  { %v443_v49 = vmul.f32 0.055555556, %v441_v46  ;;  %v744_v46 = vld [vmem:[#allocation9] sm:$0xff] }
 0x25a   :  { %v444_v50 = vadd.f32 1e-05, %v442_v47  ;;  %v16309_v47 = vld [vmem:[#allocation11 + $0x304] ss:$8 sps:$4 sm:$0xff]  }
 0x25b   :  { %v445_v51 = vadd.f32 1e-05, %v443_v49 }
 0x25c   :  { %17936 = vrsqrt.f32 %v444_v50  ;;  %v16304_v50 = vld [vmem:[#allocation11 + $0x200] ss:$8 sps:$4 sm:$0xff]  }
 0x25d   :  { %17938 = vrsqrt.f32 %v445_v51  ;;  %v16307_v51 = vld [vmem:[#allocation11 + $0x300] ss:$8 sps:$4 sm:$0xff]  }
 0x266   :  { %v17937_v58 = vpop.eup %17936 }
 0x267   :  { %v17939_v60 = vpop.eup %17938  ;;  %v448_v61 = vmul.f32 %v17937_v58, %v412_v17  ;;  %v450_v62 = vmul.f32 %v17937_v58, %v414_v18  ;;  %v452_v63 = vmul.f32 %v17937_v58, %v416_v19  ;;  %v745_v58 = vld [vmem:[#allocation9 + $0x8] sm:$0xff] }
 0x268   :  { %v449_v2 = vmul.f32 %v17939_v60, %v413_v20  ;;  %v451_v3 = vmul.f32 %v17939_v60, %v415_v21  ;;  %v453_v4 = vmul.f32 %v17939_v60, %v417_v22  ;;  %v16315_v60 = vld [vmem:[#allocation11 + $0x314] ss:$8 sps:$4 sm:$0xff]  }
 0x269   :  { %v465_v6 = vmul.f32 %v458_v57, %v448_v61  ;;  %v467_v7 = vmul.f32 %v458_v57, %v450_v62  ;;  %v469_v16 = vmul.f32 %v458_v57, %v452_v63  ;;  %v993_v57 = vld [vmem:[#allocation9 + $0x20] sm:$0xff]  ;;  %v16310_v61 = vld [vmem:[#allocation11 + $0x210] ss:$8 sps:$4 sm:$0xff]  }
 0x26a   :  { %v466_v8 = vmul.f32 %v462_v59, %v449_v2  ;;  %v468_v9 = vmul.f32 %v462_v59, %v451_v3  ;;  %v470_v10 = vmul.f32 %v462_v59, %v453_v4  ;;  %v16312_v59 = vld [vmem:[#allocation11 + $0x214] ss:$8 sps:$4 sm:$0xff]   ;;  %v16313_v62 = vld [vmem:[#allocation11 + $0x310] ss:$8 sps:$4 sm:$0xff]   ;;  %v16318_v2 = vld [vmem:[#allocation11 + $0x224] ss:$8 sps:$4 sm:$0xff]  }
 0x26b   :  { %v18834_v11 = vadd.f32 %v475_v0, %v465_v6  ;;  %v18836_v12 = vadd.f32 %v475_v0, %v467_v7  ;;  %v486_v23 = vadd.f32 %v475_v0, %v469_v16  ;;  %v994_v63 = vld [vmem:[#allocation9 + $0x28] sm:$0x3]  ;;  %v746_v0 = vld [vmem:[#allocation9 + $0x10] sm:$0x3]  ;;  %v16321_v3 = vld [vmem:[#allocation11 + $0x324] ss:$8 sps:$4 sm:$0xff]  }
 0x26c   :  { %v18838_v13 = vadd.f32 %v479_v5, %v466_v8  ;;  %v18840_v14 = vadd.f32 %v479_v5, %v468_v9  ;;  %v487_v15 = vadd.f32 %v479_v5, %v470_v10  ;;  %v16316_v4 = vld [vmem:[#allocation11 + $0x220] ss:$8 sps:$4 sm:$0xff]   ;;  %v16324_v6 = vld [vmem:[#allocation11 + $0x234] ss:$8 sps:$4 sm:$0xff]   ;;  %v16322_v8 = vld [vmem:[#allocation11 + $0x230] ss:$8 sps:$4 sm:$0xff]  }
 0x26d   :  { %v488_v17 = vmax.f32 %v18834_v11, 0.0  ;;  %v490_v18 = vmax.f32 %v18836_v12, 0.0  ;;  %v18870_v26 = vmax.f32 %v486_v23, 0.0  ;;  %v16319_v5 = vld [vmem:[#allocation11 + $0x320] ss:$8 sps:$4 sm:$0xff]  }
 0x26e   :  { %v489_v19 = vmax.f32 %v18838_v13, 0.0  ;;  %v491_v20 = vmax.f32 %v18840_v14, 0.0  ;;  %v18846_v21 = vmax.f32 %v487_v15, 0.0  ;;  %v16327_v7 = vld [vmem:[#allocation11 + $0x334] ss:$8 sps:$4 sm:$0xff]  }
 0x26f   :  { %v18858_v24 = vpack.c.bf16 %v490_v18, %v488_v17  ;;  %v18874_v27 = vpack.c.bf16 %v18870_v26, %v18870_v26  ;;  %v16325_v9 = vld [vmem:[#allocation11 + $0x330] ss:$8 sps:$4 sm:$0xff]   ;;  %v16330_v10 = vld [vmem:[#allocation11 + $0x244] ss:$8 sps:$4 sm:$0xff]   ;;  %v16328_v16 = vld [vmem:[#allocation11 + $0x240] ss:$8 sps:$4 sm:$0xff]  }
 0x270   :  { %v18852_v22 = vpack.c.bf16 %v491_v20, %v489_v19  ;;  %v18862_v25 = vpack.c.bf16 %v18846_v21, %v18846_v21  ;;  %v16333_v15 = vld [vmem:[#allocation11 + $0x344] ss:$8 sps:$4 sm:$0xff]   ;;  %v16331_v23 = vld [vmem:[#allocation11 + $0x340] ss:$8 sps:$4 sm:$0xff]  }
 0x271   :  { %v17168_v14 = vld [vmem:[#allocation11 + $0x1500] ss:$8 sps:$4 sm:$0xff]  }
 0x272   :  { %725 = vmatprep.mubr.bf16.mxu1 %v18852_v22  ;;  %972 = vmatprep.mubr.bf16.mxu0 %v18852_v22 }
 0x273   :  { %726 = vmatmul.mubr.bf16.vlgmr.msra.gmra.mrb[0].mxu1 %v18858_v24  ;;  %973 = vmatmul.mubr.bf16.vlgmr.msra.gmra.mrb[8].mxu0 %v18858_v24 }
 0x274   :  { %735 = vmatprep.mubr.bf16.mxu1 %v18862_v25  ;;  %982 = vmatprep.mubr.bf16.mxu0 %v18862_v25 }
 0x27b   :  { %736 = vmatmul.mubr.bf16.gmra.mrb[4].mxu1 %v18874_v27  ;;  %983 = vmatmul.mubr.bf16.gmra.mrb[12].mxu0 %v18874_v27 }
 0x27c   :  { %1075 = vmatprep.mubr.f32.mxu0 %v18483_v1  ;;  %1173 = vmatprep.mubr.f32.mxu1 %v18483_v1 }
 0x346   :  { %v727_v28 = vpop.f32.mrb[0].mxu1  ;;  %v974_v29 = vpop.f32.mrb[8].mxu0 }
 0x347   :  { %v729_v30 = vpop.f32.mrb[1].mxu1  ;;  %v976_v31 = vpop.f32.mrb[9].mxu0 }
 0x348   :  { %v731_v32 = vpop.f32.mrb[2].mxu1  ;;  %v978_v33 = vpop.f32.mrb[10].mxu0 }
 0x349   :  { %v15756_v34 = vpack.c.bf16 %v731_v32, %v727_v28  ;;  %v15752_v35 = vpack.c.bf16 %v978_v33, %v974_v29  ;;  %v733_v36 = vpop.f32.mrb[3].mxu1  ;;  %v980_v37 = vpop.f32.mrb[11].mxu0  ;;  %v16336_v28 = vld [vmem:[#allocation11 + $0x254] ss:$8 sps:$4 sm:$0xff]   ;;  %v16342_v32 = vld [vmem:[#allocation11 + $0x264] ss:$8 sps:$4 sm:$0xff]  }
 0x34a   :  { %v15754_v38 = vpack.c.bf16 %v733_v36, %v729_v30  ;;  %v15750_v39 = vpack.c.bf16 %v980_v37, %v976_v31  ;;  %v16339_v29 = vld [vmem:[#allocation11 + $0x354] ss:$8 sps:$4 sm:$0xff]   ;;  %v16334_v30 = vld [vmem:[#allocation11 + $0x250] ss:$8 sps:$4 sm:$0xff]   ;;  %v16345_v33 = vld [vmem:[#allocation11 + $0x364] ss:$8 sps:$4 sm:$0xff]  }
 0x34b   :  { %v16337_v31 = vld [vmem:[#allocation11 + $0x350] ss:$8 sps:$4 sm:$0xff]   ;;  %v16348_v36 = vld [vmem:[#allocation11 + $0x274] ss:$8 sps:$4 sm:$0xff]  }
 0x34c   :  { %15751 = vmatprep.subr.bf16.mxu0 %v15750_v39  ;;  %15755 = vmatprep.subr.bf16.mxu1 %v15754_v38  ;;  %v16351_v37 = vld [vmem:[#allocation11 + $0x374] ss:$8 sps:$4 sm:$0xff]   ;;  %v16346_v38 = vld [vmem:[#allocation11 + $0x270] ss:$8 sps:$4 sm:$0xff]  }
 0x34d   :  { %15753 = vmatpush1.bf16.msra.mxu0 %v15752_v35  ;;  %15757 = vmatpush1.bf16.msra.mxu1 %v15756_v34  ;;  %v16340_v34 = vld [vmem:[#allocation11 + $0x260] ss:$8 sps:$4 sm:$0xff]   ;;  %v16349_v39 = vld [vmem:[#allocation11 + $0x370] ss:$8 sps:$4 sm:$0xff]  }
 0x34e   :  { %v737_v40 = vpop.f32.mrb[4].mxu1  ;;  %v984_v41 = vpop.f32.mrb[12].mxu0  ;;  %v16343_v35 = vld [vmem:[#allocation11 + $0x360] ss:$8 sps:$4 sm:$0xff]  }
 0x34f   :  { %v739_v44 = vpop.f32.mrb[5].mxu1  ;;  %v986_v45 = vpop.f32.mrb[13].mxu0 }
 0x350   :  { %v741_v48 = vpop.f32.mrb[6].mxu1  ;;  %v988_v49 = vpop.f32.mrb[14].mxu0  ;;  %14300 = vmatprep.subr.msk.mxu0 %vm391_vm0, %v986_v45  ;;  %14305 = vmatprep.subr.msk.mxu1 %vm391_vm0, %v739_v44  ;;  %v16360_v44 = vld [vmem:[#allocation11 + $0x294] ss:$8 sps:$4 sm:$0xff]  }
 0x351   :  { %v742_v53 = vpop.f32.mrb[7].mxu1  ;;  %v989_v55 = vpop.f32.mrb[15].mxu0  ;;  %14301 = vmatpush1.msk.msra.mxu0 %vm391_vm0, %v984_v41  ;;  %14306 = vmatpush1.msk.msra.mxu1 %vm391_vm0, %v737_v40  ;;  %v16354_v40 = vld [vmem:[#allocation11 + $0x284] ss:$8 sps:$4 sm:$0xff]   ;;  %v16363_v45 = vld [vmem:[#allocation11 + $0x394] ss:$8 sps:$4 sm:$0xff]  }
 0x352   :  { %14302 = vmatmul.mubr.msk.f32.vlgmr.msra.gmra.mrb[6].mxu0 %vm995_vm1, %v992_v42  ;;  %14307 = vmatmul.mubr.msk.f32.vlgmr.msra.gmra.mrb[8].mxu1 %vm995_vm1, %v744_v46  ;;  %v16357_v41 = vld [vmem:[#allocation11 + $0x384] ss:$8 sps:$4 sm:$0xff]   ;;  %v16352_v42 = vld [vmem:[#allocation11 + $0x280] ss:$8 sps:$4 sm:$0xff]   ;;  %v16358_v46 = vld [vmem:[#allocation11 + $0x290] ss:$8 sps:$4 sm:$0xff]  }
 0x353   :  { %1385 = vmatprep.subr.bf16.mxu1 %v16306_v43  ;;  %1737 = vmatprep.subr.bf16.mxu0 %v16309_v47  ;;  %v16355_v43 = vld [vmem:[#allocation11 + $0x380] ss:$8 sps:$4 sm:$0xff]   ;;  %v16361_v47 = vld [vmem:[#allocation11 + $0x390] ss:$8 sps:$4 sm:$0xff]   ;;  %v16366_v48 = vld [vmem:[#allocation11 + $0x2a4] ss:$8 sps:$4 sm:$0xff]  }
 0x354   :  { %1386 = vmatpush1.bf16.msra.mxu1 %v16304_v50  ;;  %1738 = vmatpush1.bf16.msra.mxu0 %v16307_v51  ;;  %v16369_v49 = vld [vmem:[#allocation11 + $0x3a4] ss:$8 sps:$4 sm:$0xff]   ;;  %v16364_v50 = vld [vmem:[#allocation11 + $0x2a0] ss:$8 sps:$4 sm:$0xff]   ;;  %v16372_v53 = vld [vmem:[#allocation11 + $0x2b4] ss:$8 sps:$4 sm:$0xff]  }
 0x355   :  { %1081 = vmatprep.mubr.f32.mxu0 %v18483_v1  ;;  %1179 = vmatprep.mubr.f32.mxu1 %v18483_v1  ;;  %v16367_v51 = vld [vmem:[#allocation11 + $0x3a0] ss:$8 sps:$4 sm:$0xff]   ;;  %v16375_v55 = vld [vmem:[#allocation11 + $0x3b4] ss:$8 sps:$4 sm:$0xff]  }
 0x356   :  { %14303 = vmatmul.mubr.msk.f32.gmra.mrb[16].mxu0 %vm995_vm1, %v993_v57  ;;  %14308 = vmatmul.mubr.msk.f32.gmra.mrb[10].mxu1 %vm995_vm1, %v745_v58  ;;  %v16370_v57 = vld [vmem:[#allocation11 + $0x2b0] ss:$8 sps:$4 sm:$0xff]  }
 0x357   :  { %1387 = vmatprep.subr.bf16.mxu1 %v16312_v59  ;;  %1739 = vmatprep.subr.bf16.mxu0 %v16315_v60  ;;  %v16373_v58 = vld [vmem:[#allocation11 + $0x3b0] ss:$8 sps:$4 sm:$0xff]   ;;  %v16378_v59 = vld [vmem:[#allocation11 + $0x2c4] ss:$8 sps:$4 sm:$0xff]  }
 0x358   :  { %1388 = vmatpush1.bf16.msra.mxu1 %v16310_v61  ;;  %1740 = vmatpush1.bf16.msra.mxu0 %v16313_v62  ;;  %v16381_v60 = vld [vmem:[#allocation11 + $0x3c4] ss:$8 sps:$4 sm:$0xff]   ;;  %v16376_v61 = vld [vmem:[#allocation11 + $0x2c0] ss:$8 sps:$4 sm:$0xff]  }
 0x359   :  { %1087 = vmatprep.mubr.f32.mxu0 %v18483_v1  ;;  %1185 = vmatprep.mubr.f32.mxu1 %v18483_v1  ;;  %v16379_v62 = vld [vmem:[#allocation11 + $0x3c0] ss:$8 sps:$4 sm:$0xff]  }
 0x35a   :  { %14304 = vmatmul.mubr.msk.f32.gmra.mrb[18].mxu0 %vm995_vm1, %v994_v63  ;;  %14309 = vmatmul.mubr.msk.f32.gmra.mrb[12].mxu1 %vm995_vm1, %v746_v0  ;;  %v16384_v63 = vld [vmem:[#allocation11 + $0x2d4] ss:$8 sps:$4 sm:$0xff]  }
 0x35b   :  { %1389 = vmatprep.subr.bf16.mxu1 %v16318_v2  ;;  %1741 = vmatprep.subr.bf16.mxu0 %v16321_v3  ;;  %v16387_v0 = vld [vmem:[#allocation11 + $0x3d4] ss:$8 sps:$4 sm:$0xff]   ;;  %v16382_v2 = vld [vmem:[#allocation11 + $0x2d0] ss:$8 sps:$4 sm:$0xff]  }
 0x35c   :  { %1390 = vmatpush1.bf16.msra.mxu1 %v16316_v4  ;;  %1417 = vmatprep.mubr.bf16.mxu1 %v18852_v22  ;;  %v16385_v3 = vld [vmem:[#allocation11 + $0x3d0] ss:$8 sps:$4 sm:$0xff]   ;;  %v16390_v4 = vld [vmem:[#allocation11 + $0x2e4] ss:$8 sps:$4 sm:$0xff]  }
 0x35d   :  { %1742 = vmatpush1.bf16.msra.mxu0 %v16319_v5  ;;  %1769 = vmatprep.mubr.bf16.mxu0 %v18852_v22  ;;  %v16393_v5 = vld [vmem:[#allocation11 + $0x3e4] ss:$8 sps:$4 sm:$0xff]  }
 0x35e   :  { %1391 = vmatprep.subr.bf16.mxu1 %v16324_v6  ;;  %1743 = vmatprep.subr.bf16.mxu0 %v16327_v7  ;;  %v16388_v6 = vld [vmem:[#allocation11 + $0x2e0] ss:$8 sps:$4 sm:$0xff]  }
 0x35f   :  { %v16391_v7 = vld [vmem:[#allocation11 + $0x3e0] ss:$8 sps:$4 sm:$0xff]  }
 0x360   :  { %1392 = vmatpush1.bf16.msra.mxu1 %v16322_v8  ;;  %v16396_v8 = vld [vmem:[#allocation11 + $0x2f4] ss:$8 sps:$4 sm:$0xff]  }
 0x361   :  { %1744 = vmatpush1.bf16.msra.mxu0 %v16325_v9  ;;  %1393 = vmatprep.subr.bf16.mxu1 %v16330_v10  ;;  %v16399_v9 = vld [vmem:[#allocation11 + $0x3f4] ss:$8 sps:$4 sm:$0xff]   ;;  %v16394_v10 = vld [vmem:[#allocation11 + $0x2f0] ss:$8 sps:$4 sm:$0xff]  }
 0x362   :  { %1745 = vmatprep.subr.bf16.mxu0 %v16333_v15  ;;  %v16397_v15 = vld [vmem:[#allocation11 + $0x3f0] ss:$8 sps:$4 sm:$0xff]  }
 0x364   :  { %1394 = vmatpush1.bf16.msra.mxu1 %v16328_v16  ;;  %v16402_v16 = vld [vmem:[#allocation11 + $0x404] ss:$8 sps:$4 sm:$0xff]  }
 0x365   :  { %1746 = vmatpush1.bf16.msra.mxu0 %v16331_v23  ;;  %1395 = vmatprep.subr.bf16.mxu1 %v16336_v28  ;;  %v16400_v23 = vld [vmem:[#allocation11 + $0x400] ss:$8 sps:$4 sm:$0xff]   ;;  %v16405_v28 = vld [vmem:[#allocation11 + $0x414] ss:$8 sps:$4 sm:$0xff]  }
 0x366   :  { %1747 = vmatprep.subr.bf16.mxu0 %v16339_v29  ;;  %v16403_v29 = vld [vmem:[#allocation11 + $0x410] ss:$8 sps:$4 sm:$0xff]  }
 0x368   :  { %1396 = vmatpush1.bf16.msra.mxu1 %v16334_v30  ;;  %v16408_v30 = vld [vmem:[#allocation11 + $0x424] ss:$8 sps:$4 sm:$0xff]  }
 0x369   :  { %1748 = vmatpush1.bf16.msra.mxu0 %v16337_v31  ;;  %1397 = vmatprep.subr.bf16.mxu1 %v16342_v32  ;;  %v16406_v31 = vld [vmem:[#allocation11 + $0x420] ss:$8 sps:$4 sm:$0xff]   ;;  %v16411_v32 = vld [vmem:[#allocation11 + $0x434] ss:$8 sps:$4 sm:$0xff]  }
 0x36a   :  { %1749 = vmatprep.subr.bf16.mxu0 %v16345_v33  ;;  %v16409_v33 = vld [vmem:[#allocation11 + $0x430] ss:$8 sps:$4 sm:$0xff]  }
 0x36c   :  { %1398 = vmatpush1.bf16.msra.mxu1 %v16340_v34  ;;  %v16414_v34 = vld [vmem:[#allocation11 + $0x444] ss:$8 sps:$4 sm:$0xff]  }
 0x36d   :  { %1750 = vmatpush1.bf16.msra.mxu0 %v16343_v35  ;;  %1399 = vmatprep.subr.bf16.mxu1 %v16348_v36  ;;  %v16412_v35 = vld [vmem:[#allocation11 + $0x440] ss:$8 sps:$4 sm:$0xff]   ;;  %v16417_v36 = vld [vmem:[#allocation11 + $0x454] ss:$8 sps:$4 sm:$0xff]  }
 0x36e   :  { %1751 = vmatprep.subr.bf16.mxu0 %v16351_v37  ;;  %v16415_v37 = vld [vmem:[#allocation11 + $0x450] ss:$8 sps:$4 sm:$0xff]  }
 0x370   :  { %1400 = vmatpush1.bf16.msra.mxu1 %v16346_v38  ;;  %v16420_v38 = vld [vmem:[#allocation11 + $0x464] ss:$8 sps:$4 sm:$0xff]  }
 0x371   :  { %1752 = vmatpush1.bf16.msra.mxu0 %v16349_v39  ;;  %1401 = vmatprep.subr.bf16.mxu1 %v16354_v40  ;;  %v16418_v39 = vld [vmem:[#allocation11 + $0x460] ss:$8 sps:$4 sm:$0xff]   ;;  %v16423_v40 = vld [vmem:[#allocation11 + $0x474] ss:$8 sps:$4 sm:$0xff]  }
 0x372   :  { %1753 = vmatprep.subr.bf16.mxu0 %v16357_v41  ;;  %v16421_v41 = vld [vmem:[#allocation11 + $0x470] ss:$8 sps:$4 sm:$0xff]  }
 0x374   :  { %1402 = vmatpush1.bf16.msra.mxu1 %v16352_v42  ;;  %v16426_v42 = vld [vmem:[#allocation11 + $0x484] ss:$8 sps:$4 sm:$0xff]  }
 0x375   :  { %1754 = vmatpush1.bf16.msra.mxu0 %v16355_v43  ;;  %1403 = vmatprep.subr.bf16.mxu1 %v16360_v44  ;;  %v16424_v43 = vld [vmem:[#allocation11 + $0x480] ss:$8 sps:$4 sm:$0xff]   ;;  %v16429_v44 = vld [vmem:[#allocation11 + $0x494] ss:$8 sps:$4 sm:$0xff]  }
 0x376   :  { %1755 = vmatprep.subr.bf16.mxu0 %v16363_v45  ;;  %v16427_v45 = vld [vmem:[#allocation11 + $0x490] ss:$8 sps:$4 sm:$0xff]  }
 0x378   :  { %1404 = vmatpush1.bf16.msra.mxu1 %v16358_v46  ;;  %v16432_v46 = vld [vmem:[#allocation11 + $0x4a4] ss:$8 sps:$4 sm:$0xff]  }
 0x379   :  { %1756 = vmatpush1.bf16.msra.mxu0 %v16361_v47  ;;  %1405 = vmatprep.subr.bf16.mxu1 %v16366_v48  ;;  %v16430_v47 = vld [vmem:[#allocation11 + $0x4a0] ss:$8 sps:$4 sm:$0xff]   ;;  %v16435_v48 = vld [vmem:[#allocation11 + $0x4b4] ss:$8 sps:$4 sm:$0xff]  }
 0x37a   :  { %1757 = vmatprep.subr.bf16.mxu0 %v16369_v49  ;;  %v16433_v49 = vld [vmem:[#allocation11 + $0x4b0] ss:$8 sps:$4 sm:$0xff]  }
 0x37c   :  { %1406 = vmatpush1.bf16.msra.mxu1 %v16364_v50  ;;  %v16438_v50 = vld [vmem:[#allocation11 + $0x4c4] ss:$8 sps:$4 sm:$0xff]  }
 0x37d   :  { %1758 = vmatpush1.bf16.msra.mxu0 %v16367_v51  ;;  %1407 = vmatprep.subr.bf16.mxu1 %v16372_v53  ;;  %v16436_v51 = vld [vmem:[#allocation11 + $0x4c0] ss:$8 sps:$4 sm:$0xff]   ;;  %v16441_v53 = vld [vmem:[#allocation11 + $0x4d4] ss:$8 sps:$4 sm:$0xff]  }
 0x37e   :  { %1759 = vmatprep.subr.bf16.mxu0 %v16375_v55  ;;  %v16439_v55 = vld [vmem:[#allocation11 + $0x4d0] ss:$8 sps:$4 sm:$0xff]  }
 0x380   :  { %1408 = vmatpush1.bf16.msra.mxu1 %v16370_v57  ;;  %v16444_v57 = vld [vmem:[#allocation11 + $0x4e4] ss:$8 sps:$4 sm:$0xff]  }
 0x381   :  { %1760 = vmatpush1.bf16.msra.mxu0 %v16373_v58  ;;  %1409 = vmatprep.subr.bf16.mxu1 %v16378_v59  ;;  %v16442_v58 = vld [vmem:[#allocation11 + $0x4e0] ss:$8 sps:$4 sm:$0xff]   ;;  %v16447_v59 = vld [vmem:[#allocation11 + $0x4f4] ss:$8 sps:$4 sm:$0xff]  }
 0x382   :  { %1761 = vmatprep.subr.bf16.mxu0 %v16381_v60  ;;  %v16445_v60 = vld [vmem:[#allocation11 + $0x4f0] ss:$8 sps:$4 sm:$0xff]  }
 0x384   :  { %1410 = vmatpush1.bf16.msra.mxu1 %v16376_v61  ;;  %v16450_v61 = vld [vmem:[#allocation11 + $0x604] ss:$8 sps:$4 sm:$0xff]  }
 0x385   :  { %1762 = vmatpush1.bf16.msra.mxu0 %v16379_v62  ;;  %1411 = vmatprep.subr.bf16.mxu1 %v16384_v63  ;;  %v16448_v62 = vld [vmem:[#allocation11 + $0x600] ss:$8 sps:$4 sm:$0xff]   ;;  %v16453_v63 = vld [vmem:[#allocation11 + $0x614] ss:$8 sps:$4 sm:$0xff]  }
 0x386   :  { %1763 = vmatprep.subr.bf16.mxu0 %v16387_v0  ;;  %v16451_v0 = vld [vmem:[#allocation11 + $0x610] ss:$8 sps:$4 sm:$0xff]  }
 0x388   :  { %1412 = vmatpush1.bf16.msra.mxu1 %v16382_v2  ;;  %v16456_v2 = vld [vmem:[#allocation11 + $0x624] ss:$8 sps:$4 sm:$0xff]  }
 0x389   :  { %1764 = vmatpush1.bf16.msra.mxu0 %v16385_v3  ;;  %1413 = vmatprep.subr.bf16.mxu1 %v16390_v4  ;;  %v16454_v3 = vld [vmem:[#allocation11 + $0x620] ss:$8 sps:$4 sm:$0xff]   ;;  %v16459_v4 = vld [vmem:[#allocation11 + $0x634] ss:$8 sps:$4 sm:$0xff]  }
 0x38a   :  { %1765 = vmatprep.subr.bf16.mxu0 %v16393_v5  ;;  %v16457_v5 = vld [vmem:[#allocation11 + $0x630] ss:$8 sps:$4 sm:$0xff]  }
 0x38c   :  { %1414 = vmatpush1.bf16.msra.mxu1 %v16388_v6  ;;  %v16462_v6 = vld [vmem:[#allocation11 + $0x644] ss:$8 sps:$4 sm:$0xff]  }
 0x38d   :  { %1766 = vmatpush1.bf16.msra.mxu0 %v16391_v7  ;;  %1415 = vmatprep.subr.bf16.mxu1 %v16396_v8  ;;  %v16460_v7 = vld [vmem:[#allocation11 + $0x640] ss:$8 sps:$4 sm:$0xff]   ;;  %v16465_v8 = vld [vmem:[#allocation11 + $0x654] ss:$8 sps:$4 sm:$0xff]  }
 0x38e   :  { %1767 = vmatprep.subr.bf16.mxu0 %v16399_v9  ;;  %v16463_v9 = vld [vmem:[#allocation11 + $0x650] ss:$8 sps:$4 sm:$0xff]  }
 0x390   :  { %1416 = vmatpush1.bf16.msra.mxu1 %v16394_v10  ;;  %v16468_v10 = vld [vmem:[#allocation11 + $0x664] ss:$8 sps:$4 sm:$0xff]  }
 0x391   :  { %1768 = vmatpush1.bf16.msra.mxu0 %v16397_v15  ;;  %v16466_v15 = vld [vmem:[#allocation11 + $0x660] ss:$8 sps:$4 sm:$0xff]  }
 0x392   :  { %2089 = vmatprep.subr.bf16.mxu0 %v16402_v16  ;;  %v16471_v16 = vld [vmem:[#allocation11 + $0x674] ss:$8 sps:$4 sm:$0xff]  }
 0x393   :  { %1418 = vmatmul.mubr.bf16.vlgmr.msra.gmra.mrb[16].mxu1 %v18858_v24 }
 0x394   :  { %1770 = vmatmul.mubr.bf16.vlgmr.msra.gmra.mrb[20].mxu0 %v18858_v24  ;;  %1427 = vmatprep.mubr.bf16.mxu1 %v18862_v25 }
 0x395   :  { %1779 = vmatprep.mubr.bf16.mxu0 %v18862_v25  ;;  %2090 = vmatpush1.bf16.msra.mxu0 %v16400_v23  ;;  %v16469_v23 = vld [vmem:[#allocation11 + $0x670] ss:$8 sps:$4 sm:$0xff]  }
 0x396   :  { %2091 = vmatprep.subr.bf16.mxu0 %v16405_v28  ;;  %v16474_v28 = vld [vmem:[#allocation11 + $0x684] ss:$8 sps:$4 sm:$0xff]  }
 0x399   :  { %2092 = vmatpush1.bf16.msra.mxu0 %v16403_v29  ;;  %v16472_v29 = vld [vmem:[#allocation11 + $0x680] ss:$8 sps:$4 sm:$0xff]  }
 0x39a   :  { %2093 = vmatprep.subr.bf16.mxu0 %v16408_v30  ;;  %v16477_v30 = vld [vmem:[#allocation11 + $0x694] ss:$8 sps:$4 sm:$0xff]  }
 0x39b   :  { %1428 = vmatmul.mubr.bf16.gmra.mrb[20].mxu1 %v18874_v27 }
 0x39c   :  { %1780 = vmatmul.mubr.bf16.gmra.mrb[24].mxu0 %v18874_v27  ;;  %1519 = vmatprep.mubr.f32.mxu1 %v18483_v1 }
 0x39d   :  { %2094 = vmatpush1.bf16.msra.mxu0 %v16406_v31  ;;  %2121 = vmatprep.mubr.bf16.mxu0 %v18852_v22  ;;  %v16475_v31 = vld [vmem:[#allocation11 + $0x690] ss:$8 sps:$4 sm:$0xff]  }
 0x39e   :  { %2095 = vmatprep.subr.bf16.mxu0 %v16411_v32  ;;  %v16480_v32 = vld [vmem:[#allocation11 + $0x6a4] ss:$8 sps:$4 sm:$0xff]  }
 0x3a1   :  { %2096 = vmatpush1.bf16.msra.mxu0 %v16409_v33  ;;  %v16478_v33 = vld [vmem:[#allocation11 + $0x6a0] ss:$8 sps:$4 sm:$0xff]  }
 0x3a2   :  { %2097 = vmatprep.subr.bf16.mxu0 %v16414_v34  ;;  %v16483_v34 = vld [vmem:[#allocation11 + $0x6b4] ss:$8 sps:$4 sm:$0xff]  }
 0x3a5   :  { %2098 = vmatpush1.bf16.msra.mxu0 %v16412_v35  ;;  %v16481_v35 = vld [vmem:[#allocation11 + $0x6b0] ss:$8 sps:$4 sm:$0xff]  }
 0x3a6   :  { %2099 = vmatprep.subr.bf16.mxu0 %v16417_v36  ;;  %v16486_v36 = vld [vmem:[#allocation11 + $0x6c4] ss:$8 sps:$4 sm:$0xff]  }
 0x3a9   :  { %2100 = vmatpush1.bf16.msra.mxu0 %v16415_v37  ;;  %v16484_v37 = vld [vmem:[#allocation11 + $0x6c0] ss:$8 sps:$4 sm:$0xff]  }
 0x3aa   :  { %2101 = vmatprep.subr.bf16.mxu0 %v16420_v38  ;;  %v16489_v38 = vld [vmem:[#allocation11 + $0x6d4] ss:$8 sps:$4 sm:$0xff]  }
 0x3ad   :  { %2102 = vmatpush1.bf16.msra.mxu0 %v16418_v39  ;;  %v16487_v39 = vld [vmem:[#allocation11 + $0x6d0] ss:$8 sps:$4 sm:$0xff]  }
 0x3ae   :  { %2103 = vmatprep.subr.bf16.mxu0 %v16423_v40  ;;  %v16492_v40 = vld [vmem:[#allocation11 + $0x6e4] ss:$8 sps:$4 sm:$0xff]  }
 0x3b1   :  { %2104 = vmatpush1.bf16.msra.mxu0 %v16421_v41  ;;  %v16490_v41 = vld [vmem:[#allocation11 + $0x6e0] ss:$8 sps:$4 sm:$0xff]  }
 0x3b2   :  { %2105 = vmatprep.subr.bf16.mxu0 %v16426_v42  ;;  %v16495_v42 = vld [vmem:[#allocation11 + $0x6f4] ss:$8 sps:$4 sm:$0xff]  }
 0x3b5   :  { %2106 = vmatpush1.bf16.msra.mxu0 %v16424_v43  ;;  %v16493_v43 = vld [vmem:[#allocation11 + $0x6f0] ss:$8 sps:$4 sm:$0xff]  }
 0x3b6   :  { %2107 = vmatprep.subr.bf16.mxu0 %v16429_v44  ;;  %v16498_v44 = vld [vmem:[#allocation11 + $0x704] ss:$8 sps:$4 sm:$0xff]  }
 0x3b9   :  { %2108 = vmatpush1.bf16.msra.mxu0 %v16427_v45  ;;  %v16496_v45 = vld [vmem:[#allocation11 + $0x700] ss:$8 sps:$4 sm:$0xff]  }
 0x3ba   :  { %2109 = vmatprep.subr.bf16.mxu0 %v16432_v46  ;;  %v16501_v46 = vld [vmem:[#allocation11 + $0x714] ss:$8 sps:$4 sm:$0xff]  }
 0x3bd   :  { %2110 = vmatpush1.bf16.msra.mxu0 %v16430_v47  ;;  %v16499_v47 = vld [vmem:[#allocation11 + $0x710] ss:$8 sps:$4 sm:$0xff]  }
 0x3be   :  { %2111 = vmatprep.subr.bf16.mxu0 %v16435_v48  ;;  %v16504_v48 = vld [vmem:[#allocation11 + $0x724] ss:$8 sps:$4 sm:$0xff]  }
 0x3c1   :  { %2112 = vmatpush1.bf16.msra.mxu0 %v16433_v49  ;;  %v16502_v49 = vld [vmem:[#allocation11 + $0x720] ss:$8 sps:$4 sm:$0xff]  }
 0x3c2   :  { %2113 = vmatprep.subr.bf16.mxu0 %v16438_v50  ;;  %v16507_v50 = vld [vmem:[#allocation11 + $0x734] ss:$8 sps:$4 sm:$0xff]  }
 0x3c5   :  { %2114 = vmatpush1.bf16.msra.mxu0 %v16436_v51  ;;  %v16505_v51 = vld [vmem:[#allocation11 + $0x730] ss:$8 sps:$4 sm:$0xff]  }
 0x3c6   :  { %2115 = vmatprep.subr.bf16.mxu0 %v16441_v53  ;;  %v16510_v53 = vld [vmem:[#allocation11 + $0x744] ss:$8 sps:$4 sm:$0xff]  }
 0x3c9   :  { %2116 = vmatpush1.bf16.msra.mxu0 %v16439_v55  ;;  %v16508_v55 = vld [vmem:[#allocation11 + $0x740] ss:$8 sps:$4 sm:$0xff]  }
 0x3ca   :  { %2117 = vmatprep.subr.bf16.mxu0 %v16444_v57  ;;  %v16513_v57 = vld [vmem:[#allocation11 + $0x754] ss:$8 sps:$4 sm:$0xff]  }
 0x3cd   :  { %2118 = vmatpush1.bf16.msra.mxu0 %v16442_v58 }
 0x3ce   :  { %2119 = vmatprep.subr.bf16.mxu0 %v16447_v59  ;;  %v16511_v59 = vld [vmem:[#allocation11 + $0x750] ss:$8 sps:$4 sm:$0xff]  }
 0x3d1   :  { %2120 = vmatpush1.bf16.msra.mxu0 %v16445_v60 }
 0x3d2   :  { %2793 = vmatprep.subr.bf16.mxu0 %v16450_v61  ;;  %v16516_v61 = vld [vmem:[#allocation11 + $0x764] ss:$8 sps:$4 sm:$0xff]  }
 0x3d4   :  { %2122 = vmatmul.mubr.bf16.vlgmr.msra.gmra.mrb[28].mxu0 %v18858_v24 }
 0x3d5   :  { %2131 = vmatprep.mubr.bf16.mxu0 %v18862_v25  ;;  %2794 = vmatpush1.bf16.msra.mxu0 %v16448_v62  ;;  %v16514_v62 = vld [vmem:[#allocation11 + $0x760] ss:$8 sps:$4 sm:$0xff]  }
 0x3d6   :  { %2795 = vmatprep.subr.bf16.mxu0 %v16453_v63 }
 0x3d9   :  { %2796 = vmatpush1.bf16.msra.mxu0 %v16451_v0  ;;  %v16519_v0 = vld [vmem:[#allocation11 + $0x774] ss:$8 sps:$4 sm:$0xff]  }
 0x3da   :  { %2797 = vmatprep.subr.bf16.mxu0 %v16456_v2 }
 0x3dc   :  { %2132 = vmatmul.mubr.bf16.gmra.mrb[32].mxu0 %v18874_v27 }
 0x3dd   :  { %2798 = vmatpush1.bf16.msra.mxu0 %v16454_v3  ;;  %2825 = vmatprep.mubr.bf16.mxu0 %v18852_v22  ;;  %v16517_v3 = vld [vmem:[#allocation11 + $0x770] ss:$8 sps:$4 sm:$0xff]  }
 0x3de   :  { %2799 = vmatprep.subr.bf16.mxu0 %v16459_v4 }
 0x3e1   :  { %2800 = vmatpush1.bf16.msra.mxu0 %v16457_v5  ;;  %v16522_v5 = vld [vmem:[#allocation11 + $0x784] ss:$8 sps:$4 sm:$0xff]  }
 0x3e2   :  { %2801 = vmatprep.subr.bf16.mxu0 %v16462_v6 }
 0x3e5   :  { %2802 = vmatpush1.bf16.msra.mxu0 %v16460_v7  ;;  %v16520_v7 = vld [vmem:[#allocation11 + $0x780] ss:$8 sps:$4 sm:$0xff]  }
 0x3e6   :  { %2803 = vmatprep.subr.bf16.mxu0 %v16465_v8  ;;  %v16525_v8 = vld [vmem:[#allocation11 + $0x794] ss:$8 sps:$4 sm:$0xff]  }
 0x3e9   :  { %2804 = vmatpush1.bf16.msra.mxu0 %v16463_v9  ;;  %v16523_v9 = vld [vmem:[#allocation11 + $0x790] ss:$8 sps:$4 sm:$0xff]  }
 0x3ea   :  { %2805 = vmatprep.subr.bf16.mxu0 %v16468_v10  ;;  %v16528_v10 = vld [vmem:[#allocation11 + $0x7a4] ss:$8 sps:$4 sm:$0xff]  }
 0x3ed   :  { %2806 = vmatpush1.bf16.msra.mxu0 %v16466_v15  ;;  %v16526_v15 = vld [vmem:[#allocation11 + $0x7a0] ss:$8 sps:$4 sm:$0xff]  }
 0x3ee   :  { %2807 = vmatprep.subr.bf16.mxu0 %v16471_v16  ;;  %v16531_v16 = vld [vmem:[#allocation11 + $0x7b4] ss:$8 sps:$4 sm:$0xff]  }
 0x3f1   :  { %2808 = vmatpush1.bf16.msra.mxu0 %v16469_v23  ;;  %v16529_v23 = vld [vmem:[#allocation11 + $0x7b0] ss:$8 sps:$4 sm:$0xff]  }
 0x3f2   :  { %2809 = vmatprep.subr.bf16.mxu0 %v16474_v28  ;;  %v16534_v28 = vld [vmem:[#allocation11 + $0x7c4] ss:$8 sps:$4 sm:$0xff]  }
 0x3f5   :  { %2810 = vmatpush1.bf16.msra.mxu0 %v16472_v29  ;;  %v16532_v29 = vld [vmem:[#allocation11 + $0x7c0] ss:$8 sps:$4 sm:$0xff]  }
 0x3f6   :  { %2811 = vmatprep.subr.bf16.mxu0 %v16477_v30  ;;  %v16537_v30 = vld [vmem:[#allocation11 + $0x7d4] ss:$8 sps:$4 sm:$0xff]  }
 0x3f9   :  { %2812 = vmatpush1.bf16.msra.mxu0 %v16475_v31  ;;  %v16535_v31 = vld [vmem:[#allocation11 + $0x7d0] ss:$8 sps:$4 sm:$0xff]  }
 0x3fa   :  { %2813 = vmatprep.subr.bf16.mxu0 %v16480_v32  ;;  %v16540_v32 = vld [vmem:[#allocation11 + $0x7e4] ss:$8 sps:$4 sm:$0xff]  }
 0x3fd   :  { %2814 = vmatpush1.bf16.msra.mxu0 %v16478_v33  ;;  %v16538_v33 = vld [vmem:[#allocation11 + $0x7e0] ss:$8 sps:$4 sm:$0xff]  }
 0x3fe   :  { %2815 = vmatprep.subr.bf16.mxu0 %v16483_v34  ;;  %v16543_v34 = vld [vmem:[#allocation11 + $0x7f4] ss:$8 sps:$4 sm:$0xff]  }
 0x401   :  { %2816 = vmatpush1.bf16.msra.mxu0 %v16481_v35  ;;  %v16541_v35 = vld [vmem:[#allocation11 + $0x7f0] ss:$8 sps:$4 sm:$0xff]  }
 0x402   :  { %2817 = vmatprep.subr.bf16.mxu0 %v16486_v36 }
 0x405   :  { %2818 = vmatpush1.bf16.msra.mxu0 %v16484_v37 }
 0x406   :  { %2819 = vmatprep.subr.bf16.mxu0 %v16489_v38 }
 0x409   :  { %2820 = vmatpush1.bf16.msra.mxu0 %v16487_v39 }
 0x40a   :  { %2821 = vmatprep.subr.bf16.mxu0 %v16492_v40 }
 0x40d   :  { %2822 = vmatpush1.bf16.msra.mxu0 %v16490_v41 }
 0x40e   :  { %2823 = vmatprep.subr.bf16.mxu0 %v16495_v42 }
 0x411   :  { %2824 = vmatpush1.bf16.msra.mxu0 %v16493_v43 }
 0x412   :  { %3145 = vmatprep.subr.bf16.mxu0 %v16498_v44 }
 0x414   :  { %2826 = vmatmul.mubr.bf16.vlgmr.msra.gmra.mrb[36].mxu0 %v18858_v24 }
 0x415   :  { %2835 = vmatprep.mubr.bf16.mxu0 %v18862_v25  ;;  %3146 = vmatpush1.bf16.msra.mxu0 %v16496_v45 }
 0x416   :  { %3147 = vmatprep.subr.bf16.mxu0 %v16501_v46 }
 0x419   :  { %3148 = vmatpush1.bf16.msra.mxu0 %v16499_v47 }
 0x41a   :  { %3149 = vmatprep.subr.bf16.mxu0 %v16504_v48 }
 0x41c   :  { %2836 = vmatmul.mubr.bf16.gmra.mrb[40].mxu0 %v18874_v27 }
 0x41d   :  { %3150 = vmatpush1.bf16.msra.mxu0 %v16502_v49  ;;  %3177 = vmatprep.mubr.bf16.mxu0 %v18852_v22 }
 0x41e   :  { %3151 = vmatprep.subr.bf16.mxu0 %v16507_v50 }
 0x421   :  { %3152 = vmatpush1.bf16.msra.mxu0 %v16505_v51  ;;  %v1437_v51 = vld [vmem:[#allocation9 + $0x30] sm:$0xff] }
 0x422   :  { %3153 = vmatprep.subr.bf16.mxu0 %v16510_v53 }
 0x425   :  { %3154 = vmatpush1.bf16.msra.mxu0 %v16508_v55  ;;  %v18912_v58 = vpop.f32.mrb[6].mxu0 }
 0x426   :  { %v18914_v60 = vpop.f32.mrb[7].mxu0  ;;  %3155 = vmatprep.subr.bf16.mxu0 %v16513_v57 }
 0x429   :  { %3156 = vmatpush1.bf16.msra.mxu0 %v16511_v59  ;;  %v18916_v63 = vpop.f32.mrb[16].mxu0 }
 0x42a   :  { %3157 = vmatprep.subr.bf16.mxu0 %v16516_v61  ;;  %v18918_v2 = vpop.f32.mrb[17].mxu0 }
 0x42d   :  { %3158 = vmatpush1.bf16.msra.mxu0 %v16514_v62  ;;  %v18920_v4 = vpop.f32.mrb[18].mxu0  ;;  %v1438_v62 = vld [vmem:[#allocation9 + $0x38] sm:$0xff] }
 0x42e   :  { %3159 = vmatprep.subr.bf16.mxu0 %v16519_v0  ;;  %v18922_v6 = vpop.f32.mrb[19].mxu0  ;;  %v1439_v0 = vld [vmem:[#allocation9 + $0x40] sm:$0x3] }
 0x431   :  { %3160 = vmatpush1.bf16.msra.mxu0 %v16517_v3  ;;  %v1789_v3 = vld [vmem:[#allocation9 + $0x48] sm:$0xff] }
 0x432   :  { %3161 = vmatprep.subr.bf16.mxu0 %v16522_v5  ;;  %v1790_v5 = vld [vmem:[#allocation9 + $0x50] sm:$0xff] }
 0x435   :  { %3162 = vmatpush1.bf16.msra.mxu0 %v16520_v7  ;;  %v1791_v7 = vld [vmem:[#allocation9 + $0x58] sm:$0x3] }
 0x436   :  { %3163 = vmatprep.subr.bf16.mxu0 %v16525_v8 }
 0x439   :  { %3164 = vmatpush1.bf16.msra.mxu0 %v16523_v9 }
 0x43a   :  { %3165 = vmatprep.subr.bf16.mxu0 %v16528_v10 }
 0x43d   :  { %3166 = vmatpush1.bf16.msra.mxu0 %v16526_v15 }
 0x43e   :  { %3167 = vmatprep.subr.bf16.mxu0 %v16531_v16 }
 0x441   :  { %3168 = vmatpush1.bf16.msra.mxu0 %v16529_v23 }
 0x442   :  { %3169 = vmatprep.subr.bf16.mxu0 %v16534_v28 }
 0x445   :  { %3170 = vmatpush1.bf16.msra.mxu0 %v16532_v29  ;;  %v16546_v29 = vld [vmem:[#allocation11 + $0x504] ss:$8 sps:$4 sm:$0xff]  }
 0x446   :  { %3171 = vmatprep.subr.bf16.mxu0 %v16537_v30 }
 0x449   :  { %3172 = vmatpush1.bf16.msra.mxu0 %v16535_v31  ;;  %v2141_v31 = vld [vmem:[#allocation9 + $0x60] sm:$0xff] }
 0x44a   :  { %3173 = vmatprep.subr.bf16.mxu0 %v16540_v32  ;;  %v16544_v32 = vld [vmem:[#allocation11 + $0x500] ss:$8 sps:$4 sm:$0xff]  }
 0x44d   :  { %3174 = vmatpush1.bf16.msra.mxu0 %v16538_v33 }
 0x44e   :  { %3175 = vmatprep.subr.bf16.mxu0 %v16543_v34  ;;  %v16549_v34 = vld [vmem:[#allocation11 + $0x514] ss:$8 sps:$4 sm:$0xff]  }
 0x451   :  { %3176 = vmatpush1.bf16.msra.mxu0 %v16541_v35 }
 0x454   :  { %3178 = vmatmul.mubr.bf16.vlgmr.msra.gmra.mrb[44].mxu0 %v18858_v24 }
 0x455   :  { %3187 = vmatprep.mubr.bf16.mxu0 %v18862_v25 }
 0x45c   :  { %3188 = vmatmul.mubr.bf16.gmra.mrb[48].mxu0 %v18874_v27 }
 0x466   :  { %v1419_v36 = vpop.f32.mrb[16].mxu1 }
 0x467   :  { %v1771_v37 = vpop.f32.mrb[20].mxu0  ;;  %v1421_v38 = vpop.f32.mrb[17].mxu1 }
 0x468   :  { %v1773_v39 = vpop.f32.mrb[21].mxu0  ;;  %v1423_v40 = vpop.f32.mrb[18].mxu1 }
 0x469   :  { %v15760_v41 = vpack.c.bf16 %v1423_v40, %v1419_v36  ;;  %v1775_v42 = vpop.f32.mrb[22].mxu0  ;;  %v1425_v43 = vpop.f32.mrb[19].mxu1  ;;  %v2142_v36 = vld [vmem:[#allocation9 + $0x68] sm:$0xff]  ;;  %v16550_v40 = vld [vmem:[#allocation11 + $0x520] ss:$8 sps:$4 sm:$0xff]  }
 0x46a   :  { %v15764_v44 = vpack.c.bf16 %v1775_v42, %v1771_v37  ;;  %v15758_v45 = vpack.c.bf16 %v1425_v43, %v1421_v38  ;;  %v1777_v46 = vpop.f32.mrb[23].mxu0  ;;  %v16547_v37 = vld [vmem:[#allocation11 + $0x510] ss:$8 sps:$4 sm:$0xff]   ;;  %v16552_v38 = vld [vmem:[#allocation11 + $0x524] ss:$8 sps:$4 sm:$0xff]  }
 0x46b   :  { %v15762_v47 = vpack.c.bf16 %v1777_v46, %v1773_v39  ;;  %v2143_v39 = vld [vmem:[#allocation9 + $0x70] sm:$0x3]  ;;  %v16558_v43 = vld [vmem:[#allocation11 + $0x544] ss:$8 sps:$4 sm:$0xff]  }
 0x46c   :  { %15759 = vmatprep.subr.bf16.mxu1 %v15758_v45  ;;  %v16553_v42 = vld [vmem:[#allocation11 + $0x530] ss:$8 sps:$4 sm:$0xff]   ;;  %v16561_v45 = vld [vmem:[#allocation11 + $0x554] ss:$8 sps:$4 sm:$0xff]  }
 0x46d   :  { %15761 = vmatpush1.bf16.msra.mxu1 %v15760_v41  ;;  %v16555_v41 = vld [vmem:[#allocation11 + $0x534] ss:$8 sps:$4 sm:$0xff]   ;;  %v16559_v46 = vld [vmem:[#allocation11 + $0x550] ss:$8 sps:$4 sm:$0xff]  }
 0x46e   :  { %v1429_v48 = vpop.f32.mrb[20].mxu1 }
 0x46f   :  { %v1781_v49 = vpop.f32.mrb[24].mxu0  ;;  %v1431_v50 = vpop.f32.mrb[21].mxu1 }
 0x470   :  { %v1783_v53 = vpop.f32.mrb[25].mxu0  ;;  %v1433_v55 = vpop.f32.mrb[22].mxu1  ;;  %14342 = vmatprep.subr.msk.mxu1 %vm391_vm0, %v1431_v50  ;;  %v16565_v50 = vld [vmem:[#allocation11 + $0x570] ss:$8 sps:$4 sm:$0xff]  }
 0x471   :  { %v1785_v57 = vpop.f32.mrb[26].mxu0  ;;  %v1434_v59 = vpop.f32.mrb[23].mxu1  ;;  %14343 = vmatpush1.msk.msra.mxu1 %vm391_vm0, %v1429_v48  ;;  %v16562_v48 = vld [vmem:[#allocation11 + $0x560] ss:$8 sps:$4 sm:$0xff]   ;;  %v16573_v55 = vld [vmem:[#allocation11 + $0x594] ss:$8 sps:$4 sm:$0xff]  }
 0x472   :  { %v1786_v61 = vpop.f32.mrb[27].mxu0  ;;  %15763 = vmatprep.subr.bf16.mxu1 %v15762_v47  ;;  %14344 = vmatmul.mubr.msk.f32.vlgmr.msra.gmra.mrb[8].mxu1 %vm995_vm1, %v1437_v51  ;;  %v16564_v47 = vld [vmem:[#allocation11 + $0x564] ss:$8 sps:$4 sm:$0xff]   ;;  %v16571_v57 = vld [vmem:[#allocation11 + $0x590] ss:$8 sps:$4 sm:$0xff]  }
 0x473   :  { %15765 = vmatpush1.bf16.msra.mxu1 %v15764_v44  ;;  %1525 = vmatprep.mubr.f32.mxu1 %v18483_v1  ;;  %v16556_v44 = vld [vmem:[#allocation11 + $0x540] ss:$8 sps:$4 sm:$0xff]   ;;  %v16570_v51 = vld [vmem:[#allocation11 + $0x584] ss:$8 sps:$4 sm:$0xff]  }
 0x474   :  { %14379 = vmatprep.subr.msk.mxu1 %vm391_vm0, %v1783_v53  ;;  %v16568_v53 = vld [vmem:[#allocation11 + $0x580] ss:$8 sps:$4 sm:$0xff]   ;;  %v16576_v59 = vld [vmem:[#allocation11 + $0x5a4] ss:$8 sps:$4 sm:$0xff]  }
 0x475   :  { %v16574_v61 = vld [vmem:[#allocation11 + $0x5a0] ss:$8 sps:$4 sm:$0xff]  }
 0x476   :  { %14345 = vmatmul.mubr.msk.f32.gmra.mrb[10].mxu1 %vm995_vm1, %v1438_v62  ;;  %v16579_v62 = vld [vmem:[#allocation11 + $0x5b4] ss:$8 sps:$4 sm:$0xff]  }
 0x477   :  { %14380 = vmatpush1.msk.msra.mxu1 %vm391_vm0, %v1781_v49  ;;  %1531 = vmatprep.mubr.f32.mxu1 %v18483_v1  ;;  %v16567_v49 = vld [vmem:[#allocation11 + $0x574] ss:$8 sps:$4 sm:$0xff]  }
 0x47a   :  { %14346 = vmatmul.mubr.msk.f32.gmra.mrb[12].mxu1 %vm995_vm1, %v1439_v0  ;;  %v16577_v0 = vld [vmem:[#allocation11 + $0x5b0] ss:$8 sps:$4 sm:$0xff]  }
 0x47b   :  { %1871 = vmatprep.mubr.f32.mxu1 %v18483_v1 }
 0x47e   :  { %14381 = vmatmul.mubr.msk.f32.vlgmr.msra.gmra.mrb[8].mxu1 %vm995_vm1, %v1789_v3  ;;  %v16582_v3 = vld [vmem:[#allocation11 + $0x5c4] ss:$8 sps:$4 sm:$0xff]  }
 0x47f   :  { %1877 = vmatprep.mubr.f32.mxu1 %v18483_v1 }
 0x482   :  { %14382 = vmatmul.mubr.msk.f32.gmra.mrb[10].mxu1 %vm995_vm1, %v1790_v5  ;;  %v16580_v5 = vld [vmem:[#allocation11 + $0x5c0] ss:$8 sps:$4 sm:$0xff]  }
 0x483   :  { %1883 = vmatprep.mubr.f32.mxu1 %v18483_v1 }
 0x486   :  { %14383 = vmatmul.mubr.msk.f32.gmra.mrb[12].mxu1 %vm995_vm1, %v1791_v7  ;;  %v16585_v7 = vld [vmem:[#allocation11 + $0x5d4] ss:$8 sps:$4 sm:$0xff]  }
 0x487   :  { %2223 = vmatprep.mubr.f32.mxu1 %v18483_v1 }
 0x4a7   :  { %v2123_v8 = vpop.f32.mrb[28].mxu0 }
 0x4a8   :  { %v2125_v9 = vpop.f32.mrb[29].mxu0 }
 0x4a9   :  { %v2127_v10 = vpop.f32.mrb[30].mxu0 }
 0x4aa   :  { %v15768_v15 = vpack.c.bf16 %v2127_v10, %v2123_v8  ;;  %v2129_v16 = vpop.f32.mrb[31].mxu0  ;;  %v16583_v8 = vld [vmem:[#allocation11 + $0x5d0] ss:$8 sps:$4 sm:$0xff]  }
 0x4ab   :  { %v15766_v23 = vpack.c.bf16 %v2129_v16, %v2125_v9  ;;  %v16588_v9 = vld [vmem:[#allocation11 + $0x5e4] ss:$8 sps:$4 sm:$0xff]   ;;  %v16586_v16 = vld [vmem:[#allocation11 + $0x5e0] ss:$8 sps:$4 sm:$0xff]  }
 0x4ad   :  { %15767 = vmatprep.subr.bf16.mxu1 %v15766_v23 }
 0x4ae   :  { %15769 = vmatpush1.bf16.msra.mxu1 %v15768_v15 }
 0x4af   :  { %v2133_v28 = vpop.f32.mrb[32].mxu0 }
 0x4b0   :  { %v2135_v30 = vpop.f32.mrb[33].mxu0 }
 0x4b1   :  { %v2137_v33 = vpop.f32.mrb[34].mxu0  ;;  %14416 = vmatprep.subr.msk.mxu1 %vm391_vm0, %v2135_v30 }
 0x4b2   :  { %v2138_v35 = vpop.f32.mrb[35].mxu0  ;;  %14417 = vmatpush1.msk.msra.mxu1 %vm391_vm0, %v2133_v28  ;;  %v16591_v28 = vld [vmem:[#allocation11 + $0x5f4] ss:$8 sps:$4 sm:$0xff]  }
 0x4b3   :  { %14418 = vmatmul.mubr.msk.f32.vlgmr.msra.gmra.mrb[8].mxu1 %vm995_vm1, %v2141_v31  ;;  %2441 = vmatprep.subr.bf16.mxu1 %v16546_v29 }
 0x4b4   :  { %2442 = vmatpush1.bf16.msra.mxu1 %v16544_v32  ;;  %2229 = vmatprep.mubr.f32.mxu1 %v18483_v1  ;;  %v16589_v32 = vld [vmem:[#allocation11 + $0x5f0] ss:$8 sps:$4 sm:$0xff]  }
 0x4b5   :  { %2443 = vmatprep.subr.bf16.mxu1 %v16549_v34 }
 0x4b7   :  { %14419 = vmatmul.mubr.msk.f32.gmra.mrb[10].mxu1 %vm995_vm1, %v2142_v36 }
 0x4b8   :  { %2444 = vmatpush1.bf16.msra.mxu1 %v16547_v37  ;;  %2235 = vmatprep.mubr.f32.mxu1 %v18483_v1 }
 0x4b9   :  { %2445 = vmatprep.subr.bf16.mxu1 %v16552_v38 }
 0x4bb   :  { %14420 = vmatmul.mubr.msk.f32.gmra.mrb[12].mxu1 %vm995_vm1, %v2143_v39 }
 0x4bc   :  { %2446 = vmatpush1.bf16.msra.mxu1 %v16550_v40  ;;  %2473 = vmatprep.mubr.bf16.mxu1 %v18852_v22 }
 0x4bd   :  { %2447 = vmatprep.subr.bf16.mxu1 %v16555_v41 }
 0x4c0   :  { %2448 = vmatpush1.bf16.msra.mxu1 %v16553_v42 }
 0x4c1   :  { %2449 = vmatprep.subr.bf16.mxu1 %v16558_v43 }
 0x4c4   :  { %2450 = vmatpush1.bf16.msra.mxu1 %v16556_v44 }
 0x4c5   :  { %2451 = vmatprep.subr.bf16.mxu1 %v16561_v45 }
 0x4c8   :  { %2452 = vmatpush1.bf16.msra.mxu1 %v16559_v46 }
 0x4c9   :  { %2453 = vmatprep.subr.bf16.mxu1 %v16564_v47 }
 0x4cc   :  { %2454 = vmatpush1.bf16.msra.mxu1 %v16562_v48 }
 0x4cd   :  { %2455 = vmatprep.subr.bf16.mxu1 %v16567_v49 }
 0x4d0   :  { %2456 = vmatpush1.bf16.msra.mxu1 %v16565_v50 }
 0x4d1   :  { %2457 = vmatprep.subr.bf16.mxu1 %v16570_v51 }
 0x4d4   :  { %2458 = vmatpush1.bf16.msra.mxu1 %v16568_v53 }
 0x4d5   :  { %2459 = vmatprep.subr.bf16.mxu1 %v16573_v55 }
 0x4d8   :  { %2460 = vmatpush1.bf16.msra.mxu1 %v16571_v57 }
 0x4d9   :  { %2461 = vmatprep.subr.bf16.mxu1 %v16576_v59  ;;  %v2493_v59 = vld [vmem:[#allocation9 + $0x78] sm:$0xff] }
 0x4dc   :  { %2462 = vmatpush1.bf16.msra.mxu1 %v16574_v61 }
 0x4dd   :  { %2463 = vmatprep.subr.bf16.mxu1 %v16579_v62 }
 0x4e0   :  { %2464 = vmatpush1.bf16.msra.mxu1 %v16577_v0  ;;  %v2494_v0 = vld [vmem:[#allocation9 + $0x80] sm:$0xff] }
 0x4e1   :  { %2465 = vmatprep.subr.bf16.mxu1 %v16582_v3  ;;  %v2495_v3 = vld [vmem:[#allocation9 + $0x88] sm:$0x3] }
 0x4e4   :  { %2466 = vmatpush1.bf16.msra.mxu1 %v16580_v5  ;;  %v2845_v5 = vld [vmem:[#allocation9 + $0x90] sm:$0xff] }
 0x4e5   :  { %2467 = vmatprep.subr.bf16.mxu1 %v16585_v7  ;;  %v2846_v7 = vld [vmem:[#allocation9 + $0x98] sm:$0xff] }
 0x4e7   :  { %v2827_v10 = vpop.f32.mrb[36].mxu0 }
 0x4e8   :  { %2468 = vmatpush1.bf16.msra.mxu1 %v16583_v8  ;;  %v2829_v15 = vpop.f32.mrb[37].mxu0  ;;  %v16594_v8 = vld [vmem:[#allocation11 + $0x804] ss:$8 sps:$4 sm:$0xff]  }
 0x4e9   :  { %v2831_v23 = vpop.f32.mrb[38].mxu0  ;;  %2469 = vmatprep.subr.bf16.mxu1 %v16588_v9  ;;  %v2847_v9 = vld [vmem:[#allocation9 + $0xa0] sm:$0x3] }
 0x4ea   :  { %v15776_v29 = vpack.c.bf16 %v2831_v23, %v2827_v10  ;;  %v2833_v30 = vpop.f32.mrb[39].mxu0  ;;  %v16592_v10 = vld [vmem:[#allocation11 + $0x800] ss:$8 sps:$4 sm:$0xff]   ;;  %v16595_v23 = vld [vmem:[#allocation11 + $0x810] ss:$8 sps:$4 sm:$0xff]  }
 0x4eb   :  { %v15774_v31 = vpack.c.bf16 %v2833_v30, %v2829_v15  ;;  %v3197_v15 = vld [vmem:[#allocation9 + $0xa8] sm:$0xff]  ;;  %v16598_v30 = vld [vmem:[#allocation11 + $0x820] ss:$8 sps:$4 sm:$0xff]  }
 0x4ec   :  { %2470 = vmatpush1.bf16.msra.mxu1 %v16586_v16  ;;  %v16597_v16 = vld [vmem:[#allocation11 + $0x814] ss:$8 sps:$4 sm:$0xff]  }
 0x4ed   :  { %2471 = vmatprep.subr.bf16.mxu1 %v16591_v28  ;;  %v3198_v28 = vld [vmem:[#allocation9 + $0xb0] sm:$0xff] }
 0x4ef   :  { %v2837_v33 = vpop.f32.mrb[40].mxu0 }
 0x4f0   :  { %2472 = vmatpush1.bf16.msra.mxu1 %v16589_v32  ;;  %v2839_v34 = vpop.f32.mrb[41].mxu0  ;;  %v16603_v32 = vld [vmem:[#allocation11 + $0x834] ss:$8 sps:$4 sm:$0xff]  }
 0x4f1   :  { %v2841_v35 = vpop.f32.mrb[42].mxu0 }
 0x4f2   :  { %v2842_v36 = vpop.f32.mrb[43].mxu0  ;;  %v16604_v35 = vld [vmem:[#allocation11 + $0x840] ss:$8 sps:$4 sm:$0xff]  }
 0x4f3   :  { %2474 = vmatmul.mubr.bf16.vlgmr.msra.gmra.mrb[24].mxu1 %v18858_v24  ;;  %v16609_v36 = vld [vmem:[#allocation11 + $0x854] ss:$8 sps:$4 sm:$0xff]  }
 0x4f4   :  { %2483 = vmatprep.mubr.bf16.mxu1 %v18862_v25 }
 0x4fb   :  { %2484 = vmatmul.mubr.bf16.gmra.mrb[28].mxu1 %v18874_v27 }
 0x4fc   :  { %2575 = vmatprep.mubr.f32.mxu1 %v18483_v1 }
 0x527   :  { %v3179_v37 = vpop.f32.mrb[44].mxu0 }
 0x528   :  { %v3181_v38 = vpop.f32.mrb[45].mxu0 }
 0x529   :  { %v3183_v39 = vpop.f32.mrb[46].mxu0 }
 0x52a   :  { %v15780_v40 = vpack.c.bf16 %v3183_v39, %v3179_v37  ;;  %v3185_v41 = vpop.f32.mrb[47].mxu0  ;;  %v16607_v37 = vld [vmem:[#allocation11 + $0x850] ss:$8 sps:$4 sm:$0xff]   ;;  %v16610_v39 = vld [vmem:[#allocation11 + $0x860] ss:$8 sps:$4 sm:$0xff]  }
 0x52b   :  { %v15778_v42 = vpack.c.bf16 %v3185_v41, %v3181_v38  ;;  %v16612_v38 = vld [vmem:[#allocation11 + $0x864] ss:$8 sps:$4 sm:$0xff]   ;;  %v16613_v41 = vld [vmem:[#allocation11 + $0x870] ss:$8 sps:$4 sm:$0xff]  }
 0x52f   :  { %v3189_v43 = vpop.f32.mrb[48].mxu0 }
 0x530   :  { %v3191_v44 = vpop.f32.mrb[49].mxu0 }
 0x531   :  { %v3193_v45 = vpop.f32.mrb[50].mxu0 }
 0x532   :  { %v3194_v46 = vpop.f32.mrb[51].mxu0  ;;  %v16624_v45 = vld [vmem:[#allocation11 + $0x8a4] ss:$8 sps:$4 sm:$0xff]  }
 0x533   :  { %v16622_v46 = vld [vmem:[#allocation11 + $0x8a0] ss:$8 sps:$4 sm:$0xff]  }
 0x5c6   :  { %v2475_v47 = vpop.f32.mrb[24].mxu1 }
 0x5c7   :  { %v2477_v48 = vpop.f32.mrb[25].mxu1 }
 0x5c8   :  { %v2479_v49 = vpop.f32.mrb[26].mxu1 }
 0x5c9   :  { %v15772_v50 = vpack.c.bf16 %v2479_v49, %v2475_v47  ;;  %v2481_v51 = vpop.f32.mrb[27].mxu1  ;;  %v16627_v47 = vld [vmem:[#allocation11 + $0x8b4] ss:$8 sps:$4 sm:$0xff]   ;;  %v16630_v49 = vld [vmem:[#allocation11 + $0x8c4] ss:$8 sps:$4 sm:$0xff]  }
 0x5ca   :  { %v15770_v53 = vpack.c.bf16 %v2481_v51, %v2477_v48  ;;  %v16625_v48 = vld [vmem:[#allocation11 + $0x8b0] ss:$8 sps:$4 sm:$0xff]   ;;  %v16633_v51 = vld [vmem:[#allocation11 + $0x8d4] ss:$8 sps:$4 sm:$0xff]  }
 0x5cc   :  { %15771 = vmatprep.subr.bf16.mxu1 %v15770_v53  ;;  %v16631_v53 = vld [vmem:[#allocation11 + $0x8d0] ss:$8 sps:$4 sm:$0xff]  }
 0x5cd   :  { %15773 = vmatpush1.bf16.msra.mxu1 %v15772_v50  ;;  %v16628_v50 = vld [vmem:[#allocation11 + $0x8c0] ss:$8 sps:$4 sm:$0xff]  }
 0x5ce   :  { %v2485_v55 = vpop.f32.mrb[28].mxu1 }
 0x5cf   :  { %v2487_v57 = vpop.f32.mrb[29].mxu1 }
 0x5d0   :  { %v2489_v61 = vpop.f32.mrb[30].mxu1  ;;  %14453 = vmatprep.subr.msk.mxu1 %vm391_vm0, %v2487_v57  ;;  %v16634_v57 = vld [vmem:[#allocation11 + $0x8e0] ss:$8 sps:$4 sm:$0xff]  }
 0x5d1   :  { %v2490_v62 = vpop.f32.mrb[31].mxu1  ;;  %14454 = vmatpush1.msk.msra.mxu1 %vm391_vm0, %v2485_v55  ;;  %v16636_v55 = vld [vmem:[#allocation11 + $0x8e4] ss:$8 sps:$4 sm:$0xff]   ;;  %v16637_v61 = vld [vmem:[#allocation11 + $0x8f0] ss:$8 sps:$4 sm:$0xff]  }
 0x5d2   :  { %14455 = vmatmul.mubr.msk.f32.vlgmr.msra.gmra.mrb[8].mxu1 %vm995_vm1, %v2493_v59  ;;  %15775 = vmatprep.subr.bf16.mxu1 %v15774_v31  ;;  %v3199_v31 = vld [vmem:[#allocation9 + $0xb8] sm:$0x3]  ;;  %v16639_v59 = vld [vmem:[#allocation11 + $0x8f4] ss:$8 sps:$4 sm:$0xff]  }
 0x5d3   :  { %15777 = vmatpush1.bf16.msra.mxu1 %v15776_v29  ;;  %2581 = vmatprep.mubr.f32.mxu1 %v18483_v1  ;;  %v16600_v29 = vld [vmem:[#allocation11 + $0x824] ss:$8 sps:$4 sm:$0xff]  }
 0x5d4   :  { %14490 = vmatprep.subr.msk.mxu1 %vm391_vm0, %v2839_v34  ;;  %v16606_v34 = vld [vmem:[#allocation11 + $0x844] ss:$8 sps:$4 sm:$0xff]  }
 0x5d6   :  { %14456 = vmatmul.mubr.msk.f32.gmra.mrb[10].mxu1 %vm995_vm1, %v2494_v0 }
 0x5d7   :  { %14491 = vmatpush1.msk.msra.mxu1 %vm391_vm0, %v2837_v33  ;;  %2587 = vmatprep.mubr.f32.mxu1 %v18483_v1  ;;  %v16601_v33 = vld [vmem:[#allocation11 + $0x830] ss:$8 sps:$4 sm:$0xff]  }
 0x5d8   :  { %15779 = vmatprep.subr.bf16.mxu1 %v15778_v42  ;;  %v16618_v42 = vld [vmem:[#allocation11 + $0x884] ss:$8 sps:$4 sm:$0xff]  }
 0x5da   :  { %14457 = vmatmul.mubr.msk.f32.gmra.mrb[12].mxu1 %vm995_vm1, %v2495_v3 }
 0x5db   :  { %2927 = vmatprep.mubr.f32.mxu1 %v18483_v1 }
 0x5de   :  { %14492 = vmatmul.mubr.msk.f32.vlgmr.msra.gmra.mrb[8].mxu1 %vm995_vm1, %v2845_v5 }
 0x5df   :  { %15781 = vmatpush1.bf16.msra.mxu1 %v15780_v40  ;;  %2933 = vmatprep.mubr.f32.mxu1 %v18483_v1  ;;  %v16615_v40 = vld [vmem:[#allocation11 + $0x874] ss:$8 sps:$4 sm:$0xff]  }
 0x5e0   :  { %14527 = vmatprep.subr.msk.mxu1 %vm391_vm0, %v3191_v44  ;;  %v16619_v44 = vld [vmem:[#allocation11 + $0x890] ss:$8 sps:$4 sm:$0xff]  }
 0x5e2   :  { %14493 = vmatmul.mubr.msk.f32.gmra.mrb[10].mxu1 %vm995_vm1, %v2846_v7 }
 0x5e3   :  { %14528 = vmatpush1.msk.msra.mxu1 %vm391_vm0, %v3189_v43  ;;  %2939 = vmatprep.mubr.f32.mxu1 %v18483_v1  ;;  %v16621_v43 = vld [vmem:[#allocation11 + $0x894] ss:$8 sps:$4 sm:$0xff]  }
 0x5e4   :  { %3497 = vmatprep.subr.bf16.mxu1 %v16594_v8 }
 0x5e6   :  { %14494 = vmatmul.mubr.msk.f32.gmra.mrb[12].mxu1 %vm995_vm1, %v2847_v9 }
 0x5e7   :  { %3279 = vmatprep.mubr.f32.mxu1 %v18483_v1 }
 0x5ea   :  { %14529 = vmatmul.mubr.msk.f32.vlgmr.msra.gmra.mrb[8].mxu1 %vm995_vm1, %v3197_v15  ;;  %v3549_v15 = vld [vmem:[#allocation9 + $0xc0] sm:$0xff] }
 0x5eb   :  { %3498 = vmatpush1.bf16.msra.mxu1 %v16592_v10  ;;  %3285 = vmatprep.mubr.f32.mxu1 %v18483_v1 }
 0x5ec   :  { %3499 = vmatprep.subr.bf16.mxu1 %v16597_v16 }
 0x5ee   :  { %14530 = vmatmul.mubr.msk.f32.gmra.mrb[10].mxu1 %vm995_vm1, %v3198_v28  ;;  %v16640_v28 = vld [vmem:[#allocation11 + $0xa00] ss:$8 sps:$4 sm:$0xff]  }
 0x5ef   :  { %3500 = vmatpush1.bf16.msra.mxu1 %v16595_v23  ;;  %3291 = vmatprep.mubr.f32.mxu1 %v18483_v1  ;;  %v16642_v23 = vld [vmem:[#allocation11 + $0xa04] ss:$8 sps:$4 sm:$0xff]  }
 0x5f0   :  { %3501 = vmatprep.subr.bf16.mxu1 %v16600_v29  ;;  %v16645_v29 = vld [vmem:[#allocation11 + $0x904] ss:$8 sps:$4 sm:$0xff]  }
 0x5f1   :  { %3994 = vmatprep.subr.bf16.mxu0 %v16645_v29  ;;  %v16711_v29 = vld [vmem:[#allocation11 + $0x9b4] ss:$8 sps:$4 sm:$0xff]  }
 0x5f2   :  { %14531 = vmatmul.mubr.msk.f32.gmra.mrb[12].mxu1 %vm995_vm1, %v3199_v31  ;;  %v16648_v31 = vld [vmem:[#allocation11 + $0xa14] ss:$8 sps:$4 sm:$0xff]  }
 0x5f3   :  { %3502 = vmatpush1.bf16.msra.mxu1 %v16598_v30  ;;  %3529 = vmatprep.mubr.bf16.mxu1 %v18852_v22  ;;  %v16616_v22 = vld [vmem:[#allocation11 + $0x880] ss:$8 sps:$4 sm:$0xff]  }
 0x5f4   :  { %3503 = vmatprep.subr.bf16.mxu1 %v16603_v32  ;;  %v16643_v30 = vld [vmem:[#allocation11 + $0x900] ss:$8 sps:$4 sm:$0xff]   ;;  %v16646_v32 = vld [vmem:[#allocation11 + $0xa10] ss:$8 sps:$4 sm:$0xff]  }
 0x5f5   :  { %3995 = vmatpush1.bf16.msra.mxu0 %v16643_v30  ;;  %v16709_v30 = vld [vmem:[#allocation11 + $0x9b0] ss:$8 sps:$4 sm:$0xff]  }
 0x5f7   :  { %3504 = vmatpush1.bf16.msra.mxu1 %v16601_v33  ;;  %v16651_v33 = vld [vmem:[#allocation11 + $0x914] ss:$8 sps:$4 sm:$0xff]  }
 0x5f8   :  { %3505 = vmatprep.subr.bf16.mxu1 %v16606_v34  ;;  %v16649_v34 = vld [vmem:[#allocation11 + $0x910] ss:$8 sps:$4 sm:$0xff]   ;;  %3996 = vmatprep.subr.bf16.mxu0 %v16651_v33  ;;  %v16717_v33 = vld [vmem:[#allocation11 + $0x9c4] ss:$8 sps:$4 sm:$0xff]  }
 0x5f9   :  { %3997 = vmatpush1.bf16.msra.mxu0 %v16649_v34  ;;  %v16715_v34 = vld [vmem:[#allocation11 + $0x9c0] ss:$8 sps:$4 sm:$0xff]  }
 0x5fb   :  { %3506 = vmatpush1.bf16.msra.mxu1 %v16604_v35  ;;  %v16654_v35 = vld [vmem:[#allocation11 + $0xa24] ss:$8 sps:$4 sm:$0xff]  }
 0x5fc   :  { %3507 = vmatprep.subr.bf16.mxu1 %v16609_v36  ;;  %v16652_v36 = vld [vmem:[#allocation11 + $0xa20] ss:$8 sps:$4 sm:$0xff]  }
 0x5ff   :  { %3508 = vmatpush1.bf16.msra.mxu1 %v16607_v37  ;;  %v16657_v37 = vld [vmem:[#allocation11 + $0x924] ss:$8 sps:$4 sm:$0xff]  }
 0x600   :  { %3509 = vmatprep.subr.bf16.mxu1 %v16612_v38  ;;  %v16655_v38 = vld [vmem:[#allocation11 + $0x920] ss:$8 sps:$4 sm:$0xff]   ;;  %3998 = vmatprep.subr.bf16.mxu0 %v16657_v37  ;;  %v16723_v37 = vld [vmem:[#allocation11 + $0x9d4] ss:$8 sps:$4 sm:$0xff]  }
 0x601   :  { %3999 = vmatpush1.bf16.msra.mxu0 %v16655_v38  ;;  %v16721_v38 = vld [vmem:[#allocation11 + $0x9d0] ss:$8 sps:$4 sm:$0xff]  }
 0x603   :  { %3510 = vmatpush1.bf16.msra.mxu1 %v16610_v39  ;;  %v16660_v39 = vld [vmem:[#allocation11 + $0xa34] ss:$8 sps:$4 sm:$0xff]  }
 0x604   :  { %3511 = vmatprep.subr.bf16.mxu1 %v16615_v40  ;;  %v16658_v40 = vld [vmem:[#allocation11 + $0xa30] ss:$8 sps:$4 sm:$0xff]  }
 0x607   :  { %3512 = vmatpush1.bf16.msra.mxu1 %v16613_v41  ;;  %v16663_v41 = vld [vmem:[#allocation11 + $0x934] ss:$8 sps:$4 sm:$0xff]  }
 0x608   :  { %3513 = vmatprep.subr.bf16.mxu1 %v16618_v42  ;;  %v16661_v42 = vld [vmem:[#allocation11 + $0x930] ss:$8 sps:$4 sm:$0xff]   ;;  %4000 = vmatprep.subr.bf16.mxu0 %v16663_v41  ;;  %v16729_v41 = vld [vmem:[#allocation11 + $0x9e4] ss:$8 sps:$4 sm:$0xff]  }
 0x609   :  { %4001 = vmatpush1.bf16.msra.mxu0 %v16661_v42  ;;  %v16727_v42 = vld [vmem:[#allocation11 + $0x9e0] ss:$8 sps:$4 sm:$0xff]  }
 0x60b   :  { %3514 = vmatpush1.bf16.msra.mxu1 %v16616_v22  ;;  %v16666_v22 = vld [vmem:[#allocation11 + $0xa44] ss:$8 sps:$4 sm:$0xff]  }
 0x60c   :  { %3515 = vmatprep.subr.bf16.mxu1 %v16621_v43  ;;  %v16664_v43 = vld [vmem:[#allocation11 + $0xa40] ss:$8 sps:$4 sm:$0xff]  }
 0x60f   :  { %3516 = vmatpush1.bf16.msra.mxu1 %v16619_v44  ;;  %v16669_v44 = vld [vmem:[#allocation11 + $0x944] ss:$8 sps:$4 sm:$0xff]  }
 0x610   :  { %3517 = vmatprep.subr.bf16.mxu1 %v16624_v45  ;;  %v16667_v45 = vld [vmem:[#allocation11 + $0x940] ss:$8 sps:$4 sm:$0xff]   ;;  %4002 = vmatprep.subr.bf16.mxu0 %v16669_v44  ;;  %v16735_v44 = vld [vmem:[#allocation11 + $0x9f4] ss:$8 sps:$4 sm:$0xff]  }
 0x611   :  { %4003 = vmatpush1.bf16.msra.mxu0 %v16667_v45  ;;  %v16733_v45 = vld [vmem:[#allocation11 + $0x9f0] ss:$8 sps:$4 sm:$0xff]  }
 0x613   :  { %3518 = vmatpush1.bf16.msra.mxu1 %v16622_v46  ;;  %v16672_v46 = vld [vmem:[#allocation11 + $0xa54] ss:$8 sps:$4 sm:$0xff]  }
 0x614   :  { %3519 = vmatprep.subr.bf16.mxu1 %v16627_v47  ;;  %v16670_v47 = vld [vmem:[#allocation11 + $0xa50] ss:$8 sps:$4 sm:$0xff]  }
 0x617   :  { %3520 = vmatpush1.bf16.msra.mxu1 %v16625_v48  ;;  %v16675_v48 = vld [vmem:[#allocation11 + $0x954] ss:$8 sps:$4 sm:$0xff]  }
 0x618   :  { %3521 = vmatprep.subr.bf16.mxu1 %v16630_v49  ;;  %v16673_v49 = vld [vmem:[#allocation11 + $0x950] ss:$8 sps:$4 sm:$0xff]   ;;  %4004 = vmatprep.subr.bf16.mxu0 %v16675_v48  ;;  %v18993_v48 = vsub.s32 4, %v18822_v52 }
 0x619   :  { %4005 = vmatpush1.bf16.msra.mxu0 %v16673_v49 }
 0x61b   :  { %3522 = vmatpush1.bf16.msra.mxu1 %v16628_v50  ;;  %v16678_v50 = vld [vmem:[#allocation11 + $0xa64] ss:$8 sps:$4 sm:$0xff]  }
 0x61c   :  { %3523 = vmatprep.subr.bf16.mxu1 %v16633_v51  ;;  %v16676_v51 = vld [vmem:[#allocation11 + $0xa60] ss:$8 sps:$4 sm:$0xff]  }
 0x61f   :  { %3524 = vmatpush1.bf16.msra.mxu1 %v16631_v53  ;;  %v16681_v53 = vld [vmem:[#allocation11 + $0x964] ss:$8 sps:$4 sm:$0xff]  }
 0x620   :  { %3525 = vmatprep.subr.bf16.mxu1 %v16636_v55  ;;  %v16679_v55 = vld [vmem:[#allocation11 + $0x960] ss:$8 sps:$4 sm:$0xff]   ;;  %4006 = vmatprep.subr.bf16.mxu0 %v16681_v53 }
 0x621   :  { %4007 = vmatpush1.bf16.msra.mxu0 %v16679_v55 }
 0x623   :  { %3526 = vmatpush1.bf16.msra.mxu1 %v16634_v57  ;;  %v16684_v57 = vld [vmem:[#allocation11 + $0xa74] ss:$8 sps:$4 sm:$0xff]  }
 0x624   :  { %3527 = vmatprep.subr.bf16.mxu1 %v16639_v59  ;;  %v16682_v59 = vld [vmem:[#allocation11 + $0xa70] ss:$8 sps:$4 sm:$0xff]  }
 0x627   :  { %3528 = vmatpush1.bf16.msra.mxu1 %v16637_v61  ;;  %v16687_v61 = vld [vmem:[#allocation11 + $0x974] ss:$8 sps:$4 sm:$0xff]  }
 0x628   :  { %4008 = vmatprep.subr.bf16.mxu0 %v16687_v61 }
 0x62a   :  { %3530 = vmatmul.mubr.bf16.vlgmr.msra.gmra.mrb[32].mxu1 %v18858_v24 }
 0x62b   :  { %3539 = vmatprep.mubr.bf16.mxu1 %v18862_v25  ;;  %v3550_v25 = vld [vmem:[#allocation9 + $0xc8] sm:$0xff] }
 0x632   :  { %3540 = vmatmul.mubr.bf16.gmra.mrb[36].mxu1 %v18874_v27  ;;  %v3551_v27 = vld [vmem:[#allocation9 + $0xd0] sm:$0x3] }
 0x633   :  { %3631 = vmatprep.mubr.f32.mxu1 %v18483_v1 }
 0x6fd   :  { %v3531_v62 = vpop.f32.mrb[32].mxu1 }
 0x6fe   :  { %v3533_v0 = vpop.f32.mrb[33].mxu1 }
 0x6ff   :  { %v3535_v3 = vpop.f32.mrb[34].mxu1 }
 0x700   :  { %v15784_v5 = vpack.c.bf16 %v3535_v3, %v3531_v62  ;;  %v3537_v7 = vpop.f32.mrb[35].mxu1  ;;  %v16685_v62 = vld [vmem:[#allocation11 + $0x970] ss:$8 sps:$4 sm:$0xff]   ;;  %v16688_v3 = vld [vmem:[#allocation11 + $0xa80] ss:$8 sps:$4 sm:$0xff]  }
 0x701   :  { %v15782_v8 = vpack.c.bf16 %v3537_v7, %v3533_v0  ;;  %4009 = vmatpush1.bf16.msra.mxu0 %v16685_v62  ;;  %v16690_v0 = vld [vmem:[#allocation11 + $0xa84] ss:$8 sps:$4 sm:$0xff]   ;;  %v16691_v7 = vld [vmem:[#allocation11 + $0x980] ss:$8 sps:$4 sm:$0xff]  }
 0x703   :  { %15783 = vmatprep.subr.bf16.mxu1 %v15782_v8  ;;  %v16696_v8 = vld [vmem:[#allocation11 + $0xa94] ss:$8 sps:$4 sm:$0xff]  }
 0x704   :  { %15785 = vmatpush1.bf16.msra.mxu1 %v15784_v5  ;;  %v16693_v5 = vld [vmem:[#allocation11 + $0x984] ss:$8 sps:$4 sm:$0xff]  }
 0x705   :  { %v3541_v9 = vpop.f32.mrb[36].mxu1  ;;  %4010 = vmatprep.subr.bf16.mxu0 %v16693_v5 }
 0x706   :  { %v3543_v10 = vpop.f32.mrb[37].mxu1  ;;  %4011 = vmatpush1.bf16.msra.mxu0 %v16691_v7 }
 0x707   :  { %v3545_v16 = vpop.f32.mrb[38].mxu1  ;;  %14564 = vmatprep.subr.msk.mxu1 %vm391_vm0, %v3543_v10  ;;  %v16699_v10 = vld [vmem:[#allocation11 + $0x994] ss:$8 sps:$4 sm:$0xff]  }
 0x708   :  { %v3546_v24 = vpop.f32.mrb[39].mxu1  ;;  %14565 = vmatpush1.msk.msra.mxu1 %vm391_vm0, %v3541_v9  ;;  %v16694_v9 = vld [vmem:[#allocation11 + $0xa90] ss:$8 sps:$4 sm:$0xff]   ;;  %4012 = vmatprep.subr.bf16.mxu0 %v16699_v10  ;;  %v16702_v16 = vld [vmem:[#allocation11 + $0xaa4] ss:$8 sps:$4 sm:$0xff]  }
 0x709   :  { %14566 = vmatmul.mubr.msk.f32.vlgmr.msra.gmra.mrb[8].mxu1 %vm995_vm1, %v3549_v15  ;;  %4238 = vmatprep.subr.bf16.mxu1 %v16642_v23  ;;  %v16697_v15 = vld [vmem:[#allocation11 + $0x990] ss:$8 sps:$4 sm:$0xff]   ;;  %v16700_v24 = vld [vmem:[#allocation11 + $0xaa0] ss:$8 sps:$4 sm:$0xff]   ;;  %v16708_v23 = vld [vmem:[#allocation11 + $0xab4] ss:$8 sps:$4 sm:$0xff]  }
 0x70a   :  { %3637 = vmatprep.mubr.f32.mxu1 %v18483_v1  ;;  %4239 = vmatpush1.bf16.msra.mxu1 %v16640_v28  ;;  %v16706_v28 = vld [vmem:[#allocation11 + $0xab0] ss:$8 sps:$4 sm:$0xff]  }
 0x70b   :  { %4240 = vmatprep.subr.bf16.mxu1 %v16648_v31  ;;  %4013 = vmatpush1.bf16.msra.mxu0 %v16697_v15  ;;  %v16714_v31 = vld [vmem:[#allocation11 + $0xac4] ss:$8 sps:$4 sm:$0xff]  }
 0x70d   :  { %14567 = vmatmul.mubr.msk.f32.gmra.mrb[10].mxu1 %vm995_vm1, %v3550_v25  ;;  %v16705_v25 = vld [vmem:[#allocation11 + $0x9a4] ss:$8 sps:$4 sm:$0xff]  }
 0x70e   :  { %3643 = vmatprep.mubr.f32.mxu1 %v18483_v1  ;;  %4241 = vmatpush1.bf16.msra.mxu1 %v16646_v32  ;;  %v16712_v32 = vld [vmem:[#allocation11 + $0xac0] ss:$8 sps:$4 sm:$0xff]  }
 0x70f   :  { %4242 = vmatprep.subr.bf16.mxu1 %v16654_v35  ;;  %4014 = vmatprep.subr.bf16.mxu0 %v16705_v25  ;;  %v16720_v35 = vld [vmem:[#allocation11 + $0xad4] ss:$8 sps:$4 sm:$0xff]  }
 0x711   :  { %14568 = vmatmul.mubr.msk.f32.gmra.mrb[12].mxu1 %vm995_vm1, %v3551_v27  ;;  %v16703_v27 = vld [vmem:[#allocation11 + $0x9a0] ss:$8 sps:$4 sm:$0xff]  }
 0x712   :  { %4243 = vmatpush1.bf16.msra.mxu1 %v16652_v36  ;;  %4015 = vmatpush1.bf16.msra.mxu0 %v16703_v27  ;;  %v16718_v36 = vld [vmem:[#allocation11 + $0xad0] ss:$8 sps:$4 sm:$0xff]  }
 0x713   :  { %4244 = vmatprep.subr.bf16.mxu1 %v16660_v39  ;;  %4016 = vmatprep.subr.bf16.mxu0 %v16711_v29  ;;  %v16726_v39 = vld [vmem:[#allocation11 + $0xae4] ss:$8 sps:$4 sm:$0xff]  }
 0x716   :  { %4245 = vmatpush1.bf16.msra.mxu1 %v16658_v40  ;;  %4017 = vmatpush1.bf16.msra.mxu0 %v16709_v30  ;;  %v16724_v40 = vld [vmem:[#allocation11 + $0xae0] ss:$8 sps:$4 sm:$0xff]  }
 0x717   :  { %4246 = vmatprep.subr.bf16.mxu1 %v16666_v22  ;;  %4018 = vmatprep.subr.bf16.mxu0 %v16717_v33  ;;  %v16732_v22 = vld [vmem:[#allocation11 + $0xaf4] ss:$8 sps:$4 sm:$0xff]  }
 0x71a   :  { %4247 = vmatpush1.bf16.msra.mxu1 %v16664_v43  ;;  %4019 = vmatpush1.bf16.msra.mxu0 %v16715_v34  ;;  %v16730_v43 = vld [vmem:[#allocation11 + $0xaf0] ss:$8 sps:$4 sm:$0xff]  }
 0x71b   :  { %4248 = vmatprep.subr.bf16.mxu1 %v16672_v46  ;;  %4020 = vmatprep.subr.bf16.mxu0 %v16723_v37  ;;  %v16738_v46 = vld [vmem:[#allocation11 + $0xc04] ss:$8 sps:$4 sm:$0xff]  }
 0x71e   :  { %4249 = vmatpush1.bf16.msra.mxu1 %v16670_v47  ;;  %4021 = vmatpush1.bf16.msra.mxu0 %v16721_v38  ;;  %v18990_v47 = vld [vmem:[#allocation12] sm:$0x77] }
 0x71f   :  { %4250 = vmatprep.subr.bf16.mxu1 %v16678_v50  ;;  %4022 = vmatprep.subr.bf16.mxu0 %v16729_v41  ;;  %v3660_v49 = vrot.slane %v18990_v47, %v18825_v54 }
 0x722   :  { %4251 = vmatpush1.bf16.msra.mxu1 %v16676_v51  ;;  %4023 = vmatpush1.bf16.msra.mxu0 %v16727_v42  ;;  %v3664_v51 = vrot.slane %v18990_v47, %v18993_v48 }
 0x723   :  { %4252 = vmatprep.subr.bf16.mxu1 %v16684_v57  ;;  %4024 = vmatprep.subr.bf16.mxu0 %v16735_v44 }
 0x724   :  { %v3674_v61 = vrot.slane %v3664_v51, %v18825_v54 }
 0x726   :  { %4253 = vmatpush1.bf16.msra.mxu1 %v16682_v59  ;;  %4025 = vmatpush1.bf16.msra.mxu0 %v16733_v45  ;;  %v3670_v59 = vrot.slane %v3660_v49, %v18825_v54 }
 0x727   :  { %4254 = vmatprep.subr.bf16.mxu1 %v16690_v0 }
 0x72a   :  { %4255 = vmatpush1.bf16.msra.mxu1 %v16688_v3 }
 0x72b   :  { %4256 = vmatprep.subr.bf16.mxu1 %v16696_v8 }
 0x72e   :  { %4257 = vmatpush1.bf16.msra.mxu1 %v16694_v9 }
 0x72f   :  { %4258 = vmatprep.subr.bf16.mxu1 %v16702_v16 }
 0x732   :  { %4259 = vmatpush1.bf16.msra.mxu1 %v16700_v24 }
 0x733   :  { %4260 = vmatprep.subr.bf16.mxu1 %v16708_v23 }
 0x736   :  { %4261 = vmatpush1.bf16.msra.mxu1 %v16706_v28 }
 0x737   :  { %4262 = vmatprep.subr.bf16.mxu1 %v16714_v31 }
 0x73a   :  { %4263 = vmatpush1.bf16.msra.mxu1 %v16712_v32 }
 0x73b   :  { %4264 = vmatprep.subr.bf16.mxu1 %v16720_v35 }
 0x73e   :  { %4265 = vmatpush1.bf16.msra.mxu1 %v16718_v36 }
 0x73f   :  { %4266 = vmatprep.subr.bf16.mxu1 %v16726_v39 }
 0x742   :  { %4267 = vmatpush1.bf16.msra.mxu1 %v16724_v40 }
 0x743   :  { %4268 = vmatprep.subr.bf16.mxu1 %v16732_v22 }
 0x746   :  { %4269 = vmatpush1.bf16.msra.mxu1 %v16730_v43 }
 0x747   :  { %4999 = vmatprep.subr.bf16.mxu1 %v16738_v46 }
 0x7dc   :  { %v3633_v50 = vpop.f32.mrb[8].mxu1 }
 0x7dd   :  { %v15981_v53 = vadd.f32 %v3633_v50, %v18912_v58  ;;  %v3635_v55 = vpop.f32.mrb[9].mxu1 }
 0x7de   :  { %v15982_v57 = vadd.f32 %v3635_v55, %v18914_v60 }
 0x7df   :  { %v3675_v7 = vadd.f32 %v15981_v53, %v3670_v59 }
 0x7e0   :  { %v3639_v62 = vpop.f32.mrb[10].mxu1  ;;  %v3676_v9 = vadd.f32 %v15982_v57, %v3674_v61 }
 0x7e1   :  { %v15983_v0 = vadd.f32 %v3639_v62, %v18916_v63  ;;  %v3641_v3 = vpop.f32.mrb[11].mxu1 }
 0x7e2   :  { %v15984_v5 = vadd.f32 %v3641_v3, %v18918_v2 }
 0x7e3   :  { %v3677_v8 = vadd.f32 %v15983_v0, %v3670_v59 }
 0x7e4   :  { %v3678_v10 = vadd.f32 %v15984_v5, %v3674_v61  ;;  %v3645_v15 = vpop.f32.mrb[12].mxu1 }
 0x7e5   :  { %v3681_v16 = vadd.f32 %v3677_v8, %v3675_v7  ;;  %v15985_v58 = vadd.f32 %v3645_v15, %v18920_v4  ;;  %v3647_v24 = vpop.f32.mrb[13].mxu1 }
 0x7e6   :  { %v3690_v60 = vadd.f32 %v3678_v10, %v3676_v9  ;;  %v15986_v25 = vadd.f32 %v3647_v24, %v18922_v6 }
 0x7e7   :  { %v3679_v27 = vadd.f32 %v15985_v58, %v3670_v59 }
 0x7e8   :  { %v3680_v23 = vadd.f32 %v15986_v25, %v3674_v61 }
 0x7e9   :  { %v3682_v28 = vsel %vm391_vm0, %v3679_v27, 0.0 }
 0x7ea   :  { %v3683_v63 = vadd.f32 %v3682_v28, %v3681_v16  ;;  %v3691_v29 = vsel %vm391_vm0, %v3680_v23, 0.0 }
 0x7eb   :  { %v3692_v2 = vadd.f32 %v3691_v29, %v3690_v60 }
 0x7ec   :  { %v3684_v30 = vrot.slane %v3683_v63, 4 }
 0x7ed   :  { %v3693_v31 = vrot.slane %v3692_v2, 4 }
 0x7ee   :  { %v3685_v32 = vadd.f32 %v3684_v30, %v3683_v63  ;;  %v19012_v30 = vsub.s32 5, %v18822_v52 }
 0x7ef   :  { %v3694_v33 = vadd.f32 %v3693_v31, %v3692_v2  ;;  %v19015_v31 = vsub.s32 2, %v18822_v52 }
 0x7f0   :  { %v3686_v34 = vrot.slane %v3685_v32, 2 }
 0x7f1   :  { %v3695_v35 = vrot.slane %v3694_v33, 2 }
 0x7f2   :  { %v3687_v36 = vadd.f32 %v3686_v34, %v3685_v32  ;;  %v19018_v32 = vsub.s32 6, %v18822_v52  ;;  %v3750_v34 = vrot.slane %v18990_v47, %v19012_v30 }
 0x7f3   :  { %v3696_v4 = vadd.f32 %v3695_v35, %v3694_v33  ;;  %v3746_v33 = vrot.slane %v18990_v47, %v18828_v56  ;;  %v3770_v35 = vrot.slane %v18990_v47, %v19015_v31 }
 0x7f4   :  { %v3688_v37 = vrot.slane %v3687_v36, 1 }
 0x7f5   :  { %v3697_v38 = vrot.slane %v3696_v4, 1 }
 0x7f6   :  { %v3689_v39 = vadd.f32 %v3688_v37, %v3687_v36  ;;  %v3774_v36 = vrot.slane %v18990_v47, %v19018_v32 }
 0x7f7   :  { %v3698_v6 = vadd.f32 %v3697_v38, %v3696_v4  ;;  %v3756_v4 = vrot.slane %v3746_v33, %v18828_v56  ;;  %v3760_v38 = vrot.slane %v3750_v34, %v18828_v56  ;;  %v16753_v33 = vld [vmem:[#allocation11 + $0xc54] ss:$8 sps:$4 sm:$0xff]   ;;  %v16751_v34 = vld [vmem:[#allocation11 + $0xc50] ss:$8 sps:$4 sm:$0xff]  }
 0x7f8   :  { %v3699_v40 = vmul.f32 0.055555556, %v3689_v39 }
 0x7f9   :  { %v3700_v41 = vmul.f32 0.055555556, %v3698_v6 }
 0x7fa   :  { %v3701_v42 = vsub.f32 %v3675_v7, %v3699_v40  ;;  %v3703_v22 = vsub.f32 %v3677_v8, %v3699_v40  ;;  %v3705_v43 = vsub.f32 %v3679_v27, %v3699_v40 }
 0x7fb   :  { %v3702_v44 = vsub.f32 %v3676_v9, %v3700_v41  ;;  %v3704_v45 = vsub.f32 %v3678_v10, %v3700_v41  ;;  %v3706_v46 = vsub.f32 %v3680_v23, %v3700_v41  ;;  %v3780_v41 = vrot.slane %v3770_v35, %v19015_v31  ;;  %v16756_v35 = vld [vmem:[#allocation11 + $0xc64] ss:$8 sps:$4 sm:$0xff]  }
 0x7fc   :  { %v3707_v49 = vmul.f32 %v3701_v42, %v3701_v42  ;;  %v3709_v50 = vmul.f32 %v3703_v22, %v3703_v22  ;;  %v3711_v51 = vmul.f32 %v3705_v43, %v3705_v43 }
 0x7fd   :  { %v3708_v53 = vmul.f32 %v3702_v44, %v3702_v44  ;;  %v3710_v55 = vmul.f32 %v3704_v45, %v3704_v45  ;;  %v3712_v57 = vmul.f32 %v3706_v46, %v3706_v46 }
 0x7fe   :  { %v3713_v59 = vadd.f32 %v3709_v50, %v3707_v49  ;;  %v3714_v61 = vsel %vm391_vm0, %v3711_v51, 0.0 }
 0x7ff   :  { %v3722_v62 = vadd.f32 %v3710_v55, %v3708_v53  ;;  %v3723_v0 = vsel %vm391_vm0, %v3712_v57, 0.0  ;;  %v3784_v53 = vrot.slane %v3774_v36, %v19015_v31  ;;  %v16754_v36 = vld [vmem:[#allocation11 + $0xc60] ss:$8 sps:$4 sm:$0xff]  }
 0x800   :  { %v3715_v3 = vadd.f32 %v3714_v61, %v3713_v59 }
 0x801   :  { %v3724_v5 = vadd.f32 %v3723_v0, %v3722_v62 }
 0x802   :  { %v3716_v7 = vrot.slane %v3715_v3, 4 }
 0x803   :  { %v3725_v8 = vrot.slane %v3724_v5, 4 }
 0x804   :  { %v3717_v15 = vadd.f32 %v3716_v7, %v3715_v3 }
 0x805   :  { %v3726_v9 = vadd.f32 %v3725_v8, %v3724_v5 }
 0x806   :  { %v3718_v10 = vrot.slane %v3717_v15, 2 }
 0x807   :  { %v3727_v16 = vrot.slane %v3726_v9, 2 }
 0x808   :  { %v3719_v58 = vadd.f32 %v3718_v10, %v3717_v15 }
 0x809   :  { %v3728_v24 = vadd.f32 %v3727_v16, %v3726_v9  ;;  %v16736_v9 = vld [vmem:[#allocation11 + $0xc00] ss:$8 sps:$4 sm:$0xff]   ;;  %v16741_v16 = vld [vmem:[#allocation11 + $0xc14] ss:$8 sps:$4 sm:$0xff]  }
 0x80a   :  { %v3720_v60 = vrot.slane %v3719_v58, 1 }
 0x80b   :  { %v3729_v25 = vrot.slane %v3728_v24, 1 }
 0x80c   :  { %v3721_v27 = vadd.f32 %v3720_v60, %v3719_v58 }
 0x80d   :  { %v3730_v23 = vadd.f32 %v3729_v25, %v3728_v24  ;;  %v16739_v24 = vld [vmem:[#allocation11 + $0xc10] ss:$8 sps:$4 sm:$0xff]   ;;  %v16744_v25 = vld [vmem:[#allocation11 + $0xc24] ss:$8 sps:$4 sm:$0xff]  }
 0x80e   :  { %v3731_v28 = vmul.f32 0.055555556, %v3721_v27  ;;  %v16742_v27 = vld [vmem:[#allocation11 + $0xc20] ss:$8 sps:$4 sm:$0xff]  }
 0x80f   :  { %v3732_v63 = vmul.f32 0.055555556, %v3730_v23 }
 0x810   :  { %v3733_v29 = vadd.f32 1e-05, %v3731_v28  ;;  %v16747_v28 = vld [vmem:[#allocation11 + $0xc34] ss:$8 sps:$4 sm:$0xff]  }
 0x811   :  { %v3734_v2 = vadd.f32 1e-05, %v3732_v63  ;;  %v16745_v63 = vld [vmem:[#allocation11 + $0xc30] ss:$8 sps:$4 sm:$0xff]  }
 0x812   :  { %17940 = vrsqrt.f32 %v3733_v29  ;;  %v16750_v29 = vld [vmem:[#allocation11 + $0xc44] ss:$8 sps:$4 sm:$0xff]  }
 0x813   :  { %17942 = vrsqrt.f32 %v3734_v2  ;;  %v16748_v2 = vld [vmem:[#allocation11 + $0xc40] ss:$8 sps:$4 sm:$0xff]  }
 0x81c   :  { %v17941_v37 = vpop.eup %17940 }
 0x81d   :  { %v17943_v39 = vpop.eup %17942  ;;  %v3737_v52 = vmul.f32 %v17941_v37, %v3701_v42  ;;  %v3739_v6 = vmul.f32 %v17941_v37, %v3703_v22  ;;  %v3741_v40 = vmul.f32 %v17941_v37, %v3705_v43  ;;  %v16757_v37 = vld [vmem:[#allocation11 + $0xc70] ss:$8 sps:$4 sm:$0xff]  }
 0x81e   :  { %v3738_v49 = vmul.f32 %v17943_v39, %v3702_v44  ;;  %v3740_v50 = vmul.f32 %v17943_v39, %v3704_v45  ;;  %v3742_v51 = vmul.f32 %v17943_v39, %v3706_v46  ;;  %v16760_v39 = vld [vmem:[#allocation11 + $0xc80] ss:$8 sps:$4 sm:$0xff]  }
 0x81f   :  { %v3761_v55 = vmul.f32 %v3756_v4, %v3737_v52  ;;  %v3763_v57 = vmul.f32 %v3756_v4, %v3739_v6  ;;  %v3765_v42 = vmul.f32 %v3756_v4, %v3741_v40  ;;  %v16759_v4 = vld [vmem:[#allocation11 + $0xc74] ss:$8 sps:$4 sm:$0xff]   ;;  %v16763_v6 = vld [vmem:[#allocation11 + $0xc90] ss:$8 sps:$4 sm:$0xff]   ;;  %v16768_v40 = vld [vmem:[#allocation11 + $0xca4] ss:$8 sps:$4 sm:$0xff]  }
 0x820   :  { %v3762_v59 = vmul.f32 %v3760_v38, %v3738_v49  ;;  %v3764_v47 = vmul.f32 %v3760_v38, %v3740_v50  ;;  %v3766_v61 = vmul.f32 %v3760_v38, %v3742_v51  ;;  %v16762_v38 = vld [vmem:[#allocation11 + $0xc84] ss:$8 sps:$4 sm:$0xff]   ;;  %v16765_v52 = vld [vmem:[#allocation11 + $0xc94] ss:$8 sps:$4 sm:$0xff]   ;;  %v16769_v50 = vld [vmem:[#allocation11 + $0xcb0] ss:$8 sps:$4 sm:$0xff]  }
 0x821   :  { %v3785_v62 = vadd.f32 %v3780_v41, %v3761_v55  ;;  %v3787_v0 = vadd.f32 %v3780_v41, %v3763_v57  ;;  %v3789_v10 = vadd.f32 %v3780_v41, %v3765_v42  ;;  %v16766_v41 = vld [vmem:[#allocation11 + $0xca0] ss:$8 sps:$4 sm:$0xff]   ;;  %v16771_v49 = vld [vmem:[#allocation11 + $0xcb4] ss:$8 sps:$4 sm:$0xff]   ;;  %v16774_v51 = vld [vmem:[#allocation11 + $0xcc4] ss:$8 sps:$4 sm:$0xff]  }
 0x822   :  { %v3786_v3 = vadd.f32 %v3784_v53, %v3762_v59  ;;  %v3788_v5 = vadd.f32 %v3784_v53, %v3764_v47  ;;  %v3790_v7 = vadd.f32 %v3784_v53, %v3766_v61  ;;  %v16772_v53 = vld [vmem:[#allocation11 + $0xcc0] ss:$8 sps:$4 sm:$0xff]   ;;  %v16777_v55 = vld [vmem:[#allocation11 + $0xcd4] ss:$8 sps:$4 sm:$0xff]   ;;  %v16775_v57 = vld [vmem:[#allocation11 + $0xcd0] ss:$8 sps:$4 sm:$0xff]  }
 0x823   :  { %v3791_v22 = vmax.f32 %v3785_v62, 0.0  ;;  %v3793_v43 = vmax.f32 %v3787_v0, 0.0  ;;  %v3795_v60 = vmax.f32 %v3789_v10, 0.0  ;;  %v16780_v59 = vld [vmem:[#allocation11 + $0xce4] ss:$8 sps:$4 sm:$0xff]  }
 0x824   :  { %v3792_v8 = vmax.f32 %v3786_v3, 0.0  ;;  %v3794_v15 = vmax.f32 %v3788_v5, 0.0  ;;  %v3796_v44 = vmax.f32 %v3790_v7, 0.0  ;;  %v16778_v47 = vld [vmem:[#allocation11 + $0xce0] ss:$8 sps:$4 sm:$0xff]  }
 0x825   :  { %v19032_v45 = vpack.c.bf16 %v3793_v43, %v3791_v22  ;;  %v19044_v23 = vpack.c.bf16 %v3795_v60, %v3795_v60  ;;  %v16783_v61 = vld [vmem:[#allocation11 + $0xcf4] ss:$8 sps:$4 sm:$0xff]   ;;  %v16781_v62 = vld [vmem:[#allocation11 + $0xcf0] ss:$8 sps:$4 sm:$0xff]   ;;  %v16786_v0 = vld [vmem:[#allocation11 + $0xd04] ss:$8 sps:$4 sm:$0xff]  }
 0x826   :  { %v19034_v46 = vpack.c.bf16 %v3794_v15, %v3792_v8  ;;  %v19036_v58 = vpack.c.bf16 %v3796_v44, %v3796_v44  ;;  %v16784_v3 = vld [vmem:[#allocation11 + $0xd00] ss:$8 sps:$4 sm:$0xff]   ;;  %v16789_v5 = vld [vmem:[#allocation11 + $0xd14] ss:$8 sps:$4 sm:$0xff]   ;;  %v16787_v7 = vld [vmem:[#allocation11 + $0xd10] ss:$8 sps:$4 sm:$0xff]  }
 0x827   :  { %v16792_v42 = vld [vmem:[#allocation11 + $0xd24] ss:$8 sps:$4 sm:$0xff]   ;;  %v16790_v22 = vld [vmem:[#allocation11 + $0xd20] ss:$8 sps:$4 sm:$0xff]   ;;  %v16795_v43 = vld [vmem:[#allocation11 + $0xd34] ss:$8 sps:$4 sm:$0xff]  }
 0x828   :  { %4026 = vmatprep.mubr.bf16.mxu0 %v19034_v46  ;;  %4270 = vmatprep.mubr.bf16.mxu1 %v19034_v46  ;;  %v16793_v8 = vld [vmem:[#allocation11 + $0xd30] ss:$8 sps:$4 sm:$0xff]   ;;  %v16798_v15 = vld [vmem:[#allocation11 + $0xd44] ss:$8 sps:$4 sm:$0xff]   ;;  %v16796_v44 = vld [vmem:[#allocation11 + $0xd40] ss:$8 sps:$4 sm:$0xff]  }
 0x829   :  { %4027 = vmatmul.mubr.bf16.vlgmr.msra.gmra.mrb[52].mxu0 %v19032_v45  ;;  %4271 = vmatmul.mubr.bf16.vlgmr.msra.gmra.mrb[40].mxu1 %v19032_v45  ;;  %v16799_v10 = vld [vmem:[#allocation11 + $0xd50] ss:$8 sps:$4 sm:$0xff]   ;;  %v16807_v60 = vld [vmem:[#allocation11 + $0xd74] ss:$8 sps:$4 sm:$0xff]  }
 0x82a   :  { %5000 = vmatpush1.bf16.msra.mxu1 %v16736_v9  ;;  %4036 = vmatprep.mubr.bf16.mxu0 %v19036_v58  ;;  %v16801_v9 = vld [vmem:[#allocation11 + $0xd54] ss:$8 sps:$4 sm:$0xff]  }
 0x82b   :  { %4280 = vmatprep.mubr.bf16.mxu1 %v19036_v58  ;;  %5001 = vmatprep.subr.bf16.mxu1 %v16741_v16  ;;  %v16804_v16 = vld [vmem:[#allocation11 + $0xd64] ss:$8 sps:$4 sm:$0xff]  }
 0x82e   :  { %5002 = vmatpush1.bf16.msra.mxu1 %v16739_v24  ;;  %v16802_v24 = vld [vmem:[#allocation11 + $0xd60] ss:$8 sps:$4 sm:$0xff]  }
 0x82f   :  { %5003 = vmatprep.subr.bf16.mxu1 %v16744_v25  ;;  %v16805_v25 = vld [vmem:[#allocation11 + $0xd70] ss:$8 sps:$4 sm:$0xff]  }
 0x831   :  { %4037 = vmatmul.mubr.bf16.gmra.mrb[56].mxu0 %v19044_v23  ;;  %4281 = vmatmul.mubr.bf16.gmra.mrb[44].mxu1 %v19044_v23 }
 0x832   :  { %5004 = vmatpush1.bf16.msra.mxu1 %v16742_v27  ;;  %5031 = vmatprep.mubr.bf16.mxu1 %v19034_v46  ;;  %v16810_v27 = vld [vmem:[#allocation11 + $0xd84] ss:$8 sps:$4 sm:$0xff]  }
 0x833   :  { %5005 = vmatprep.subr.bf16.mxu1 %v16747_v28  ;;  %4359 = vmatprep.mubr.f32.mxu0 %v18483_v1  ;;  %v16808_v28 = vld [vmem:[#allocation11 + $0xd80] ss:$8 sps:$4 sm:$0xff]  }
 0x836   :  { %5006 = vmatpush1.bf16.msra.mxu1 %v16745_v63  ;;  %v16813_v63 = vld [vmem:[#allocation11 + $0xd94] ss:$8 sps:$4 sm:$0xff]  }
 0x837   :  { %5007 = vmatprep.subr.bf16.mxu1 %v16750_v29  ;;  %v16811_v29 = vld [vmem:[#allocation11 + $0xd90] ss:$8 sps:$4 sm:$0xff]  }
 0x83a   :  { %5008 = vmatpush1.bf16.msra.mxu1 %v16748_v2  ;;  %v16816_v2 = vld [vmem:[#allocation11 + $0xda4] ss:$8 sps:$4 sm:$0xff]  }
 0x83b   :  { %5009 = vmatprep.subr.bf16.mxu1 %v16753_v33  ;;  %v16814_v33 = vld [vmem:[#allocation11 + $0xda0] ss:$8 sps:$4 sm:$0xff]  }
 0x83e   :  { %5010 = vmatpush1.bf16.msra.mxu1 %v16751_v34  ;;  %v16819_v34 = vld [vmem:[#allocation11 + $0xdb4] ss:$8 sps:$4 sm:$0xff]  }
 0x83f   :  { %5011 = vmatprep.subr.bf16.mxu1 %v16756_v35  ;;  %v16817_v35 = vld [vmem:[#allocation11 + $0xdb0] ss:$8 sps:$4 sm:$0xff]  }
 0x842   :  { %5012 = vmatpush1.bf16.msra.mxu1 %v16754_v36  ;;  %v16822_v36 = vld [vmem:[#allocation11 + $0xdc4] ss:$8 sps:$4 sm:$0xff]  }
 0x843   :  { %5013 = vmatprep.subr.bf16.mxu1 %v16759_v4  ;;  %v16820_v4 = vld [vmem:[#allocation11 + $0xdc0] ss:$8 sps:$4 sm:$0xff]  }
 0x846   :  { %5014 = vmatpush1.bf16.msra.mxu1 %v16757_v37  ;;  %v16825_v37 = vld [vmem:[#allocation11 + $0xdd4] ss:$8 sps:$4 sm:$0xff]  }
 0x847   :  { %5015 = vmatprep.subr.bf16.mxu1 %v16762_v38  ;;  %v16823_v38 = vld [vmem:[#allocation11 + $0xdd0] ss:$8 sps:$4 sm:$0xff]  }
 0x84a   :  { %5016 = vmatpush1.bf16.msra.mxu1 %v16760_v39  ;;  %v16828_v39 = vld [vmem:[#allocation11 + $0xde4] ss:$8 sps:$4 sm:$0xff]  }
 0x84b   :  { %5017 = vmatprep.subr.bf16.mxu1 %v16765_v52  ;;  %v16826_v52 = vld [vmem:[#allocation11 + $0xde0] ss:$8 sps:$4 sm:$0xff]  }
 0x84e   :  { %5018 = vmatpush1.bf16.msra.mxu1 %v16763_v6  ;;  %v16831_v6 = vld [vmem:[#allocation11 + $0xdf4] ss:$8 sps:$4 sm:$0xff]  }
 0x84f   :  { %5019 = vmatprep.subr.bf16.mxu1 %v16768_v40  ;;  %v16829_v40 = vld [vmem:[#allocation11 + $0xdf0] ss:$8 sps:$4 sm:$0xff]  }
 0x852   :  { %5020 = vmatpush1.bf16.msra.mxu1 %v16766_v41  ;;  %v16834_v41 = vld [vmem:[#allocation11 + $0xf04] ss:$8 sps:$4 sm:$0xff]  }
 0x853   :  { %5021 = vmatprep.subr.bf16.mxu1 %v16771_v49  ;;  %v16832_v49 = vld [vmem:[#allocation11 + $0xf00] ss:$8 sps:$4 sm:$0xff]  }
 0x856   :  { %5022 = vmatpush1.bf16.msra.mxu1 %v16769_v50  ;;  %v16837_v50 = vld [vmem:[#allocation11 + $0xf14] ss:$8 sps:$4 sm:$0xff]  }
 0x857   :  { %5023 = vmatprep.subr.bf16.mxu1 %v16774_v51  ;;  %v16835_v51 = vld [vmem:[#allocation11 + $0xf10] ss:$8 sps:$4 sm:$0xff]  }
 0x85a   :  { %5024 = vmatpush1.bf16.msra.mxu1 %v16772_v53  ;;  %v16840_v53 = vld [vmem:[#allocation11 + $0xf24] ss:$8 sps:$4 sm:$0xff]  }
 0x85b   :  { %5025 = vmatprep.subr.bf16.mxu1 %v16777_v55  ;;  %v16838_v55 = vld [vmem:[#allocation11 + $0xf20] ss:$8 sps:$4 sm:$0xff]  }
 0x85e   :  { %5026 = vmatpush1.bf16.msra.mxu1 %v16775_v57  ;;  %v16843_v57 = vld [vmem:[#allocation11 + $0xf34] ss:$8 sps:$4 sm:$0xff]  }
 0x85f   :  { %5027 = vmatprep.subr.bf16.mxu1 %v16780_v59  ;;  %v16841_v59 = vld [vmem:[#allocation11 + $0xf30] ss:$8 sps:$4 sm:$0xff]  }
 0x862   :  { %5028 = vmatpush1.bf16.msra.mxu1 %v16778_v47  ;;  %v16846_v47 = vld [vmem:[#allocation11 + $0xf44] ss:$8 sps:$4 sm:$0xff]  }
 0x863   :  { %5029 = vmatprep.subr.bf16.mxu1 %v16783_v61  ;;  %v16844_v61 = vld [vmem:[#allocation11 + $0xf40] ss:$8 sps:$4 sm:$0xff]  }
 0x866   :  { %5030 = vmatpush1.bf16.msra.mxu1 %v16781_v62  ;;  %v16849_v62 = vld [vmem:[#allocation11 + $0xf54] ss:$8 sps:$4 sm:$0xff]  }
 0x867   :  { %5338 = vmatprep.subr.bf16.mxu1 %v16786_v0  ;;  %v16847_v0 = vld [vmem:[#allocation11 + $0xf50] ss:$8 sps:$4 sm:$0xff]  }
 0x869   :  { %5032 = vmatmul.mubr.bf16.vlgmr.msra.gmra.mrb[48].mxu1 %v19032_v45 }
 0x86a   :  { %5041 = vmatprep.mubr.bf16.mxu1 %v19036_v58  ;;  %5339 = vmatpush1.bf16.msra.mxu1 %v16784_v3  ;;  %v16852_v3 = vld [vmem:[#allocation11 + $0xf64] ss:$8 sps:$4 sm:$0xff]  }
 0x86b   :  { %5340 = vmatprep.subr.bf16.mxu1 %v16789_v5  ;;  %v16850_v5 = vld [vmem:[#allocation11 + $0xf60] ss:$8 sps:$4 sm:$0xff]  }
 0x86e   :  { %5341 = vmatpush1.bf16.msra.mxu1 %v16787_v7  ;;  %v16855_v7 = vld [vmem:[#allocation11 + $0xf74] ss:$8 sps:$4 sm:$0xff]  }
 0x86f   :  { %5342 = vmatprep.subr.bf16.mxu1 %v16792_v42  ;;  %v16853_v42 = vld [vmem:[#allocation11 + $0xf70] ss:$8 sps:$4 sm:$0xff]  }
 0x871   :  { %5042 = vmatmul.mubr.bf16.gmra.mrb[52].mxu1 %v19044_v23 }
 0x872   :  { %5343 = vmatpush1.bf16.msra.mxu1 %v16790_v22  ;;  %5370 = vmatprep.mubr.bf16.mxu1 %v19034_v46  ;;  %v16858_v22 = vld [vmem:[#allocation11 + $0xf84] ss:$8 sps:$4 sm:$0xff]  }
 0x873   :  { %5344 = vmatprep.subr.bf16.mxu1 %v16795_v43  ;;  %v16856_v43 = vld [vmem:[#allocation11 + $0xf80] ss:$8 sps:$4 sm:$0xff]  }
 0x876   :  { %5345 = vmatpush1.bf16.msra.mxu1 %v16793_v8  ;;  %v16861_v8 = vld [vmem:[#allocation11 + $0xf94] ss:$8 sps:$4 sm:$0xff]  }
 0x877   :  { %5346 = vmatprep.subr.bf16.mxu1 %v16798_v15  ;;  %v16859_v15 = vld [vmem:[#allocation11 + $0xf90] ss:$8 sps:$4 sm:$0xff]  }
 0x87a   :  { %5347 = vmatpush1.bf16.msra.mxu1 %v16796_v44  ;;  %v16864_v44 = vld [vmem:[#allocation11 + $0xfa4] ss:$8 sps:$4 sm:$0xff]  }
 0x87b   :  { %5348 = vmatprep.subr.bf16.mxu1 %v16801_v9  ;;  %v16862_v9 = vld [vmem:[#allocation11 + $0xfa0] ss:$8 sps:$4 sm:$0xff]  }
 0x87e   :  { %5349 = vmatpush1.bf16.msra.mxu1 %v16799_v10  ;;  %v16867_v10 = vld [vmem:[#allocation11 + $0xfb4] ss:$8 sps:$4 sm:$0xff]  }
 0x87f   :  { %5350 = vmatprep.subr.bf16.mxu1 %v16804_v16  ;;  %v16865_v16 = vld [vmem:[#allocation11 + $0xfb0] ss:$8 sps:$4 sm:$0xff]  }
 0x882   :  { %5351 = vmatpush1.bf16.msra.mxu1 %v16802_v24  ;;  %v16870_v24 = vld [vmem:[#allocation11 + $0xfc4] ss:$8 sps:$4 sm:$0xff]  }
 0x883   :  { %5352 = vmatprep.subr.bf16.mxu1 %v16807_v60  ;;  %v16868_v60 = vld [vmem:[#allocation11 + $0xfc0] ss:$8 sps:$4 sm:$0xff]  }
 0x886   :  { %5353 = vmatpush1.bf16.msra.mxu1 %v16805_v25  ;;  %v16873_v25 = vld [vmem:[#allocation11 + $0xfd4] ss:$8 sps:$4 sm:$0xff]  }
 0x887   :  { %5354 = vmatprep.subr.bf16.mxu1 %v16810_v27  ;;  %v16871_v27 = vld [vmem:[#allocation11 + $0xfd0] ss:$8 sps:$4 sm:$0xff]  }
 0x88a   :  { %5355 = vmatpush1.bf16.msra.mxu1 %v16808_v28  ;;  %v16876_v28 = vld [vmem:[#allocation11 + $0xfe4] ss:$8 sps:$4 sm:$0xff]  }
 0x88b   :  { %5356 = vmatprep.subr.bf16.mxu1 %v16813_v63  ;;  %v16874_v63 = vld [vmem:[#allocation11 + $0xfe0] ss:$8 sps:$4 sm:$0xff]  }
 0x88e   :  { %5357 = vmatpush1.bf16.msra.mxu1 %v16811_v29  ;;  %v16879_v29 = vld [vmem:[#allocation11 + $0xff4] ss:$8 sps:$4 sm:$0xff]  }
 0x88f   :  { %5358 = vmatprep.subr.bf16.mxu1 %v16816_v2  ;;  %v16877_v2 = vld [vmem:[#allocation11 + $0xff0] ss:$8 sps:$4 sm:$0xff]  }
 0x892   :  { %5359 = vmatpush1.bf16.msra.mxu1 %v16814_v33  ;;  %v16882_v33 = vld [vmem:[#allocation11 + $0x1004] ss:$8 sps:$4 sm:$0xff]  }
 0x893   :  { %5360 = vmatprep.subr.bf16.mxu1 %v16819_v34  ;;  %v16880_v34 = vld [vmem:[#allocation11 + $0x1000] ss:$8 sps:$4 sm:$0xff]  }
 0x896   :  { %5361 = vmatpush1.bf16.msra.mxu1 %v16817_v35  ;;  %v16885_v35 = vld [vmem:[#allocation11 + $0x1014] ss:$8 sps:$4 sm:$0xff]  }
 0x897   :  { %5362 = vmatprep.subr.bf16.mxu1 %v16822_v36  ;;  %v16883_v36 = vld [vmem:[#allocation11 + $0x1010] ss:$8 sps:$4 sm:$0xff]  }
 0x89a   :  { %5363 = vmatpush1.bf16.msra.mxu1 %v16820_v4  ;;  %v16888_v4 = vld [vmem:[#allocation11 + $0x1024] ss:$8 sps:$4 sm:$0xff]  }
 0x89b   :  { %5364 = vmatprep.subr.bf16.mxu1 %v16825_v37  ;;  %v16886_v37 = vld [vmem:[#allocation11 + $0x1020] ss:$8 sps:$4 sm:$0xff]  }
 0x89e   :  { %5365 = vmatpush1.bf16.msra.mxu1 %v16823_v38  ;;  %v16891_v38 = vld [vmem:[#allocation11 + $0x1034] ss:$8 sps:$4 sm:$0xff]  }
 0x89f   :  { %5366 = vmatprep.subr.bf16.mxu1 %v16828_v39  ;;  %v16889_v39 = vld [vmem:[#allocation11 + $0x1030] ss:$8 sps:$4 sm:$0xff]  }
 0x8a2   :  { %5367 = vmatpush1.bf16.msra.mxu1 %v16826_v52  ;;  %v16894_v52 = vld [vmem:[#allocation11 + $0x1044] ss:$8 sps:$4 sm:$0xff]  }
 0x8a3   :  { %5368 = vmatprep.subr.bf16.mxu1 %v16831_v6  ;;  %v16892_v6 = vld [vmem:[#allocation11 + $0x1040] ss:$8 sps:$4 sm:$0xff]  }
 0x8a6   :  { %5369 = vmatpush1.bf16.msra.mxu1 %v16829_v40  ;;  %v16897_v40 = vld [vmem:[#allocation11 + $0x1054] ss:$8 sps:$4 sm:$0xff]  }
 0x8a7   :  { %6016 = vmatprep.subr.bf16.mxu1 %v16834_v41  ;;  %v16895_v41 = vld [vmem:[#allocation11 + $0x1050] ss:$8 sps:$4 sm:$0xff]  }
 0x8a9   :  { %5371 = vmatmul.mubr.bf16.vlgmr.msra.gmra.mrb[56].mxu1 %v19032_v45 }
 0x8aa   :  { %5380 = vmatprep.mubr.bf16.mxu1 %v19036_v58  ;;  %6017 = vmatpush1.bf16.msra.mxu1 %v16832_v49  ;;  %v16900_v49 = vld [vmem:[#allocation11 + $0x1064] ss:$8 sps:$4 sm:$0xff]  }
 0x8ab   :  { %6018 = vmatprep.subr.bf16.mxu1 %v16837_v50 }
 0x8ae   :  { %6019 = vmatpush1.bf16.msra.mxu1 %v16835_v51 }
 0x8af   :  { %6020 = vmatprep.subr.bf16.mxu1 %v16840_v53 }
 0x8b1   :  { %5381 = vmatmul.mubr.bf16.gmra.mrb[60].mxu1 %v19044_v23 }
 0x8b2   :  { %6021 = vmatpush1.bf16.msra.mxu1 %v16838_v55  ;;  %6048 = vmatprep.mubr.bf16.mxu1 %v19034_v46 }
 0x8b3   :  { %6022 = vmatprep.subr.bf16.mxu1 %v16843_v57 }
 0x8b6   :  { %6023 = vmatpush1.bf16.msra.mxu1 %v16841_v59 }
 0x8b7   :  { %6024 = vmatprep.subr.bf16.mxu1 %v16846_v47  ;;  %v16898_v47 = vld [vmem:[#allocation11 + $0x1060] ss:$8 sps:$4 sm:$0xff]  }
 0x8ba   :  { %6025 = vmatpush1.bf16.msra.mxu1 %v16844_v61 }
 0x8bb   :  { %6026 = vmatprep.subr.bf16.mxu1 %v16849_v62 }
 0x8be   :  { %6027 = vmatpush1.bf16.msra.mxu1 %v16847_v0 }
 0x8bf   :  { %6028 = vmatprep.subr.bf16.mxu1 %v16852_v3 }
 0x8c2   :  { %6029 = vmatpush1.bf16.msra.mxu1 %v16850_v5  ;;  %v16903_v5 = vld [vmem:[#allocation11 + $0x1074] ss:$8 sps:$4 sm:$0xff]  }
 0x8c3   :  { %6030 = vmatprep.subr.bf16.mxu1 %v16855_v7 }
 0x8c6   :  { %6031 = vmatpush1.bf16.msra.mxu1 %v16853_v42 }
 0x8c7   :  { %6032 = vmatprep.subr.bf16.mxu1 %v16858_v22  ;;  %v16901_v22 = vld [vmem:[#allocation11 + $0x1070] ss:$8 sps:$4 sm:$0xff]  }
 0x8ca   :  { %6033 = vmatpush1.bf16.msra.mxu1 %v16856_v43  ;;  %v16906_v43 = vld [vmem:[#allocation11 + $0x1084] ss:$8 sps:$4 sm:$0xff]  }
 0x8cb   :  { %6034 = vmatprep.subr.bf16.mxu1 %v16861_v8 }
 0x8ce   :  { %6035 = vmatpush1.bf16.msra.mxu1 %v16859_v15 }
 0x8cf   :  { %6036 = vmatprep.subr.bf16.mxu1 %v16864_v44 }
 0x8d2   :  { %6037 = vmatpush1.bf16.msra.mxu1 %v16862_v9 }
 0x8d3   :  { %6038 = vmatprep.subr.bf16.mxu1 %v16867_v10 }
 0x8d6   :  { %6039 = vmatpush1.bf16.msra.mxu1 %v16865_v16 }
 0x8d7   :  { %6040 = vmatprep.subr.bf16.mxu1 %v16870_v24  ;;  %v16904_v24 = vld [vmem:[#allocation11 + $0x1080] ss:$8 sps:$4 sm:$0xff]  }
 0x8da   :  { %6041 = vmatpush1.bf16.msra.mxu1 %v16868_v60 }
 0x8db   :  { %6042 = vmatprep.subr.bf16.mxu1 %v16873_v25 }
 0x8de   :  { %6043 = vmatpush1.bf16.msra.mxu1 %v16871_v27  ;;  %v16909_v27 = vld [vmem:[#allocation11 + $0x1094] ss:$8 sps:$4 sm:$0xff]  }
 0x8df   :  { %6044 = vmatprep.subr.bf16.mxu1 %v16876_v28  ;;  %v17964_v28 = vld [vmem:[#allocation9 + $0x18] sm:$0xff] }
 0x8e2   :  { %6045 = vmatpush1.bf16.msra.mxu1 %v16874_v63  ;;  %v16907_v63 = vld [vmem:[#allocation11 + $0x1090] ss:$8 sps:$4 sm:$0xff]  }
 0x8e3   :  { %6046 = vmatprep.subr.bf16.mxu1 %v16879_v29  ;;  %v16915_v29 = vld [vmem:[#allocation11 + $0xb04] ss:$8 sps:$4 sm:$0xff]  }
 0x8e6   :  { %6047 = vmatpush1.bf16.msra.mxu1 %v16877_v2  ;;  %v16912_v2 = vld [vmem:[#allocation11 + $0x10a4] ss:$8 sps:$4 sm:$0xff]  }
 0x8e7   :  { %6355 = vmatprep.subr.bf16.mxu1 %v16882_v33  ;;  %v17965_v33 = vld [vmem:[#allocation9 + $0x20] sm:$0xff] }
 0x8e9   :  { %6049 = vmatmul.mubr.bf16.vlgmr.msra.gmra.mrb[64].mxu1 %v19032_v45 }
 0x8ea   :  { %6058 = vmatprep.mubr.bf16.mxu1 %v19036_v58  ;;  %6356 = vmatpush1.bf16.msra.mxu1 %v16880_v34  ;;  %v16910_v34 = vld [vmem:[#allocation11 + $0x10a0] ss:$8 sps:$4 sm:$0xff]  }
 0x8eb   :  { %6357 = vmatprep.subr.bf16.mxu1 %v16885_v35  ;;  %v16918_v35 = vld [vmem:[#allocation11 + $0x10b4] ss:$8 sps:$4 sm:$0xff]  }
 0x8ee   :  { %6358 = vmatpush1.bf16.msra.mxu1 %v16883_v36  ;;  %v17966_v36 = vld [vmem:[#allocation9 + $0x28] sm:$0x3] }
 0x8ef   :  { %6359 = vmatprep.subr.bf16.mxu1 %v16888_v4  ;;  %v16913_v4 = vld [vmem:[#allocation11 + $0xb00] ss:$8 sps:$4 sm:$0xff]  }
 0x8f1   :  { %6059 = vmatmul.mubr.bf16.gmra.mrb[68].mxu1 %v19044_v23 }
 0x8f2   :  { %6360 = vmatpush1.bf16.msra.mxu1 %v16886_v37  ;;  %6387 = vmatprep.mubr.bf16.mxu1 %v19034_v46  ;;  %v16916_v37 = vld [vmem:[#allocation11 + $0x10b0] ss:$8 sps:$4 sm:$0xff]  }
 0x8f3   :  { %6361 = vmatprep.subr.bf16.mxu1 %v16891_v38  ;;  %v16921_v38 = vld [vmem:[#allocation11 + $0xb14] ss:$8 sps:$4 sm:$0xff]  }
 0x8f6   :  { %6362 = vmatpush1.bf16.msra.mxu1 %v16889_v39  ;;  %v16924_v39 = vld [vmem:[#allocation11 + $0x10c4] ss:$8 sps:$4 sm:$0xff]  }
 0x8f7   :  { %6363 = vmatprep.subr.bf16.mxu1 %v16894_v52  ;;  %v17967_v52 = vld [vmem:[#allocation9] sm:$0xff] }
 0x8fa   :  { %6364 = vmatpush1.bf16.msra.mxu1 %v16892_v6  ;;  %v16919_v6 = vld [vmem:[#allocation11 + $0xb10] ss:$8 sps:$4 sm:$0xff]  }
 0x8fb   :  { %6365 = vmatprep.subr.bf16.mxu1 %v16897_v40  ;;  %v16922_v40 = vld [vmem:[#allocation11 + $0x10c0] ss:$8 sps:$4 sm:$0xff]  }
 0x8fc   :  { %v4028_v50 = vpop.f32.mrb[52].mxu0  ;;  %v4272_v51 = vpop.f32.mrb[40].mxu1 }
 0x8fd   :  { %v4030_v53 = vpop.f32.mrb[53].mxu0  ;;  %v4274_v55 = vpop.f32.mrb[41].mxu1 }
 0x8fe   :  { %6366 = vmatpush1.bf16.msra.mxu1 %v16895_v41  ;;  %v4032_v57 = vpop.f32.mrb[54].mxu0  ;;  %v4276_v59 = vpop.f32.mrb[42].mxu1  ;;  %v16927_v41 = vld [vmem:[#allocation11 + $0xb24] ss:$8 sps:$4 sm:$0xff]  }
 0x8ff   :  { %v15792_v61 = vpack.c.bf16 %v4032_v57, %v4028_v50  ;;  %v15788_v62 = vpack.c.bf16 %v4276_v59, %v4272_v51  ;;  %v4034_v0 = vpop.f32.mrb[55].mxu0  ;;  %v4278_v3 = vpop.f32.mrb[43].mxu1  ;;  %6367 = vmatprep.subr.bf16.mxu1 %v16900_v49  ;;  %v16930_v49 = vld [vmem:[#allocation11 + $0x10d4] ss:$8 sps:$4 sm:$0xff]   ;;  %v16925_v51 = vld [vmem:[#allocation11 + $0xb20] ss:$8 sps:$4 sm:$0xff]  }
 0x900   :  { %v15790_v7 = vpack.c.bf16 %v4034_v0, %v4030_v53  ;;  %v15786_v42 = vpack.c.bf16 %v4278_v3, %v4274_v55  ;;  %v17968_v50 = vld [vmem:[#allocation9 + $0x8] sm:$0xff]  ;;  %v16936_v57 = vld [vmem:[#allocation11 + $0x10e4] ss:$8 sps:$4 sm:$0xff]   ;;  %v17969_v59 = vld [vmem:[#allocation9 + $0x10] sm:$0x3] }
 0x901   :  { %v16928_v53 = vld [vmem:[#allocation11 + $0x10d0] ss:$8 sps:$4 sm:$0xff]   ;;  %v16933_v55 = vld [vmem:[#allocation11 + $0xb34] ss:$8 sps:$4 sm:$0xff]   ;;  %v16937_v3 = vld [vmem:[#allocation11 + $0xb40] ss:$8 sps:$4 sm:$0xff]  }
 0x902   :  { %6368 = vmatpush1.bf16.msra.mxu1 %v16898_v47  ;;  %15787 = vmatprep.subr.bf16.mxu0 %v15786_v42  ;;  %v16931_v47 = vld [vmem:[#allocation11 + $0xb30] ss:$8 sps:$4 sm:$0xff]   ;;  %v16942_v0 = vld [vmem:[#allocation11 + $0x10f4] ss:$8 sps:$4 sm:$0xff]  }
 0x903   :  { %15789 = vmatpush1.bf16.msra.mxu0 %v15788_v62  ;;  %6369 = vmatprep.subr.bf16.mxu1 %v16903_v5  ;;  %v16939_v62 = vld [vmem:[#allocation11 + $0xb44] ss:$8 sps:$4 sm:$0xff]   ;;  %v16940_v5 = vld [vmem:[#allocation11 + $0x10f0] ss:$8 sps:$4 sm:$0xff]  }
 0x904   :  { %v4038_v8 = vpop.f32.mrb[56].mxu0  ;;  %v4282_v15 = vpop.f32.mrb[44].mxu1  ;;  %v16943_v42 = vld [vmem:[#allocation11 + $0xb50] ss:$8 sps:$4 sm:$0xff]  }
 0x905   :  { %v4040_v44 = vpop.f32.mrb[57].mxu0  ;;  %v4284_v9 = vpop.f32.mrb[45].mxu1 }
 0x906   :  { %6370 = vmatpush1.bf16.msra.mxu1 %v16901_v22  ;;  %v4042_v10 = vpop.f32.mrb[58].mxu0  ;;  %v4286_v16 = vpop.f32.mrb[46].mxu1  ;;  %14633 = vmatprep.subr.msk.mxu0 %vm391_vm0, %v4284_v9  ;;  %v16948_v22 = vld [vmem:[#allocation11 + $0xb64] ss:$8 sps:$4 sm:$0xff]   ;;  %v16952_v9 = vld [vmem:[#allocation11 + $0xb80] ss:$8 sps:$4 sm:$0xff]  }
 0x907   :  { %v4043_v60 = vpop.f32.mrb[59].mxu0  ;;  %v4287_v25 = vpop.f32.mrb[47].mxu1  ;;  %14634 = vmatpush1.msk.msra.mxu0 %vm391_vm0, %v4282_v15  ;;  %6371 = vmatprep.subr.bf16.mxu1 %v16906_v43  ;;  %v16946_v43 = vld [vmem:[#allocation11 + $0xb60] ss:$8 sps:$4 sm:$0xff]   ;;  %v16949_v15 = vld [vmem:[#allocation11 + $0xb70] ss:$8 sps:$4 sm:$0xff]  }
 0x908   :  { %14635 = vmatmul.mubr.msk.f32.vlgmr.msra.gmra.mrb[60].mxu0 %vm995_vm1, %v17964_v28  ;;  %15791 = vmatprep.subr.bf16.mxu0 %v15790_v7  ;;  %v16945_v7 = vld [vmem:[#allocation11 + $0xb54] ss:$8 sps:$4 sm:$0xff]   ;;  %v16955_v16 = vld [vmem:[#allocation11 + $0xb90] ss:$8 sps:$4 sm:$0xff]   ;;  %v16958_v60 = vld [vmem:[#allocation11 + $0xba0] ss:$8 sps:$4 sm:$0xff]  }
 0x909   :  { %15793 = vmatpush1.bf16.msra.mxu0 %v15792_v61  ;;  %4365 = vmatprep.mubr.f32.mxu0 %v18483_v1  ;;  %v16934_v61 = vld [vmem:[#allocation11 + $0x10e0] ss:$8 sps:$4 sm:$0xff]   ;;  %v16957_v10 = vld [vmem:[#allocation11 + $0xb94] ss:$8 sps:$4 sm:$0xff]  }
 0x90a   :  { %6372 = vmatpush1.bf16.msra.mxu1 %v16904_v24  ;;  %14638 = vmatprep.subr.msk.mxu0 %vm391_vm0, %v4040_v44  ;;  %v16954_v44 = vld [vmem:[#allocation11 + $0xb84] ss:$8 sps:$4 sm:$0xff]   ;;  %v16963_v25 = vld [vmem:[#allocation11 + $0xbb4] ss:$8 sps:$4 sm:$0xff]  }
 0x90b   :  { %6373 = vmatprep.subr.bf16.mxu1 %v16909_v27  ;;  %v16960_v24 = vld [vmem:[#allocation11 + $0xba4] ss:$8 sps:$4 sm:$0xff]  }
 0x90c   :  { %14636 = vmatmul.mubr.msk.f32.gmra.mrb[62].mxu0 %vm995_vm1, %v17965_v33 }
 0x90d   :  { %14639 = vmatpush1.msk.msra.mxu0 %vm391_vm0, %v4038_v8  ;;  %4371 = vmatprep.mubr.f32.mxu0 %v18483_v1  ;;  %v16951_v8 = vld [vmem:[#allocation11 + $0xb74] ss:$8 sps:$4 sm:$0xff]  }
 0x90e   :  { %6374 = vmatpush1.bf16.msra.mxu1 %v16907_v63  ;;  %4660 = vmatprep.subr.bf16.mxu0 %v16915_v29  ;;  %v16961_v63 = vld [vmem:[#allocation11 + $0xbb0] ss:$8 sps:$4 sm:$0xff]  }
 0x90f   :  { %6375 = vmatprep.subr.bf16.mxu1 %v16912_v2  ;;  %v16966_v2 = vld [vmem:[#allocation11 + $0xbc4] ss:$8 sps:$4 sm:$0xff]  }
 0x910   :  { %14637 = vmatmul.mubr.msk.f32.gmra.mrb[64].mxu0 %vm995_vm1, %v17966_v36  ;;  %v16964_v36 = vld [vmem:[#allocation11 + $0xbc0] ss:$8 sps:$4 sm:$0xff]  }
 0x911   :  { %4448 = vmatprep.mubr.f32.mxu0 %v18483_v1 }
 0x912   :  { %6376 = vmatpush1.bf16.msra.mxu1 %v16910_v34 }
 0x913   :  { %6377 = vmatprep.subr.bf16.mxu1 %v16918_v35 }
 0x914   :  { %14640 = vmatmul.mubr.msk.f32.vlgmr.msra.gmra.mrb[60].mxu0 %vm995_vm1, %v17967_v52 }
 0x915   :  { %4661 = vmatpush1.bf16.msra.mxu0 %v16913_v4  ;;  %4454 = vmatprep.mubr.f32.mxu0 %v18483_v1  ;;  %v16969_v4 = vld [vmem:[#allocation11 + $0xbd4] ss:$8 sps:$4 sm:$0xff]  }
 0x916   :  { %6378 = vmatpush1.bf16.msra.mxu1 %v16916_v37  ;;  %4662 = vmatprep.subr.bf16.mxu0 %v16921_v38 }
 0x917   :  { %6379 = vmatprep.subr.bf16.mxu1 %v16924_v39  ;;  %v16967_v39 = vld [vmem:[#allocation11 + $0xbd0] ss:$8 sps:$4 sm:$0xff]  }
 0x918   :  { %14641 = vmatmul.mubr.msk.f32.gmra.mrb[62].mxu0 %vm995_vm1, %v17968_v50  ;;  %v16973_v50 = vld [vmem:[#allocation11 + $0xbf0] ss:$8 sps:$4 sm:$0xff]  }
 0x919   :  { %4663 = vmatpush1.bf16.msra.mxu0 %v16919_v6  ;;  %4460 = vmatprep.mubr.f32.mxu0 %v18483_v1  ;;  %v16972_v6 = vld [vmem:[#allocation11 + $0xbe4] ss:$8 sps:$4 sm:$0xff]  }
 0x91a   :  { %6380 = vmatpush1.bf16.msra.mxu1 %v16922_v40  ;;  %4664 = vmatprep.subr.bf16.mxu0 %v16927_v41  ;;  %v16970_v41 = vld [vmem:[#allocation11 + $0xbe0] ss:$8 sps:$4 sm:$0xff]  }
 0x91b   :  { %6381 = vmatprep.subr.bf16.mxu1 %v16930_v49  ;;  %v16975_v49 = vld [vmem:[#allocation11 + $0xbf4] ss:$8 sps:$4 sm:$0xff]  }
 0x91c   :  { %14642 = vmatmul.mubr.msk.f32.gmra.mrb[64].mxu0 %vm995_vm1, %v17969_v59 }
 0x91d   :  { %4665 = vmatpush1.bf16.msra.mxu0 %v16925_v51  ;;  %4692 = vmatprep.mubr.bf16.mxu0 %v19034_v46 }
 0x91e   :  { %6382 = vmatpush1.bf16.msra.mxu1 %v16928_v53  ;;  %4666 = vmatprep.subr.bf16.mxu0 %v16933_v55 }
 0x91f   :  { %6383 = vmatprep.subr.bf16.mxu1 %v16936_v57 }
 0x921   :  { %4667 = vmatpush1.bf16.msra.mxu0 %v16931_v47 }
 0x922   :  { %6384 = vmatpush1.bf16.msra.mxu1 %v16934_v61  ;;  %4668 = vmatprep.subr.bf16.mxu0 %v16939_v62 }
 0x923   :  { %6385 = vmatprep.subr.bf16.mxu1 %v16942_v0 }
 0x925   :  { %4669 = vmatpush1.bf16.msra.mxu0 %v16937_v3 }
 0x926   :  { %6386 = vmatpush1.bf16.msra.mxu1 %v16940_v5  ;;  %4670 = vmatprep.subr.bf16.mxu0 %v16945_v7 }
 0x929   :  { %4671 = vmatpush1.bf16.msra.mxu0 %v16943_v42  ;;  %6388 = vmatmul.mubr.bf16.vlgmr.msra.gmra.mrb[72].mxu1 %v19032_v45 }
 0x92a   :  { %6397 = vmatprep.mubr.bf16.mxu1 %v19036_v58  ;;  %4672 = vmatprep.subr.bf16.mxu0 %v16948_v22 }
 0x92d   :  { %4673 = vmatpush1.bf16.msra.mxu0 %v16946_v43 }
 0x92e   :  { %4674 = vmatprep.subr.bf16.mxu0 %v16951_v8 }
 0x931   :  { %4675 = vmatpush1.bf16.msra.mxu0 %v16949_v15  ;;  %6398 = vmatmul.mubr.bf16.gmra.mrb[76].mxu1 %v19044_v23 }
 0x932   :  { %4676 = vmatprep.subr.bf16.mxu0 %v16954_v44 }
 0x935   :  { %4677 = vmatpush1.bf16.msra.mxu0 %v16952_v9 }
 0x936   :  { %4678 = vmatprep.subr.bf16.mxu0 %v16957_v10 }
 0x939   :  { %4679 = vmatpush1.bf16.msra.mxu0 %v16955_v16 }
 0x93a   :  { %4680 = vmatprep.subr.bf16.mxu0 %v16960_v24 }
 0x93c   :  { %v19081_v27 = vpop.f32.mrb[48].mxu1 }
 0x93d   :  { %4681 = vmatpush1.bf16.msra.mxu0 %v16958_v60  ;;  %v19083_v28 = vpop.f32.mrb[49].mxu1 }
 0x93e   :  { %v19085_v29 = vpop.f32.mrb[50].mxu1  ;;  %4682 = vmatprep.subr.bf16.mxu0 %v16963_v25 }
 0x93f   :  { %v15800_v33 = vpack.c.bf16 %v19085_v29, %v19081_v27  ;;  %v19089_v34 = vpop.f32.mrb[51].mxu1  ;;  %v17973_v27 = vld [vmem:[#allocation9 + $0x48] sm:$0xff]  ;;  %v16978_v29 = vld [vmem:[#allocation11 + $0xe04] ss:$8 sps:$4 sm:$0xff]  }
 0x940   :  { %v15798_v35 = vpack.c.bf16 %v19089_v34, %v19083_v28  ;;  %v17972_v28 = vld [vmem:[#allocation9 + $0x40] sm:$0x3]  ;;  %v17975_v34 = vld [vmem:[#allocation9 + $0x58] sm:$0x3] }
 0x941   :  { %4683 = vmatpush1.bf16.msra.mxu0 %v16961_v63 }
 0x942   :  { %4684 = vmatprep.subr.bf16.mxu0 %v16966_v2 }
 0x944   :  { %v19093_v37 = vpop.f32.mrb[52].mxu1 }
 0x945   :  { %4685 = vmatpush1.bf16.msra.mxu0 %v16964_v36  ;;  %v19095_v38 = vpop.f32.mrb[53].mxu1 }
 0x946   :  { %v5047_v52 = vpop.f32.mrb[54].mxu1  ;;  %4686 = vmatprep.subr.bf16.mxu0 %v16969_v4 }
 0x947   :  { %v5048_v40 = vpop.f32.mrb[55].mxu1 }
 0x949   :  { %4687 = vmatpush1.bf16.msra.mxu0 %v16967_v39 }
 0x94a   :  { %4688 = vmatprep.subr.bf16.mxu0 %v16972_v6 }
 0x94d   :  { %4689 = vmatpush1.bf16.msra.mxu0 %v16970_v41 }
 0x94e   :  { %4690 = vmatprep.subr.bf16.mxu0 %v16975_v49 }
 0x951   :  { %4691 = vmatpush1.bf16.msra.mxu0 %v16973_v50 }
 0x954   :  { %4693 = vmatmul.mubr.bf16.vlgmr.msra.gmra.mrb[68].mxu0 %v19032_v45 }
 0x955   :  { %4702 = vmatprep.mubr.bf16.mxu0 %v19036_v58 }
 0x95c   :  { %4703 = vmatmul.mubr.bf16.gmra.mrb[72].mxu0 %v19044_v23 }
 0x95d   :  { %4781 = vmatprep.mubr.f32.mxu0 %v18483_v1 }
 0x97c   :  { %v5372_v51 = vpop.f32.mrb[56].mxu1 }
 0x97d   :  { %v5374_v53 = vpop.f32.mrb[57].mxu1 }
 0x97e   :  { %v5376_v55 = vpop.f32.mrb[58].mxu1 }
 0x97f   :  { %v15804_v57 = vpack.c.bf16 %v5376_v55, %v5372_v51  ;;  %v5378_v59 = vpop.f32.mrb[59].mxu1 }
 0x980   :  { %v15802_v47 = vpack.c.bf16 %v5378_v59, %v5374_v53 }
 0x984   :  { %v5382_v61 = vpop.f32.mrb[60].mxu1 }
 0x985   :  { %v5384_v62 = vpop.f32.mrb[61].mxu1 }
 0x986   :  { %v5386_v0 = vpop.f32.mrb[62].mxu1 }
 0x987   :  { %v5387_v3 = vpop.f32.mrb[63].mxu1 }
 0x988   :  { %v17970_v3 = vld [vmem:[#allocation9 + $0x30] sm:$0xff] }
 0x9bc   :  { %v19101_v5 = vpop.f32.mrb[64].mxu1 }
 0x9bd   :  { %v19103_v7 = vpop.f32.mrb[65].mxu1 }
 0x9be   :  { %v19105_v42 = vpop.f32.mrb[66].mxu1 }
 0x9bf   :  { %v15812_v22 = vpack.c.bf16 %v19105_v42, %v19101_v5  ;;  %v19109_v43 = vpop.f32.mrb[67].mxu1  ;;  %v17982_v5 = vld [vmem:[#allocation9 + $0x90] sm:$0xff]  ;;  %v17026_v42 = vld [vmem:[#allocation11 + $0x1104] ss:$8 sps:$4 sm:$0xff]  }
 0x9c0   :  { %v15810_v8 = vpack.c.bf16 %v19109_v43, %v19103_v7  ;;  %v17981_v7 = vld [vmem:[#allocation9 + $0x88] sm:$0x3]  ;;  %v17984_v43 = vld [vmem:[#allocation9 + $0xa0] sm:$0x3] }
 0x9c4   :  { %v19113_v15 = vpop.f32.mrb[68].mxu1 }
 0x9c5   :  { %v19115_v44 = vpop.f32.mrb[69].mxu1 }
 0x9c6   :  { %v6064_v9 = vpop.f32.mrb[70].mxu1 }
 0x9c7   :  { %v6065_v10 = vpop.f32.mrb[71].mxu1  ;;  %v17971_v9 = vld [vmem:[#allocation9 + $0x38] sm:$0xff] }
 0x9c8   :  { %v16987_v10 = vld [vmem:[#allocation11 + $0xe34] ss:$8 sps:$4 sm:$0xff]  }
 0x9fc   :  { %v19117_v16 = vpop.f32.mrb[72].mxu1 }
 0x9fd   :  { %v19119_v24 = vpop.f32.mrb[73].mxu1 }
 0x9fe   :  { %v19121_v60 = vpop.f32.mrb[74].mxu1 }
 0x9ff   :  { %v15816_v25 = vpack.c.bf16 %v19121_v60, %v19117_v16  ;;  %v19125_v63 = vpop.f32.mrb[75].mxu1  ;;  %v17027_v16 = vld [vmem:[#allocation11 + $0x1110] ss:$8 sps:$4 sm:$0xff]  }
 0xa00   :  { %v15814_v2 = vpack.c.bf16 %v19125_v63, %v19119_v24  ;;  %v17032_v24 = vld [vmem:[#allocation11 + $0x1124] ss:$8 sps:$4 sm:$0xff]   ;;  %v17986_v60 = vld [vmem:[#allocation9 + $0xb0] sm:$0xff] }
 0xa01   :  { %v17035_v63 = vld [vmem:[#allocation11 + $0x1134] ss:$8 sps:$4 sm:$0xff]  }
 0xa04   :  { %v19129_v36 = vpop.f32.mrb[76].mxu1 }
 0xa05   :  { %v19131_v4 = vpop.f32.mrb[77].mxu1 }
 0xa06   :  { %v6403_v39 = vpop.f32.mrb[78].mxu1 }
 0xa07   :  { %v6404_v52 = vpop.f32.mrb[79].mxu1  ;;  %v17978_v39 = vld [vmem:[#allocation9 + $0x70] sm:$0x3] }
 0xa08   :  { %v16985_v52 = vld [vmem:[#allocation11 + $0xe30] ss:$8 sps:$4 sm:$0xff]  }
 0xa27   :  { %v4694_v6 = vpop.f32.mrb[68].mxu0 }
 0xa28   :  { %v4696_v40 = vpop.f32.mrb[69].mxu0 }
 0xa29   :  { %v4698_v41 = vpop.f32.mrb[70].mxu0 }
 0xa2a   :  { %v15796_v49 = vpack.c.bf16 %v4698_v41, %v4694_v6  ;;  %v4700_v50 = vpop.f32.mrb[71].mxu0  ;;  %v16990_v6 = vld [vmem:[#allocation11 + $0xe44] ss:$8 sps:$4 sm:$0xff]   ;;  %v16993_v41 = vld [vmem:[#allocation11 + $0xe54] ss:$8 sps:$4 sm:$0xff]  }
 0xa2b   :  { %v15794_v51 = vpack.c.bf16 %v4700_v50, %v4696_v40  ;;  %v16988_v40 = vld [vmem:[#allocation11 + $0xe40] ss:$8 sps:$4 sm:$0xff]   ;;  %v16996_v50 = vld [vmem:[#allocation11 + $0xe64] ss:$8 sps:$4 sm:$0xff]  }
 0xa2d   :  { %15795 = vmatprep.subr.bf16.mxu0 %v15794_v51  ;;  %v16994_v51 = vld [vmem:[#allocation11 + $0xe60] ss:$8 sps:$4 sm:$0xff]  }
 0xa2e   :  { %15797 = vmatpush1.bf16.msra.mxu0 %v15796_v49  ;;  %v16991_v49 = vld [vmem:[#allocation11 + $0xe50] ss:$8 sps:$4 sm:$0xff]  }
 0xa2f   :  { %v4704_v53 = vpop.f32.mrb[72].mxu0 }
 0xa30   :  { %v4706_v55 = vpop.f32.mrb[73].mxu0 }
 0xa31   :  { %v4708_v59 = vpop.f32.mrb[74].mxu0  ;;  %14675 = vmatprep.subr.msk.mxu0 %vm391_vm0, %v4706_v55  ;;  %v16997_v55 = vld [vmem:[#allocation11 + $0xe70] ss:$8 sps:$4 sm:$0xff]  }
 0xa32   :  { %v4709_v0 = vpop.f32.mrb[75].mxu0  ;;  %14676 = vmatpush1.msk.msra.mxu0 %vm391_vm0, %v4704_v53  ;;  %v16999_v53 = vld [vmem:[#allocation11 + $0xe74] ss:$8 sps:$4 sm:$0xff]   ;;  %v17002_v59 = vld [vmem:[#allocation11 + $0xe84] ss:$8 sps:$4 sm:$0xff]  }
 0xa33   :  { %14677 = vmatmul.mubr.msk.f32.vlgmr.msra.gmra.mrb[60].mxu0 %vm995_vm1, %v17970_v3  ;;  %15799 = vmatprep.subr.bf16.mxu0 %v15798_v35  ;;  %v16976_v35 = vld [vmem:[#allocation11 + $0xe00] ss:$8 sps:$4 sm:$0xff]   ;;  %v17005_v3 = vld [vmem:[#allocation11 + $0xe94] ss:$8 sps:$4 sm:$0xff]  }
 0xa34   :  { %15801 = vmatpush1.bf16.msra.mxu0 %v15800_v33  ;;  %4787 = vmatprep.mubr.f32.mxu0 %v18483_v1  ;;  %v17974_v33 = vld [vmem:[#allocation9 + $0x50] sm:$0xff]  ;;  %v17000_v0 = vld [vmem:[#allocation11 + $0xe80] ss:$8 sps:$4 sm:$0xff]  }
 0xa35   :  { %14712 = vmatprep.subr.msk.mxu0 %vm391_vm0, %v19095_v38  ;;  %v17976_v38 = vld [vmem:[#allocation9 + $0x60] sm:$0xff] }
 0xa37   :  { %14678 = vmatmul.mubr.msk.f32.gmra.mrb[62].mxu0 %vm995_vm1, %v17971_v9  ;;  %v17003_v9 = vld [vmem:[#allocation11 + $0xe90] ss:$8 sps:$4 sm:$0xff]  }
 0xa38   :  { %14713 = vmatpush1.msk.msra.mxu0 %vm391_vm0, %v19093_v37  ;;  %4793 = vmatprep.mubr.f32.mxu0 %v18483_v1  ;;  %v16981_v37 = vld [vmem:[#allocation11 + $0xe14] ss:$8 sps:$4 sm:$0xff]  }
 0xa39   :  { %15803 = vmatprep.subr.bf16.mxu0 %v15802_v47  ;;  %v16984_v47 = vld [vmem:[#allocation11 + $0xe24] ss:$8 sps:$4 sm:$0xff]  }
 0xa3b   :  { %14679 = vmatmul.mubr.msk.f32.gmra.mrb[64].mxu0 %vm995_vm1, %v17972_v28  ;;  %v17008_v28 = vld [vmem:[#allocation11 + $0xea4] ss:$8 sps:$4 sm:$0xff]  }
 0xa3c   :  { %5120 = vmatprep.mubr.f32.mxu0 %v18483_v1 }
 0xa3f   :  { %14714 = vmatmul.mubr.msk.f32.vlgmr.msra.gmra.mrb[60].mxu0 %vm995_vm1, %v17973_v27  ;;  %v17006_v27 = vld [vmem:[#allocation11 + $0xea0] ss:$8 sps:$4 sm:$0xff]  }
 0xa40   :  { %15805 = vmatpush1.bf16.msra.mxu0 %v15804_v57  ;;  %5126 = vmatprep.mubr.f32.mxu0 %v18483_v1  ;;  %v16979_v57 = vld [vmem:[#allocation11 + $0xe10] ss:$8 sps:$4 sm:$0xff]  }
 0xa41   :  { %14749 = vmatprep.subr.msk.mxu0 %vm391_vm0, %v5384_v62  ;;  %v16982_v62 = vld [vmem:[#allocation11 + $0xe20] ss:$8 sps:$4 sm:$0xff]  }
 0xa43   :  { %14715 = vmatmul.mubr.msk.f32.gmra.mrb[62].mxu0 %vm995_vm1, %v17974_v33  ;;  %v17009_v33 = vld [vmem:[#allocation11 + $0xeb0] ss:$8 sps:$4 sm:$0xff]  }
 0xa44   :  { %14750 = vmatpush1.msk.msra.mxu0 %vm391_vm0, %v5382_v61  ;;  %5132 = vmatprep.mubr.f32.mxu0 %v18483_v1  ;;  %v17977_v61 = vld [vmem:[#allocation9 + $0x68] sm:$0xff] }
 0xa45   :  { %5677 = vmatprep.subr.bf16.mxu0 %v16978_v29  ;;  %v17011_v29 = vld [vmem:[#allocation11 + $0xeb4] ss:$8 sps:$4 sm:$0xff]  }
 0xa47   :  { %14716 = vmatmul.mubr.msk.f32.gmra.mrb[64].mxu0 %vm995_vm1, %v17975_v34  ;;  %v17014_v34 = vld [vmem:[#allocation11 + $0xec4] ss:$8 sps:$4 sm:$0xff]  }
 0xa48   :  { %5459 = vmatprep.mubr.f32.mxu0 %v18483_v1 }
 0xa4b   :  { %14751 = vmatmul.mubr.msk.f32.vlgmr.msra.gmra.mrb[60].mxu0 %vm995_vm1, %v17976_v38  ;;  %v17015_v38 = vld [vmem:[#allocation11 + $0xed0] ss:$8 sps:$4 sm:$0xff]  }
 0xa4c   :  { %5678 = vmatpush1.bf16.msra.mxu0 %v16976_v35  ;;  %5465 = vmatprep.mubr.f32.mxu0 %v18483_v1  ;;  %v17012_v35 = vld [vmem:[#allocation11 + $0xec0] ss:$8 sps:$4 sm:$0xff]  }
 0xa4d   :  { %5679 = vmatprep.subr.bf16.mxu0 %v16981_v37  ;;  %v17017_v37 = vld [vmem:[#allocation11 + $0xed4] ss:$8 sps:$4 sm:$0xff]  }
 0xa4f   :  { %14752 = vmatmul.mubr.msk.f32.gmra.mrb[62].mxu0 %vm995_vm1, %v17977_v61  ;;  %v17023_v61 = vld [vmem:[#allocation11 + $0xef4] ss:$8 sps:$4 sm:$0xff]  }
 0xa50   :  { %5680 = vmatpush1.bf16.msra.mxu0 %v16979_v57  ;;  %5471 = vmatprep.mubr.f32.mxu0 %v18483_v1  ;;  %v17020_v57 = vld [vmem:[#allocation11 + $0xee4] ss:$8 sps:$4 sm:$0xff]  }
 0xa51   :  { %5681 = vmatprep.subr.bf16.mxu0 %v16984_v47  ;;  %v17018_v47 = vld [vmem:[#allocation11 + $0xee0] ss:$8 sps:$4 sm:$0xff]  }
 0xa53   :  { %14753 = vmatmul.mubr.msk.f32.gmra.mrb[64].mxu0 %vm995_vm1, %v17978_v39 }
 0xa54   :  { %5682 = vmatpush1.bf16.msra.mxu0 %v16982_v62  ;;  %5709 = vmatprep.mubr.bf16.mxu0 %v19034_v46  ;;  %v17021_v62 = vld [vmem:[#allocation11 + $0xef0] ss:$8 sps:$4 sm:$0xff]  }
 0xa55   :  { %5683 = vmatprep.subr.bf16.mxu0 %v16987_v10 }
 0xa58   :  { %5684 = vmatpush1.bf16.msra.mxu0 %v16985_v52 }
 0xa59   :  { %5685 = vmatprep.subr.bf16.mxu0 %v16990_v6 }
 0xa5c   :  { %5686 = vmatpush1.bf16.msra.mxu0 %v16988_v40 }
 0xa5d   :  { %5687 = vmatprep.subr.bf16.mxu0 %v16993_v41 }
 0xa60   :  { %5688 = vmatpush1.bf16.msra.mxu0 %v16991_v49 }
 0xa61   :  { %5689 = vmatprep.subr.bf16.mxu0 %v16996_v50 }
 0xa64   :  { %5690 = vmatpush1.bf16.msra.mxu0 %v16994_v51 }
 0xa65   :  { %5691 = vmatprep.subr.bf16.mxu0 %v16999_v53 }
 0xa68   :  { %5692 = vmatpush1.bf16.msra.mxu0 %v16997_v55  ;;  %v17979_v55 = vld [vmem:[#allocation9 + $0x78] sm:$0xff] }
 0xa69   :  { %5693 = vmatprep.subr.bf16.mxu0 %v17002_v59  ;;  %v17980_v59 = vld [vmem:[#allocation9 + $0x80] sm:$0xff] }
 0xa6c   :  { %5694 = vmatpush1.bf16.msra.mxu0 %v17000_v0  ;;  %v17036_v0 = vld [vmem:[#allocation11 + $0x1140] ss:$8 sps:$4 sm:$0xff]  }
 0xa6d   :  { %5695 = vmatprep.subr.bf16.mxu0 %v17005_v3  ;;  %v17041_v3 = vld [vmem:[#allocation11 + $0x1154] ss:$8 sps:$4 sm:$0xff]  }
 0xa70   :  { %5696 = vmatpush1.bf16.msra.mxu0 %v17003_v9  ;;  %v17039_v9 = vld [vmem:[#allocation11 + $0x1150] ss:$8 sps:$4 sm:$0xff]  }
 0xa71   :  { %5697 = vmatprep.subr.bf16.mxu0 %v17008_v28  ;;  %v17044_v28 = vld [vmem:[#allocation11 + $0x1164] ss:$8 sps:$4 sm:$0xff]  }
 0xa74   :  { %5698 = vmatpush1.bf16.msra.mxu0 %v17006_v27  ;;  %v17042_v27 = vld [vmem:[#allocation11 + $0x1160] ss:$8 sps:$4 sm:$0xff]  }
 0xa75   :  { %5699 = vmatprep.subr.bf16.mxu0 %v17011_v29  ;;  %v17047_v29 = vld [vmem:[#allocation11 + $0x1174] ss:$8 sps:$4 sm:$0xff]  }
 0xa78   :  { %5700 = vmatpush1.bf16.msra.mxu0 %v17009_v33  ;;  %v17045_v33 = vld [vmem:[#allocation11 + $0x1170] ss:$8 sps:$4 sm:$0xff]  }
 0xa79   :  { %5701 = vmatprep.subr.bf16.mxu0 %v17014_v34  ;;  %v17050_v34 = vld [vmem:[#allocation11 + $0x1184] ss:$8 sps:$4 sm:$0xff]  }
 0xa7c   :  { %5702 = vmatpush1.bf16.msra.mxu0 %v17012_v35  ;;  %v17053_v35 = vld [vmem:[#allocation11 + $0x1194] ss:$8 sps:$4 sm:$0xff]  }
 0xa7d   :  { %5703 = vmatprep.subr.bf16.mxu0 %v17017_v37  ;;  %v17051_v37 = vld [vmem:[#allocation11 + $0x1190] ss:$8 sps:$4 sm:$0xff]  }
 0xa80   :  { %5704 = vmatpush1.bf16.msra.mxu0 %v17015_v38  ;;  %v17056_v38 = vld [vmem:[#allocation11 + $0x11a4] ss:$8 sps:$4 sm:$0xff]  }
 0xa81   :  { %5705 = vmatprep.subr.bf16.mxu0 %v17020_v57  ;;  %v17054_v57 = vld [vmem:[#allocation11 + $0x11a0] ss:$8 sps:$4 sm:$0xff]  }
 0xa84   :  { %5706 = vmatpush1.bf16.msra.mxu0 %v17018_v47  ;;  %v17059_v47 = vld [vmem:[#allocation11 + $0x11b4] ss:$8 sps:$4 sm:$0xff]  }
 0xa85   :  { %5707 = vmatprep.subr.bf16.mxu0 %v17023_v61  ;;  %v17057_v61 = vld [vmem:[#allocation11 + $0x11b0] ss:$8 sps:$4 sm:$0xff]  }
 0xa88   :  { %5708 = vmatpush1.bf16.msra.mxu0 %v17021_v62  ;;  %v17062_v62 = vld [vmem:[#allocation11 + $0x11c4] ss:$8 sps:$4 sm:$0xff]  }
 0xa8b   :  { %5710 = vmatmul.mubr.bf16.vlgmr.msra.gmra.mrb[76].mxu0 %v19032_v45 }
 0xa8c   :  { %5719 = vmatprep.mubr.bf16.mxu0 %v19036_v58 }
 0xa93   :  { %5720 = vmatmul.mubr.bf16.gmra.mrb[80].mxu0 %v19044_v23 }
 0xa94   :  { %5798 = vmatprep.mubr.f32.mxu0 %v18483_v1 }
 0xb5e   :  { %v5711_v10 = vpop.f32.mrb[76].mxu0 }
 0xb5f   :  { %v5713_v39 = vpop.f32.mrb[77].mxu0 }
 0xb60   :  { %v5715_v52 = vpop.f32.mrb[78].mxu0 }
 0xb61   :  { %v15808_v6 = vpack.c.bf16 %v5715_v52, %v5711_v10  ;;  %v5717_v40 = vpop.f32.mrb[79].mxu0  ;;  %v17060_v10 = vld [vmem:[#allocation11 + $0x11c0] ss:$8 sps:$4 sm:$0xff]   ;;  %v17063_v52 = vld [vmem:[#allocation11 + $0x11d0] ss:$8 sps:$4 sm:$0xff]  }
 0xb62   :  { %v15806_v41 = vpack.c.bf16 %v5717_v40, %v5713_v39  ;;  %v17065_v39 = vld [vmem:[#allocation11 + $0x11d4] ss:$8 sps:$4 sm:$0xff]   ;;  %v17066_v40 = vld [vmem:[#allocation11 + $0x11e0] ss:$8 sps:$4 sm:$0xff]  }
 0xb64   :  { %15807 = vmatprep.subr.bf16.mxu0 %v15806_v41  ;;  %v17071_v41 = vld [vmem:[#allocation11 + $0x11f4] ss:$8 sps:$4 sm:$0xff]  }
 0xb65   :  { %15809 = vmatpush1.bf16.msra.mxu0 %v15808_v6  ;;  %v17068_v6 = vld [vmem:[#allocation11 + $0x11e4] ss:$8 sps:$4 sm:$0xff]  }
 0xb66   :  { %v5721_v49 = vpop.f32.mrb[80].mxu0 }
 0xb67   :  { %v5723_v50 = vpop.f32.mrb[81].mxu0 }
 0xb68   :  { %v5725_v51 = vpop.f32.mrb[82].mxu0  ;;  %14786 = vmatprep.subr.msk.mxu0 %vm391_vm0, %v5723_v50 }
 0xb69   :  { %v5726_v53 = vpop.f32.mrb[83].mxu0  ;;  %14787 = vmatpush1.msk.msra.mxu0 %vm391_vm0, %v5721_v49  ;;  %v17069_v49 = vld [vmem:[#allocation11 + $0x11f0] ss:$8 sps:$4 sm:$0xff]  }
 0xb6a   :  { %14788 = vmatmul.mubr.msk.f32.vlgmr.msra.gmra.mrb[60].mxu0 %vm995_vm1, %v17979_v55  ;;  %15811 = vmatprep.subr.bf16.mxu0 %v15810_v8  ;;  %v17024_v8 = vld [vmem:[#allocation11 + $0x1100] ss:$8 sps:$4 sm:$0xff]  }
 0xb6b   :  { %15813 = vmatpush1.bf16.msra.mxu0 %v15812_v22  ;;  %5804 = vmatprep.mubr.f32.mxu0 %v18483_v1  ;;  %v17983_v22 = vld [vmem:[#allocation9 + $0x98] sm:$0xff] }
 0xb6c   :  { %14823 = vmatprep.subr.msk.mxu0 %vm391_vm0, %v19115_v44  ;;  %v17985_v44 = vld [vmem:[#allocation9 + $0xa8] sm:$0xff] }
 0xb6e   :  { %14789 = vmatmul.mubr.msk.f32.gmra.mrb[62].mxu0 %vm995_vm1, %v17980_v59 }
 0xb6f   :  { %14824 = vmatpush1.msk.msra.mxu0 %vm391_vm0, %v19113_v15  ;;  %5810 = vmatprep.mubr.f32.mxu0 %v18483_v1  ;;  %v17029_v15 = vld [vmem:[#allocation11 + $0x1114] ss:$8 sps:$4 sm:$0xff]  }
 0xb70   :  { %15815 = vmatprep.subr.bf16.mxu0 %v15814_v2  ;;  %v17987_v2 = vld [vmem:[#allocation9 + $0xb8] sm:$0x3] }
 0xb72   :  { %14790 = vmatmul.mubr.msk.f32.gmra.mrb[64].mxu0 %vm995_vm1, %v17981_v7 }
 0xb73   :  { %6137 = vmatprep.mubr.f32.mxu0 %v18483_v1 }
 0xb76   :  { %14825 = vmatmul.mubr.msk.f32.vlgmr.msra.gmra.mrb[60].mxu0 %vm995_vm1, %v17982_v5 }
 0xb77   :  { %15817 = vmatpush1.bf16.msra.mxu0 %v15816_v25  ;;  %6143 = vmatprep.mubr.f32.mxu0 %v18483_v1  ;;  %v17030_v25 = vld [vmem:[#allocation11 + $0x1120] ss:$8 sps:$4 sm:$0xff]  }
 0xb78   :  { %14860 = vmatprep.subr.msk.mxu0 %vm391_vm0, %v19131_v4  ;;  %v17038_v4 = vld [vmem:[#allocation11 + $0x1144] ss:$8 sps:$4 sm:$0xff]  }
 0xb7a   :  { %14826 = vmatmul.mubr.msk.f32.gmra.mrb[62].mxu0 %vm995_vm1, %v17983_v22 }
 0xb7b   :  { %14861 = vmatpush1.msk.msra.mxu0 %vm391_vm0, %v19129_v36  ;;  %6149 = vmatprep.mubr.f32.mxu0 %v18483_v1  ;;  %v17033_v36 = vld [vmem:[#allocation11 + $0x1130] ss:$8 sps:$4 sm:$0xff]  }
 0xb7c   :  { %6694 = vmatprep.subr.bf16.mxu0 %v17026_v42 }
 0xb7e   :  { %14827 = vmatmul.mubr.msk.f32.gmra.mrb[64].mxu0 %vm995_vm1, %v17984_v43  ;;  %v17990_v43 = vld [vmem:[#allocation9 + $0xd0] sm:$0x3] }
 0xb7f   :  { %6476 = vmatprep.mubr.f32.mxu0 %v18483_v1 }
 0xb82   :  { %14862 = vmatmul.mubr.msk.f32.vlgmr.msra.gmra.mrb[60].mxu0 %vm995_vm1, %v17985_v44  ;;  %v17077_v44 = vld [vmem:[#allocation11 + $0x1204] ss:$8 sps:$4 sm:$0xff]  }
 0xb83   :  { %6695 = vmatpush1.bf16.msra.mxu0 %v17024_v8  ;;  %6482 = vmatprep.mubr.f32.mxu0 %v18483_v1  ;;  %v17074_v8 = vld [vmem:[#allocation11 + $0x1304] ss:$8 sps:$4 sm:$0xff]  }
 0xb84   :  { %6696 = vmatprep.subr.bf16.mxu0 %v17029_v15  ;;  %v17072_v15 = vld [vmem:[#allocation11 + $0x1300] ss:$8 sps:$4 sm:$0xff]   ;;  %7188 = vmatprep.subr.bf16.mxu1 %v17077_v44 }
 0xb85   :  { %v17144_v44 = vld [vmem:[#allocation11 + $0x13c0] ss:$8 sps:$4 sm:$0xff]  }
 0xb86   :  { %14863 = vmatmul.mubr.msk.f32.gmra.mrb[62].mxu0 %vm995_vm1, %v17986_v60  ;;  %v17078_v60 = vld [vmem:[#allocation11 + $0x1310] ss:$8 sps:$4 sm:$0xff]  }
 0xb87   :  { %6697 = vmatpush1.bf16.msra.mxu0 %v17027_v16  ;;  %6488 = vmatprep.mubr.f32.mxu0 %v18483_v1  ;;  %v17075_v16 = vld [vmem:[#allocation11 + $0x1200] ss:$8 sps:$4 sm:$0xff]  }
 0xb88   :  { %6698 = vmatprep.subr.bf16.mxu0 %v17032_v24  ;;  %7189 = vmatpush1.bf16.msra.mxu1 %v17075_v16  ;;  %v17080_v24 = vld [vmem:[#allocation11 + $0x1314] ss:$8 sps:$4 sm:$0xff]   ;;  %v17149_v16 = vld [vmem:[#allocation11 + $0x12c4] ss:$8 sps:$4 sm:$0xff]  }
 0xb8a   :  { %14864 = vmatmul.mubr.msk.f32.gmra.mrb[64].mxu0 %vm995_vm1, %v17987_v2  ;;  %v17086_v2 = vld [vmem:[#allocation11 + $0x1324] ss:$8 sps:$4 sm:$0xff]  }
 0xb8b   :  { %6699 = vmatpush1.bf16.msra.mxu0 %v17030_v25  ;;  %6726 = vmatprep.mubr.bf16.mxu0 %v19034_v46  ;;  %v17048_v46 = vld [vmem:[#allocation11 + $0x1180] ss:$8 sps:$4 sm:$0xff]   ;;  %v17083_v25 = vld [vmem:[#allocation11 + $0x1214] ss:$8 sps:$4 sm:$0xff]  }
 0xb8c   :  { %6700 = vmatprep.subr.bf16.mxu0 %v17035_v63  ;;  %v17081_v63 = vld [vmem:[#allocation11 + $0x1210] ss:$8 sps:$4 sm:$0xff]   ;;  %7190 = vmatprep.subr.bf16.mxu1 %v17083_v25 }
 0xb8d   :  { %7191 = vmatpush1.bf16.msra.mxu1 %v17081_v63  ;;  %v17150_v25 = vld [vmem:[#allocation11 + $0x13d0] ss:$8 sps:$4 sm:$0xff]   ;;  %v17155_v63 = vld [vmem:[#allocation11 + $0x12d4] ss:$8 sps:$4 sm:$0xff]  }
 0xb8f   :  { %6701 = vmatpush1.bf16.msra.mxu0 %v17033_v36  ;;  %v17084_v36 = vld [vmem:[#allocation11 + $0x1320] ss:$8 sps:$4 sm:$0xff]  }
 0xb90   :  { %6702 = vmatprep.subr.bf16.mxu0 %v17038_v4  ;;  %v17089_v4 = vld [vmem:[#allocation11 + $0x1224] ss:$8 sps:$4 sm:$0xff]  }
 0xb91   :  { %7192 = vmatprep.subr.bf16.mxu1 %v17089_v4  ;;  %v17156_v4 = vld [vmem:[#allocation11 + $0x13e0] ss:$8 sps:$4 sm:$0xff]  }
 0xb93   :  { %6703 = vmatpush1.bf16.msra.mxu0 %v17036_v0  ;;  %v17087_v0 = vld [vmem:[#allocation11 + $0x1220] ss:$8 sps:$4 sm:$0xff]  }
 0xb94   :  { %6704 = vmatprep.subr.bf16.mxu0 %v17041_v3  ;;  %7193 = vmatpush1.bf16.msra.mxu1 %v17087_v0  ;;  %v17092_v3 = vld [vmem:[#allocation11 + $0x1334] ss:$8 sps:$4 sm:$0xff]   ;;  %v17161_v0 = vld [vmem:[#allocation11 + $0x12e4] ss:$8 sps:$4 sm:$0xff]  }
 0xb97   :  { %6705 = vmatpush1.bf16.msra.mxu0 %v17039_v9  ;;  %v17090_v9 = vld [vmem:[#allocation11 + $0x1330] ss:$8 sps:$4 sm:$0xff]  }
 0xb98   :  { %6706 = vmatprep.subr.bf16.mxu0 %v17044_v28  ;;  %v17095_v28 = vld [vmem:[#allocation11 + $0x1234] ss:$8 sps:$4 sm:$0xff]  }
 0xb99   :  { %7194 = vmatprep.subr.bf16.mxu1 %v17095_v28  ;;  %v17162_v28 = vld [vmem:[#allocation11 + $0x13f0] ss:$8 sps:$4 sm:$0xff]  }
 0xb9b   :  { %6707 = vmatpush1.bf16.msra.mxu0 %v17042_v27  ;;  %v17093_v27 = vld [vmem:[#allocation11 + $0x1230] ss:$8 sps:$4 sm:$0xff]  }
 0xb9c   :  { %6708 = vmatprep.subr.bf16.mxu0 %v17047_v29  ;;  %7195 = vmatpush1.bf16.msra.mxu1 %v17093_v27  ;;  %v17098_v29 = vld [vmem:[#allocation11 + $0x1344] ss:$8 sps:$4 sm:$0xff]   ;;  %v17167_v27 = vld [vmem:[#allocation11 + $0x12f4] ss:$8 sps:$4 sm:$0xff]  }
 0xb9f   :  { %6709 = vmatpush1.bf16.msra.mxu0 %v17045_v33  ;;  %v17096_v33 = vld [vmem:[#allocation11 + $0x1340] ss:$8 sps:$4 sm:$0xff]  }
 0xba0   :  { %6710 = vmatprep.subr.bf16.mxu0 %v17050_v34  ;;  %v17101_v34 = vld [vmem:[#allocation11 + $0x1244] ss:$8 sps:$4 sm:$0xff]  }
 0xba1   :  { %7196 = vmatprep.subr.bf16.mxu1 %v17101_v34  ;;  %v19220_v34 = vld [vmem:[#allocation12 + $0x8] sm:$0x77] }
 0xba3   :  { %6711 = vmatpush1.bf16.msra.mxu0 %v17048_v46  ;;  %v17099_v46 = vld [vmem:[#allocation11 + $0x1240] ss:$8 sps:$4 sm:$0xff]  }
 0xba4   :  { %6712 = vmatprep.subr.bf16.mxu0 %v17053_v35  ;;  %7197 = vmatpush1.bf16.msra.mxu1 %v17099_v46  ;;  %v17104_v35 = vld [vmem:[#allocation11 + $0x1354] ss:$8 sps:$4 sm:$0xff]   ;;  %v6844_v46 = vrot.slane %v19220_v34, %v18825_v54 }
 0xba7   :  { %6713 = vmatpush1.bf16.msra.mxu0 %v17051_v37  ;;  %v17102_v37 = vld [vmem:[#allocation11 + $0x1350] ss:$8 sps:$4 sm:$0xff]  }
 0xba8   :  { %6714 = vmatprep.subr.bf16.mxu0 %v17056_v38  ;;  %v17107_v38 = vld [vmem:[#allocation11 + $0x1254] ss:$8 sps:$4 sm:$0xff]  }
 0xba9   :  { %7198 = vmatprep.subr.bf16.mxu1 %v17107_v38  ;;  %v6854_v38 = vrot.slane %v6844_v46, %v18825_v54 }
 0xbab   :  { %6715 = vmatpush1.bf16.msra.mxu0 %v17054_v57  ;;  %v17105_v57 = vld [vmem:[#allocation11 + $0x1250] ss:$8 sps:$4 sm:$0xff]  }
 0xbac   :  { %6716 = vmatprep.subr.bf16.mxu0 %v17059_v47  ;;  %7199 = vmatpush1.bf16.msra.mxu1 %v17105_v57  ;;  %v17110_v47 = vld [vmem:[#allocation11 + $0x1364] ss:$8 sps:$4 sm:$0xff]  }
 0xbaf   :  { %6717 = vmatpush1.bf16.msra.mxu0 %v17057_v61  ;;  %v17108_v61 = vld [vmem:[#allocation11 + $0x1360] ss:$8 sps:$4 sm:$0xff]  }
 0xbb0   :  { %6718 = vmatprep.subr.bf16.mxu0 %v17062_v62  ;;  %v17113_v62 = vld [vmem:[#allocation11 + $0x1264] ss:$8 sps:$4 sm:$0xff]  }
 0xbb1   :  { %7200 = vmatprep.subr.bf16.mxu1 %v17113_v62 }
 0xbb3   :  { %6719 = vmatpush1.bf16.msra.mxu0 %v17060_v10  ;;  %v17111_v10 = vld [vmem:[#allocation11 + $0x1260] ss:$8 sps:$4 sm:$0xff]  }
 0xbb4   :  { %6720 = vmatprep.subr.bf16.mxu0 %v17065_v39  ;;  %7201 = vmatpush1.bf16.msra.mxu1 %v17111_v10  ;;  %v17116_v39 = vld [vmem:[#allocation11 + $0x1374] ss:$8 sps:$4 sm:$0xff]  }
 0xbb7   :  { %6721 = vmatpush1.bf16.msra.mxu0 %v17063_v52  ;;  %v17114_v52 = vld [vmem:[#allocation11 + $0x1370] ss:$8 sps:$4 sm:$0xff]  }
 0xbb8   :  { %6722 = vmatprep.subr.bf16.mxu0 %v17068_v6  ;;  %v17119_v6 = vld [vmem:[#allocation11 + $0x1274] ss:$8 sps:$4 sm:$0xff]  }
 0xbb9   :  { %7202 = vmatprep.subr.bf16.mxu1 %v17119_v6 }
 0xbbb   :  { %6723 = vmatpush1.bf16.msra.mxu0 %v17066_v40  ;;  %v17117_v40 = vld [vmem:[#allocation11 + $0x1270] ss:$8 sps:$4 sm:$0xff]  }
 0xbbc   :  { %6724 = vmatprep.subr.bf16.mxu0 %v17071_v41  ;;  %7203 = vmatpush1.bf16.msra.mxu1 %v17117_v40  ;;  %v17122_v41 = vld [vmem:[#allocation11 + $0x1384] ss:$8 sps:$4 sm:$0xff]  }
 0xbbf   :  { %6725 = vmatpush1.bf16.msra.mxu0 %v17069_v49  ;;  %v17120_v49 = vld [vmem:[#allocation11 + $0x1380] ss:$8 sps:$4 sm:$0xff]  }
 0xbc2   :  { %6727 = vmatmul.mubr.bf16.vlgmr.msra.gmra.mrb[84].mxu0 %v19032_v45 }
 0xbc3   :  { %6736 = vmatprep.mubr.bf16.mxu0 %v19036_v58  ;;  %v17988_v58 = vld [vmem:[#allocation9 + $0xc0] sm:$0xff] }
 0xbca   :  { %6737 = vmatmul.mubr.bf16.gmra.mrb[88].mxu0 %v19044_v23  ;;  %v17989_v23 = vld [vmem:[#allocation9 + $0xc8] sm:$0xff] }
 0xbcb   :  { %6815 = vmatprep.mubr.f32.mxu0 %v18483_v1 }
 0xc95   :  { %v6728_v50 = vpop.f32.mrb[84].mxu0 }
 0xc96   :  { %v6730_v51 = vpop.f32.mrb[85].mxu0 }
 0xc97   :  { %v6732_v53 = vpop.f32.mrb[86].mxu0 }
 0xc98   :  { %v15820_v55 = vpack.c.bf16 %v6732_v53, %v6728_v50  ;;  %v6734_v59 = vpop.f32.mrb[87].mxu0  ;;  %v17125_v50 = vld [vmem:[#allocation11 + $0x1284] ss:$8 sps:$4 sm:$0xff]   ;;  %v17128_v53 = vld [vmem:[#allocation11 + $0x1394] ss:$8 sps:$4 sm:$0xff]  }
 0xc99   :  { %v15818_v7 = vpack.c.bf16 %v6734_v59, %v6730_v51  ;;  %v17123_v51 = vld [vmem:[#allocation11 + $0x1280] ss:$8 sps:$4 sm:$0xff]   ;;  %7204 = vmatprep.subr.bf16.mxu1 %v17125_v50  ;;  %v17131_v59 = vld [vmem:[#allocation11 + $0x1294] ss:$8 sps:$4 sm:$0xff]  }
 0xc9a   :  { %7205 = vmatpush1.bf16.msra.mxu1 %v17123_v51 }
 0xc9b   :  { %15819 = vmatprep.subr.bf16.mxu0 %v15818_v7  ;;  %v17129_v7 = vld [vmem:[#allocation11 + $0x1290] ss:$8 sps:$4 sm:$0xff]   ;;  %7206 = vmatprep.subr.bf16.mxu1 %v17131_v59 }
 0xc9c   :  { %15821 = vmatpush1.bf16.msra.mxu0 %v15820_v55  ;;  %v17126_v55 = vld [vmem:[#allocation11 + $0x1390] ss:$8 sps:$4 sm:$0xff]  }
 0xc9d   :  { %v6738_v5 = vpop.f32.mrb[88].mxu0 }
 0xc9e   :  { %v6740_v42 = vpop.f32.mrb[89].mxu0  ;;  %7207 = vmatpush1.bf16.msra.mxu1 %v17129_v7 }
 0xc9f   :  { %v6742_v22 = vpop.f32.mrb[90].mxu0  ;;  %14897 = vmatprep.subr.msk.mxu0 %vm391_vm0, %v6740_v42  ;;  %v17132_v42 = vld [vmem:[#allocation11 + $0x13a0] ss:$8 sps:$4 sm:$0xff]  }
 0xca0   :  { %v6743_v45 = vpop.f32.mrb[91].mxu0  ;;  %14898 = vmatpush1.msk.msra.mxu0 %vm391_vm0, %v6738_v5  ;;  %v17134_v5 = vld [vmem:[#allocation11 + $0x13a4] ss:$8 sps:$4 sm:$0xff]  }
 0xca1   :  { %14899 = vmatmul.mubr.msk.f32.vlgmr.msra.gmra.mrb[60].mxu0 %vm995_vm1, %v17988_v58  ;;  %7432 = vmatprep.subr.bf16.mxu0 %v17074_v8  ;;  %v17137_v22 = vld [vmem:[#allocation11 + $0x12a4] ss:$8 sps:$4 sm:$0xff]   ;;  %v17135_v45 = vld [vmem:[#allocation11 + $0x12a0] ss:$8 sps:$4 sm:$0xff]   ;;  %v17140_v58 = vld [vmem:[#allocation11 + $0x13b4] ss:$8 sps:$4 sm:$0xff]  }
 0xca2   :  { %6821 = vmatprep.mubr.f32.mxu0 %v18483_v1  ;;  %7433 = vmatpush1.bf16.msra.mxu0 %v17072_v15  ;;  %v17141_v8 = vld [vmem:[#allocation11 + $0x12b0] ss:$8 sps:$4 sm:$0xff]   ;;  %v17146_v15 = vld [vmem:[#allocation11 + $0x13c4] ss:$8 sps:$4 sm:$0xff]  }
 0xca3   :  { %7434 = vmatprep.subr.bf16.mxu0 %v17080_v24  ;;  %7208 = vmatprep.subr.bf16.mxu1 %v17137_v22  ;;  %v17147_v24 = vld [vmem:[#allocation11 + $0x12c0] ss:$8 sps:$4 sm:$0xff]  }
 0xca4   :  { %7209 = vmatpush1.bf16.msra.mxu1 %v17135_v45 }
 0xca5   :  { %14900 = vmatmul.mubr.msk.f32.gmra.mrb[62].mxu0 %vm995_vm1, %v17989_v23  ;;  %v17138_v23 = vld [vmem:[#allocation11 + $0x13b0] ss:$8 sps:$4 sm:$0xff]  }
 0xca6   :  { %6827 = vmatprep.mubr.f32.mxu0 %v18483_v1  ;;  %7435 = vmatpush1.bf16.msra.mxu0 %v17078_v60  ;;  %v17152_v60 = vld [vmem:[#allocation11 + $0x13d4] ss:$8 sps:$4 sm:$0xff]  }
 0xca7   :  { %7436 = vmatprep.subr.bf16.mxu0 %v17086_v2  ;;  %v17153_v2 = vld [vmem:[#allocation11 + $0x12d0] ss:$8 sps:$4 sm:$0xff]  }
 0xca9   :  { %14901 = vmatmul.mubr.msk.f32.gmra.mrb[64].mxu0 %vm995_vm1, %v17990_v43  ;;  %v17143_v43 = vld [vmem:[#allocation11 + $0x12b4] ss:$8 sps:$4 sm:$0xff]  }
 0xcaa   :  { %7437 = vmatpush1.bf16.msra.mxu0 %v17084_v36  ;;  %7210 = vmatprep.subr.bf16.mxu1 %v17143_v43  ;;  %v17158_v36 = vld [vmem:[#allocation11 + $0x13e4] ss:$8 sps:$4 sm:$0xff]  }
 0xcab   :  { %7438 = vmatprep.subr.bf16.mxu0 %v17092_v3  ;;  %7211 = vmatpush1.bf16.msra.mxu1 %v17141_v8  ;;  %v17159_v3 = vld [vmem:[#allocation11 + $0x12e0] ss:$8 sps:$4 sm:$0xff]  }
 0xcac   :  { %7212 = vmatprep.subr.bf16.mxu1 %v17149_v16 }
 0xcae   :  { %7439 = vmatpush1.bf16.msra.mxu0 %v17090_v9  ;;  %v17164_v9 = vld [vmem:[#allocation11 + $0x13f4] ss:$8 sps:$4 sm:$0xff]  }
 0xcaf   :  { %7440 = vmatprep.subr.bf16.mxu0 %v17098_v29  ;;  %7213 = vmatpush1.bf16.msra.mxu1 %v17147_v24  ;;  %v17165_v29 = vld [vmem:[#allocation11 + $0x12f0] ss:$8 sps:$4 sm:$0xff]  }
 0xcb0   :  { %7214 = vmatprep.subr.bf16.mxu1 %v17155_v63 }
 0xcb2   :  { %7441 = vmatpush1.bf16.msra.mxu0 %v17096_v33  ;;  %v17170_v33 = vld [vmem:[#allocation11 + $0x1504] ss:$8 sps:$4 sm:$0xff]  }
 0xcb3   :  { %7442 = vmatprep.subr.bf16.mxu0 %v17104_v35  ;;  %7215 = vmatpush1.bf16.msra.mxu1 %v17153_v2  ;;  %v6848_v35 = vrot.slane %v19220_v34, %v18993_v48 }
 0xcb4   :  { %7216 = vmatprep.subr.bf16.mxu1 %v17161_v0 }
 0xcb6   :  { %7443 = vmatpush1.bf16.msra.mxu0 %v17102_v37 }
 0xcb7   :  { %7444 = vmatprep.subr.bf16.mxu0 %v17110_v47  ;;  %7217 = vmatpush1.bf16.msra.mxu1 %v17159_v3  ;;  %v6858_v47 = vrot.slane %v6848_v35, %v18825_v54 }
 0xcb8   :  { %7218 = vmatprep.subr.bf16.mxu1 %v17167_v27 }
 0xcba   :  { %7445 = vmatpush1.bf16.msra.mxu0 %v17108_v61 }
 0xcbb   :  { %7446 = vmatprep.subr.bf16.mxu0 %v17116_v39  ;;  %7219 = vmatpush1.bf16.msra.mxu1 %v17165_v29 }
 0xcbe   :  { %7447 = vmatpush1.bf16.msra.mxu0 %v17114_v52 }
 0xcbf   :  { %7448 = vmatprep.subr.bf16.mxu0 %v17122_v41 }
 0xcc2   :  { %7449 = vmatpush1.bf16.msra.mxu0 %v17120_v49 }
 0xcc3   :  { %7450 = vmatprep.subr.bf16.mxu0 %v17128_v53 }
 0xcc6   :  { %7451 = vmatpush1.bf16.msra.mxu0 %v17126_v55 }
 0xcc7   :  { %7452 = vmatprep.subr.bf16.mxu0 %v17134_v5 }
 0xcca   :  { %7453 = vmatpush1.bf16.msra.mxu0 %v17132_v42 }
 0xccb   :  { %7454 = vmatprep.subr.bf16.mxu0 %v17140_v58 }
 0xcce   :  { %7455 = vmatpush1.bf16.msra.mxu0 %v17138_v23 }
 0xccf   :  { %7456 = vmatprep.subr.bf16.mxu0 %v17146_v15 }
 0xcd2   :  { %7457 = vmatpush1.bf16.msra.mxu0 %v17144_v44 }
 0xcd3   :  { %7458 = vmatprep.subr.bf16.mxu0 %v17152_v60 }
 0xcd6   :  { %7459 = vmatpush1.bf16.msra.mxu0 %v17150_v25 }
 0xcd7   :  { %7460 = vmatprep.subr.bf16.mxu0 %v17158_v36 }
 0xcda   :  { %7461 = vmatpush1.bf16.msra.mxu0 %v17156_v4 }
 0xcdb   :  { %7462 = vmatprep.subr.bf16.mxu0 %v17164_v9 }
 0xcde   :  { %7463 = vmatpush1.bf16.msra.mxu0 %v17162_v28 }
 0xcdf   :  { %8193 = vmatprep.subr.bf16.mxu0 %v17170_v33 }
 0xd74   :  { %v6817_v37 = vpop.f32.mrb[60].mxu0 }
 0xd75   :  { %v6819_v57 = vpop.f32.mrb[61].mxu0  ;;  %v6859_v62 = vadd.f32 %v6854_v38, %v6817_v37 }
 0xd76   :  { %v6860_v52 = vadd.f32 %v6858_v47, %v6819_v57 }
 0xd78   :  { %v6823_v61 = vpop.f32.mrb[62].mxu0 }
 0xd79   :  { %v6861_v10 = vadd.f32 %v6854_v38, %v6823_v61  ;;  %v6825_v39 = vpop.f32.mrb[63].mxu0 }
 0xd7a   :  { %v6862_v6 = vadd.f32 %v6858_v47, %v6825_v39 }
 0xd7b   :  { %v6865_v40 = vadd.f32 %v6861_v10, %v6859_v62 }
 0xd7c   :  { %v6874_v41 = vadd.f32 %v6862_v6, %v6860_v52  ;;  %v6829_v49 = vpop.f32.mrb[64].mxu0 }
 0xd7d   :  { %v6863_v50 = vadd.f32 %v6854_v38, %v6829_v49  ;;  %v6831_v51 = vpop.f32.mrb[65].mxu0 }
 0xd7e   :  { %v6864_v53 = vadd.f32 %v6858_v47, %v6831_v51 }
 0xd7f   :  { %v6866_v55 = vsel %vm391_vm0, %v6863_v50, 0.0 }
 0xd80   :  { %v6867_v59 = vadd.f32 %v6866_v55, %v6865_v40  ;;  %v6875_v7 = vsel %vm391_vm0, %v6864_v53, 0.0 }
 0xd81   :  { %v6876_v5 = vadd.f32 %v6875_v7, %v6874_v41 }
 0xd82   :  { %v6868_v42 = vrot.slane %v6867_v59, 4 }
 0xd83   :  { %v6877_v22 = vrot.slane %v6876_v5, 4 }
 0xd84   :  { %v6869_v45 = vadd.f32 %v6868_v42, %v6867_v59 }
 0xd85   :  { %v6878_v58 = vadd.f32 %v6877_v22, %v6876_v5 }
 0xd86   :  { %v6870_v23 = vrot.slane %v6869_v45, 2 }
 0xd87   :  { %v6879_v43 = vrot.slane %v6878_v58, 2 }
 0xd88   :  { %v6871_v8 = vadd.f32 %v6870_v23, %v6869_v45  ;;  %v6930_v45 = vrot.slane %v19220_v34, %v18828_v56  ;;  %v6954_v23 = vrot.slane %v19220_v34, %v19015_v31 }
 0xd89   :  { %v6880_v15 = vadd.f32 %v6879_v43, %v6878_v58  ;;  %v6934_v58 = vrot.slane %v19220_v34, %v19012_v30  ;;  %v6958_v43 = vrot.slane %v19220_v34, %v19018_v32 }
 0xd8a   :  { %v6872_v44 = vrot.slane %v6871_v8, 1 }
 0xd8b   :  { %v6881_v16 = vrot.slane %v6880_v15, 1 }
 0xd8c   :  { %v6873_v24 = vadd.f32 %v6872_v44, %v6871_v8  ;;  %v6940_v8 = vrot.slane %v6930_v45, %v18828_v56  ;;  %v6944_v44 = vrot.slane %v6934_v58, %v18828_v56  ;;  %v17191_v45 = vld [vmem:[#allocation11 + $0x1574] ss:$8 sps:$4 sm:$0xff]   ;;  %v17189_v58 = vld [vmem:[#allocation11 + $0x1570] ss:$8 sps:$4 sm:$0xff]  }
 0xd8d   :  { %v6882_v60 = vadd.f32 %v6881_v16, %v6880_v15 }
 0xd8e   :  { %v6883_v25 = vmul.f32 0.055555556, %v6873_v24 }
 0xd8f   :  { %v6884_v63 = vmul.f32 0.055555556, %v6882_v60 }
 0xd90   :  { %v6885_v2 = vsub.f32 %v6859_v62, %v6883_v25  ;;  %v6887_v36 = vsub.f32 %v6861_v10, %v6883_v25  ;;  %v6889_v4 = vsub.f32 %v6863_v50, %v6883_v25 }
 0xd91   :  { %v6886_v0 = vsub.f32 %v6860_v52, %v6884_v63  ;;  %v6888_v3 = vsub.f32 %v6862_v6, %v6884_v63  ;;  %v6890_v9 = vsub.f32 %v6864_v53, %v6884_v63  ;;  %v6964_v63 = vrot.slane %v6954_v23, %v19015_v31  ;;  %v17194_v23 = vld [vmem:[#allocation11 + $0x1584] ss:$8 sps:$4 sm:$0xff]  }
 0xd92   :  { %v6891_v28 = vmul.f32 %v6885_v2, %v6885_v2  ;;  %v6893_v27 = vmul.f32 %v6887_v36, %v6887_v36  ;;  %v6895_v29 = vmul.f32 %v6889_v4, %v6889_v4 }
 0xd93   :  { %v6892_v33 = vmul.f32 %v6886_v0, %v6886_v0  ;;  %v6894_v46 = vmul.f32 %v6888_v3, %v6888_v3  ;;  %v6896_v35 = vmul.f32 %v6890_v9, %v6890_v9 }
 0xd94   :  { %v6897_v37 = vadd.f32 %v6893_v27, %v6891_v28  ;;  %v6898_v38 = vsel %vm391_vm0, %v6895_v29, 0.0 }
 0xd95   :  { %v6906_v57 = vadd.f32 %v6894_v46, %v6892_v33  ;;  %v6907_v47 = vsel %vm391_vm0, %v6896_v35, 0.0  ;;  %v6968_v33 = vrot.slane %v6958_v43, %v19015_v31  ;;  %v17192_v43 = vld [vmem:[#allocation11 + $0x1580] ss:$8 sps:$4 sm:$0xff]  }
 0xd96   :  { %v6899_v61 = vadd.f32 %v6898_v38, %v6897_v37 }
 0xd97   :  { %v6908_v39 = vadd.f32 %v6907_v47, %v6906_v57 }
 0xd98   :  { %v6900_v62 = vrot.slane %v6899_v61, 4 }
 0xd99   :  { %v6909_v10 = vrot.slane %v6908_v39, 4 }
 0xd9a   :  { %v6901_v40 = vadd.f32 %v6900_v62, %v6899_v61 }
 0xd9b   :  { %v6910_v52 = vadd.f32 %v6909_v10, %v6908_v39 }
 0xd9c   :  { %v6902_v6 = vrot.slane %v6901_v40, 2 }
 0xd9d   :  { %v6911_v41 = vrot.slane %v6910_v52, 2 }
 0xd9e   :  { %v6903_v49 = vadd.f32 %v6902_v6, %v6901_v40 }
 0xd9f   :  { %v6912_v50 = vadd.f32 %v6911_v41, %v6910_v52  ;;  %v17176_v41 = vld [vmem:[#allocation11 + $0x1524] ss:$8 sps:$4 sm:$0xff]  }
 0xda0   :  { %v6904_v51 = vrot.slane %v6903_v49, 1 }
 0xda1   :  { %v6913_v53 = vrot.slane %v6912_v50, 1 }
 0xda2   :  { %v6905_v55 = vadd.f32 %v6904_v51, %v6903_v49  ;;  %v17174_v49 = vld [vmem:[#allocation11 + $0x1520] ss:$8 sps:$4 sm:$0xff]   ;;  %v17179_v51 = vld [vmem:[#allocation11 + $0x1534] ss:$8 sps:$4 sm:$0xff]  }
 0xda3   :  { %v6914_v59 = vadd.f32 %v6913_v53, %v6912_v50  ;;  %v17177_v53 = vld [vmem:[#allocation11 + $0x1530] ss:$8 sps:$4 sm:$0xff]  }
 0xda4   :  { %v6915_v7 = vmul.f32 0.055555556, %v6905_v55  ;;  %v17182_v55 = vld [vmem:[#allocation11 + $0x1544] ss:$8 sps:$4 sm:$0xff]  }
 0xda5   :  { %v6916_v5 = vmul.f32 0.055555556, %v6914_v59  ;;  %v17180_v59 = vld [vmem:[#allocation11 + $0x1540] ss:$8 sps:$4 sm:$0xff]  }
 0xda6   :  { %v6917_v42 = vadd.f32 1e-05, %v6915_v7  ;;  %v17185_v7 = vld [vmem:[#allocation11 + $0x1554] ss:$8 sps:$4 sm:$0xff]  }
 0xda7   :  { %v6918_v22 = vadd.f32 1e-05, %v6916_v5  ;;  %v17183_v5 = vld [vmem:[#allocation11 + $0x1550] ss:$8 sps:$4 sm:$0xff]  }
 0xda8   :  { %17944 = vrsqrt.f32 %v6917_v42  ;;  %v17188_v42 = vld [vmem:[#allocation11 + $0x1564] ss:$8 sps:$4 sm:$0xff]  }
 0xda9   :  { %17946 = vrsqrt.f32 %v6918_v22  ;;  %v17186_v22 = vld [vmem:[#allocation11 + $0x1560] ss:$8 sps:$4 sm:$0xff]  }
 0xdb2   :  { %v17945_v15 = vpop.eup %17944 }
 0xdb3   :  { %v17947_v16 = vpop.eup %17946  ;;  %v6921_v24 = vmul.f32 %v17945_v15, %v6885_v2  ;;  %v6923_v60 = vmul.f32 %v17945_v15, %v6887_v36  ;;  %v6925_v25 = vmul.f32 %v17945_v15, %v6889_v4  ;;  %v17195_v15 = vld [vmem:[#allocation11 + $0x1590] ss:$8 sps:$4 sm:$0xff]  }
 0xdb4   :  { %v6922_v28 = vmul.f32 %v17947_v16, %v6886_v0  ;;  %v6924_v27 = vmul.f32 %v17947_v16, %v6888_v3  ;;  %v6926_v29 = vmul.f32 %v17947_v16, %v6890_v9  ;;  %v17198_v16 = vld [vmem:[#allocation11 + $0x15a0] ss:$8 sps:$4 sm:$0xff]  }
 0xdb5   :  { %v6945_v46 = vmul.f32 %v6940_v8, %v6921_v24  ;;  %v6947_v35 = vmul.f32 %v6940_v8, %v6923_v60  ;;  %v6949_v57 = vmul.f32 %v6940_v8, %v6925_v25  ;;  %v17197_v8 = vld [vmem:[#allocation11 + $0x1594] ss:$8 sps:$4 sm:$0xff]   ;;  %v17201_v60 = vld [vmem:[#allocation11 + $0x15b0] ss:$8 sps:$4 sm:$0xff]   ;;  %v17206_v25 = vld [vmem:[#allocation11 + $0x15c4] ss:$8 sps:$4 sm:$0xff]  }
 0xdb6   :  { %v6946_v37 = vmul.f32 %v6944_v44, %v6922_v28  ;;  %v6948_v34 = vmul.f32 %v6944_v44, %v6924_v27  ;;  %v6950_v38 = vmul.f32 %v6944_v44, %v6926_v29  ;;  %v17200_v44 = vld [vmem:[#allocation11 + $0x15a4] ss:$8 sps:$4 sm:$0xff]   ;;  %v17203_v24 = vld [vmem:[#allocation11 + $0x15b4] ss:$8 sps:$4 sm:$0xff]   ;;  %v17207_v27 = vld [vmem:[#allocation11 + $0x15d0] ss:$8 sps:$4 sm:$0xff]  }
 0xdb7   :  { %v6969_v47 = vadd.f32 %v6964_v63, %v6945_v46  ;;  %v6971_v61 = vadd.f32 %v6964_v63, %v6947_v35  ;;  %v6973_v10 = vadd.f32 %v6964_v63, %v6949_v57  ;;  %v17204_v63 = vld [vmem:[#allocation11 + $0x15c0] ss:$8 sps:$4 sm:$0xff]   ;;  %v17209_v28 = vld [vmem:[#allocation11 + $0x15d4] ss:$8 sps:$4 sm:$0xff]   ;;  %v17212_v29 = vld [vmem:[#allocation11 + $0x15e4] ss:$8 sps:$4 sm:$0xff]  }
 0xdb8   :  { %v6970_v39 = vadd.f32 %v6968_v33, %v6946_v37  ;;  %v6972_v62 = vadd.f32 %v6968_v33, %v6948_v34  ;;  %v6974_v2 = vadd.f32 %v6968_v33, %v6950_v38  ;;  %v17210_v33 = vld [vmem:[#allocation11 + $0x15e0] ss:$8 sps:$4 sm:$0xff]   ;;  %v17215_v46 = vld [vmem:[#allocation11 + $0x15f4] ss:$8 sps:$4 sm:$0xff]   ;;  %v17213_v35 = vld [vmem:[#allocation11 + $0x15f0] ss:$8 sps:$4 sm:$0xff]  }
 0xdb9   :  { %v19246_v36 = vadd.f32 %v6969_v47, %v488_v17  ;;  %v19250_v4 = vadd.f32 %v6971_v61, %v490_v18  ;;  %v17218_v37 = vld [vmem:[#allocation11 + $0x1604] ss:$8 sps:$4 sm:$0xff]   ;;  %v17216_v34 = vld [vmem:[#allocation11 + $0x1600] ss:$8 sps:$4 sm:$0xff]   ;;  %v17221_v38 = vld [vmem:[#allocation11 + $0x1614] ss:$8 sps:$4 sm:$0xff]  }
 0xdba   :  { %v19254_v0 = vadd.f32 %v6970_v39, %v489_v19  ;;  %v19258_v3 = vadd.f32 %v6972_v62, %v491_v20  ;;  %v6980_v9 = vadd.f32 %v6974_v2, %v18846_v21  ;;  %v6979_v19 = vadd.f32 %v6973_v10, %v18870_v26  ;;  %v17173_v21 = vld [vmem:[#allocation11 + $0x1514] ss:$8 sps:$4 sm:$0xff]   ;;  %v17171_v26 = vld [vmem:[#allocation11 + $0x1510] ss:$8 sps:$4 sm:$0xff]   ;;  %v17224_v47 = vld [vmem:[#allocation11 + $0x1624] ss:$8 sps:$4 sm:$0xff]  }
 0xdbb   :  { %v6981_v40 = vmax.f32 %v19246_v36, 0.0  ;;  %v6983_v11 = vmax.f32 %v19250_v4, 0.0  ;;  %v17219_v57 = vld [vmem:[#allocation11 + $0x1610] ss:$8 sps:$4 sm:$0xff]   ;;  %v17222_v61 = vld [vmem:[#allocation11 + $0x1620] ss:$8 sps:$4 sm:$0xff]  }
 0xdbc   :  { %v6982_v17 = vmax.f32 %v19254_v0, 0.0  ;;  %v6984_v12 = vmax.f32 %v19258_v3, 0.0  ;;  %v19265_v18 = vmax.f32 %v6980_v9, 0.0  ;;  %v19289_v6 = vmax.f32 %v6979_v19, 0.0  ;;  %v17227_v39 = vld [vmem:[#allocation11 + $0x1634] ss:$8 sps:$4 sm:$0xff]  }
 0xdbd   :  { %v19278_v20 = vpack.c.bf16 %v6983_v11, %v6981_v40  ;;  %v17225_v62 = vld [vmem:[#allocation11 + $0x1630] ss:$8 sps:$4 sm:$0xff]   ;;  %v17230_v2 = vld [vmem:[#allocation11 + $0x1644] ss:$8 sps:$4 sm:$0xff]   ;;  %v17228_v9 = vld [vmem:[#allocation11 + $0x1640] ss:$8 sps:$4 sm:$0xff]  }
 0xdbe   :  { %v19271_v13 = vpack.c.bf16 %v6984_v12, %v6982_v17  ;;  %v19282_v52 = vpack.c.bf16 %v19265_v18, %v19265_v18  ;;  %v19294_v50 = vpack.c.bf16 %v19289_v6, %v19289_v6  ;;  %v17233_v10 = vld [vmem:[#allocation11 + $0x1654] ss:$8 sps:$4 sm:$0xff]   ;;  %v17236_v19 = vld [vmem:[#allocation11 + $0x1664] ss:$8 sps:$4 sm:$0xff]   ;;  %v13365_v4 = vld [vmem:[#allocation15] sm:$0x7] }
 0xdc0   :  { %7220 = vmatprep.mubr.bf16.mxu1 %v19271_v13  ;;  %7464 = vmatprep.mubr.bf16.mxu0 %v19271_v13 }
 0xdc1   :  { %7221 = vmatmul.mubr.bf16.vlgmr.msra.gmra.mrb[80].mxu1 %v19278_v20  ;;  %7465 = vmatmul.mubr.bf16.vlgmr.msra.gmra.mrb[92].mxu0 %v19278_v20 }
 0xdc2   :  { %8194 = vmatpush1.bf16.msra.mxu0 %v17168_v14  ;;  %7230 = vmatprep.mubr.bf16.mxu1 %v19282_v52  ;;  %v17231_v14 = vld [vmem:[#allocation11 + $0x1650] ss:$8 sps:$4 sm:$0xff]  }
 0xdc3   :  { %7474 = vmatprep.mubr.bf16.mxu0 %v19282_v52  ;;  %8195 = vmatprep.subr.bf16.mxu0 %v17173_v21  ;;  %v17234_v21 = vld [vmem:[#allocation11 + $0x1660] ss:$8 sps:$4 sm:$0xff]  }
 0xdc6   :  { %8196 = vmatpush1.bf16.msra.mxu0 %v17171_v26  ;;  %v17239_v26 = vld [vmem:[#allocation11 + $0x1674] ss:$8 sps:$4 sm:$0xff]  }
 0xdc7   :  { %8197 = vmatprep.subr.bf16.mxu0 %v17176_v41  ;;  %v17237_v41 = vld [vmem:[#allocation11 + $0x1670] ss:$8 sps:$4 sm:$0xff]  }
 0xdc9   :  { %7231 = vmatmul.mubr.bf16.gmra.mrb[84].mxu1 %v19294_v50  ;;  %7475 = vmatmul.mubr.bf16.gmra.mrb[96].mxu0 %v19294_v50 }
 0xdca   :  { %8198 = vmatpush1.bf16.msra.mxu0 %v17174_v49  ;;  %8225 = vmatprep.mubr.bf16.mxu0 %v19271_v13  ;;  %v17242_v49 = vld [vmem:[#allocation11 + $0x1684] ss:$8 sps:$4 sm:$0xff]  }
 0xdcb   :  { %8199 = vmatprep.subr.bf16.mxu0 %v17179_v51  ;;  %7553 = vmatprep.mubr.f32.mxu1 %v18483_v1  ;;  %v17240_v51 = vld [vmem:[#allocation11 + $0x1680] ss:$8 sps:$4 sm:$0xff]  }
 0xdce   :  { %8200 = vmatpush1.bf16.msra.mxu0 %v17177_v53  ;;  %v17245_v53 = vld [vmem:[#allocation11 + $0x1694] ss:$8 sps:$4 sm:$0xff]  }
 0xdcf   :  { %8201 = vmatprep.subr.bf16.mxu0 %v17182_v55  ;;  %v17243_v55 = vld [vmem:[#allocation11 + $0x1690] ss:$8 sps:$4 sm:$0xff]  }
 0xdd2   :  { %8202 = vmatpush1.bf16.msra.mxu0 %v17180_v59  ;;  %v17248_v59 = vld [vmem:[#allocation11 + $0x16a4] ss:$8 sps:$4 sm:$0xff]  }
 0xdd3   :  { %8203 = vmatprep.subr.bf16.mxu0 %v17185_v7  ;;  %v17246_v7 = vld [vmem:[#allocation11 + $0x16a0] ss:$8 sps:$4 sm:$0xff]  }
 0xdd6   :  { %8204 = vmatpush1.bf16.msra.mxu0 %v17183_v5  ;;  %v17251_v5 = vld [vmem:[#allocation11 + $0x16b4] ss:$8 sps:$4 sm:$0xff]  }
 0xdd7   :  { %8205 = vmatprep.subr.bf16.mxu0 %v17188_v42  ;;  %v17249_v42 = vld [vmem:[#allocation11 + $0x16b0] ss:$8 sps:$4 sm:$0xff]  }
 0xdda   :  { %8206 = vmatpush1.bf16.msra.mxu0 %v17186_v22  ;;  %v17254_v22 = vld [vmem:[#allocation11 + $0x16c4] ss:$8 sps:$4 sm:$0xff]  }
 0xddb   :  { %8207 = vmatprep.subr.bf16.mxu0 %v17191_v45  ;;  %v17252_v45 = vld [vmem:[#allocation11 + $0x16c0] ss:$8 sps:$4 sm:$0xff]  }
 0xdde   :  { %8208 = vmatpush1.bf16.msra.mxu0 %v17189_v58  ;;  %v17257_v58 = vld [vmem:[#allocation11 + $0x16d4] ss:$8 sps:$4 sm:$0xff]  }
 0xddf   :  { %8209 = vmatprep.subr.bf16.mxu0 %v17194_v23  ;;  %v17255_v23 = vld [vmem:[#allocation11 + $0x16d0] ss:$8 sps:$4 sm:$0xff]  }
 0xde2   :  { %8210 = vmatpush1.bf16.msra.mxu0 %v17192_v43  ;;  %v17260_v43 = vld [vmem:[#allocation11 + $0x16e4] ss:$8 sps:$4 sm:$0xff]  }
 0xde3   :  { %8211 = vmatprep.subr.bf16.mxu0 %v17197_v8  ;;  %v17258_v8 = vld [vmem:[#allocation11 + $0x16e0] ss:$8 sps:$4 sm:$0xff]  }
 0xde6   :  { %8212 = vmatpush1.bf16.msra.mxu0 %v17195_v15  ;;  %v17263_v15 = vld [vmem:[#allocation11 + $0x16f4] ss:$8 sps:$4 sm:$0xff]  }
 0xde7   :  { %8213 = vmatprep.subr.bf16.mxu0 %v17200_v44  ;;  %v17261_v44 = vld [vmem:[#allocation11 + $0x16f0] ss:$8 sps:$4 sm:$0xff]  }
 0xdea   :  { %8214 = vmatpush1.bf16.msra.mxu0 %v17198_v16  ;;  %v17266_v16 = vld [vmem:[#allocation11 + $0x1804] ss:$8 sps:$4 sm:$0xff]  }
 0xdeb   :  { %8215 = vmatprep.subr.bf16.mxu0 %v17203_v24  ;;  %v17264_v24 = vld [vmem:[#allocation11 + $0x1800] ss:$8 sps:$4 sm:$0xff]  }
 0xdee   :  { %8216 = vmatpush1.bf16.msra.mxu0 %v17201_v60  ;;  %v17269_v60 = vld [vmem:[#allocation11 + $0x1814] ss:$8 sps:$4 sm:$0xff]  }
 0xdef   :  { %8217 = vmatprep.subr.bf16.mxu0 %v17206_v25  ;;  %v17267_v25 = vld [vmem:[#allocation11 + $0x1810] ss:$8 sps:$4 sm:$0xff]  }
 0xdf2   :  { %8218 = vmatpush1.bf16.msra.mxu0 %v17204_v63  ;;  %v17272_v63 = vld [vmem:[#allocation11 + $0x1824] ss:$8 sps:$4 sm:$0xff]  }
 0xdf3   :  { %8219 = vmatprep.subr.bf16.mxu0 %v17209_v28  ;;  %v17270_v28 = vld [vmem:[#allocation11 + $0x1820] ss:$8 sps:$4 sm:$0xff]  }
 0xdf6   :  { %8220 = vmatpush1.bf16.msra.mxu0 %v17207_v27  ;;  %v17275_v27 = vld [vmem:[#allocation11 + $0x1834] ss:$8 sps:$4 sm:$0xff]  }
 0xdf7   :  { %8221 = vmatprep.subr.bf16.mxu0 %v17212_v29  ;;  %v17273_v29 = vld [vmem:[#allocation11 + $0x1830] ss:$8 sps:$4 sm:$0xff]  }
 0xdfa   :  { %8222 = vmatpush1.bf16.msra.mxu0 %v17210_v33  ;;  %v17278_v33 = vld [vmem:[#allocation11 + $0x1844] ss:$8 sps:$4 sm:$0xff]  }
 0xdfb   :  { %8223 = vmatprep.subr.bf16.mxu0 %v17215_v46  ;;  %v17276_v46 = vld [vmem:[#allocation11 + $0x1840] ss:$8 sps:$4 sm:$0xff]  }
 0xdfe   :  { %8224 = vmatpush1.bf16.msra.mxu0 %v17213_v35  ;;  %v17281_v35 = vld [vmem:[#allocation11 + $0x1854] ss:$8 sps:$4 sm:$0xff]  }
 0xdff   :  { %8532 = vmatprep.subr.bf16.mxu0 %v17218_v37  ;;  %v17279_v37 = vld [vmem:[#allocation11 + $0x1850] ss:$8 sps:$4 sm:$0xff]  }
 0xe01   :  { %8226 = vmatmul.mubr.bf16.vlgmr.msra.gmra.mrb[100].mxu0 %v19278_v20 }
 0xe02   :  { %8235 = vmatprep.mubr.bf16.mxu0 %v19282_v52  ;;  %8533 = vmatpush1.bf16.msra.mxu0 %v17216_v34  ;;  %v17284_v34 = vld [vmem:[#allocation11 + $0x1864] ss:$8 sps:$4 sm:$0xff]  }
 0xe03   :  { %8534 = vmatprep.subr.bf16.mxu0 %v17221_v38  ;;  %v17282_v38 = vld [vmem:[#allocation11 + $0x1860] ss:$8 sps:$4 sm:$0xff]  }
 0xe06   :  { %8535 = vmatpush1.bf16.msra.mxu0 %v17219_v57  ;;  %v17287_v57 = vld [vmem:[#allocation11 + $0x1874] ss:$8 sps:$4 sm:$0xff]  }
 0xe07   :  { %8536 = vmatprep.subr.bf16.mxu0 %v17224_v47  ;;  %v17285_v47 = vld [vmem:[#allocation11 + $0x1870] ss:$8 sps:$4 sm:$0xff]  }
 0xe09   :  { %8236 = vmatmul.mubr.bf16.gmra.mrb[104].mxu0 %v19294_v50 }
 0xe0a   :  { %8537 = vmatpush1.bf16.msra.mxu0 %v17222_v61  ;;  %8564 = vmatprep.mubr.bf16.mxu0 %v19271_v13  ;;  %v17290_v61 = vld [vmem:[#allocation11 + $0x1884] ss:$8 sps:$4 sm:$0xff]  }
 0xe0b   :  { %8538 = vmatprep.subr.bf16.mxu0 %v17227_v39  ;;  %v17288_v39 = vld [vmem:[#allocation11 + $0x1880] ss:$8 sps:$4 sm:$0xff]  }
 0xe0e   :  { %8539 = vmatpush1.bf16.msra.mxu0 %v17225_v62  ;;  %v17293_v62 = vld [vmem:[#allocation11 + $0x1894] ss:$8 sps:$4 sm:$0xff]  }
 0xe0f   :  { %8540 = vmatprep.subr.bf16.mxu0 %v17230_v2  ;;  %v17291_v2 = vld [vmem:[#allocation11 + $0x1890] ss:$8 sps:$4 sm:$0xff]  }
 0xe12   :  { %8541 = vmatpush1.bf16.msra.mxu0 %v17228_v9  ;;  %v17296_v9 = vld [vmem:[#allocation11 + $0x18a4] ss:$8 sps:$4 sm:$0xff]  }
 0xe13   :  { %8542 = vmatprep.subr.bf16.mxu0 %v17233_v10  ;;  %v17294_v10 = vld [vmem:[#allocation11 + $0x18a0] ss:$8 sps:$4 sm:$0xff]  }
 0xe16   :  { %8543 = vmatpush1.bf16.msra.mxu0 %v17231_v14  ;;  %v17299_v14 = vld [vmem:[#allocation11 + $0x18b4] ss:$8 sps:$4 sm:$0xff]  }
 0xe17   :  { %8544 = vmatprep.subr.bf16.mxu0 %v17236_v19  ;;  %v17297_v19 = vld [vmem:[#allocation11 + $0x18b0] ss:$8 sps:$4 sm:$0xff]  }
 0xe1a   :  { %8545 = vmatpush1.bf16.msra.mxu0 %v17234_v21  ;;  %v17302_v21 = vld [vmem:[#allocation11 + $0x18c4] ss:$8 sps:$4 sm:$0xff]  }
 0xe1b   :  { %8546 = vmatprep.subr.bf16.mxu0 %v17239_v26  ;;  %v17300_v26 = vld [vmem:[#allocation11 + $0x18c0] ss:$8 sps:$4 sm:$0xff]  }
 0xe1e   :  { %8547 = vmatpush1.bf16.msra.mxu0 %v17237_v41  ;;  %v17305_v41 = vld [vmem:[#allocation11 + $0x18d4] ss:$8 sps:$4 sm:$0xff]  }
 0xe1f   :  { %8548 = vmatprep.subr.bf16.mxu0 %v17242_v49  ;;  %v17303_v49 = vld [vmem:[#allocation11 + $0x18d0] ss:$8 sps:$4 sm:$0xff]  }
 0xe22   :  { %8549 = vmatpush1.bf16.msra.mxu0 %v17240_v51  ;;  %v17308_v51 = vld [vmem:[#allocation11 + $0x18e4] ss:$8 sps:$4 sm:$0xff]  }
 0xe23   :  { %8550 = vmatprep.subr.bf16.mxu0 %v17245_v53  ;;  %v17306_v53 = vld [vmem:[#allocation11 + $0x18e0] ss:$8 sps:$4 sm:$0xff]  }
 0xe26   :  { %8551 = vmatpush1.bf16.msra.mxu0 %v17243_v55  ;;  %v17311_v55 = vld [vmem:[#allocation11 + $0x18f4] ss:$8 sps:$4 sm:$0xff]  }
 0xe27   :  { %8552 = vmatprep.subr.bf16.mxu0 %v17248_v59  ;;  %v17309_v59 = vld [vmem:[#allocation11 + $0x18f0] ss:$8 sps:$4 sm:$0xff]  }
 0xe2a   :  { %8553 = vmatpush1.bf16.msra.mxu0 %v17246_v7  ;;  %v17314_v7 = vld [vmem:[#allocation11 + $0x1904] ss:$8 sps:$4 sm:$0xff]  }
 0xe2b   :  { %8554 = vmatprep.subr.bf16.mxu0 %v17251_v5  ;;  %v17312_v5 = vld [vmem:[#allocation11 + $0x1900] ss:$8 sps:$4 sm:$0xff]  }
 0xe2e   :  { %8555 = vmatpush1.bf16.msra.mxu0 %v17249_v42  ;;  %v17317_v42 = vld [vmem:[#allocation11 + $0x1914] ss:$8 sps:$4 sm:$0xff]  }
 0xe2f   :  { %8556 = vmatprep.subr.bf16.mxu0 %v17254_v22  ;;  %v17315_v22 = vld [vmem:[#allocation11 + $0x1910] ss:$8 sps:$4 sm:$0xff]  }
 0xe32   :  { %8557 = vmatpush1.bf16.msra.mxu0 %v17252_v45  ;;  %v17320_v45 = vld [vmem:[#allocation11 + $0x1924] ss:$8 sps:$4 sm:$0xff]  }
 0xe33   :  { %8558 = vmatprep.subr.bf16.mxu0 %v17257_v58  ;;  %v17318_v58 = vld [vmem:[#allocation11 + $0x1920] ss:$8 sps:$4 sm:$0xff]  }
 0xe36   :  { %8559 = vmatpush1.bf16.msra.mxu0 %v17255_v23  ;;  %v17323_v23 = vld [vmem:[#allocation11 + $0x1934] ss:$8 sps:$4 sm:$0xff]  }
 0xe37   :  { %8560 = vmatprep.subr.bf16.mxu0 %v17260_v43  ;;  %v17321_v43 = vld [vmem:[#allocation11 + $0x1930] ss:$8 sps:$4 sm:$0xff]  }
 0xe3a   :  { %8561 = vmatpush1.bf16.msra.mxu0 %v17258_v8  ;;  %v17326_v8 = vld [vmem:[#allocation11 + $0x1944] ss:$8 sps:$4 sm:$0xff]  }
 0xe3b   :  { %8562 = vmatprep.subr.bf16.mxu0 %v17263_v15  ;;  %v17324_v15 = vld [vmem:[#allocation11 + $0x1940] ss:$8 sps:$4 sm:$0xff]  }
 0xe3e   :  { %8563 = vmatpush1.bf16.msra.mxu0 %v17261_v44  ;;  %v17329_v44 = vld [vmem:[#allocation11 + $0x1954] ss:$8 sps:$4 sm:$0xff]  }
 0xe3f   :  { %9210 = vmatprep.subr.bf16.mxu0 %v17266_v16  ;;  %v17327_v16 = vld [vmem:[#allocation11 + $0x1950] ss:$8 sps:$4 sm:$0xff]  }
 0xe41   :  { %8565 = vmatmul.mubr.bf16.vlgmr.msra.gmra.mrb[108].mxu0 %v19278_v20 }
 0xe42   :  { %8574 = vmatprep.mubr.bf16.mxu0 %v19282_v52  ;;  %9211 = vmatpush1.bf16.msra.mxu0 %v17264_v24  ;;  %v17332_v24 = vld [vmem:[#allocation11 + $0x1964] ss:$8 sps:$4 sm:$0xff]  }
 0xe43   :  { %9212 = vmatprep.subr.bf16.mxu0 %v17269_v60 }
 0xe46   :  { %9213 = vmatpush1.bf16.msra.mxu0 %v17267_v25 }
 0xe47   :  { %9214 = vmatprep.subr.bf16.mxu0 %v17272_v63 }
 0xe49   :  { %8575 = vmatmul.mubr.bf16.gmra.mrb[112].mxu0 %v19294_v50 }
 0xe4a   :  { %9215 = vmatpush1.bf16.msra.mxu0 %v17270_v28  ;;  %9242 = vmatprep.mubr.bf16.mxu0 %v19271_v13 }
 0xe4b   :  { %9216 = vmatprep.subr.bf16.mxu0 %v17275_v27 }
 0xe4e   :  { %9217 = vmatpush1.bf16.msra.mxu0 %v17273_v29 }
 0xe4f   :  { %9218 = vmatprep.subr.bf16.mxu0 %v17278_v33  ;;  %v17330_v33 = vld [vmem:[#allocation11 + $0x1960] ss:$8 sps:$4 sm:$0xff]  }
 0xe52   :  { %9219 = vmatpush1.bf16.msra.mxu0 %v17276_v46 }
 0xe53   :  { %9220 = vmatprep.subr.bf16.mxu0 %v17281_v35 }
 0xe56   :  { %9221 = vmatpush1.bf16.msra.mxu0 %v17279_v37 }
 0xe57   :  { %9222 = vmatprep.subr.bf16.mxu0 %v17284_v34 }
 0xe5a   :  { %9223 = vmatpush1.bf16.msra.mxu0 %v17282_v38  ;;  %v17335_v38 = vld [vmem:[#allocation11 + $0x1974] ss:$8 sps:$4 sm:$0xff]  }
 0xe5b   :  { %9224 = vmatprep.subr.bf16.mxu0 %v17287_v57 }
 0xe5e   :  { %9225 = vmatpush1.bf16.msra.mxu0 %v17285_v47 }
 0xe5f   :  { %9226 = vmatprep.subr.bf16.mxu0 %v17290_v61  ;;  %v17333_v61 = vld [vmem:[#allocation11 + $0x1970] ss:$8 sps:$4 sm:$0xff]  }
 0xe62   :  { %9227 = vmatpush1.bf16.msra.mxu0 %v17288_v39  ;;  %v17338_v39 = vld [vmem:[#allocation11 + $0x1984] ss:$8 sps:$4 sm:$0xff]  }
 0xe63   :  { %9228 = vmatprep.subr.bf16.mxu0 %v17293_v62 }
 0xe66   :  { %9229 = vmatpush1.bf16.msra.mxu0 %v17291_v2 }
 0xe67   :  { %9230 = vmatprep.subr.bf16.mxu0 %v17296_v9 }
 0xe6a   :  { %9231 = vmatpush1.bf16.msra.mxu0 %v17294_v10 }
 0xe6b   :  { %9232 = vmatprep.subr.bf16.mxu0 %v17299_v14 }
 0xe6e   :  { %9233 = vmatpush1.bf16.msra.mxu0 %v17297_v19 }
 0xe6f   :  { %9234 = vmatprep.subr.bf16.mxu0 %v17302_v21  ;;  %v17336_v21 = vld [vmem:[#allocation11 + $0x1980] ss:$8 sps:$4 sm:$0xff]  }
 0xe72   :  { %9235 = vmatpush1.bf16.msra.mxu0 %v17300_v26 }
 0xe73   :  { %9236 = vmatprep.subr.bf16.mxu0 %v17305_v41 }
 0xe76   :  { %9237 = vmatpush1.bf16.msra.mxu0 %v17303_v49  ;;  %v17341_v49 = vld [vmem:[#allocation11 + $0x1994] ss:$8 sps:$4 sm:$0xff]  }
 0xe77   :  { %9238 = vmatprep.subr.bf16.mxu0 %v17308_v51  ;;  %v17991_v51 = vld [vmem:[#allocation9 + $0x18] sm:$0xff] }
 0xe7a   :  { %9239 = vmatpush1.bf16.msra.mxu0 %v17306_v53  ;;  %v17339_v53 = vld [vmem:[#allocation11 + $0x1990] ss:$8 sps:$4 sm:$0xff]  }
 0xe7b   :  { %9240 = vmatprep.subr.bf16.mxu0 %v17311_v55  ;;  %v17347_v55 = vld [vmem:[#allocation11 + $0x1404] ss:$8 sps:$4 sm:$0xff]  }
 0xe7e   :  { %9241 = vmatpush1.bf16.msra.mxu0 %v17309_v59  ;;  %v17344_v59 = vld [vmem:[#allocation11 + $0x19a4] ss:$8 sps:$4 sm:$0xff]  }
 0xe7f   :  { %9549 = vmatprep.subr.bf16.mxu0 %v17314_v7  ;;  %v17992_v7 = vld [vmem:[#allocation9 + $0x20] sm:$0xff] }
 0xe81   :  { %9243 = vmatmul.mubr.bf16.vlgmr.msra.gmra.mrb[116].mxu0 %v19278_v20 }
 0xe82   :  { %9252 = vmatprep.mubr.bf16.mxu0 %v19282_v52  ;;  %9550 = vmatpush1.bf16.msra.mxu0 %v17312_v5  ;;  %v17342_v5 = vld [vmem:[#allocation11 + $0x19a0] ss:$8 sps:$4 sm:$0xff]  }
 0xe83   :  { %9551 = vmatprep.subr.bf16.mxu0 %v17317_v42  ;;  %v17350_v42 = vld [vmem:[#allocation11 + $0x19b4] ss:$8 sps:$4 sm:$0xff]  }
 0xe86   :  { %9552 = vmatpush1.bf16.msra.mxu0 %v17315_v22  ;;  %v17993_v22 = vld [vmem:[#allocation9 + $0x28] sm:$0x3] }
 0xe87   :  { %9553 = vmatprep.subr.bf16.mxu0 %v17320_v45  ;;  %v17345_v45 = vld [vmem:[#allocation11 + $0x1400] ss:$8 sps:$4 sm:$0xff]  }
 0xe89   :  { %9253 = vmatmul.mubr.bf16.gmra.mrb[120].mxu0 %v19294_v50 }
 0xe8a   :  { %9554 = vmatpush1.bf16.msra.mxu0 %v17318_v58  ;;  %9581 = vmatprep.mubr.bf16.mxu0 %v19271_v13  ;;  %v17348_v58 = vld [vmem:[#allocation11 + $0x19b0] ss:$8 sps:$4 sm:$0xff]  }
 0xe8b   :  { %9555 = vmatprep.subr.bf16.mxu0 %v17323_v23  ;;  %v17353_v23 = vld [vmem:[#allocation11 + $0x1414] ss:$8 sps:$4 sm:$0xff]  }
 0xe8e   :  { %9556 = vmatpush1.bf16.msra.mxu0 %v17321_v43  ;;  %v17356_v43 = vld [vmem:[#allocation11 + $0x19c4] ss:$8 sps:$4 sm:$0xff]  }
 0xe8f   :  { %9557 = vmatprep.subr.bf16.mxu0 %v17326_v8  ;;  %v17994_v8 = vld [vmem:[#allocation9] sm:$0xff] }
 0xe92   :  { %9558 = vmatpush1.bf16.msra.mxu0 %v17324_v15  ;;  %v17351_v15 = vld [vmem:[#allocation11 + $0x1410] ss:$8 sps:$4 sm:$0xff]  }
 0xe93   :  { %9559 = vmatprep.subr.bf16.mxu0 %v17329_v44  ;;  %v17354_v44 = vld [vmem:[#allocation11 + $0x19c0] ss:$8 sps:$4 sm:$0xff]  }
 0xe94   :  { %v7222_v60 = vpop.f32.mrb[80].mxu1  ;;  %v7466_v25 = vpop.f32.mrb[92].mxu0 }
 0xe95   :  { %v7224_v63 = vpop.f32.mrb[81].mxu1  ;;  %v7468_v28 = vpop.f32.mrb[93].mxu0 }
 0xe96   :  { %9560 = vmatpush1.bf16.msra.mxu0 %v17327_v16  ;;  %v7226_v27 = vpop.f32.mrb[82].mxu1  ;;  %v7470_v29 = vpop.f32.mrb[94].mxu0  ;;  %v17359_v16 = vld [vmem:[#allocation11 + $0x1424] ss:$8 sps:$4 sm:$0xff]  }
 0xe97   :  { %v15828_v46 = vpack.c.bf16 %v7226_v27, %v7222_v60  ;;  %v15824_v35 = vpack.c.bf16 %v7470_v29, %v7466_v25  ;;  %v7228_v37 = vpop.f32.mrb[83].mxu1  ;;  %v7472_v34 = vpop.f32.mrb[95].mxu0  ;;  %9561 = vmatprep.subr.bf16.mxu0 %v17332_v24  ;;  %v17362_v24 = vld [vmem:[#allocation11 + $0x19d4] ss:$8 sps:$4 sm:$0xff]   ;;  %v17357_v25 = vld [vmem:[#allocation11 + $0x1420] ss:$8 sps:$4 sm:$0xff]  }
 0xe98   :  { %v15826_v57 = vpack.c.bf16 %v7228_v37, %v7224_v63  ;;  %v15822_v47 = vpack.c.bf16 %v7472_v34, %v7468_v28  ;;  %v17995_v60 = vld [vmem:[#allocation9 + $0x8] sm:$0xff]  ;;  %v17368_v27 = vld [vmem:[#allocation11 + $0x19e4] ss:$8 sps:$4 sm:$0xff]   ;;  %v17996_v29 = vld [vmem:[#allocation9 + $0x10] sm:$0x3] }
 0xe99   :  { %v17360_v63 = vld [vmem:[#allocation11 + $0x19d0] ss:$8 sps:$4 sm:$0xff]   ;;  %v17365_v28 = vld [vmem:[#allocation11 + $0x1434] ss:$8 sps:$4 sm:$0xff]   ;;  %v17369_v34 = vld [vmem:[#allocation11 + $0x1440] ss:$8 sps:$4 sm:$0xff]  }
 0xe9a   :  { %9562 = vmatpush1.bf16.msra.mxu0 %v17330_v33  ;;  %15823 = vmatprep.subr.bf16.mxu1 %v15822_v47  ;;  %v17363_v33 = vld [vmem:[#allocation11 + $0x1430] ss:$8 sps:$4 sm:$0xff]   ;;  %v17374_v37 = vld [vmem:[#allocation11 + $0x19f4] ss:$8 sps:$4 sm:$0xff]  }
 0xe9b   :  { %15825 = vmatpush1.bf16.msra.mxu1 %v15824_v35  ;;  %9563 = vmatprep.subr.bf16.mxu0 %v17335_v38  ;;  %v17371_v35 = vld [vmem:[#allocation11 + $0x1444] ss:$8 sps:$4 sm:$0xff]   ;;  %v17372_v38 = vld [vmem:[#allocation11 + $0x19f0] ss:$8 sps:$4 sm:$0xff]  }
 0xe9c   :  { %v7232_v62 = vpop.f32.mrb[84].mxu1  ;;  %v7476_v2 = vpop.f32.mrb[96].mxu0  ;;  %v17375_v47 = vld [vmem:[#allocation11 + $0x1450] ss:$8 sps:$4 sm:$0xff]  }
 0xe9d   :  { %v7234_v9 = vpop.f32.mrb[85].mxu1  ;;  %v7478_v10 = vpop.f32.mrb[97].mxu0 }
 0xe9e   :  { %9564 = vmatpush1.bf16.msra.mxu0 %v17333_v61  ;;  %v7236_v14 = vpop.f32.mrb[86].mxu1  ;;  %v7480_v19 = vpop.f32.mrb[98].mxu0  ;;  %14966 = vmatprep.subr.msk.mxu1 %vm391_vm0, %v7478_v10  ;;  %v17380_v61 = vld [vmem:[#allocation11 + $0x1464] ss:$8 sps:$4 sm:$0xff]   ;;  %v17384_v10 = vld [vmem:[#allocation11 + $0x1480] ss:$8 sps:$4 sm:$0xff]  }
 0xe9f   :  { %v7237_v26 = vpop.f32.mrb[87].mxu1  ;;  %v7481_v41 = vpop.f32.mrb[99].mxu0  ;;  %14967 = vmatpush1.msk.msra.mxu1 %vm391_vm0, %v7476_v2  ;;  %9565 = vmatprep.subr.bf16.mxu0 %v17338_v39  ;;  %v17378_v39 = vld [vmem:[#allocation11 + $0x1460] ss:$8 sps:$4 sm:$0xff]   ;;  %v17381_v2 = vld [vmem:[#allocation11 + $0x1470] ss:$8 sps:$4 sm:$0xff]  }
 0xea0   :  { %14968 = vmatmul.mubr.msk.f32.vlgmr.msra.gmra.mrb[14].mxu1 %vm995_vm1, %v17991_v51  ;;  %15827 = vmatprep.subr.bf16.mxu1 %v15826_v57  ;;  %v17377_v57 = vld [vmem:[#allocation11 + $0x1454] ss:$8 sps:$4 sm:$0xff]   ;;  %v17387_v19 = vld [vmem:[#allocation11 + $0x1490] ss:$8 sps:$4 sm:$0xff]   ;;  %v17390_v26 = vld [vmem:[#allocation11 + $0x14a0] ss:$8 sps:$4 sm:$0xff]  }
 0xea1   :  { %15829 = vmatpush1.bf16.msra.mxu1 %v15828_v46  ;;  %7559 = vmatprep.mubr.f32.mxu1 %v18483_v1  ;;  %v17366_v46 = vld [vmem:[#allocation11 + $0x19e0] ss:$8 sps:$4 sm:$0xff]   ;;  %v17389_v14 = vld [vmem:[#allocation11 + $0x1494] ss:$8 sps:$4 sm:$0xff]  }
 0xea2   :  { %9566 = vmatpush1.bf16.msra.mxu0 %v17336_v21  ;;  %14971 = vmatprep.subr.msk.mxu1 %vm391_vm0, %v7234_v9  ;;  %v17386_v9 = vld [vmem:[#allocation11 + $0x1484] ss:$8 sps:$4 sm:$0xff]   ;;  %v17395_v41 = vld [vmem:[#allocation11 + $0x14b4] ss:$8 sps:$4 sm:$0xff]  }
 0xea3   :  { %9567 = vmatprep.subr.bf16.mxu0 %v17341_v49  ;;  %v17392_v21 = vld [vmem:[#allocation11 + $0x14a4] ss:$8 sps:$4 sm:$0xff]  }
 0xea4   :  { %14969 = vmatmul.mubr.msk.f32.gmra.mrb[88].mxu1 %vm995_vm1, %v17992_v7 }
 0xea5   :  { %14972 = vmatpush1.msk.msra.mxu1 %vm391_vm0, %v7232_v62  ;;  %7565 = vmatprep.mubr.f32.mxu1 %v18483_v1  ;;  %v17383_v62 = vld [vmem:[#allocation11 + $0x1474] ss:$8 sps:$4 sm:$0xff]  }
 0xea6   :  { %9568 = vmatpush1.bf16.msra.mxu0 %v17339_v53  ;;  %7854 = vmatprep.subr.bf16.mxu1 %v17347_v55  ;;  %v17393_v53 = vld [vmem:[#allocation11 + $0x14b0] ss:$8 sps:$4 sm:$0xff]  }
 0xea7   :  { %9569 = vmatprep.subr.bf16.mxu0 %v17344_v59  ;;  %v17398_v59 = vld [vmem:[#allocation11 + $0x14c4] ss:$8 sps:$4 sm:$0xff]  }
 0xea8   :  { %14970 = vmatmul.mubr.msk.f32.gmra.mrb[90].mxu1 %vm995_vm1, %v17993_v22  ;;  %v17396_v22 = vld [vmem:[#allocation11 + $0x14c0] ss:$8 sps:$4 sm:$0xff]  }
 0xea9   :  { %7642 = vmatprep.mubr.f32.mxu1 %v18483_v1 }
 0xeaa   :  { %9570 = vmatpush1.bf16.msra.mxu0 %v17342_v5 }
 0xeab   :  { %9571 = vmatprep.subr.bf16.mxu0 %v17350_v42 }
 0xeac   :  { %14973 = vmatmul.mubr.msk.f32.vlgmr.msra.gmra.mrb[14].mxu1 %vm995_vm1, %v17994_v8 }
 0xead   :  { %7855 = vmatpush1.bf16.msra.mxu1 %v17345_v45  ;;  %7648 = vmatprep.mubr.f32.mxu1 %v18483_v1  ;;  %v17401_v45 = vld [vmem:[#allocation11 + $0x14d4] ss:$8 sps:$4 sm:$0xff]  }
 0xeae   :  { %9572 = vmatpush1.bf16.msra.mxu0 %v17348_v58  ;;  %7856 = vmatprep.subr.bf16.mxu1 %v17353_v23 }
 0xeaf   :  { %9573 = vmatprep.subr.bf16.mxu0 %v17356_v43  ;;  %v17399_v43 = vld [vmem:[#allocation11 + $0x14d0] ss:$8 sps:$4 sm:$0xff]  }
 0xeb0   :  { %14974 = vmatmul.mubr.msk.f32.gmra.mrb[88].mxu1 %vm995_vm1, %v17995_v60  ;;  %v17405_v60 = vld [vmem:[#allocation11 + $0x14f0] ss:$8 sps:$4 sm:$0xff]  }
 0xeb1   :  { %7857 = vmatpush1.bf16.msra.mxu1 %v17351_v15  ;;  %7654 = vmatprep.mubr.f32.mxu1 %v18483_v1  ;;  %v17404_v15 = vld [vmem:[#allocation11 + $0x14e4] ss:$8 sps:$4 sm:$0xff]  }
 0xeb2   :  { %9574 = vmatpush1.bf16.msra.mxu0 %v17354_v44  ;;  %7858 = vmatprep.subr.bf16.mxu1 %v17359_v16  ;;  %v17402_v16 = vld [vmem:[#allocation11 + $0x14e0] ss:$8 sps:$4 sm:$0xff]  }
 0xeb3   :  { %9575 = vmatprep.subr.bf16.mxu0 %v17362_v24  ;;  %v17407_v24 = vld [vmem:[#allocation11 + $0x14f4] ss:$8 sps:$4 sm:$0xff]  }
 0xeb4   :  { %14975 = vmatmul.mubr.msk.f32.gmra.mrb[90].mxu1 %vm995_vm1, %v17996_v29 }
 0xeb5   :  { %7859 = vmatpush1.bf16.msra.mxu1 %v17357_v25  ;;  %7886 = vmatprep.mubr.bf16.mxu1 %v19271_v13 }
 0xeb6   :  { %9576 = vmatpush1.bf16.msra.mxu0 %v17360_v63  ;;  %7860 = vmatprep.subr.bf16.mxu1 %v17365_v28 }
 0xeb7   :  { %9577 = vmatprep.subr.bf16.mxu0 %v17368_v27 }
 0xeb9   :  { %7861 = vmatpush1.bf16.msra.mxu1 %v17363_v33 }
 0xeba   :  { %9578 = vmatpush1.bf16.msra.mxu0 %v17366_v46  ;;  %7862 = vmatprep.subr.bf16.mxu1 %v17371_v35 }
 0xebb   :  { %9579 = vmatprep.subr.bf16.mxu0 %v17374_v37 }
 0xebd   :  { %7863 = vmatpush1.bf16.msra.mxu1 %v17369_v34 }
 0xebe   :  { %9580 = vmatpush1.bf16.msra.mxu0 %v17372_v38  ;;  %7864 = vmatprep.subr.bf16.mxu1 %v17377_v57 }
 0xec1   :  { %7865 = vmatpush1.bf16.msra.mxu1 %v17375_v47  ;;  %9582 = vmatmul.mubr.bf16.vlgmr.msra.gmra.mrb[124].mxu0 %v19278_v20 }
 0xec2   :  { %9591 = vmatprep.mubr.bf16.mxu0 %v19282_v52  ;;  %7866 = vmatprep.subr.bf16.mxu1 %v17380_v61 }
 0xec5   :  { %7867 = vmatpush1.bf16.msra.mxu1 %v17378_v39 }
 0xec6   :  { %7868 = vmatprep.subr.bf16.mxu1 %v17383_v62 }
 0xec9   :  { %7869 = vmatpush1.bf16.msra.mxu1 %v17381_v2  ;;  %9592 = vmatmul.mubr.bf16.gmra.mrb[128].mxu0 %v19294_v50 }
 0xeca   :  { %7870 = vmatprep.subr.bf16.mxu1 %v17386_v9 }
 0xecd   :  { %7871 = vmatpush1.bf16.msra.mxu1 %v17384_v10 }
 0xece   :  { %7872 = vmatprep.subr.bf16.mxu1 %v17389_v14 }
 0xed1   :  { %7873 = vmatpush1.bf16.msra.mxu1 %v17387_v19 }
 0xed2   :  { %7874 = vmatprep.subr.bf16.mxu1 %v17392_v21 }
 0xed4   :  { %v19331_v49 = vpop.f32.mrb[100].mxu0 }
 0xed5   :  { %7875 = vmatpush1.bf16.msra.mxu1 %v17390_v26  ;;  %v19333_v51 = vpop.f32.mrb[101].mxu0 }
 0xed6   :  { %v19335_v55 = vpop.f32.mrb[102].mxu0  ;;  %7876 = vmatprep.subr.bf16.mxu1 %v17395_v41 }
 0xed7   :  { %v15836_v7 = vpack.c.bf16 %v19335_v55, %v19331_v49  ;;  %v19339_v5 = vpop.f32.mrb[103].mxu0  ;;  %v18000_v49 = vld [vmem:[#allocation9 + $0x48] sm:$0xff]  ;;  %v17410_v55 = vld [vmem:[#allocation11 + $0x1704] ss:$8 sps:$4 sm:$0xff]  }
 0xed8   :  { %v15834_v42 = vpack.c.bf16 %v19339_v5, %v19333_v51  ;;  %v17999_v51 = vld [vmem:[#allocation9 + $0x40] sm:$0x3]  ;;  %v18002_v5 = vld [vmem:[#allocation9 + $0x58] sm:$0x3] }
 0xed9   :  { %7877 = vmatpush1.bf16.msra.mxu1 %v17393_v53 }
 0xeda   :  { %7878 = vmatprep.subr.bf16.mxu1 %v17398_v59 }
 0xedc   :  { %v19343_v58 = vpop.f32.mrb[104].mxu0 }
 0xedd   :  { %7879 = vmatpush1.bf16.msra.mxu1 %v17396_v22  ;;  %v19345_v23 = vpop.f32.mrb[105].mxu0 }
 0xede   :  { %v8241_v8 = vpop.f32.mrb[106].mxu0  ;;  %7880 = vmatprep.subr.bf16.mxu1 %v17401_v45 }
 0xedf   :  { %v8242_v44 = vpop.f32.mrb[107].mxu0 }
 0xee1   :  { %7881 = vmatpush1.bf16.msra.mxu1 %v17399_v43 }
 0xee2   :  { %7882 = vmatprep.subr.bf16.mxu1 %v17404_v15 }
 0xee5   :  { %7883 = vmatpush1.bf16.msra.mxu1 %v17402_v16 }
 0xee6   :  { %7884 = vmatprep.subr.bf16.mxu1 %v17407_v24 }
 0xee9   :  { %7885 = vmatpush1.bf16.msra.mxu1 %v17405_v60 }
 0xeec   :  { %7887 = vmatmul.mubr.bf16.vlgmr.msra.gmra.mrb[92].mxu1 %v19278_v20 }
 0xeed   :  { %7896 = vmatprep.mubr.bf16.mxu1 %v19282_v52 }
 0xef4   :  { %7897 = vmatmul.mubr.bf16.gmra.mrb[96].mxu1 %v19294_v50 }
 0xef5   :  { %7975 = vmatprep.mubr.f32.mxu1 %v18483_v1 }
 0xf14   :  { %v8566_v25 = vpop.f32.mrb[108].mxu0 }
 0xf15   :  { %v8568_v63 = vpop.f32.mrb[109].mxu0 }
 0xf16   :  { %v8570_v28 = vpop.f32.mrb[110].mxu0 }
 0xf17   :  { %v15840_v27 = vpack.c.bf16 %v8570_v28, %v8566_v25  ;;  %v8572_v29 = vpop.f32.mrb[111].mxu0 }
 0xf18   :  { %v15838_v33 = vpack.c.bf16 %v8572_v29, %v8568_v63 }
 0xf1c   :  { %v8576_v46 = vpop.f32.mrb[112].mxu0 }
 0xf1d   :  { %v8578_v35 = vpop.f32.mrb[113].mxu0 }
 0xf1e   :  { %v8580_v37 = vpop.f32.mrb[114].mxu0 }
 0xf1f   :  { %v8581_v34 = vpop.f32.mrb[115].mxu0 }
 0xf20   :  { %v17997_v34 = vld [vmem:[#allocation9 + $0x30] sm:$0xff] }
 0xf54   :  { %v19351_v38 = vpop.f32.mrb[116].mxu0 }
 0xf55   :  { %v19353_v57 = vpop.f32.mrb[117].mxu0 }
 0xf56   :  { %v19355_v47 = vpop.f32.mrb[118].mxu0 }
 0xf57   :  { %v15848_v61 = vpack.c.bf16 %v19355_v47, %v19351_v38  ;;  %v19359_v39 = vpop.f32.mrb[119].mxu0  ;;  %v18009_v38 = vld [vmem:[#allocation9 + $0x90] sm:$0xff]  ;;  %v17458_v47 = vld [vmem:[#allocation11 + $0x1a04] ss:$8 sps:$4 sm:$0xff]  }
 0xf58   :  { %v15846_v62 = vpack.c.bf16 %v19359_v39, %v19353_v57  ;;  %v18008_v57 = vld [vmem:[#allocation9 + $0x88] sm:$0x3]  ;;  %v18011_v39 = vld [vmem:[#allocation9 + $0xa0] sm:$0x3] }
 0xf5c   :  { %v19363_v2 = vpop.f32.mrb[120].mxu0 }
 0xf5d   :  { %v19365_v9 = vpop.f32.mrb[121].mxu0 }
 0xf5e   :  { %v9258_v10 = vpop.f32.mrb[122].mxu0 }
 0xf5f   :  { %v9259_v14 = vpop.f32.mrb[123].mxu0  ;;  %v17998_v10 = vld [vmem:[#allocation9 + $0x38] sm:$0xff] }
 0xf60   :  { %v17419_v14 = vld [vmem:[#allocation11 + $0x1734] ss:$8 sps:$4 sm:$0xff]  }
 0xf94   :  { %v19367_v19 = vpop.f32.mrb[124].mxu0 }
 0xf95   :  { %v19369_v21 = vpop.f32.mrb[125].mxu0 }
 0xf96   :  { %v19371_v26 = vpop.f32.mrb[126].mxu0 }
 0xf97   :  { %v15852_v41 = vpack.c.bf16 %v19371_v26, %v19367_v19  ;;  %v19375_v53 = vpop.f32.mrb[127].mxu0  ;;  %v17459_v19 = vld [vmem:[#allocation11 + $0x1a10] ss:$8 sps:$4 sm:$0xff]  }
 0xf98   :  { %v15850_v59 = vpack.c.bf16 %v19375_v53, %v19369_v21  ;;  %v17464_v21 = vld [vmem:[#allocation11 + $0x1a24] ss:$8 sps:$4 sm:$0xff]   ;;  %v18013_v26 = vld [vmem:[#allocation9 + $0xb0] sm:$0xff] }
 0xf99   :  { %v17467_v53 = vld [vmem:[#allocation11 + $0x1a34] ss:$8 sps:$4 sm:$0xff]  }
 0xf9c   :  { %v19379_v22 = vpop.f32.mrb[128].mxu0 }
 0xf9d   :  { %v19381_v45 = vpop.f32.mrb[129].mxu0 }
 0xf9e   :  { %v9597_v43 = vpop.f32.mrb[130].mxu0 }
 0xf9f   :  { %v9598_v8 = vpop.f32.mrb[131].mxu0  ;;  %v18005_v43 = vld [vmem:[#allocation9 + $0x70] sm:$0x3] }
 0xfa0   :  { %v17417_v8 = vld [vmem:[#allocation11 + $0x1730] ss:$8 sps:$4 sm:$0xff]  }
 0xfbf   :  { %v7888_v15 = vpop.f32.mrb[92].mxu1 }
 0xfc0   :  { %v7890_v44 = vpop.f32.mrb[93].mxu1 }
 0xfc1   :  { %v7892_v16 = vpop.f32.mrb[94].mxu1 }
 0xfc2   :  { %v15832_v24 = vpack.c.bf16 %v7892_v16, %v7888_v15  ;;  %v7894_v60 = vpop.f32.mrb[95].mxu1  ;;  %v17422_v15 = vld [vmem:[#allocation11 + $0x1744] ss:$8 sps:$4 sm:$0xff]   ;;  %v17425_v16 = vld [vmem:[#allocation11 + $0x1754] ss:$8 sps:$4 sm:$0xff]  }
 0xfc3   :  { %v15830_v25 = vpack.c.bf16 %v7894_v60, %v7890_v44  ;;  %v17420_v44 = vld [vmem:[#allocation11 + $0x1740] ss:$8 sps:$4 sm:$0xff]   ;;  %v17428_v60 = vld [vmem:[#allocation11 + $0x1764] ss:$8 sps:$4 sm:$0xff]  }
 0xfc5   :  { %15831 = vmatprep.subr.bf16.mxu1 %v15830_v25  ;;  %v17426_v25 = vld [vmem:[#allocation11 + $0x1760] ss:$8 sps:$4 sm:$0xff]  }
 0xfc6   :  { %15833 = vmatpush1.bf16.msra.mxu1 %v15832_v24  ;;  %v17423_v24 = vld [vmem:[#allocation11 + $0x1750] ss:$8 sps:$4 sm:$0xff]  }
 0xfc7   :  { %v7898_v63 = vpop.f32.mrb[96].mxu1 }
 0xfc8   :  { %v7900_v28 = vpop.f32.mrb[97].mxu1 }
 0xfc9   :  { %v7902_v29 = vpop.f32.mrb[98].mxu1  ;;  %15008 = vmatprep.subr.msk.mxu1 %vm391_vm0, %v7900_v28  ;;  %v17429_v28 = vld [vmem:[#allocation11 + $0x1770] ss:$8 sps:$4 sm:$0xff]  }
 0xfca   :  { %v7903_v37 = vpop.f32.mrb[99].mxu1  ;;  %15009 = vmatpush1.msk.msra.mxu1 %vm391_vm0, %v7898_v63  ;;  %v17431_v63 = vld [vmem:[#allocation11 + $0x1774] ss:$8 sps:$4 sm:$0xff]   ;;  %v17434_v29 = vld [vmem:[#allocation11 + $0x1784] ss:$8 sps:$4 sm:$0xff]  }
 0xfcb   :  { %15010 = vmatmul.mubr.msk.f32.vlgmr.msra.gmra.mrb[14].mxu1 %vm995_vm1, %v17997_v34  ;;  %15835 = vmatprep.subr.bf16.mxu1 %v15834_v42  ;;  %v17408_v42 = vld [vmem:[#allocation11 + $0x1700] ss:$8 sps:$4 sm:$0xff]   ;;  %v17437_v34 = vld [vmem:[#allocation11 + $0x1794] ss:$8 sps:$4 sm:$0xff]  }
 0xfcc   :  { %15837 = vmatpush1.bf16.msra.mxu1 %v15836_v7  ;;  %7981 = vmatprep.mubr.f32.mxu1 %v18483_v1  ;;  %v18001_v7 = vld [vmem:[#allocation9 + $0x50] sm:$0xff]  ;;  %v17432_v37 = vld [vmem:[#allocation11 + $0x1780] ss:$8 sps:$4 sm:$0xff]  }
 0xfcd   :  { %15045 = vmatprep.subr.msk.mxu1 %vm391_vm0, %v19345_v23  ;;  %v18003_v23 = vld [vmem:[#allocation9 + $0x60] sm:$0xff] }
 0xfcf   :  { %15011 = vmatmul.mubr.msk.f32.gmra.mrb[88].mxu1 %vm995_vm1, %v17998_v10  ;;  %v17435_v10 = vld [vmem:[#allocation11 + $0x1790] ss:$8 sps:$4 sm:$0xff]  }
 0xfd0   :  { %15046 = vmatpush1.msk.msra.mxu1 %vm391_vm0, %v19343_v58  ;;  %7987 = vmatprep.mubr.f32.mxu1 %v18483_v1  ;;  %v17413_v58 = vld [vmem:[#allocation11 + $0x1714] ss:$8 sps:$4 sm:$0xff]  }
 0xfd1   :  { %15839 = vmatprep.subr.bf16.mxu1 %v15838_v33  ;;  %v17416_v33 = vld [vmem:[#allocation11 + $0x1724] ss:$8 sps:$4 sm:$0xff]  }
 0xfd3   :  { %15012 = vmatmul.mubr.msk.f32.gmra.mrb[90].mxu1 %vm995_vm1, %v17999_v51  ;;  %v17440_v51 = vld [vmem:[#allocation11 + $0x17a4] ss:$8 sps:$4 sm:$0xff]  }
 0xfd4   :  { %8314 = vmatprep.mubr.f32.mxu1 %v18483_v1 }
 0xfd7   :  { %15047 = vmatmul.mubr.msk.f32.vlgmr.msra.gmra.mrb[14].mxu1 %vm995_vm1, %v18000_v49  ;;  %v17438_v49 = vld [vmem:[#allocation11 + $0x17a0] ss:$8 sps:$4 sm:$0xff]  }
 0xfd8   :  { %15841 = vmatpush1.bf16.msra.mxu1 %v15840_v27  ;;  %8320 = vmatprep.mubr.f32.mxu1 %v18483_v1  ;;  %v17411_v27 = vld [vmem:[#allocation11 + $0x1710] ss:$8 sps:$4 sm:$0xff]  }
 0xfd9   :  { %15082 = vmatprep.subr.msk.mxu1 %vm391_vm0, %v8578_v35  ;;  %v17414_v35 = vld [vmem:[#allocation11 + $0x1720] ss:$8 sps:$4 sm:$0xff]  }
 0xfdb   :  { %15048 = vmatmul.mubr.msk.f32.gmra.mrb[88].mxu1 %vm995_vm1, %v18001_v7  ;;  %v17441_v7 = vld [vmem:[#allocation11 + $0x17b0] ss:$8 sps:$4 sm:$0xff]  }
 0xfdc   :  { %15083 = vmatpush1.msk.msra.mxu1 %vm391_vm0, %v8576_v46  ;;  %8326 = vmatprep.mubr.f32.mxu1 %v18483_v1  ;;  %v18004_v46 = vld [vmem:[#allocation9 + $0x68] sm:$0xff] }
 0xfdd   :  { %8871 = vmatprep.subr.bf16.mxu1 %v17410_v55  ;;  %v17443_v55 = vld [vmem:[#allocation11 + $0x17b4] ss:$8 sps:$4 sm:$0xff]  }
 0xfdf   :  { %15049 = vmatmul.mubr.msk.f32.gmra.mrb[90].mxu1 %vm995_vm1, %v18002_v5  ;;  %v17446_v5 = vld [vmem:[#allocation11 + $0x17c4] ss:$8 sps:$4 sm:$0xff]  }
 0xfe0   :  { %8653 = vmatprep.mubr.f32.mxu1 %v18483_v1 }
 0xfe3   :  { %15084 = vmatmul.mubr.msk.f32.vlgmr.msra.gmra.mrb[14].mxu1 %vm995_vm1, %v18003_v23  ;;  %v17447_v23 = vld [vmem:[#allocation11 + $0x17d0] ss:$8 sps:$4 sm:$0xff]  }
 0xfe4   :  { %8872 = vmatpush1.bf16.msra.mxu1 %v17408_v42  ;;  %8659 = vmatprep.mubr.f32.mxu1 %v18483_v1  ;;  %v17444_v42 = vld [vmem:[#allocation11 + $0x17c0] ss:$8 sps:$4 sm:$0xff]  }
 0xfe5   :  { %8873 = vmatprep.subr.bf16.mxu1 %v17413_v58  ;;  %v17449_v58 = vld [vmem:[#allocation11 + $0x17d4] ss:$8 sps:$4 sm:$0xff]  }
 0xfe7   :  { %15085 = vmatmul.mubr.msk.f32.gmra.mrb[88].mxu1 %vm995_vm1, %v18004_v46  ;;  %v17455_v46 = vld [vmem:[#allocation11 + $0x17f4] ss:$8 sps:$4 sm:$0xff]  }
 0xfe8   :  { %8874 = vmatpush1.bf16.msra.mxu1 %v17411_v27  ;;  %8665 = vmatprep.mubr.f32.mxu1 %v18483_v1  ;;  %v17452_v27 = vld [vmem:[#allocation11 + $0x17e4] ss:$8 sps:$4 sm:$0xff]  }
 0xfe9   :  { %8875 = vmatprep.subr.bf16.mxu1 %v17416_v33  ;;  %v17450_v33 = vld [vmem:[#allocation11 + $0x17e0] ss:$8 sps:$4 sm:$0xff]  }
 0xfeb   :  { %15086 = vmatmul.mubr.msk.f32.gmra.mrb[90].mxu1 %vm995_vm1, %v18005_v43 }
 0xfec   :  { %8876 = vmatpush1.bf16.msra.mxu1 %v17414_v35  ;;  %8903 = vmatprep.mubr.bf16.mxu1 %v19271_v13  ;;  %v17453_v35 = vld [vmem:[#allocation11 + $0x17f0] ss:$8 sps:$4 sm:$0xff]  }
 0xfed   :  { %8877 = vmatprep.subr.bf16.mxu1 %v17419_v14 }
 0xff0   :  { %8878 = vmatpush1.bf16.msra.mxu1 %v17417_v8 }
 0xff1   :  { %8879 = vmatprep.subr.bf16.mxu1 %v17422_v15 }
 0xff4   :  { %8880 = vmatpush1.bf16.msra.mxu1 %v17420_v44 }
 0xff5   :  { %8881 = vmatprep.subr.bf16.mxu1 %v17425_v16 }
 0xff8   :  { %8882 = vmatpush1.bf16.msra.mxu1 %v17423_v24 }
 0xff9   :  { %8883 = vmatprep.subr.bf16.mxu1 %v17428_v60 }
 0xffc   :  { %8884 = vmatpush1.bf16.msra.mxu1 %v17426_v25 }
 0xffd   :  { %8885 = vmatprep.subr.bf16.mxu1 %v17431_v63 }
0x1000   :  { %8886 = vmatpush1.bf16.msra.mxu1 %v17429_v28  ;;  %v18006_v28 = vld [vmem:[#allocation9 + $0x78] sm:$0xff] }
0x1001   :  { %8887 = vmatprep.subr.bf16.mxu1 %v17434_v29  ;;  %v18007_v29 = vld [vmem:[#allocation9 + $0x80] sm:$0xff] }
0x1004   :  { %8888 = vmatpush1.bf16.msra.mxu1 %v17432_v37  ;;  %v17468_v37 = vld [vmem:[#allocation11 + $0x1a40] ss:$8 sps:$4 sm:$0xff]  }
0x1005   :  { %8889 = vmatprep.subr.bf16.mxu1 %v17437_v34  ;;  %v17473_v34 = vld [vmem:[#allocation11 + $0x1a54] ss:$8 sps:$4 sm:$0xff]  }
0x1008   :  { %8890 = vmatpush1.bf16.msra.mxu1 %v17435_v10  ;;  %v17471_v10 = vld [vmem:[#allocation11 + $0x1a50] ss:$8 sps:$4 sm:$0xff]  }
0x1009   :  { %8891 = vmatprep.subr.bf16.mxu1 %v17440_v51  ;;  %v17476_v51 = vld [vmem:[#allocation11 + $0x1a64] ss:$8 sps:$4 sm:$0xff]  }
0x100c   :  { %8892 = vmatpush1.bf16.msra.mxu1 %v17438_v49  ;;  %v17474_v49 = vld [vmem:[#allocation11 + $0x1a60] ss:$8 sps:$4 sm:$0xff]  }
0x100d   :  { %8893 = vmatprep.subr.bf16.mxu1 %v17443_v55  ;;  %v17479_v55 = vld [vmem:[#allocation11 + $0x1a74] ss:$8 sps:$4 sm:$0xff]  }
0x1010   :  { %8894 = vmatpush1.bf16.msra.mxu1 %v17441_v7  ;;  %v17477_v7 = vld [vmem:[#allocation11 + $0x1a70] ss:$8 sps:$4 sm:$0xff]  }
0x1011   :  { %8895 = vmatprep.subr.bf16.mxu1 %v17446_v5  ;;  %v17482_v5 = vld [vmem:[#allocation11 + $0x1a84] ss:$8 sps:$4 sm:$0xff]  }
0x1014   :  { %8896 = vmatpush1.bf16.msra.mxu1 %v17444_v42  ;;  %v17485_v42 = vld [vmem:[#allocation11 + $0x1a94] ss:$8 sps:$4 sm:$0xff]  }
0x1015   :  { %8897 = vmatprep.subr.bf16.mxu1 %v17449_v58  ;;  %v17483_v58 = vld [vmem:[#allocation11 + $0x1a90] ss:$8 sps:$4 sm:$0xff]  }
0x1018   :  { %8898 = vmatpush1.bf16.msra.mxu1 %v17447_v23  ;;  %v17488_v23 = vld [vmem:[#allocation11 + $0x1aa4] ss:$8 sps:$4 sm:$0xff]  }
0x1019   :  { %8899 = vmatprep.subr.bf16.mxu1 %v17452_v27  ;;  %v17486_v27 = vld [vmem:[#allocation11 + $0x1aa0] ss:$8 sps:$4 sm:$0xff]  }
0x101c   :  { %8900 = vmatpush1.bf16.msra.mxu1 %v17450_v33  ;;  %v17491_v33 = vld [vmem:[#allocation11 + $0x1ab4] ss:$8 sps:$4 sm:$0xff]  }
0x101d   :  { %8901 = vmatprep.subr.bf16.mxu1 %v17455_v46  ;;  %v17489_v46 = vld [vmem:[#allocation11 + $0x1ab0] ss:$8 sps:$4 sm:$0xff]  }
0x1020   :  { %8902 = vmatpush1.bf16.msra.mxu1 %v17453_v35  ;;  %v17494_v35 = vld [vmem:[#allocation11 + $0x1ac4] ss:$8 sps:$4 sm:$0xff]  }
0x1023   :  { %8904 = vmatmul.mubr.bf16.vlgmr.msra.gmra.mrb[100].mxu1 %v19278_v20 }
0x1024   :  { %8913 = vmatprep.mubr.bf16.mxu1 %v19282_v52 }
0x102b   :  { %8914 = vmatmul.mubr.bf16.gmra.mrb[104].mxu1 %v19294_v50 }
0x102c   :  { %8992 = vmatprep.mubr.f32.mxu1 %v18483_v1 }
0x10f6   :  { %v8905_v14 = vpop.f32.mrb[100].mxu1 }
0x10f7   :  { %v8907_v43 = vpop.f32.mrb[101].mxu1 }
0x10f8   :  { %v8909_v8 = vpop.f32.mrb[102].mxu1 }
0x10f9   :  { %v15844_v15 = vpack.c.bf16 %v8909_v8, %v8905_v14  ;;  %v8911_v44 = vpop.f32.mrb[103].mxu1  ;;  %v17492_v14 = vld [vmem:[#allocation11 + $0x1ac0] ss:$8 sps:$4 sm:$0xff]   ;;  %v17495_v8 = vld [vmem:[#allocation11 + $0x1ad0] ss:$8 sps:$4 sm:$0xff]  }
0x10fa   :  { %v15842_v16 = vpack.c.bf16 %v8911_v44, %v8907_v43  ;;  %v17497_v43 = vld [vmem:[#allocation11 + $0x1ad4] ss:$8 sps:$4 sm:$0xff]   ;;  %v17498_v44 = vld [vmem:[#allocation11 + $0x1ae0] ss:$8 sps:$4 sm:$0xff]  }
0x10fc   :  { %15843 = vmatprep.subr.bf16.mxu1 %v15842_v16  ;;  %v17503_v16 = vld [vmem:[#allocation11 + $0x1af4] ss:$8 sps:$4 sm:$0xff]  }
0x10fd   :  { %15845 = vmatpush1.bf16.msra.mxu1 %v15844_v15  ;;  %v17500_v15 = vld [vmem:[#allocation11 + $0x1ae4] ss:$8 sps:$4 sm:$0xff]  }
0x10fe   :  { %v8915_v24 = vpop.f32.mrb[104].mxu1 }
0x10ff   :  { %v8917_v60 = vpop.f32.mrb[105].mxu1 }
0x1100   :  { %v8919_v25 = vpop.f32.mrb[106].mxu1  ;;  %15119 = vmatprep.subr.msk.mxu1 %vm391_vm0, %v8917_v60 }
0x1101   :  { %v8920_v63 = vpop.f32.mrb[107].mxu1  ;;  %15120 = vmatpush1.msk.msra.mxu1 %vm391_vm0, %v8915_v24  ;;  %v17501_v24 = vld [vmem:[#allocation11 + $0x1af0] ss:$8 sps:$4 sm:$0xff]  }
0x1102   :  { %15121 = vmatmul.mubr.msk.f32.vlgmr.msra.gmra.mrb[14].mxu1 %vm995_vm1, %v18006_v28  ;;  %15847 = vmatprep.subr.bf16.mxu1 %v15846_v62  ;;  %v17456_v62 = vld [vmem:[#allocation11 + $0x1a00] ss:$8 sps:$4 sm:$0xff]  }
0x1103   :  { %15849 = vmatpush1.bf16.msra.mxu1 %v15848_v61  ;;  %8998 = vmatprep.mubr.f32.mxu1 %v18483_v1  ;;  %v18010_v61 = vld [vmem:[#allocation9 + $0x98] sm:$0xff] }
0x1104   :  { %15156 = vmatprep.subr.msk.mxu1 %vm391_vm0, %v19365_v9  ;;  %v18012_v9 = vld [vmem:[#allocation9 + $0xa8] sm:$0xff] }
0x1106   :  { %15122 = vmatmul.mubr.msk.f32.gmra.mrb[88].mxu1 %vm995_vm1, %v18007_v29 }
0x1107   :  { %15157 = vmatpush1.msk.msra.mxu1 %vm391_vm0, %v19363_v2  ;;  %9004 = vmatprep.mubr.f32.mxu1 %v18483_v1  ;;  %v17461_v2 = vld [vmem:[#allocation11 + $0x1a14] ss:$8 sps:$4 sm:$0xff]  }
0x1108   :  { %15851 = vmatprep.subr.bf16.mxu1 %v15850_v59  ;;  %v18014_v59 = vld [vmem:[#allocation9 + $0xb8] sm:$0x3] }
0x110a   :  { %15123 = vmatmul.mubr.msk.f32.gmra.mrb[90].mxu1 %vm995_vm1, %v18008_v57 }
0x110b   :  { %9331 = vmatprep.mubr.f32.mxu1 %v18483_v1 }
0x110e   :  { %15158 = vmatmul.mubr.msk.f32.vlgmr.msra.gmra.mrb[14].mxu1 %vm995_vm1, %v18009_v38 }
0x110f   :  { %15853 = vmatpush1.bf16.msra.mxu1 %v15852_v41  ;;  %9337 = vmatprep.mubr.f32.mxu1 %v18483_v1  ;;  %v17462_v41 = vld [vmem:[#allocation11 + $0x1a20] ss:$8 sps:$4 sm:$0xff]  }
0x1110   :  { %15193 = vmatprep.subr.msk.mxu1 %vm391_vm0, %v19381_v45  ;;  %v17470_v45 = vld [vmem:[#allocation11 + $0x1a44] ss:$8 sps:$4 sm:$0xff]  }
0x1112   :  { %15159 = vmatmul.mubr.msk.f32.gmra.mrb[88].mxu1 %vm995_vm1, %v18010_v61 }
0x1113   :  { %15194 = vmatpush1.msk.msra.mxu1 %vm391_vm0, %v19379_v22  ;;  %9343 = vmatprep.mubr.f32.mxu1 %v18483_v1  ;;  %v17465_v22 = vld [vmem:[#allocation11 + $0x1a30] ss:$8 sps:$4 sm:$0xff]  }
0x1114   :  { %9888 = vmatprep.subr.bf16.mxu1 %v17458_v47 }
0x1116   :  { %15160 = vmatmul.mubr.msk.f32.gmra.mrb[90].mxu1 %vm995_vm1, %v18011_v39  ;;  %v18017_v39 = vld [vmem:[#allocation9 + $0xd0] sm:$0x3] }
0x1117   :  { %9670 = vmatprep.mubr.f32.mxu1 %v18483_v1 }
0x111a   :  { %15195 = vmatmul.mubr.msk.f32.vlgmr.msra.gmra.mrb[14].mxu1 %vm995_vm1, %v18012_v9  ;;  %v17509_v9 = vld [vmem:[#allocation11 + $0x1b04] ss:$8 sps:$4 sm:$0xff]  }
0x111b   :  { %9889 = vmatpush1.bf16.msra.mxu1 %v17456_v62  ;;  %9676 = vmatprep.mubr.f32.mxu1 %v18483_v1  ;;  %v17506_v62 = vld [vmem:[#allocation11 + $0x1c04] ss:$8 sps:$4 sm:$0xff]  }
0x111c   :  { %9890 = vmatprep.subr.bf16.mxu1 %v17461_v2  ;;  %v17504_v2 = vld [vmem:[#allocation11 + $0x1c00] ss:$8 sps:$4 sm:$0xff]   ;;  %10372 = vmatprep.subr.bf16.mxu0 %v17509_v9 }
0x111d   :  { %v17576_v9 = vld [vmem:[#allocation11 + $0x1cc0] ss:$8 sps:$4 sm:$0xff]  }
0x111e   :  { %15196 = vmatmul.mubr.msk.f32.gmra.mrb[88].mxu1 %vm995_vm1, %v18013_v26  ;;  %v17510_v26 = vld [vmem:[#allocation11 + $0x1c10] ss:$8 sps:$4 sm:$0xff]  }
0x111f   :  { %9891 = vmatpush1.bf16.msra.mxu1 %v17459_v19  ;;  %9682 = vmatprep.mubr.f32.mxu1 %v18483_v1  ;;  %v17507_v19 = vld [vmem:[#allocation11 + $0x1b00] ss:$8 sps:$4 sm:$0xff]  }
0x1120   :  { %9892 = vmatprep.subr.bf16.mxu1 %v17464_v21  ;;  %10373 = vmatpush1.bf16.msra.mxu0 %v17507_v19  ;;  %v17512_v21 = vld [vmem:[#allocation11 + $0x1c14] ss:$8 sps:$4 sm:$0xff]   ;;  %v17581_v19 = vld [vmem:[#allocation11 + $0x1bc4] ss:$8 sps:$4 sm:$0xff]  }
0x1122   :  { %15197 = vmatmul.mubr.msk.f32.gmra.mrb[90].mxu1 %vm995_vm1, %v18014_v59  ;;  %v17518_v59 = vld [vmem:[#allocation11 + $0x1c24] ss:$8 sps:$4 sm:$0xff]  }
0x1123   :  { %9893 = vmatpush1.bf16.msra.mxu1 %v17462_v41  ;;  %9920 = vmatprep.mubr.bf16.mxu1 %v19271_v13  ;;  %v17480_v13 = vld [vmem:[#allocation11 + $0x1a80] ss:$8 sps:$4 sm:$0xff]   ;;  %v17515_v41 = vld [vmem:[#allocation11 + $0x1b14] ss:$8 sps:$4 sm:$0xff]  }
0x1124   :  { %9894 = vmatprep.subr.bf16.mxu1 %v17467_v53  ;;  %v17513_v53 = vld [vmem:[#allocation11 + $0x1b10] ss:$8 sps:$4 sm:$0xff]   ;;  %10374 = vmatprep.subr.bf16.mxu0 %v17515_v41 }
0x1125   :  { %10375 = vmatpush1.bf16.msra.mxu0 %v17513_v53  ;;  %v17582_v41 = vld [vmem:[#allocation11 + $0x1cd0] ss:$8 sps:$4 sm:$0xff]   ;;  %v17587_v53 = vld [vmem:[#allocation11 + $0x1bd4] ss:$8 sps:$4 sm:$0xff]  }
0x1127   :  { %9895 = vmatpush1.bf16.msra.mxu1 %v17465_v22  ;;  %v17516_v22 = vld [vmem:[#allocation11 + $0x1c20] ss:$8 sps:$4 sm:$0xff]  }
0x1128   :  { %9896 = vmatprep.subr.bf16.mxu1 %v17470_v45  ;;  %v17521_v45 = vld [vmem:[#allocation11 + $0x1b24] ss:$8 sps:$4 sm:$0xff]  }
0x1129   :  { %10376 = vmatprep.subr.bf16.mxu0 %v17521_v45  ;;  %v17588_v45 = vld [vmem:[#allocation11 + $0x1ce0] ss:$8 sps:$4 sm:$0xff]  }
0x112b   :  { %9897 = vmatpush1.bf16.msra.mxu1 %v17468_v37  ;;  %v17519_v37 = vld [vmem:[#allocation11 + $0x1b20] ss:$8 sps:$4 sm:$0xff]  }
0x112c   :  { %9898 = vmatprep.subr.bf16.mxu1 %v17473_v34  ;;  %10377 = vmatpush1.bf16.msra.mxu0 %v17519_v37  ;;  %v17524_v34 = vld [vmem:[#allocation11 + $0x1c34] ss:$8 sps:$4 sm:$0xff]   ;;  %v17593_v37 = vld [vmem:[#allocation11 + $0x1be4] ss:$8 sps:$4 sm:$0xff]  }
0x112f   :  { %9899 = vmatpush1.bf16.msra.mxu1 %v17471_v10  ;;  %v17522_v10 = vld [vmem:[#allocation11 + $0x1c30] ss:$8 sps:$4 sm:$0xff]  }
0x1130   :  { %9900 = vmatprep.subr.bf16.mxu1 %v17476_v51  ;;  %v17527_v51 = vld [vmem:[#allocation11 + $0x1b34] ss:$8 sps:$4 sm:$0xff]  }
0x1131   :  { %10378 = vmatprep.subr.bf16.mxu0 %v17527_v51  ;;  %v17594_v51 = vld [vmem:[#allocation11 + $0x1cf0] ss:$8 sps:$4 sm:$0xff]  }
0x1133   :  { %9901 = vmatpush1.bf16.msra.mxu1 %v17474_v49  ;;  %v17525_v49 = vld [vmem:[#allocation11 + $0x1b30] ss:$8 sps:$4 sm:$0xff]  }
0x1134   :  { %9902 = vmatprep.subr.bf16.mxu1 %v17479_v55  ;;  %10379 = vmatpush1.bf16.msra.mxu0 %v17525_v49  ;;  %v17530_v55 = vld [vmem:[#allocation11 + $0x1c44] ss:$8 sps:$4 sm:$0xff]   ;;  %v17599_v49 = vld [vmem:[#allocation11 + $0x1bf4] ss:$8 sps:$4 sm:$0xff]  }
0x1137   :  { %9903 = vmatpush1.bf16.msra.mxu1 %v17477_v7  ;;  %v17528_v7 = vld [vmem:[#allocation11 + $0x1c40] ss:$8 sps:$4 sm:$0xff]  }
0x1138   :  { %9904 = vmatprep.subr.bf16.mxu1 %v17482_v5  ;;  %v17533_v5 = vld [vmem:[#allocation11 + $0x1b44] ss:$8 sps:$4 sm:$0xff]  }
0x1139   :  { %10380 = vmatprep.subr.bf16.mxu0 %v17533_v5  ;;  %v19470_v5 = vld [vmem:[#allocation12 + $0x10] sm:$0x77] }
0x113b   :  { %9905 = vmatpush1.bf16.msra.mxu1 %v17480_v13  ;;  %v17531_v13 = vld [vmem:[#allocation11 + $0x1b40] ss:$8 sps:$4 sm:$0xff]  }
0x113c   :  { %9906 = vmatprep.subr.bf16.mxu1 %v17485_v42  ;;  %10381 = vmatpush1.bf16.msra.mxu0 %v17531_v13  ;;  %v17536_v42 = vld [vmem:[#allocation11 + $0x1c54] ss:$8 sps:$4 sm:$0xff]   ;;  %v10038_v13 = vrot.slane %v19470_v5, %v18825_v54 }
0x113f   :  { %9907 = vmatpush1.bf16.msra.mxu1 %v17483_v58  ;;  %v17534_v58 = vld [vmem:[#allocation11 + $0x1c50] ss:$8 sps:$4 sm:$0xff]  }
0x1140   :  { %9908 = vmatprep.subr.bf16.mxu1 %v17488_v23  ;;  %v17539_v23 = vld [vmem:[#allocation11 + $0x1b54] ss:$8 sps:$4 sm:$0xff]  }
0x1141   :  { %10382 = vmatprep.subr.bf16.mxu0 %v17539_v23  ;;  %v10048_v23 = vrot.slane %v10038_v13, %v18825_v54 }
0x1143   :  { %9909 = vmatpush1.bf16.msra.mxu1 %v17486_v27  ;;  %v17537_v27 = vld [vmem:[#allocation11 + $0x1b50] ss:$8 sps:$4 sm:$0xff]  }
0x1144   :  { %9910 = vmatprep.subr.bf16.mxu1 %v17491_v33  ;;  %10383 = vmatpush1.bf16.msra.mxu0 %v17537_v27  ;;  %v17542_v33 = vld [vmem:[#allocation11 + $0x1c64] ss:$8 sps:$4 sm:$0xff]  }
0x1147   :  { %9911 = vmatpush1.bf16.msra.mxu1 %v17489_v46  ;;  %v17540_v46 = vld [vmem:[#allocation11 + $0x1c60] ss:$8 sps:$4 sm:$0xff]  }
0x1148   :  { %9912 = vmatprep.subr.bf16.mxu1 %v17494_v35  ;;  %v17545_v35 = vld [vmem:[#allocation11 + $0x1b64] ss:$8 sps:$4 sm:$0xff]  }
0x1149   :  { %10384 = vmatprep.subr.bf16.mxu0 %v17545_v35 }
0x114b   :  { %9913 = vmatpush1.bf16.msra.mxu1 %v17492_v14  ;;  %v17543_v14 = vld [vmem:[#allocation11 + $0x1b60] ss:$8 sps:$4 sm:$0xff]  }
0x114c   :  { %9914 = vmatprep.subr.bf16.mxu1 %v17497_v43  ;;  %10385 = vmatpush1.bf16.msra.mxu0 %v17543_v14  ;;  %v17548_v43 = vld [vmem:[#allocation11 + $0x1c74] ss:$8 sps:$4 sm:$0xff]  }
0x114f   :  { %9915 = vmatpush1.bf16.msra.mxu1 %v17495_v8  ;;  %v17546_v8 = vld [vmem:[#allocation11 + $0x1c70] ss:$8 sps:$4 sm:$0xff]  }
0x1150   :  { %9916 = vmatprep.subr.bf16.mxu1 %v17500_v15  ;;  %v17551_v15 = vld [vmem:[#allocation11 + $0x1b74] ss:$8 sps:$4 sm:$0xff]  }
0x1151   :  { %10386 = vmatprep.subr.bf16.mxu0 %v17551_v15 }
0x1153   :  { %9917 = vmatpush1.bf16.msra.mxu1 %v17498_v44  ;;  %v17549_v44 = vld [vmem:[#allocation11 + $0x1b70] ss:$8 sps:$4 sm:$0xff]  }
0x1154   :  { %9918 = vmatprep.subr.bf16.mxu1 %v17503_v16  ;;  %10387 = vmatpush1.bf16.msra.mxu0 %v17549_v44  ;;  %v17554_v16 = vld [vmem:[#allocation11 + $0x1c84] ss:$8 sps:$4 sm:$0xff]  }
0x1157   :  { %9919 = vmatpush1.bf16.msra.mxu1 %v17501_v24  ;;  %v17552_v24 = vld [vmem:[#allocation11 + $0x1c80] ss:$8 sps:$4 sm:$0xff]  }
0x115a   :  { %9921 = vmatmul.mubr.bf16.vlgmr.msra.gmra.mrb[108].mxu1 %v19278_v20 }
0x115b   :  { %9930 = vmatprep.mubr.bf16.mxu1 %v19282_v52  ;;  %v18015_v52 = vld [vmem:[#allocation9 + $0xc0] sm:$0xff] }
0x1162   :  { %9931 = vmatmul.mubr.bf16.gmra.mrb[112].mxu1 %v19294_v50  ;;  %v18016_v50 = vld [vmem:[#allocation9 + $0xc8] sm:$0xff] }
0x1163   :  { %10009 = vmatprep.mubr.f32.mxu1 %v18483_v1 }
0x122d   :  { %v9922_v60 = vpop.f32.mrb[108].mxu1 }
0x122e   :  { %v9924_v25 = vpop.f32.mrb[109].mxu1 }
0x122f   :  { %v9926_v63 = vpop.f32.mrb[110].mxu1 }
0x1230   :  { %v15856_v28 = vpack.c.bf16 %v9926_v63, %v9922_v60  ;;  %v9928_v29 = vpop.f32.mrb[111].mxu1  ;;  %v17557_v60 = vld [vmem:[#allocation11 + $0x1b84] ss:$8 sps:$4 sm:$0xff]   ;;  %v17560_v63 = vld [vmem:[#allocation11 + $0x1c94] ss:$8 sps:$4 sm:$0xff]  }
0x1231   :  { %v15854_v57 = vpack.c.bf16 %v9928_v29, %v9924_v25  ;;  %v17555_v25 = vld [vmem:[#allocation11 + $0x1b80] ss:$8 sps:$4 sm:$0xff]   ;;  %10388 = vmatprep.subr.bf16.mxu0 %v17557_v60  ;;  %v17563_v29 = vld [vmem:[#allocation11 + $0x1b94] ss:$8 sps:$4 sm:$0xff]  }
0x1232   :  { %10389 = vmatpush1.bf16.msra.mxu0 %v17555_v25 }
0x1233   :  { %15855 = vmatprep.subr.bf16.mxu1 %v15854_v57  ;;  %v17561_v57 = vld [vmem:[#allocation11 + $0x1b90] ss:$8 sps:$4 sm:$0xff]   ;;  %10390 = vmatprep.subr.bf16.mxu0 %v17563_v29 }
0x1234   :  { %15857 = vmatpush1.bf16.msra.mxu1 %v15856_v28  ;;  %v17558_v28 = vld [vmem:[#allocation11 + $0x1c90] ss:$8 sps:$4 sm:$0xff]  }
0x1235   :  { %v9932_v38 = vpop.f32.mrb[112].mxu1 }
0x1236   :  { %v9934_v47 = vpop.f32.mrb[113].mxu1  ;;  %10391 = vmatpush1.bf16.msra.mxu0 %v17561_v57 }
0x1237   :  { %v9936_v61 = vpop.f32.mrb[114].mxu1  ;;  %15230 = vmatprep.subr.msk.mxu1 %vm391_vm0, %v9934_v47  ;;  %v17564_v47 = vld [vmem:[#allocation11 + $0x1ca0] ss:$8 sps:$4 sm:$0xff]  }
0x1238   :  { %v9937_v20 = vpop.f32.mrb[115].mxu1  ;;  %15231 = vmatpush1.msk.msra.mxu1 %vm391_vm0, %v9932_v38  ;;  %v17566_v38 = vld [vmem:[#allocation11 + $0x1ca4] ss:$8 sps:$4 sm:$0xff]  }
0x1239   :  { %15232 = vmatmul.mubr.msk.f32.vlgmr.msra.gmra.mrb[14].mxu1 %vm995_vm1, %v18015_v52  ;;  %10616 = vmatprep.subr.bf16.mxu1 %v17506_v62  ;;  %v17569_v61 = vld [vmem:[#allocation11 + $0x1ba4] ss:$8 sps:$4 sm:$0xff]   ;;  %v17567_v20 = vld [vmem:[#allocation11 + $0x1ba0] ss:$8 sps:$4 sm:$0xff]   ;;  %v17572_v52 = vld [vmem:[#allocation11 + $0x1cb4] ss:$8 sps:$4 sm:$0xff]  }
0x123a   :  { %10015 = vmatprep.mubr.f32.mxu1 %v18483_v1  ;;  %10617 = vmatpush1.bf16.msra.mxu1 %v17504_v2  ;;  %v17573_v62 = vld [vmem:[#allocation11 + $0x1bb0] ss:$8 sps:$4 sm:$0xff]   ;;  %v17578_v2 = vld [vmem:[#allocation11 + $0x1cc4] ss:$8 sps:$4 sm:$0xff]  }
0x123b   :  { %10618 = vmatprep.subr.bf16.mxu1 %v17512_v21  ;;  %10392 = vmatprep.subr.bf16.mxu0 %v17569_v61  ;;  %v17579_v21 = vld [vmem:[#allocation11 + $0x1bc0] ss:$8 sps:$4 sm:$0xff]  }
0x123c   :  { %10393 = vmatpush1.bf16.msra.mxu0 %v17567_v20 }
0x123d   :  { %15233 = vmatmul.mubr.msk.f32.gmra.mrb[88].mxu1 %vm995_vm1, %v18016_v50  ;;  %v17570_v50 = vld [vmem:[#allocation11 + $0x1cb0] ss:$8 sps:$4 sm:$0xff]  }
0x123e   :  { %10021 = vmatprep.mubr.f32.mxu1 %v18483_v1  ;;  %10619 = vmatpush1.bf16.msra.mxu1 %v17510_v26  ;;  %v17584_v26 = vld [vmem:[#allocation11 + $0x1cd4] ss:$8 sps:$4 sm:$0xff]  }
0x123f   :  { %10620 = vmatprep.subr.bf16.mxu1 %v17518_v59  ;;  %v17585_v59 = vld [vmem:[#allocation11 + $0x1bd0] ss:$8 sps:$4 sm:$0xff]  }
0x1241   :  { %15234 = vmatmul.mubr.msk.f32.gmra.mrb[90].mxu1 %vm995_vm1, %v18017_v39  ;;  %v17575_v39 = vld [vmem:[#allocation11 + $0x1bb4] ss:$8 sps:$4 sm:$0xff]  }
0x1242   :  { %10621 = vmatpush1.bf16.msra.mxu1 %v17516_v22  ;;  %10394 = vmatprep.subr.bf16.mxu0 %v17575_v39  ;;  %v17590_v22 = vld [vmem:[#allocation11 + $0x1ce4] ss:$8 sps:$4 sm:$0xff]  }
0x1243   :  { %10622 = vmatprep.subr.bf16.mxu1 %v17524_v34  ;;  %10395 = vmatpush1.bf16.msra.mxu0 %v17573_v62  ;;  %v17591_v34 = vld [vmem:[#allocation11 + $0x1be0] ss:$8 sps:$4 sm:$0xff]  }
0x1244   :  { %10396 = vmatprep.subr.bf16.mxu0 %v17581_v19 }
0x1246   :  { %10623 = vmatpush1.bf16.msra.mxu1 %v17522_v10  ;;  %v17596_v10 = vld [vmem:[#allocation11 + $0x1cf4] ss:$8 sps:$4 sm:$0xff]  }
0x1247   :  { %10624 = vmatprep.subr.bf16.mxu1 %v17530_v55  ;;  %10397 = vmatpush1.bf16.msra.mxu0 %v17579_v21  ;;  %v17597_v55 = vld [vmem:[#allocation11 + $0x1bf0] ss:$8 sps:$4 sm:$0xff]  }
0x1248   :  { %10398 = vmatprep.subr.bf16.mxu0 %v17587_v53 }
0x124a   :  { %10625 = vmatpush1.bf16.msra.mxu1 %v17528_v7  ;;  %v17602_v7 = vld [vmem:[#allocation11 + $0x1e04] ss:$8 sps:$4 sm:$0xff]  }
0x124b   :  { %10626 = vmatprep.subr.bf16.mxu1 %v17536_v42  ;;  %10399 = vmatpush1.bf16.msra.mxu0 %v17585_v59  ;;  %v10042_v42 = vrot.slane %v19470_v5, %v18993_v48 }
0x124c   :  { %10400 = vmatprep.subr.bf16.mxu0 %v17593_v37 }
0x124e   :  { %10627 = vmatpush1.bf16.msra.mxu1 %v17534_v58 }
0x124f   :  { %10628 = vmatprep.subr.bf16.mxu1 %v17542_v33  ;;  %10401 = vmatpush1.bf16.msra.mxu0 %v17591_v34  ;;  %v10052_v33 = vrot.slane %v10042_v42, %v18825_v54 }
0x1250   :  { %10402 = vmatprep.subr.bf16.mxu0 %v17599_v49 }
0x1252   :  { %10629 = vmatpush1.bf16.msra.mxu1 %v17540_v46 }
0x1253   :  { %10630 = vmatprep.subr.bf16.mxu1 %v17548_v43  ;;  %10403 = vmatpush1.bf16.msra.mxu0 %v17597_v55 }
0x1256   :  { %10631 = vmatpush1.bf16.msra.mxu1 %v17546_v8 }
0x1257   :  { %10632 = vmatprep.subr.bf16.mxu1 %v17554_v16 }
0x125a   :  { %10633 = vmatpush1.bf16.msra.mxu1 %v17552_v24 }
0x125b   :  { %10634 = vmatprep.subr.bf16.mxu1 %v17560_v63 }
0x125e   :  { %10635 = vmatpush1.bf16.msra.mxu1 %v17558_v28 }
0x125f   :  { %10636 = vmatprep.subr.bf16.mxu1 %v17566_v38 }
0x1262   :  { %10637 = vmatpush1.bf16.msra.mxu1 %v17564_v47 }
0x1263   :  { %10638 = vmatprep.subr.bf16.mxu1 %v17572_v52 }
0x1266   :  { %10639 = vmatpush1.bf16.msra.mxu1 %v17570_v50 }
0x1267   :  { %10640 = vmatprep.subr.bf16.mxu1 %v17578_v2 }
0x126a   :  { %10641 = vmatpush1.bf16.msra.mxu1 %v17576_v9 }
0x126b   :  { %10642 = vmatprep.subr.bf16.mxu1 %v17584_v26 }
0x126e   :  { %10643 = vmatpush1.bf16.msra.mxu1 %v17582_v41 }
0x126f   :  { %10644 = vmatprep.subr.bf16.mxu1 %v17590_v22 }
0x1272   :  { %10645 = vmatpush1.bf16.msra.mxu1 %v17588_v45 }
0x1273   :  { %10646 = vmatprep.subr.bf16.mxu1 %v17596_v10 }
0x1276   :  { %10647 = vmatpush1.bf16.msra.mxu1 %v17594_v51 }
0x1277   :  { %11377 = vmatprep.subr.bf16.mxu1 %v17602_v7 }
0x130c   :  { %v10011_v58 = vpop.f32.mrb[14].mxu1 }
0x130d   :  { %v10013_v27 = vpop.f32.mrb[15].mxu1  ;;  %v10053_v35 = vadd.f32 %v10048_v23, %v10011_v58 }
0x130e   :  { %v10054_v8 = vadd.f32 %v10052_v33, %v10013_v27 }
0x1310   :  { %v10017_v46 = vpop.f32.mrb[88].mxu1 }
0x1311   :  { %v10055_v14 = vadd.f32 %v10048_v23, %v10017_v46  ;;  %v10019_v43 = vpop.f32.mrb[89].mxu1 }
0x1312   :  { %v10056_v15 = vadd.f32 %v10052_v33, %v10019_v43 }
0x1313   :  { %v10059_v44 = vadd.f32 %v10055_v14, %v10053_v35 }
0x1314   :  { %v10068_v16 = vadd.f32 %v10056_v15, %v10054_v8  ;;  %v10023_v24 = vpop.f32.mrb[90].mxu1 }
0x1315   :  { %v10057_v60 = vadd.f32 %v10048_v23, %v10023_v24  ;;  %v10025_v25 = vpop.f32.mrb[91].mxu1 }
0x1316   :  { %v10058_v63 = vadd.f32 %v10052_v33, %v10025_v25 }
0x1317   :  { %v10060_v28 = vsel %vm391_vm0, %v10057_v60, 0.0 }
0x1318   :  { %v10061_v29 = vadd.f32 %v10060_v28, %v10059_v44  ;;  %v10069_v57 = vsel %vm391_vm0, %v10058_v63, 0.0 }
0x1319   :  { %v10070_v38 = vadd.f32 %v10069_v57, %v10068_v16 }
0x131a   :  { %v10062_v47 = vrot.slane %v10061_v29, 4 }
0x131b   :  { %v10071_v61 = vrot.slane %v10070_v38, 4 }
0x131c   :  { %v10063_v20 = vadd.f32 %v10062_v47, %v10061_v29 }
0x131d   :  { %v10072_v52 = vadd.f32 %v10071_v61, %v10070_v38 }
0x131e   :  { %v10064_v50 = vrot.slane %v10063_v20, 2 }
0x131f   :  { %v10073_v39 = vrot.slane %v10072_v52, 2 }
0x1320   :  { %v10065_v62 = vadd.f32 %v10064_v50, %v10063_v20  ;;  %v10124_v20 = vrot.slane %v19470_v5, %v18828_v56  ;;  %v10148_v50 = vrot.slane %v19470_v5, %v19015_v31 }
0x1321   :  { %v10074_v2 = vadd.f32 %v10073_v39, %v10072_v52  ;;  %v10128_v52 = vrot.slane %v19470_v5, %v19012_v30  ;;  %v10152_v39 = vrot.slane %v19470_v5, %v19018_v32 }
0x1322   :  { %v10066_v9 = vrot.slane %v10065_v62, 1 }
0x1323   :  { %v10075_v19 = vrot.slane %v10074_v2, 1 }
0x1324   :  { %v10067_v21 = vadd.f32 %v10066_v9, %v10065_v62  ;;  %v10134_v62 = vrot.slane %v10124_v20, %v18828_v56  ;;  %v10138_v9 = vrot.slane %v10128_v52, %v18828_v56  ;;  %v17617_v20 = vld [vmem:[#allocation11 + $0x1e54] ss:$8 sps:$4 sm:$0xff]   ;;  %v17615_v52 = vld [vmem:[#allocation11 + $0x1e50] ss:$8 sps:$4 sm:$0xff]  }
0x1325   :  { %v10076_v26 = vadd.f32 %v10075_v19, %v10074_v2 }
0x1326   :  { %v10077_v41 = vmul.f32 0.055555556, %v10067_v21 }
0x1327   :  { %v10078_v53 = vmul.f32 0.055555556, %v10076_v26 }
0x1328   :  { %v10079_v59 = vsub.f32 %v10053_v35, %v10077_v41  ;;  %v10081_v22 = vsub.f32 %v10055_v14, %v10077_v41  ;;  %v10083_v45 = vsub.f32 %v10057_v60, %v10077_v41 }
0x1329   :  { %v10080_v37 = vsub.f32 %v10054_v8, %v10078_v53  ;;  %v10082_v34 = vsub.f32 %v10056_v15, %v10078_v53  ;;  %v10084_v10 = vsub.f32 %v10058_v63, %v10078_v53  ;;  %v10158_v53 = vrot.slane %v10148_v50, %v19015_v31  ;;  %v17620_v50 = vld [vmem:[#allocation11 + $0x1e64] ss:$8 sps:$4 sm:$0xff]  }
0x132a   :  { %v10085_v51 = vmul.f32 %v10079_v59, %v10079_v59  ;;  %v10087_v49 = vmul.f32 %v10081_v22, %v10081_v22  ;;  %v10089_v55 = vmul.f32 %v10083_v45, %v10083_v45 }
0x132b   :  { %v10086_v7 = vmul.f32 %v10080_v37, %v10080_v37  ;;  %v10088_v13 = vmul.f32 %v10082_v34, %v10082_v34  ;;  %v10090_v42 = vmul.f32 %v10084_v10, %v10084_v10 }
0x132c   :  { %v10091_v58 = vadd.f32 %v10087_v49, %v10085_v51  ;;  %v10092_v23 = vsel %vm391_vm0, %v10089_v55, 0.0 }
0x132d   :  { %v10100_v27 = vadd.f32 %v10088_v13, %v10086_v7  ;;  %v10101_v33 = vsel %vm391_vm0, %v10090_v42, 0.0  ;;  %v10162_v7 = vrot.slane %v10152_v39, %v19015_v31  ;;  %v17618_v39 = vld [vmem:[#allocation11 + $0x1e60] ss:$8 sps:$4 sm:$0xff]  }
0x132e   :  { %v10093_v46 = vadd.f32 %v10092_v23, %v10091_v58 }
0x132f   :  { %v10102_v43 = vadd.f32 %v10101_v33, %v10100_v27 }
0x1330   :  { %v10094_v35 = vrot.slane %v10093_v46, 4 }
0x1331   :  { %v10103_v14 = vrot.slane %v10102_v43, 4 }
0x1332   :  { %v10095_v44 = vadd.f32 %v10094_v35, %v10093_v46 }
0x1333   :  { %v10104_v8 = vadd.f32 %v10103_v14, %v10102_v43 }
0x1334   :  { %v10096_v15 = vrot.slane %v10095_v44, 2 }
0x1335   :  { %v10105_v16 = vrot.slane %v10104_v8, 2 }
0x1336   :  { %v10097_v24 = vadd.f32 %v10096_v15, %v10095_v44 }
0x1337   :  { %v10106_v60 = vadd.f32 %v10105_v16, %v10104_v8  ;;  %v17600_v8 = vld [vmem:[#allocation11 + $0x1e00] ss:$8 sps:$4 sm:$0xff]   ;;  %v17605_v16 = vld [vmem:[#allocation11 + $0x1e14] ss:$8 sps:$4 sm:$0xff]  }
0x1338   :  { %v10098_v25 = vrot.slane %v10097_v24, 1 }
0x1339   :  { %v10107_v63 = vrot.slane %v10106_v60, 1 }
0x133a   :  { %v10099_v28 = vadd.f32 %v10098_v25, %v10097_v24 }
0x133b   :  { %v10108_v29 = vadd.f32 %v10107_v63, %v10106_v60  ;;  %v17603_v60 = vld [vmem:[#allocation11 + $0x1e10] ss:$8 sps:$4 sm:$0xff]   ;;  %v17608_v63 = vld [vmem:[#allocation11 + $0x1e24] ss:$8 sps:$4 sm:$0xff]  }
0x133c   :  { %v10109_v57 = vmul.f32 0.055555556, %v10099_v28  ;;  %v17606_v28 = vld [vmem:[#allocation11 + $0x1e20] ss:$8 sps:$4 sm:$0xff]  }
0x133d   :  { %v10110_v38 = vmul.f32 0.055555556, %v10108_v29 }
0x133e   :  { %v10111_v47 = vadd.f32 1e-05, %v10109_v57  ;;  %v17611_v57 = vld [vmem:[#allocation11 + $0x1e34] ss:$8 sps:$4 sm:$0xff]  }
0x133f   :  { %v10112_v61 = vadd.f32 1e-05, %v10110_v38  ;;  %v17609_v38 = vld [vmem:[#allocation11 + $0x1e30] ss:$8 sps:$4 sm:$0xff]  }
0x1340   :  { %17948 = vrsqrt.f32 %v10111_v47  ;;  %v17614_v47 = vld [vmem:[#allocation11 + $0x1e44] ss:$8 sps:$4 sm:$0xff]  }
0x1341   :  { %17950 = vrsqrt.f32 %v10112_v61  ;;  %v17612_v61 = vld [vmem:[#allocation11 + $0x1e40] ss:$8 sps:$4 sm:$0xff]  }
0x134a   :  { %v17949_v2 = vpop.eup %17948 }
0x134b   :  { %v17951_v19 = vpop.eup %17950  ;;  %v10115_v21 = vmul.f32 %v17949_v2, %v10079_v59  ;;  %v10117_v26 = vmul.f32 %v17949_v2, %v10081_v22  ;;  %v10119_v41 = vmul.f32 %v17949_v2, %v10083_v45  ;;  %v17621_v2 = vld [vmem:[#allocation11 + $0x1e70] ss:$8 sps:$4 sm:$0xff]  }
0x134c   :  { %v10116_v51 = vmul.f32 %v17951_v19, %v10080_v37  ;;  %v10118_v49 = vmul.f32 %v17951_v19, %v10082_v34  ;;  %v10120_v55 = vmul.f32 %v17951_v19, %v10084_v10  ;;  %v17624_v19 = vld [vmem:[#allocation11 + $0x1e80] ss:$8 sps:$4 sm:$0xff]  }
0x134d   :  { %v10139_v13 = vmul.f32 %v10134_v62, %v10115_v21  ;;  %v10141_v42 = vmul.f32 %v10134_v62, %v10117_v26  ;;  %v10143_v59 = vmul.f32 %v10134_v62, %v10119_v41  ;;  %v17623_v62 = vld [vmem:[#allocation11 + $0x1e74] ss:$8 sps:$4 sm:$0xff]   ;;  %v17627_v26 = vld [vmem:[#allocation11 + $0x1e90] ss:$8 sps:$4 sm:$0xff]   ;;  %v17632_v41 = vld [vmem:[#allocation11 + $0x1ea4] ss:$8 sps:$4 sm:$0xff]  }
0x134e   :  { %v10140_v58 = vmul.f32 %v10138_v9, %v10116_v51  ;;  %v10142_v5 = vmul.f32 %v10138_v9, %v10118_v49  ;;  %v10144_v23 = vmul.f32 %v10138_v9, %v10120_v55  ;;  %v17626_v9 = vld [vmem:[#allocation11 + $0x1e84] ss:$8 sps:$4 sm:$0xff]   ;;  %v17629_v21 = vld [vmem:[#allocation11 + $0x1e94] ss:$8 sps:$4 sm:$0xff]   ;;  %v17633_v49 = vld [vmem:[#allocation11 + $0x1eb0] ss:$8 sps:$4 sm:$0xff]  }
0x134f   :  { %v10163_v27 = vadd.f32 %v10158_v53, %v10139_v13  ;;  %v10165_v33 = vadd.f32 %v10158_v53, %v10141_v42  ;;  %v10167_v15 = vadd.f32 %v10158_v53, %v10143_v59  ;;  %v17630_v53 = vld [vmem:[#allocation11 + $0x1ea0] ss:$8 sps:$4 sm:$0xff]   ;;  %v17635_v51 = vld [vmem:[#allocation11 + $0x1eb4] ss:$8 sps:$4 sm:$0xff]   ;;  %v17638_v55 = vld [vmem:[#allocation11 + $0x1ec4] ss:$8 sps:$4 sm:$0xff]  }
0x1350   :  { %v10164_v46 = vadd.f32 %v10162_v7, %v10140_v58  ;;  %v10166_v43 = vadd.f32 %v10162_v7, %v10142_v5  ;;  %v10168_v35 = vadd.f32 %v10162_v7, %v10144_v23  ;;  %v17636_v7 = vld [vmem:[#allocation11 + $0x1ec0] ss:$8 sps:$4 sm:$0xff]   ;;  %v17641_v13 = vld [vmem:[#allocation11 + $0x1ed4] ss:$8 sps:$4 sm:$0xff]   ;;  %v17639_v42 = vld [vmem:[#allocation11 + $0x1ed0] ss:$8 sps:$4 sm:$0xff]  }
0x1351   :  { %v10169_v22 = vmax.f32 %v10163_v27, 0.0  ;;  %v10171_v45 = vmax.f32 %v10165_v33, 0.0  ;;  %v10173_v25 = vmax.f32 %v10167_v15, 0.0  ;;  %v17644_v58 = vld [vmem:[#allocation11 + $0x1ee4] ss:$8 sps:$4 sm:$0xff]  }
0x1352   :  { %v10170_v14 = vmax.f32 %v10164_v46, 0.0  ;;  %v10172_v44 = vmax.f32 %v10166_v43, 0.0  ;;  %v10174_v37 = vmax.f32 %v10168_v35, 0.0  ;;  %v17642_v5 = vld [vmem:[#allocation11 + $0x1ee0] ss:$8 sps:$4 sm:$0xff]  }
0x1353   :  { %v19494_v34 = vpack.c.bf16 %v10171_v45, %v10169_v22  ;;  %v19506_v29 = vpack.c.bf16 %v10173_v25, %v10173_v25  ;;  %v17647_v23 = vld [vmem:[#allocation11 + $0x1ef4] ss:$8 sps:$4 sm:$0xff]   ;;  %v17645_v27 = vld [vmem:[#allocation11 + $0x1ef0] ss:$8 sps:$4 sm:$0xff]   ;;  %v17650_v33 = vld [vmem:[#allocation11 + $0x1f04] ss:$8 sps:$4 sm:$0xff]  }
0x1354   :  { %v19496_v10 = vpack.c.bf16 %v10172_v44, %v10170_v14  ;;  %v19498_v24 = vpack.c.bf16 %v10174_v37, %v10174_v37  ;;  %v17648_v46 = vld [vmem:[#allocation11 + $0x1f00] ss:$8 sps:$4 sm:$0xff]   ;;  %v17653_v43 = vld [vmem:[#allocation11 + $0x1f14] ss:$8 sps:$4 sm:$0xff]   ;;  %v17651_v35 = vld [vmem:[#allocation11 + $0x1f10] ss:$8 sps:$4 sm:$0xff]  }
0x1355   :  { %v17656_v59 = vld [vmem:[#allocation11 + $0x1f24] ss:$8 sps:$4 sm:$0xff]   ;;  %v17654_v22 = vld [vmem:[#allocation11 + $0x1f20] ss:$8 sps:$4 sm:$0xff]   ;;  %v17659_v45 = vld [vmem:[#allocation11 + $0x1f34] ss:$8 sps:$4 sm:$0xff]  }
0x1356   :  { %10404 = vmatprep.mubr.bf16.mxu0 %v19496_v10  ;;  %10648 = vmatprep.mubr.bf16.mxu1 %v19496_v10  ;;  %v17657_v14 = vld [vmem:[#allocation11 + $0x1f30] ss:$8 sps:$4 sm:$0xff]   ;;  %v17662_v44 = vld [vmem:[#allocation11 + $0x1f44] ss:$8 sps:$4 sm:$0xff]   ;;  %v17660_v37 = vld [vmem:[#allocation11 + $0x1f40] ss:$8 sps:$4 sm:$0xff]  }
0x1357   :  { %10405 = vmatmul.mubr.bf16.vlgmr.msra.gmra.mrb[132].mxu0 %v19494_v34  ;;  %10649 = vmatmul.mubr.bf16.vlgmr.msra.gmra.mrb[116].mxu1 %v19494_v34  ;;  %v17663_v15 = vld [vmem:[#allocation11 + $0x1f50] ss:$8 sps:$4 sm:$0xff]   ;;  %v17671_v25 = vld [vmem:[#allocation11 + $0x1f74] ss:$8 sps:$4 sm:$0xff]  }
0x1358   :  { %11378 = vmatpush1.bf16.msra.mxu1 %v17600_v8  ;;  %10414 = vmatprep.mubr.bf16.mxu0 %v19498_v24  ;;  %v17665_v8 = vld [vmem:[#allocation11 + $0x1f54] ss:$8 sps:$4 sm:$0xff]  }
0x1359   :  { %10658 = vmatprep.mubr.bf16.mxu1 %v19498_v24  ;;  %11379 = vmatprep.subr.bf16.mxu1 %v17605_v16  ;;  %v17668_v16 = vld [vmem:[#allocation11 + $0x1f64] ss:$8 sps:$4 sm:$0xff]  }
0x135c   :  { %11380 = vmatpush1.bf16.msra.mxu1 %v17603_v60  ;;  %v17666_v60 = vld [vmem:[#allocation11 + $0x1f60] ss:$8 sps:$4 sm:$0xff]  }
0x135d   :  { %11381 = vmatprep.subr.bf16.mxu1 %v17608_v63  ;;  %v17669_v63 = vld [vmem:[#allocation11 + $0x1f70] ss:$8 sps:$4 sm:$0xff]  }
0x135f   :  { %10415 = vmatmul.mubr.bf16.gmra.mrb[136].mxu0 %v19506_v29  ;;  %10659 = vmatmul.mubr.bf16.gmra.mrb[120].mxu1 %v19506_v29 }
0x1360   :  { %11382 = vmatpush1.bf16.msra.mxu1 %v17606_v28  ;;  %11409 = vmatprep.mubr.bf16.mxu1 %v19496_v10  ;;  %v17674_v28 = vld [vmem:[#allocation11 + $0x1f84] ss:$8 sps:$4 sm:$0xff]  }
0x1361   :  { %11383 = vmatprep.subr.bf16.mxu1 %v17611_v57  ;;  %10737 = vmatprep.mubr.f32.mxu0 %v18483_v1  ;;  %v17672_v57 = vld [vmem:[#allocation11 + $0x1f80] ss:$8 sps:$4 sm:$0xff]  }
0x1364   :  { %11384 = vmatpush1.bf16.msra.mxu1 %v17609_v38  ;;  %v17677_v38 = vld [vmem:[#allocation11 + $0x1f94] ss:$8 sps:$4 sm:$0xff]  }
0x1365   :  { %11385 = vmatprep.subr.bf16.mxu1 %v17614_v47  ;;  %v17675_v47 = vld [vmem:[#allocation11 + $0x1f90] ss:$8 sps:$4 sm:$0xff]  }
0x1368   :  { %11386 = vmatpush1.bf16.msra.mxu1 %v17612_v61  ;;  %v17680_v61 = vld [vmem:[#allocation11 + $0x1fa4] ss:$8 sps:$4 sm:$0xff]  }
0x1369   :  { %11387 = vmatprep.subr.bf16.mxu1 %v17617_v20  ;;  %v17678_v20 = vld [vmem:[#allocation11 + $0x1fa0] ss:$8 sps:$4 sm:$0xff]  }
0x136c   :  { %11388 = vmatpush1.bf16.msra.mxu1 %v17615_v52  ;;  %v17683_v52 = vld [vmem:[#allocation11 + $0x1fb4] ss:$8 sps:$4 sm:$0xff]  }
0x136d   :  { %11389 = vmatprep.subr.bf16.mxu1 %v17620_v50  ;;  %v17681_v50 = vld [vmem:[#allocation11 + $0x1fb0] ss:$8 sps:$4 sm:$0xff]  }
0x1370   :  { %11390 = vmatpush1.bf16.msra.mxu1 %v17618_v39  ;;  %v17686_v39 = vld [vmem:[#allocation11 + $0x1fc4] ss:$8 sps:$4 sm:$0xff]  }
0x1371   :  { %11391 = vmatprep.subr.bf16.mxu1 %v17623_v62  ;;  %v17684_v62 = vld [vmem:[#allocation11 + $0x1fc0] ss:$8 sps:$4 sm:$0xff]  }
0x1374   :  { %11392 = vmatpush1.bf16.msra.mxu1 %v17621_v2  ;;  %v17689_v2 = vld [vmem:[#allocation11 + $0x1fd4] ss:$8 sps:$4 sm:$0xff]  }
0x1375   :  { %11393 = vmatprep.subr.bf16.mxu1 %v17626_v9  ;;  %v17687_v9 = vld [vmem:[#allocation11 + $0x1fd0] ss:$8 sps:$4 sm:$0xff]  }
0x1378   :  { %11394 = vmatpush1.bf16.msra.mxu1 %v17624_v19  ;;  %v17692_v19 = vld [vmem:[#allocation11 + $0x1fe4] ss:$8 sps:$4 sm:$0xff]  }
0x1379   :  { %11395 = vmatprep.subr.bf16.mxu1 %v17629_v21  ;;  %v17690_v21 = vld [vmem:[#allocation11 + $0x1fe0] ss:$8 sps:$4 sm:$0xff]  }
0x137c   :  { %11396 = vmatpush1.bf16.msra.mxu1 %v17627_v26  ;;  %v17695_v26 = vld [vmem:[#allocation11 + $0x1ff4] ss:$8 sps:$4 sm:$0xff]  }
0x137d   :  { %11397 = vmatprep.subr.bf16.mxu1 %v17632_v41  ;;  %v17693_v41 = vld [vmem:[#allocation11 + $0x1ff0] ss:$8 sps:$4 sm:$0xff]  }
0x1380   :  { %11398 = vmatpush1.bf16.msra.mxu1 %v17630_v53  ;;  %v17698_v53 = vld [vmem:[#allocation11 + $0x2104] ss:$8 sps:$4 sm:$0xff]  }
0x1381   :  { %11399 = vmatprep.subr.bf16.mxu1 %v17635_v51  ;;  %v17696_v51 = vld [vmem:[#allocation11 + $0x2100] ss:$8 sps:$4 sm:$0xff]  }
0x1384   :  { %11400 = vmatpush1.bf16.msra.mxu1 %v17633_v49  ;;  %v17701_v49 = vld [vmem:[#allocation11 + $0x2114] ss:$8 sps:$4 sm:$0xff]  }
0x1385   :  { %11401 = vmatprep.subr.bf16.mxu1 %v17638_v55  ;;  %v17699_v55 = vld [vmem:[#allocation11 + $0x2110] ss:$8 sps:$4 sm:$0xff]  }
0x1388   :  { %11402 = vmatpush1.bf16.msra.mxu1 %v17636_v7  ;;  %v17704_v7 = vld [vmem:[#allocation11 + $0x2124] ss:$8 sps:$4 sm:$0xff]  }
0x1389   :  { %11403 = vmatprep.subr.bf16.mxu1 %v17641_v13  ;;  %v17702_v13 = vld [vmem:[#allocation11 + $0x2120] ss:$8 sps:$4 sm:$0xff]  }
0x138c   :  { %11404 = vmatpush1.bf16.msra.mxu1 %v17639_v42  ;;  %v17707_v42 = vld [vmem:[#allocation11 + $0x2134] ss:$8 sps:$4 sm:$0xff]  }
0x138d   :  { %11405 = vmatprep.subr.bf16.mxu1 %v17644_v58  ;;  %v17705_v58 = vld [vmem:[#allocation11 + $0x2130] ss:$8 sps:$4 sm:$0xff]  }
0x1390   :  { %11406 = vmatpush1.bf16.msra.mxu1 %v17642_v5  ;;  %v17710_v5 = vld [vmem:[#allocation11 + $0x2144] ss:$8 sps:$4 sm:$0xff]  }
0x1391   :  { %11407 = vmatprep.subr.bf16.mxu1 %v17647_v23  ;;  %v17708_v23 = vld [vmem:[#allocation11 + $0x2140] ss:$8 sps:$4 sm:$0xff]  }
0x1394   :  { %11408 = vmatpush1.bf16.msra.mxu1 %v17645_v27  ;;  %v17713_v27 = vld [vmem:[#allocation11 + $0x2154] ss:$8 sps:$4 sm:$0xff]  }
0x1395   :  { %11716 = vmatprep.subr.bf16.mxu1 %v17650_v33  ;;  %v17711_v33 = vld [vmem:[#allocation11 + $0x2150] ss:$8 sps:$4 sm:$0xff]  }
0x1397   :  { %11410 = vmatmul.mubr.bf16.vlgmr.msra.gmra.mrb[124].mxu1 %v19494_v34 }
0x1398   :  { %11419 = vmatprep.mubr.bf16.mxu1 %v19498_v24  ;;  %11717 = vmatpush1.bf16.msra.mxu1 %v17648_v46  ;;  %v17716_v46 = vld [vmem:[#allocation11 + $0x2164] ss:$8 sps:$4 sm:$0xff]  }
0x1399   :  { %11718 = vmatprep.subr.bf16.mxu1 %v17653_v43  ;;  %v17714_v43 = vld [vmem:[#allocation11 + $0x2160] ss:$8 sps:$4 sm:$0xff]  }
0x139c   :  { %11719 = vmatpush1.bf16.msra.mxu1 %v17651_v35  ;;  %v17719_v35 = vld [vmem:[#allocation11 + $0x2174] ss:$8 sps:$4 sm:$0xff]  }
0x139d   :  { %11720 = vmatprep.subr.bf16.mxu1 %v17656_v59  ;;  %v17717_v59 = vld [vmem:[#allocation11 + $0x2170] ss:$8 sps:$4 sm:$0xff]  }
0x139f   :  { %11420 = vmatmul.mubr.bf16.gmra.mrb[128].mxu1 %v19506_v29 }
0x13a0   :  { %11721 = vmatpush1.bf16.msra.mxu1 %v17654_v22  ;;  %11748 = vmatprep.mubr.bf16.mxu1 %v19496_v10  ;;  %v17722_v22 = vld [vmem:[#allocation11 + $0x2184] ss:$8 sps:$4 sm:$0xff]  }
0x13a1   :  { %11722 = vmatprep.subr.bf16.mxu1 %v17659_v45  ;;  %v17720_v45 = vld [vmem:[#allocation11 + $0x2180] ss:$8 sps:$4 sm:$0xff]  }
0x13a4   :  { %11723 = vmatpush1.bf16.msra.mxu1 %v17657_v14  ;;  %v17725_v14 = vld [vmem:[#allocation11 + $0x2194] ss:$8 sps:$4 sm:$0xff]  }
0x13a5   :  { %11724 = vmatprep.subr.bf16.mxu1 %v17662_v44  ;;  %v17723_v44 = vld [vmem:[#allocation11 + $0x2190] ss:$8 sps:$4 sm:$0xff]  }
0x13a8   :  { %11725 = vmatpush1.bf16.msra.mxu1 %v17660_v37  ;;  %v17728_v37 = vld [vmem:[#allocation11 + $0x21a4] ss:$8 sps:$4 sm:$0xff]  }
0x13a9   :  { %11726 = vmatprep.subr.bf16.mxu1 %v17665_v8  ;;  %v17726_v8 = vld [vmem:[#allocation11 + $0x21a0] ss:$8 sps:$4 sm:$0xff]  }
0x13ac   :  { %11727 = vmatpush1.bf16.msra.mxu1 %v17663_v15  ;;  %v17731_v15 = vld [vmem:[#allocation11 + $0x21b4] ss:$8 sps:$4 sm:$0xff]  }
0x13ad   :  { %11728 = vmatprep.subr.bf16.mxu1 %v17668_v16  ;;  %v17729_v16 = vld [vmem:[#allocation11 + $0x21b0] ss:$8 sps:$4 sm:$0xff]  }
0x13b0   :  { %11729 = vmatpush1.bf16.msra.mxu1 %v17666_v60  ;;  %v17734_v60 = vld [vmem:[#allocation11 + $0x21c4] ss:$8 sps:$4 sm:$0xff]  }
0x13b1   :  { %11730 = vmatprep.subr.bf16.mxu1 %v17671_v25  ;;  %v17732_v25 = vld [vmem:[#allocation11 + $0x21c0] ss:$8 sps:$4 sm:$0xff]  }
0x13b4   :  { %11731 = vmatpush1.bf16.msra.mxu1 %v17669_v63  ;;  %v17737_v63 = vld [vmem:[#allocation11 + $0x21d4] ss:$8 sps:$4 sm:$0xff]  }
0x13b5   :  { %11732 = vmatprep.subr.bf16.mxu1 %v17674_v28  ;;  %v17735_v28 = vld [vmem:[#allocation11 + $0x21d0] ss:$8 sps:$4 sm:$0xff]  }
0x13b8   :  { %11733 = vmatpush1.bf16.msra.mxu1 %v17672_v57  ;;  %v17740_v57 = vld [vmem:[#allocation11 + $0x21e4] ss:$8 sps:$4 sm:$0xff]  }
0x13b9   :  { %11734 = vmatprep.subr.bf16.mxu1 %v17677_v38  ;;  %v17738_v38 = vld [vmem:[#allocation11 + $0x21e0] ss:$8 sps:$4 sm:$0xff]  }
0x13bc   :  { %11735 = vmatpush1.bf16.msra.mxu1 %v17675_v47  ;;  %v17743_v47 = vld [vmem:[#allocation11 + $0x21f4] ss:$8 sps:$4 sm:$0xff]  }
0x13bd   :  { %11736 = vmatprep.subr.bf16.mxu1 %v17680_v61  ;;  %v17741_v61 = vld [vmem:[#allocation11 + $0x21f0] ss:$8 sps:$4 sm:$0xff]  }
0x13c0   :  { %11737 = vmatpush1.bf16.msra.mxu1 %v17678_v20  ;;  %v17746_v20 = vld [vmem:[#allocation11 + $0x2204] ss:$8 sps:$4 sm:$0xff]  }
0x13c1   :  { %11738 = vmatprep.subr.bf16.mxu1 %v17683_v52  ;;  %v17744_v52 = vld [vmem:[#allocation11 + $0x2200] ss:$8 sps:$4 sm:$0xff]  }
0x13c4   :  { %11739 = vmatpush1.bf16.msra.mxu1 %v17681_v50  ;;  %v17749_v50 = vld [vmem:[#allocation11 + $0x2214] ss:$8 sps:$4 sm:$0xff]  }
0x13c5   :  { %11740 = vmatprep.subr.bf16.mxu1 %v17686_v39  ;;  %v17747_v39 = vld [vmem:[#allocation11 + $0x2210] ss:$8 sps:$4 sm:$0xff]  }
0x13c8   :  { %11741 = vmatpush1.bf16.msra.mxu1 %v17684_v62  ;;  %v17752_v62 = vld [vmem:[#allocation11 + $0x2224] ss:$8 sps:$4 sm:$0xff]  }
0x13c9   :  { %11742 = vmatprep.subr.bf16.mxu1 %v17689_v2  ;;  %v17750_v2 = vld [vmem:[#allocation11 + $0x2220] ss:$8 sps:$4 sm:$0xff]  }
0x13cc   :  { %11743 = vmatpush1.bf16.msra.mxu1 %v17687_v9  ;;  %v17755_v9 = vld [vmem:[#allocation11 + $0x2234] ss:$8 sps:$4 sm:$0xff]  }
0x13cd   :  { %11744 = vmatprep.subr.bf16.mxu1 %v17692_v19  ;;  %v17753_v19 = vld [vmem:[#allocation11 + $0x2230] ss:$8 sps:$4 sm:$0xff]  }
0x13d0   :  { %11745 = vmatpush1.bf16.msra.mxu1 %v17690_v21  ;;  %v17758_v21 = vld [vmem:[#allocation11 + $0x2244] ss:$8 sps:$4 sm:$0xff]  }
0x13d1   :  { %11746 = vmatprep.subr.bf16.mxu1 %v17695_v26  ;;  %v17756_v26 = vld [vmem:[#allocation11 + $0x2240] ss:$8 sps:$4 sm:$0xff]  }
0x13d4   :  { %11747 = vmatpush1.bf16.msra.mxu1 %v17693_v41  ;;  %v17761_v41 = vld [vmem:[#allocation11 + $0x2254] ss:$8 sps:$4 sm:$0xff]  }
0x13d5   :  { %12394 = vmatprep.subr.bf16.mxu1 %v17698_v53  ;;  %v17759_v53 = vld [vmem:[#allocation11 + $0x2250] ss:$8 sps:$4 sm:$0xff]  }
0x13d7   :  { %11749 = vmatmul.mubr.bf16.vlgmr.msra.gmra.mrb[132].mxu1 %v19494_v34 }
0x13d8   :  { %11758 = vmatprep.mubr.bf16.mxu1 %v19498_v24  ;;  %12395 = vmatpush1.bf16.msra.mxu1 %v17696_v51  ;;  %v17764_v51 = vld [vmem:[#allocation11 + $0x2264] ss:$8 sps:$4 sm:$0xff]  }
0x13d9   :  { %12396 = vmatprep.subr.bf16.mxu1 %v17701_v49 }
0x13dc   :  { %12397 = vmatpush1.bf16.msra.mxu1 %v17699_v55 }
0x13dd   :  { %12398 = vmatprep.subr.bf16.mxu1 %v17704_v7 }
0x13df   :  { %11759 = vmatmul.mubr.bf16.gmra.mrb[136].mxu1 %v19506_v29 }
0x13e0   :  { %12399 = vmatpush1.bf16.msra.mxu1 %v17702_v13  ;;  %12426 = vmatprep.mubr.bf16.mxu1 %v19496_v10 }
0x13e1   :  { %12400 = vmatprep.subr.bf16.mxu1 %v17707_v42 }
0x13e4   :  { %12401 = vmatpush1.bf16.msra.mxu1 %v17705_v58 }
0x13e5   :  { %12402 = vmatprep.subr.bf16.mxu1 %v17710_v5  ;;  %v17762_v5 = vld [vmem:[#allocation11 + $0x2260] ss:$8 sps:$4 sm:$0xff]  }
0x13e8   :  { %12403 = vmatpush1.bf16.msra.mxu1 %v17708_v23 }
0x13e9   :  { %12404 = vmatprep.subr.bf16.mxu1 %v17713_v27 }
0x13ec   :  { %12405 = vmatpush1.bf16.msra.mxu1 %v17711_v33 }
0x13ed   :  { %12406 = vmatprep.subr.bf16.mxu1 %v17716_v46 }
0x13f0   :  { %12407 = vmatpush1.bf16.msra.mxu1 %v17714_v43  ;;  %v17767_v43 = vld [vmem:[#allocation11 + $0x2274] ss:$8 sps:$4 sm:$0xff]  }
0x13f1   :  { %12408 = vmatprep.subr.bf16.mxu1 %v17719_v35 }
0x13f4   :  { %12409 = vmatpush1.bf16.msra.mxu1 %v17717_v59 }
0x13f5   :  { %12410 = vmatprep.subr.bf16.mxu1 %v17722_v22  ;;  %v17765_v22 = vld [vmem:[#allocation11 + $0x2270] ss:$8 sps:$4 sm:$0xff]  }
0x13f8   :  { %12411 = vmatpush1.bf16.msra.mxu1 %v17720_v45  ;;  %v17770_v45 = vld [vmem:[#allocation11 + $0x2284] ss:$8 sps:$4 sm:$0xff]  }
0x13f9   :  { %12412 = vmatprep.subr.bf16.mxu1 %v17725_v14 }
0x13fc   :  { %12413 = vmatpush1.bf16.msra.mxu1 %v17723_v44 }
0x13fd   :  { %12414 = vmatprep.subr.bf16.mxu1 %v17728_v37 }
0x1400   :  { %12415 = vmatpush1.bf16.msra.mxu1 %v17726_v8 }
0x1401   :  { %12416 = vmatprep.subr.bf16.mxu1 %v17731_v15 }
0x1404   :  { %12417 = vmatpush1.bf16.msra.mxu1 %v17729_v16 }
0x1405   :  { %12418 = vmatprep.subr.bf16.mxu1 %v17734_v60  ;;  %v17768_v60 = vld [vmem:[#allocation11 + $0x2280] ss:$8 sps:$4 sm:$0xff]  }
0x1408   :  { %12419 = vmatpush1.bf16.msra.mxu1 %v17732_v25 }
0x1409   :  { %12420 = vmatprep.subr.bf16.mxu1 %v17737_v63 }
0x140c   :  { %12421 = vmatpush1.bf16.msra.mxu1 %v17735_v28  ;;  %v17773_v28 = vld [vmem:[#allocation11 + $0x2294] ss:$8 sps:$4 sm:$0xff]  }
0x140d   :  { %12422 = vmatprep.subr.bf16.mxu1 %v17740_v57  ;;  %v18018_v57 = vld [vmem:[#allocation9 + $0x18] sm:$0xff] }
0x1410   :  { %12423 = vmatpush1.bf16.msra.mxu1 %v17738_v38  ;;  %v17771_v38 = vld [vmem:[#allocation11 + $0x2290] ss:$8 sps:$4 sm:$0xff]  }
0x1411   :  { %12424 = vmatprep.subr.bf16.mxu1 %v17743_v47  ;;  %v17779_v47 = vld [vmem:[#allocation11 + $0x1d04] ss:$8 sps:$4 sm:$0xff]  }
0x1414   :  { %12425 = vmatpush1.bf16.msra.mxu1 %v17741_v61  ;;  %v17776_v61 = vld [vmem:[#allocation11 + $0x22a4] ss:$8 sps:$4 sm:$0xff]  }
0x1415   :  { %12733 = vmatprep.subr.bf16.mxu1 %v17746_v20  ;;  %v18019_v20 = vld [vmem:[#allocation9 + $0x20] sm:$0xff] }
0x1417   :  { %12427 = vmatmul.mubr.bf16.vlgmr.msra.gmra.mrb[140].mxu1 %v19494_v34 }
0x1418   :  { %12436 = vmatprep.mubr.bf16.mxu1 %v19498_v24  ;;  %12734 = vmatpush1.bf16.msra.mxu1 %v17744_v52  ;;  %v17774_v52 = vld [vmem:[#allocation11 + $0x22a0] ss:$8 sps:$4 sm:$0xff]  }
0x1419   :  { %12735 = vmatprep.subr.bf16.mxu1 %v17749_v50  ;;  %v17782_v50 = vld [vmem:[#allocation11 + $0x22b4] ss:$8 sps:$4 sm:$0xff]  }
0x141c   :  { %12736 = vmatpush1.bf16.msra.mxu1 %v17747_v39  ;;  %v18020_v39 = vld [vmem:[#allocation9 + $0x28] sm:$0x3] }
0x141d   :  { %12737 = vmatprep.subr.bf16.mxu1 %v17752_v62  ;;  %v17777_v62 = vld [vmem:[#allocation11 + $0x1d00] ss:$8 sps:$4 sm:$0xff]  }
0x141f   :  { %12437 = vmatmul.mubr.bf16.gmra.mrb[144].mxu1 %v19506_v29 }
0x1420   :  { %12738 = vmatpush1.bf16.msra.mxu1 %v17750_v2  ;;  %12765 = vmatprep.mubr.bf16.mxu1 %v19496_v10  ;;  %v17780_v2 = vld [vmem:[#allocation11 + $0x22b0] ss:$8 sps:$4 sm:$0xff]  }
0x1421   :  { %12739 = vmatprep.subr.bf16.mxu1 %v17755_v9  ;;  %v17785_v9 = vld [vmem:[#allocation11 + $0x1d14] ss:$8 sps:$4 sm:$0xff]  }
0x1424   :  { %12740 = vmatpush1.bf16.msra.mxu1 %v17753_v19  ;;  %v17788_v19 = vld [vmem:[#allocation11 + $0x22c4] ss:$8 sps:$4 sm:$0xff]  }
0x1425   :  { %12741 = vmatprep.subr.bf16.mxu1 %v17758_v21  ;;  %v18021_v21 = vld [vmem:[#allocation9] sm:$0xff] }
0x1428   :  { %12742 = vmatpush1.bf16.msra.mxu1 %v17756_v26  ;;  %v17783_v26 = vld [vmem:[#allocation11 + $0x1d10] ss:$8 sps:$4 sm:$0xff]  }
0x1429   :  { %12743 = vmatprep.subr.bf16.mxu1 %v17761_v41  ;;  %v17786_v41 = vld [vmem:[#allocation11 + $0x22c0] ss:$8 sps:$4 sm:$0xff]  }
0x142a   :  { %v10406_v49 = vpop.f32.mrb[132].mxu0  ;;  %v10650_v55 = vpop.f32.mrb[116].mxu1 }
0x142b   :  { %v10408_v7 = vpop.f32.mrb[133].mxu0  ;;  %v10652_v13 = vpop.f32.mrb[117].mxu1 }
0x142c   :  { %12744 = vmatpush1.bf16.msra.mxu1 %v17759_v53  ;;  %v10410_v42 = vpop.f32.mrb[134].mxu0  ;;  %v10654_v58 = vpop.f32.mrb[118].mxu1  ;;  %v17791_v53 = vld [vmem:[#allocation11 + $0x1d24] ss:$8 sps:$4 sm:$0xff]  }
0x142d   :  { %v15864_v23 = vpack.c.bf16 %v10410_v42, %v10406_v49  ;;  %v15860_v27 = vpack.c.bf16 %v10654_v58, %v10650_v55  ;;  %v10412_v33 = vpop.f32.mrb[135].mxu0  ;;  %v10656_v46 = vpop.f32.mrb[119].mxu1  ;;  %12745 = vmatprep.subr.bf16.mxu1 %v17764_v51  ;;  %v17794_v51 = vld [vmem:[#allocation11 + $0x22d4] ss:$8 sps:$4 sm:$0xff]   ;;  %v17789_v55 = vld [vmem:[#allocation11 + $0x1d20] ss:$8 sps:$4 sm:$0xff]  }
0x142e   :  { %v15862_v35 = vpack.c.bf16 %v10412_v33, %v10408_v7  ;;  %v15858_v59 = vpack.c.bf16 %v10656_v46, %v10652_v13  ;;  %v18022_v49 = vld [vmem:[#allocation9 + $0x8] sm:$0xff]  ;;  %v17800_v42 = vld [vmem:[#allocation11 + $0x22e4] ss:$8 sps:$4 sm:$0xff]   ;;  %v18023_v58 = vld [vmem:[#allocation9 + $0x10] sm:$0x3] }
0x142f   :  { %v17792_v7 = vld [vmem:[#allocation11 + $0x22d0] ss:$8 sps:$4 sm:$0xff]   ;;  %v17797_v13 = vld [vmem:[#allocation11 + $0x1d34] ss:$8 sps:$4 sm:$0xff]   ;;  %v17801_v46 = vld [vmem:[#allocation11 + $0x1d40] ss:$8 sps:$4 sm:$0xff]  }
0x1430   :  { %12746 = vmatpush1.bf16.msra.mxu1 %v17762_v5  ;;  %15859 = vmatprep.subr.bf16.mxu0 %v15858_v59  ;;  %v17795_v5 = vld [vmem:[#allocation11 + $0x1d30] ss:$8 sps:$4 sm:$0xff]   ;;  %v17806_v33 = vld [vmem:[#allocation11 + $0x22f4] ss:$8 sps:$4 sm:$0xff]  }
0x1431   :  { %15861 = vmatpush1.bf16.msra.mxu0 %v15860_v27  ;;  %12747 = vmatprep.subr.bf16.mxu1 %v17767_v43  ;;  %v17803_v27 = vld [vmem:[#allocation11 + $0x1d44] ss:$8 sps:$4 sm:$0xff]   ;;  %v17804_v43 = vld [vmem:[#allocation11 + $0x22f0] ss:$8 sps:$4 sm:$0xff]  }
0x1432   :  { %v10416_v14 = vpop.f32.mrb[136].mxu0  ;;  %v10660_v44 = vpop.f32.mrb[120].mxu1  ;;  %v17807_v59 = vld [vmem:[#allocation11 + $0x1d50] ss:$8 sps:$4 sm:$0xff]  }
0x1433   :  { %v10418_v37 = vpop.f32.mrb[137].mxu0  ;;  %v10662_v8 = vpop.f32.mrb[121].mxu1 }
0x1434   :  { %12748 = vmatpush1.bf16.msra.mxu1 %v17765_v22  ;;  %v10420_v15 = vpop.f32.mrb[138].mxu0  ;;  %v10664_v16 = vpop.f32.mrb[122].mxu1  ;;  %15299 = vmatprep.subr.msk.mxu0 %vm391_vm0, %v10662_v8  ;;  %v17812_v22 = vld [vmem:[#allocation11 + $0x1d64] ss:$8 sps:$4 sm:$0xff]   ;;  %v17816_v8 = vld [vmem:[#allocation11 + $0x1d80] ss:$8 sps:$4 sm:$0xff]  }
0x1435   :  { %v10421_v25 = vpop.f32.mrb[139].mxu0  ;;  %v10665_v63 = vpop.f32.mrb[123].mxu1  ;;  %15300 = vmatpush1.msk.msra.mxu0 %vm391_vm0, %v10660_v44  ;;  %12749 = vmatprep.subr.bf16.mxu1 %v17770_v45  ;;  %v17810_v45 = vld [vmem:[#allocation11 + $0x1d60] ss:$8 sps:$4 sm:$0xff]   ;;  %v17813_v44 = vld [vmem:[#allocation11 + $0x1d70] ss:$8 sps:$4 sm:$0xff]  }
0x1436   :  { %15301 = vmatmul.mubr.msk.f32.vlgmr.msra.gmra.mrb[66].mxu0 %vm995_vm1, %v18018_v57  ;;  %15863 = vmatprep.subr.bf16.mxu0 %v15862_v35  ;;  %v17809_v35 = vld [vmem:[#allocation11 + $0x1d54] ss:$8 sps:$4 sm:$0xff]   ;;  %v17819_v16 = vld [vmem:[#allocation11 + $0x1d90] ss:$8 sps:$4 sm:$0xff]   ;;  %v17822_v25 = vld [vmem:[#allocation11 + $0x1da0] ss:$8 sps:$4 sm:$0xff]  }
0x1437   :  { %15865 = vmatpush1.bf16.msra.mxu0 %v15864_v23  ;;  %10743 = vmatprep.mubr.f32.mxu0 %v18483_v1  ;;  %v17798_v23 = vld [vmem:[#allocation11 + $0x22e0] ss:$8 sps:$4 sm:$0xff]   ;;  %v17821_v15 = vld [vmem:[#allocation11 + $0x1d94] ss:$8 sps:$4 sm:$0xff]  }
0x1438   :  { %12750 = vmatpush1.bf16.msra.mxu1 %v17768_v60  ;;  %15304 = vmatprep.subr.msk.mxu0 %vm391_vm0, %v10418_v37  ;;  %v17818_v37 = vld [vmem:[#allocation11 + $0x1d84] ss:$8 sps:$4 sm:$0xff]   ;;  %v17827_v63 = vld [vmem:[#allocation11 + $0x1db4] ss:$8 sps:$4 sm:$0xff]  }
0x1439   :  { %12751 = vmatprep.subr.bf16.mxu1 %v17773_v28  ;;  %v17824_v60 = vld [vmem:[#allocation11 + $0x1da4] ss:$8 sps:$4 sm:$0xff]  }
0x143a   :  { %15302 = vmatmul.mubr.msk.f32.gmra.mrb[140].mxu0 %vm995_vm1, %v18019_v20 }
0x143b   :  { %15305 = vmatpush1.msk.msra.mxu0 %vm391_vm0, %v10416_v14  ;;  %10749 = vmatprep.mubr.f32.mxu0 %v18483_v1  ;;  %v17815_v14 = vld [vmem:[#allocation11 + $0x1d74] ss:$8 sps:$4 sm:$0xff]  }
0x143c   :  { %12752 = vmatpush1.bf16.msra.mxu1 %v17771_v38  ;;  %11038 = vmatprep.subr.bf16.mxu0 %v17779_v47  ;;  %v17825_v38 = vld [vmem:[#allocation11 + $0x1db0] ss:$8 sps:$4 sm:$0xff]  }
0x143d   :  { %12753 = vmatprep.subr.bf16.mxu1 %v17776_v61  ;;  %v17830_v61 = vld [vmem:[#allocation11 + $0x1dc4] ss:$8 sps:$4 sm:$0xff]  }
0x143e   :  { %15303 = vmatmul.mubr.msk.f32.gmra.mrb[142].mxu0 %vm995_vm1, %v18020_v39  ;;  %v17828_v39 = vld [vmem:[#allocation11 + $0x1dc0] ss:$8 sps:$4 sm:$0xff]  }
0x143f   :  { %10826 = vmatprep.mubr.f32.mxu0 %v18483_v1 }
0x1440   :  { %12754 = vmatpush1.bf16.msra.mxu1 %v17774_v52 }
0x1441   :  { %12755 = vmatprep.subr.bf16.mxu1 %v17782_v50 }
0x1442   :  { %15306 = vmatmul.mubr.msk.f32.vlgmr.msra.gmra.mrb[66].mxu0 %vm995_vm1, %v18021_v21 }
0x1443   :  { %11039 = vmatpush1.bf16.msra.mxu0 %v17777_v62  ;;  %10832 = vmatprep.mubr.f32.mxu0 %v18483_v1  ;;  %v17833_v62 = vld [vmem:[#allocation11 + $0x1dd4] ss:$8 sps:$4 sm:$0xff]  }
0x1444   :  { %12756 = vmatpush1.bf16.msra.mxu1 %v17780_v2  ;;  %11040 = vmatprep.subr.bf16.mxu0 %v17785_v9 }
0x1445   :  { %12757 = vmatprep.subr.bf16.mxu1 %v17788_v19  ;;  %v17831_v19 = vld [vmem:[#allocation11 + $0x1dd0] ss:$8 sps:$4 sm:$0xff]  }
0x1446   :  { %15307 = vmatmul.mubr.msk.f32.gmra.mrb[140].mxu0 %vm995_vm1, %v18022_v49  ;;  %v17837_v49 = vld [vmem:[#allocation11 + $0x1df0] ss:$8 sps:$4 sm:$0xff]  }
0x1447   :  { %11041 = vmatpush1.bf16.msra.mxu0 %v17783_v26  ;;  %10838 = vmatprep.mubr.f32.mxu0 %v18483_v1  ;;  %v17836_v26 = vld [vmem:[#allocation11 + $0x1de4] ss:$8 sps:$4 sm:$0xff]  }
0x1448   :  { %12758 = vmatpush1.bf16.msra.mxu1 %v17786_v41  ;;  %11042 = vmatprep.subr.bf16.mxu0 %v17791_v53  ;;  %v17834_v53 = vld [vmem:[#allocation11 + $0x1de0] ss:$8 sps:$4 sm:$0xff]  }
0x1449   :  { %12759 = vmatprep.subr.bf16.mxu1 %v17794_v51  ;;  %v17839_v51 = vld [vmem:[#allocation11 + $0x1df4] ss:$8 sps:$4 sm:$0xff]  }
0x144a   :  { %15308 = vmatmul.mubr.msk.f32.gmra.mrb[142].mxu0 %vm995_vm1, %v18023_v58 }
0x144b   :  { %11043 = vmatpush1.bf16.msra.mxu0 %v17789_v55  ;;  %11070 = vmatprep.mubr.bf16.mxu0 %v19496_v10 }
0x144c   :  { %12760 = vmatpush1.bf16.msra.mxu1 %v17792_v7  ;;  %11044 = vmatprep.subr.bf16.mxu0 %v17797_v13 }
0x144d   :  { %12761 = vmatprep.subr.bf16.mxu1 %v17800_v42 }
0x144f   :  { %11045 = vmatpush1.bf16.msra.mxu0 %v17795_v5 }
0x1450   :  { %12762 = vmatpush1.bf16.msra.mxu1 %v17798_v23  ;;  %11046 = vmatprep.subr.bf16.mxu0 %v17803_v27 }
0x1451   :  { %12763 = vmatprep.subr.bf16.mxu1 %v17806_v33 }
0x1453   :  { %11047 = vmatpush1.bf16.msra.mxu0 %v17801_v46 }
0x1454   :  { %12764 = vmatpush1.bf16.msra.mxu1 %v17804_v43  ;;  %11048 = vmatprep.subr.bf16.mxu0 %v17809_v35 }
0x1457   :  { %11049 = vmatpush1.bf16.msra.mxu0 %v17807_v59  ;;  %12766 = vmatmul.mubr.bf16.vlgmr.msra.gmra.mrb[148].mxu1 %v19494_v34 }
0x1458   :  { %12775 = vmatprep.mubr.bf16.mxu1 %v19498_v24  ;;  %11050 = vmatprep.subr.bf16.mxu0 %v17812_v22 }
0x145b   :  { %11051 = vmatpush1.bf16.msra.mxu0 %v17810_v45 }
0x145c   :  { %11052 = vmatprep.subr.bf16.mxu0 %v17815_v14 }
0x145f   :  { %11053 = vmatpush1.bf16.msra.mxu0 %v17813_v44  ;;  %12776 = vmatmul.mubr.bf16.gmra.mrb[152].mxu1 %v19506_v29 }
0x1460   :  { %11054 = vmatprep.subr.bf16.mxu0 %v17818_v37 }
0x1463   :  { %11055 = vmatpush1.bf16.msra.mxu0 %v17816_v8 }
0x1464   :  { %11056 = vmatprep.subr.bf16.mxu0 %v17821_v15 }
0x1467   :  { %11057 = vmatpush1.bf16.msra.mxu0 %v17819_v16 }
0x1468   :  { %11058 = vmatprep.subr.bf16.mxu0 %v17824_v60 }
0x146a   :  { %v19543_v28 = vpop.f32.mrb[124].mxu1 }
0x146b   :  { %11059 = vmatpush1.bf16.msra.mxu0 %v17822_v25  ;;  %v19545_v57 = vpop.f32.mrb[125].mxu1 }
0x146c   :  { %v19547_v47 = vpop.f32.mrb[126].mxu1  ;;  %11060 = vmatprep.subr.bf16.mxu0 %v17827_v63 }
0x146d   :  { %v15872_v20 = vpack.c.bf16 %v19547_v47, %v19543_v28  ;;  %v19551_v52 = vpop.f32.mrb[127].mxu1  ;;  %v18027_v28 = vld [vmem:[#allocation9 + $0x48] sm:$0xff]  ;;  %v17842_v47 = vld [vmem:[#allocation11 + $0x2004] ss:$8 sps:$4 sm:$0xff]  }
0x146e   :  { %v15870_v50 = vpack.c.bf16 %v19551_v52, %v19545_v57  ;;  %v18026_v57 = vld [vmem:[#allocation9 + $0x40] sm:$0x3]  ;;  %v18029_v52 = vld [vmem:[#allocation9 + $0x58] sm:$0x3] }
0x146f   :  { %11061 = vmatpush1.bf16.msra.mxu0 %v17825_v38 }
0x1470   :  { %11062 = vmatprep.subr.bf16.mxu0 %v17830_v61 }
0x1472   :  { %v19555_v2 = vpop.f32.mrb[128].mxu1 }
0x1473   :  { %11063 = vmatpush1.bf16.msra.mxu0 %v17828_v39  ;;  %v19557_v9 = vpop.f32.mrb[129].mxu1 }
0x1474   :  { %v11425_v21 = vpop.f32.mrb[130].mxu1  ;;  %11064 = vmatprep.subr.bf16.mxu0 %v17833_v62 }
0x1475   :  { %v11426_v41 = vpop.f32.mrb[131].mxu1 }
0x1477   :  { %11065 = vmatpush1.bf16.msra.mxu0 %v17831_v19 }
0x1478   :  { %11066 = vmatprep.subr.bf16.mxu0 %v17836_v26 }
0x147b   :  { %11067 = vmatpush1.bf16.msra.mxu0 %v17834_v53 }
0x147c   :  { %11068 = vmatprep.subr.bf16.mxu0 %v17839_v51 }
0x147f   :  { %11069 = vmatpush1.bf16.msra.mxu0 %v17837_v49 }
0x1482   :  { %11071 = vmatmul.mubr.bf16.vlgmr.msra.gmra.mrb[144].mxu0 %v19494_v34 }
0x1483   :  { %11080 = vmatprep.mubr.bf16.mxu0 %v19498_v24 }
0x148a   :  { %11081 = vmatmul.mubr.bf16.gmra.mrb[148].mxu0 %v19506_v29 }
0x148b   :  { %11159 = vmatprep.mubr.f32.mxu0 %v18483_v1 }
0x14aa   :  { %v11750_v55 = vpop.f32.mrb[132].mxu1 }
0x14ab   :  { %v11752_v7 = vpop.f32.mrb[133].mxu1 }
0x14ac   :  { %v11754_v13 = vpop.f32.mrb[134].mxu1 }
0x14ad   :  { %v15876_v42 = vpack.c.bf16 %v11754_v13, %v11750_v55  ;;  %v11756_v58 = vpop.f32.mrb[135].mxu1 }
0x14ae   :  { %v15874_v5 = vpack.c.bf16 %v11756_v58, %v11752_v7 }
0x14b2   :  { %v11760_v23 = vpop.f32.mrb[136].mxu1 }
0x14b3   :  { %v11762_v27 = vpop.f32.mrb[137].mxu1 }
0x14b4   :  { %v11764_v33 = vpop.f32.mrb[138].mxu1 }
0x14b5   :  { %v11765_v46 = vpop.f32.mrb[139].mxu1 }
0x14b6   :  { %v18024_v46 = vld [vmem:[#allocation9 + $0x30] sm:$0xff] }
0x14ea   :  { %v19563_v43 = vpop.f32.mrb[140].mxu1 }
0x14eb   :  { %v19565_v35 = vpop.f32.mrb[141].mxu1 }
0x14ec   :  { %v19567_v59 = vpop.f32.mrb[142].mxu1 }
0x14ed   :  { %v15884_v22 = vpack.c.bf16 %v19567_v59, %v19563_v43  ;;  %v19571_v45 = vpop.f32.mrb[143].mxu1  ;;  %v18036_v43 = vld [vmem:[#allocation9 + $0x90] sm:$0xff]  ;;  %v17890_v59 = vld [vmem:[#allocation11 + $0x2304] ss:$8 sps:$4 sm:$0xff]  }
0x14ee   :  { %v15882_v14 = vpack.c.bf16 %v19571_v45, %v19565_v35  ;;  %v18035_v35 = vld [vmem:[#allocation9 + $0x88] sm:$0x3]  ;;  %v18038_v45 = vld [vmem:[#allocation9 + $0xa0] sm:$0x3] }
0x14f2   :  { %v19575_v44 = vpop.f32.mrb[144].mxu1 }
0x14f3   :  { %v19577_v37 = vpop.f32.mrb[145].mxu1 }
0x14f4   :  { %v12442_v8 = vpop.f32.mrb[146].mxu1 }
0x14f5   :  { %v12443_v15 = vpop.f32.mrb[147].mxu1  ;;  %v18025_v8 = vld [vmem:[#allocation9 + $0x38] sm:$0xff] }
0x14f6   :  { %v17851_v15 = vld [vmem:[#allocation11 + $0x2034] ss:$8 sps:$4 sm:$0xff]  }
0x152a   :  { %v19579_v16 = vpop.f32.mrb[148].mxu1 }
0x152b   :  { %v19581_v60 = vpop.f32.mrb[149].mxu1 }
0x152c   :  { %v19583_v25 = vpop.f32.mrb[150].mxu1 }
0x152d   :  { %v15888_v63 = vpack.c.bf16 %v19583_v25, %v19579_v16  ;;  %v19587_v38 = vpop.f32.mrb[151].mxu1  ;;  %v17891_v16 = vld [vmem:[#allocation11 + $0x2310] ss:$8 sps:$4 sm:$0xff]  }
0x152e   :  { %v15886_v61 = vpack.c.bf16 %v19587_v38, %v19581_v60  ;;  %v17896_v60 = vld [vmem:[#allocation11 + $0x2324] ss:$8 sps:$4 sm:$0xff]   ;;  %v18040_v25 = vld [vmem:[#allocation9 + $0xb0] sm:$0xff] }
0x152f   :  { %v17899_v38 = vld [vmem:[#allocation11 + $0x2334] ss:$8 sps:$4 sm:$0xff]  }
0x1532   :  { %v19591_v39 = vpop.f32.mrb[152].mxu1 }
0x1533   :  { %v19593_v62 = vpop.f32.mrb[153].mxu1 }
0x1534   :  { %v12781_v19 = vpop.f32.mrb[154].mxu1 }
0x1535   :  { %v12782_v21 = vpop.f32.mrb[155].mxu1  ;;  %v18032_v19 = vld [vmem:[#allocation9 + $0x70] sm:$0x3] }
0x1536   :  { %v17849_v21 = vld [vmem:[#allocation11 + $0x2030] ss:$8 sps:$4 sm:$0xff]  }
0x1555   :  { %v11072_v26 = vpop.f32.mrb[144].mxu0 }
0x1556   :  { %v11074_v41 = vpop.f32.mrb[145].mxu0 }
0x1557   :  { %v11076_v53 = vpop.f32.mrb[146].mxu0 }
0x1558   :  { %v15868_v51 = vpack.c.bf16 %v11076_v53, %v11072_v26  ;;  %v11078_v49 = vpop.f32.mrb[147].mxu0  ;;  %v17854_v26 = vld [vmem:[#allocation11 + $0x2044] ss:$8 sps:$4 sm:$0xff]   ;;  %v17857_v53 = vld [vmem:[#allocation11 + $0x2054] ss:$8 sps:$4 sm:$0xff]  }
0x1559   :  { %v15866_v55 = vpack.c.bf16 %v11078_v49, %v11074_v41  ;;  %v17852_v41 = vld [vmem:[#allocation11 + $0x2040] ss:$8 sps:$4 sm:$0xff]   ;;  %v17860_v49 = vld [vmem:[#allocation11 + $0x2064] ss:$8 sps:$4 sm:$0xff]  }
0x155b   :  { %15867 = vmatprep.subr.bf16.mxu0 %v15866_v55  ;;  %v17858_v55 = vld [vmem:[#allocation11 + $0x2060] ss:$8 sps:$4 sm:$0xff]  }
0x155c   :  { %15869 = vmatpush1.bf16.msra.mxu0 %v15868_v51  ;;  %v17855_v51 = vld [vmem:[#allocation11 + $0x2050] ss:$8 sps:$4 sm:$0xff]  }
0x155d   :  { %v11082_v7 = vpop.f32.mrb[148].mxu0 }
0x155e   :  { %v11084_v13 = vpop.f32.mrb[149].mxu0 }
0x155f   :  { %v11086_v58 = vpop.f32.mrb[150].mxu0  ;;  %15341 = vmatprep.subr.msk.mxu0 %vm391_vm0, %v11084_v13  ;;  %v17861_v13 = vld [vmem:[#allocation11 + $0x2070] ss:$8 sps:$4 sm:$0xff]  }
0x1560   :  { %v11087_v33 = vpop.f32.mrb[151].mxu0  ;;  %15342 = vmatpush1.msk.msra.mxu0 %vm391_vm0, %v11082_v7  ;;  %v17863_v7 = vld [vmem:[#allocation11 + $0x2074] ss:$8 sps:$4 sm:$0xff]   ;;  %v17866_v58 = vld [vmem:[#allocation11 + $0x2084] ss:$8 sps:$4 sm:$0xff]  }
0x1561   :  { %15343 = vmatmul.mubr.msk.f32.vlgmr.msra.gmra.mrb[66].mxu0 %vm995_vm1, %v18024_v46  ;;  %15871 = vmatprep.subr.bf16.mxu0 %v15870_v50  ;;  %v17840_v50 = vld [vmem:[#allocation11 + $0x2000] ss:$8 sps:$4 sm:$0xff]   ;;  %v17869_v46 = vld [vmem:[#allocation11 + $0x2094] ss:$8 sps:$4 sm:$0xff]  }
0x1562   :  { %15873 = vmatpush1.bf16.msra.mxu0 %v15872_v20  ;;  %11165 = vmatprep.mubr.f32.mxu0 %v18483_v1  ;;  %v18028_v20 = vld [vmem:[#allocation9 + $0x50] sm:$0xff]  ;;  %v17864_v33 = vld [vmem:[#allocation11 + $0x2080] ss:$8 sps:$4 sm:$0xff]  }
0x1563   :  { %15378 = vmatprep.subr.msk.mxu0 %vm391_vm0, %v19557_v9  ;;  %v18030_v9 = vld [vmem:[#allocation9 + $0x60] sm:$0xff] }
0x1565   :  { %15344 = vmatmul.mubr.msk.f32.gmra.mrb[140].mxu0 %vm995_vm1, %v18025_v8  ;;  %v17867_v8 = vld [vmem:[#allocation11 + $0x2090] ss:$8 sps:$4 sm:$0xff]  }
0x1566   :  { %15379 = vmatpush1.msk.msra.mxu0 %vm391_vm0, %v19555_v2  ;;  %11171 = vmatprep.mubr.f32.mxu0 %v18483_v1  ;;  %v17845_v2 = vld [vmem:[#allocation11 + $0x2014] ss:$8 sps:$4 sm:$0xff]  }
0x1567   :  { %15875 = vmatprep.subr.bf16.mxu0 %v15874_v5  ;;  %v17848_v5 = vld [vmem:[#allocation11 + $0x2024] ss:$8 sps:$4 sm:$0xff]  }
0x1569   :  { %15345 = vmatmul.mubr.msk.f32.gmra.mrb[142].mxu0 %vm995_vm1, %v18026_v57  ;;  %v17872_v57 = vld [vmem:[#allocation11 + $0x20a4] ss:$8 sps:$4 sm:$0xff]  }
0x156a   :  { %11498 = vmatprep.mubr.f32.mxu0 %v18483_v1 }
0x156d   :  { %15380 = vmatmul.mubr.msk.f32.vlgmr.msra.gmra.mrb[66].mxu0 %vm995_vm1, %v18027_v28  ;;  %v17870_v28 = vld [vmem:[#allocation11 + $0x20a0] ss:$8 sps:$4 sm:$0xff]  }
0x156e   :  { %15877 = vmatpush1.bf16.msra.mxu0 %v15876_v42  ;;  %11504 = vmatprep.mubr.f32.mxu0 %v18483_v1  ;;  %v17843_v42 = vld [vmem:[#allocation11 + $0x2010] ss:$8 sps:$4 sm:$0xff]  }
0x156f   :  { %15415 = vmatprep.subr.msk.mxu0 %vm391_vm0, %v11762_v27  ;;  %v17846_v27 = vld [vmem:[#allocation11 + $0x2020] ss:$8 sps:$4 sm:$0xff]  }
0x1571   :  { %15381 = vmatmul.mubr.msk.f32.gmra.mrb[140].mxu0 %vm995_vm1, %v18028_v20  ;;  %v17873_v20 = vld [vmem:[#allocation11 + $0x20b0] ss:$8 sps:$4 sm:$0xff]  }
0x1572   :  { %15416 = vmatpush1.msk.msra.mxu0 %vm391_vm0, %v11760_v23  ;;  %11510 = vmatprep.mubr.f32.mxu0 %v18483_v1  ;;  %v18031_v23 = vld [vmem:[#allocation9 + $0x68] sm:$0xff] }
0x1573   :  { %12055 = vmatprep.subr.bf16.mxu0 %v17842_v47  ;;  %v17875_v47 = vld [vmem:[#allocation11 + $0x20b4] ss:$8 sps:$4 sm:$0xff]  }
0x1575   :  { %15382 = vmatmul.mubr.msk.f32.gmra.mrb[142].mxu0 %vm995_vm1, %v18029_v52  ;;  %v17878_v52 = vld [vmem:[#allocation11 + $0x20c4] ss:$8 sps:$4 sm:$0xff]  }
0x1576   :  { %11837 = vmatprep.mubr.f32.mxu0 %v18483_v1 }
0x1579   :  { %15417 = vmatmul.mubr.msk.f32.vlgmr.msra.gmra.mrb[66].mxu0 %vm995_vm1, %v18030_v9  ;;  %v17879_v9 = vld [vmem:[#allocation11 + $0x20d0] ss:$8 sps:$4 sm:$0xff]  }
0x157a   :  { %12056 = vmatpush1.bf16.msra.mxu0 %v17840_v50  ;;  %11843 = vmatprep.mubr.f32.mxu0 %v18483_v1  ;;  %v17876_v50 = vld [vmem:[#allocation11 + $0x20c0] ss:$8 sps:$4 sm:$0xff]  }
0x157b   :  { %12057 = vmatprep.subr.bf16.mxu0 %v17845_v2  ;;  %v17881_v2 = vld [vmem:[#allocation11 + $0x20d4] ss:$8 sps:$4 sm:$0xff]  }
0x157d   :  { %15418 = vmatmul.mubr.msk.f32.gmra.mrb[140].mxu0 %vm995_vm1, %v18031_v23  ;;  %v17887_v23 = vld [vmem:[#allocation11 + $0x20f4] ss:$8 sps:$4 sm:$0xff]  }
0x157e   :  { %12058 = vmatpush1.bf16.msra.mxu0 %v17843_v42  ;;  %11849 = vmatprep.mubr.f32.mxu0 %v18483_v1  ;;  %v17884_v42 = vld [vmem:[#allocation11 + $0x20e4] ss:$8 sps:$4 sm:$0xff]  }
0x157f   :  { %12059 = vmatprep.subr.bf16.mxu0 %v17848_v5  ;;  %v17882_v5 = vld [vmem:[#allocation11 + $0x20e0] ss:$8 sps:$4 sm:$0xff]  }
0x1581   :  { %15419 = vmatmul.mubr.msk.f32.gmra.mrb[142].mxu0 %vm995_vm1, %v18032_v19 }
0x1582   :  { %12060 = vmatpush1.bf16.msra.mxu0 %v17846_v27  ;;  %12087 = vmatprep.mubr.bf16.mxu0 %v19496_v10  ;;  %v17885_v27 = vld [vmem:[#allocation11 + $0x20f0] ss:$8 sps:$4 sm:$0xff]  }
0x1583   :  { %12061 = vmatprep.subr.bf16.mxu0 %v17851_v15 }
0x1586   :  { %12062 = vmatpush1.bf16.msra.mxu0 %v17849_v21 }
0x1587   :  { %12063 = vmatprep.subr.bf16.mxu0 %v17854_v26 }
0x158a   :  { %12064 = vmatpush1.bf16.msra.mxu0 %v17852_v41 }
0x158b   :  { %12065 = vmatprep.subr.bf16.mxu0 %v17857_v53 }
0x158e   :  { %12066 = vmatpush1.bf16.msra.mxu0 %v17855_v51 }
0x158f   :  { %12067 = vmatprep.subr.bf16.mxu0 %v17860_v49 }
0x1592   :  { %12068 = vmatpush1.bf16.msra.mxu0 %v17858_v55 }
0x1593   :  { %12069 = vmatprep.subr.bf16.mxu0 %v17863_v7 }
0x1596   :  { %12070 = vmatpush1.bf16.msra.mxu0 %v17861_v13  ;;  %v18033_v13 = vld [vmem:[#allocation9 + $0x78] sm:$0xff] }
0x1597   :  { %12071 = vmatprep.subr.bf16.mxu0 %v17866_v58  ;;  %v18034_v58 = vld [vmem:[#allocation9 + $0x80] sm:$0xff] }
0x159a   :  { %12072 = vmatpush1.bf16.msra.mxu0 %v17864_v33  ;;  %v17900_v33 = vld [vmem:[#allocation11 + $0x2340] ss:$8 sps:$4 sm:$0xff]  }
0x159b   :  { %12073 = vmatprep.subr.bf16.mxu0 %v17869_v46  ;;  %v17905_v46 = vld [vmem:[#allocation11 + $0x2354] ss:$8 sps:$4 sm:$0xff]  }
0x159e   :  { %12074 = vmatpush1.bf16.msra.mxu0 %v17867_v8  ;;  %v17903_v8 = vld [vmem:[#allocation11 + $0x2350] ss:$8 sps:$4 sm:$0xff]  }
0x159f   :  { %12075 = vmatprep.subr.bf16.mxu0 %v17872_v57  ;;  %v17908_v57 = vld [vmem:[#allocation11 + $0x2364] ss:$8 sps:$4 sm:$0xff]  }
0x15a2   :  { %12076 = vmatpush1.bf16.msra.mxu0 %v17870_v28  ;;  %v17906_v28 = vld [vmem:[#allocation11 + $0x2360] ss:$8 sps:$4 sm:$0xff]  }
0x15a3   :  { %12077 = vmatprep.subr.bf16.mxu0 %v17875_v47  ;;  %v17911_v47 = vld [vmem:[#allocation11 + $0x2374] ss:$8 sps:$4 sm:$0xff]  }
0x15a6   :  { %12078 = vmatpush1.bf16.msra.mxu0 %v17873_v20  ;;  %v17909_v20 = vld [vmem:[#allocation11 + $0x2370] ss:$8 sps:$4 sm:$0xff]  }
0x15a7   :  { %12079 = vmatprep.subr.bf16.mxu0 %v17878_v52  ;;  %v17914_v52 = vld [vmem:[#allocation11 + $0x2384] ss:$8 sps:$4 sm:$0xff]  }
0x15aa   :  { %12080 = vmatpush1.bf16.msra.mxu0 %v17876_v50  ;;  %v17917_v50 = vld [vmem:[#allocation11 + $0x2394] ss:$8 sps:$4 sm:$0xff]  }
0x15ab   :  { %12081 = vmatprep.subr.bf16.mxu0 %v17881_v2  ;;  %v17915_v2 = vld [vmem:[#allocation11 + $0x2390] ss:$8 sps:$4 sm:$0xff]  }
0x15ae   :  { %12082 = vmatpush1.bf16.msra.mxu0 %v17879_v9  ;;  %v17920_v9 = vld [vmem:[#allocation11 + $0x23a4] ss:$8 sps:$4 sm:$0xff]  }
0x15af   :  { %12083 = vmatprep.subr.bf16.mxu0 %v17884_v42  ;;  %v17918_v42 = vld [vmem:[#allocation11 + $0x23a0] ss:$8 sps:$4 sm:$0xff]  }
0x15b2   :  { %12084 = vmatpush1.bf16.msra.mxu0 %v17882_v5  ;;  %v17923_v5 = vld [vmem:[#allocation11 + $0x23b4] ss:$8 sps:$4 sm:$0xff]  }
0x15b3   :  { %12085 = vmatprep.subr.bf16.mxu0 %v17887_v23  ;;  %v17921_v23 = vld [vmem:[#allocation11 + $0x23b0] ss:$8 sps:$4 sm:$0xff]  }
0x15b6   :  { %12086 = vmatpush1.bf16.msra.mxu0 %v17885_v27  ;;  %v17926_v27 = vld [vmem:[#allocation11 + $0x23c4] ss:$8 sps:$4 sm:$0xff]  }
0x15b9   :  { %12088 = vmatmul.mubr.bf16.vlgmr.msra.gmra.mrb[152].mxu0 %v19494_v34 }
0x15ba   :  { %12097 = vmatprep.mubr.bf16.mxu0 %v19498_v24 }
0x15c1   :  { %12098 = vmatmul.mubr.bf16.gmra.mrb[156].mxu0 %v19506_v29 }
0x15c2   :  { %12176 = vmatprep.mubr.f32.mxu0 %v18483_v1 }
0x168c   :  { %v12089_v15 = vpop.f32.mrb[152].mxu0 }
0x168d   :  { %v12091_v19 = vpop.f32.mrb[153].mxu0 }
0x168e   :  { %v12093_v21 = vpop.f32.mrb[154].mxu0 }
0x168f   :  { %v15880_v26 = vpack.c.bf16 %v12093_v21, %v12089_v15  ;;  %v12095_v41 = vpop.f32.mrb[155].mxu0  ;;  %v17924_v15 = vld [vmem:[#allocation11 + $0x23c0] ss:$8 sps:$4 sm:$0xff]   ;;  %v17927_v21 = vld [vmem:[#allocation11 + $0x23d0] ss:$8 sps:$4 sm:$0xff]  }
0x1690   :  { %v15878_v53 = vpack.c.bf16 %v12095_v41, %v12091_v19  ;;  %v17929_v19 = vld [vmem:[#allocation11 + $0x23d4] ss:$8 sps:$4 sm:$0xff]   ;;  %v17930_v41 = vld [vmem:[#allocation11 + $0x23e0] ss:$8 sps:$4 sm:$0xff]  }
0x1692   :  { %15879 = vmatprep.subr.bf16.mxu0 %v15878_v53  ;;  %v17935_v53 = vld [vmem:[#allocation11 + $0x23f4] ss:$8 sps:$4 sm:$0xff]  }
0x1693   :  { %15881 = vmatpush1.bf16.msra.mxu0 %v15880_v26  ;;  %v17932_v26 = vld [vmem:[#allocation11 + $0x23e4] ss:$8 sps:$4 sm:$0xff]  }
0x1694   :  { %v12099_v51 = vpop.f32.mrb[156].mxu0 }
0x1695   :  { %v12101_v49 = vpop.f32.mrb[157].mxu0 }
0x1696   :  { %v12103_v55 = vpop.f32.mrb[158].mxu0  ;;  %15452 = vmatprep.subr.msk.mxu0 %vm391_vm0, %v12101_v49 }
0x1697   :  { %v12104_v7 = vpop.f32.mrb[159].mxu0  ;;  %15453 = vmatpush1.msk.msra.mxu0 %vm391_vm0, %v12099_v51  ;;  %v17933_v51 = vld [vmem:[#allocation11 + $0x23f0] ss:$8 sps:$4 sm:$0xff]  }
0x1698   :  { %15454 = vmatmul.mubr.msk.f32.vlgmr.msra.gmra.mrb[66].mxu0 %vm995_vm1, %v18033_v13  ;;  %15883 = vmatprep.subr.bf16.mxu0 %v15882_v14  ;;  %v17888_v14 = vld [vmem:[#allocation11 + $0x2300] ss:$8 sps:$4 sm:$0xff]  }
0x1699   :  { %15885 = vmatpush1.bf16.msra.mxu0 %v15884_v22  ;;  %12182 = vmatprep.mubr.f32.mxu0 %v18483_v1  ;;  %v18037_v22 = vld [vmem:[#allocation9 + $0x98] sm:$0xff] }
0x169a   :  { %15489 = vmatprep.subr.msk.mxu0 %vm391_vm0, %v19577_v37  ;;  %v18039_v37 = vld [vmem:[#allocation9 + $0xa8] sm:$0xff] }
0x169c   :  { %15455 = vmatmul.mubr.msk.f32.gmra.mrb[140].mxu0 %vm995_vm1, %v18034_v58 }
0x169d   :  { %15490 = vmatpush1.msk.msra.mxu0 %vm391_vm0, %v19575_v44  ;;  %12188 = vmatprep.mubr.f32.mxu0 %v18483_v1  ;;  %v17893_v44 = vld [vmem:[#allocation11 + $0x2314] ss:$8 sps:$4 sm:$0xff]  }
0x169e   :  { %15887 = vmatprep.subr.bf16.mxu0 %v15886_v61  ;;  %v18041_v61 = vld [vmem:[#allocation9 + $0xb8] sm:$0x3] }
0x16a0   :  { %15456 = vmatmul.mubr.msk.f32.gmra.mrb[142].mxu0 %vm995_vm1, %v18035_v35 }
0x16a1   :  { %12515 = vmatprep.mubr.f32.mxu0 %v18483_v1 }
0x16a4   :  { %15491 = vmatmul.mubr.msk.f32.vlgmr.msra.gmra.mrb[66].mxu0 %vm995_vm1, %v18036_v43 }
0x16a5   :  { %15889 = vmatpush1.bf16.msra.mxu0 %v15888_v63  ;;  %12521 = vmatprep.mubr.f32.mxu0 %v18483_v1  ;;  %v17894_v63 = vld [vmem:[#allocation11 + $0x2320] ss:$8 sps:$4 sm:$0xff]  }
0x16a6   :  { %15526 = vmatprep.subr.msk.mxu0 %vm391_vm0, %v19593_v62  ;;  %v17902_v62 = vld [vmem:[#allocation11 + $0x2344] ss:$8 sps:$4 sm:$0xff]  }
0x16a8   :  { %15492 = vmatmul.mubr.msk.f32.gmra.mrb[140].mxu0 %vm995_vm1, %v18037_v22 }
0x16a9   :  { %15527 = vmatpush1.msk.msra.mxu0 %vm391_vm0, %v19591_v39  ;;  %12527 = vmatprep.mubr.f32.mxu0 %v18483_v1  ;;  %v17897_v39 = vld [vmem:[#allocation11 + $0x2330] ss:$8 sps:$4 sm:$0xff]  }
0x16aa   :  { %13072 = vmatprep.subr.bf16.mxu0 %v17890_v59 }
0x16ac   :  { %15493 = vmatmul.mubr.msk.f32.gmra.mrb[142].mxu0 %vm995_vm1, %v18038_v45  ;;  %v18044_v45 = vld [vmem:[#allocation9 + $0xd0] sm:$0x3] }
0x16ad   :  { %12854 = vmatprep.mubr.f32.mxu0 %v18483_v1 }
0x16b0   :  { %15528 = vmatmul.mubr.msk.f32.vlgmr.msra.gmra.mrb[66].mxu0 %vm995_vm1, %v18039_v37 }
0x16b1   :  { %13073 = vmatpush1.bf16.msra.mxu0 %v17888_v14  ;;  %12860 = vmatprep.mubr.f32.mxu0 %v18483_v1  ;;  %v13382_v14 = vld [vmem:[#allocation14 + $0x80] sm:$0xff] }
0x16b2   :  { %13074 = vmatprep.subr.bf16.mxu0 %v17893_v44  ;;  %v13383_v44 = vld [vmem:[#allocation14 + $0x88] sm:$0xff] }
0x16b3   :  { %v15894_v37 = vpack.c.bf16 %v13383_v44, %v13382_v14  ;;  %v19682_v44 = vld [vmem:[#allocation12 + $0x18] sm:$0x77] }
0x16b4   :  { %15529 = vmatmul.mubr.msk.f32.gmra.mrb[140].mxu0 %vm995_vm1, %v18040_v25 }
0x16b5   :  { %13075 = vmatpush1.bf16.msra.mxu0 %v17891_v16  ;;  %12866 = vmatprep.mubr.f32.mxu0 %v18483_v1  ;;  %v13366_v16 = vld [vmem:[#allocation14] sm:$0xff] }
0x16b6   :  { %13076 = vmatprep.subr.bf16.mxu0 %v17896_v60  ;;  %v13367_v60 = vld [vmem:[#allocation14 + $0x8] sm:$0xff]  ;;  %15895 = vmatprep.subr.bf16.mxu1 %v15894_v37  ;;  %v13222_v37 = vrot.slane %v19682_v44, %v18825_v54 }
0x16b7   :  { %v15896_v25 = vpack.c.bf16 %v13367_v60, %v13366_v16  ;;  %v13226_v16 = vrot.slane %v19682_v44, %v18993_v48 }
0x16b8   :  { %15530 = vmatmul.mubr.msk.f32.gmra.mrb[142].mxu0 %vm995_vm1, %v18041_v61 }
0x16b9   :  { %13077 = vmatpush1.bf16.msra.mxu0 %v17894_v63  ;;  %13104 = vmatprep.mubr.bf16.mxu0 %v19496_v10  ;;  %v17912_v10 = vld [vmem:[#allocation11 + $0x2380] ss:$8 sps:$4 sm:$0xff]   ;;  %v13384_v63 = vld [vmem:[#allocation14 + $0x90] sm:$0xff] }
0x16ba   :  { %13078 = vmatprep.subr.bf16.mxu0 %v17899_v38  ;;  %15897 = vmatpush3.bf16.msra.mxu1 %v15896_v25  ;;  %v13385_v38 = vld [vmem:[#allocation14 + $0x98] sm:$0xff]  ;;  %v13232_v25 = vrot.slane %v13222_v37, %v18825_v54 }
0x16bb   :  { %v15898_v61 = vpack.c.bf16 %v13385_v38, %v13384_v63  ;;  %v13236_v38 = vrot.slane %v13226_v16, %v18825_v54 }
0x16bd   :  { %13079 = vmatpush1.bf16.msra.mxu0 %v17897_v39  ;;  %v13368_v39 = vld [vmem:[#allocation14 + $0x10] sm:$0xff]  ;;  %15899 = vmatprep.subr.bf16.mxu1 %v15898_v61 }
0x16be   :  { %13080 = vmatprep.subr.bf16.mxu0 %v17902_v62  ;;  %v13369_v62 = vld [vmem:[#allocation14 + $0x18] sm:$0xff] }
0x16c1   :  { %13081 = vmatpush1.bf16.msra.mxu0 %v17900_v33  ;;  %v15900_v33 = vpack.c.bf16 %v13369_v62, %v13368_v39 }
0x16c2   :  { %13082 = vmatprep.subr.bf16.mxu0 %v17905_v46  ;;  %v13386_v46 = vld [vmem:[#allocation14 + $0xa0] sm:$0xff] }
0x16c3   :  { %15901 = vmatpush3.bf16.msra.mxu1 %v15900_v33 }
0x16c5   :  { %13083 = vmatpush1.bf16.msra.mxu0 %v17903_v8  ;;  %v13387_v8 = vld [vmem:[#allocation14 + $0xa8] sm:$0xff] }
0x16c6   :  { %13084 = vmatprep.subr.bf16.mxu0 %v17908_v57  ;;  %v15902_v57 = vpack.c.bf16 %v13387_v8, %v13386_v46 }
0x16c8   :  { %15903 = vmatprep.subr.bf16.mxu1 %v15902_v57 }
0x16c9   :  { %13085 = vmatpush1.bf16.msra.mxu0 %v17906_v28  ;;  %v13370_v28 = vld [vmem:[#allocation14 + $0x20] sm:$0xff] }
0x16ca   :  { %13086 = vmatprep.subr.bf16.mxu0 %v17911_v47  ;;  %v13371_v47 = vld [vmem:[#allocation14 + $0x28] sm:$0xff] }
0x16cd   :  { %13087 = vmatpush1.bf16.msra.mxu0 %v17909_v20  ;;  %v15904_v20 = vpack.c.bf16 %v13371_v47, %v13370_v28 }
0x16ce   :  { %13088 = vmatprep.subr.bf16.mxu0 %v17914_v52  ;;  %v13388_v52 = vld [vmem:[#allocation14 + $0xb0] sm:$0xff] }
0x16cf   :  { %15905 = vmatpush3.bf16.msra.mxu1 %v15904_v20 }
0x16d1   :  { %13089 = vmatpush1.bf16.msra.mxu0 %v17912_v10  ;;  %v13389_v10 = vld [vmem:[#allocation14 + $0xb8] sm:$0xff] }
0x16d2   :  { %13090 = vmatprep.subr.bf16.mxu0 %v17917_v50  ;;  %v15906_v50 = vpack.c.bf16 %v13389_v10, %v13388_v52 }
0x16d4   :  { %15907 = vmatprep.subr.bf16.mxu1 %v15906_v50 }
0x16d5   :  { %13091 = vmatpush1.bf16.msra.mxu0 %v17915_v2  ;;  %v13372_v2 = vld [vmem:[#allocation14 + $0x30] sm:$0xff] }
0x16d6   :  { %13092 = vmatprep.subr.bf16.mxu0 %v17920_v9  ;;  %v13373_v9 = vld [vmem:[#allocation14 + $0x38] sm:$0xff] }
0x16d9   :  { %13093 = vmatpush1.bf16.msra.mxu0 %v17918_v42  ;;  %v15908_v42 = vpack.c.bf16 %v13373_v9, %v13372_v2 }
0x16da   :  { %13094 = vmatprep.subr.bf16.mxu0 %v17923_v5  ;;  %v13390_v5 = vld [vmem:[#allocation14 + $0xc0] sm:$0xff] }
0x16db   :  { %15909 = vmatpush3.bf16.msra.mxu1 %v15908_v42 }
0x16dd   :  { %13095 = vmatpush1.bf16.msra.mxu0 %v17921_v23  ;;  %v13391_v23 = vld [vmem:[#allocation14 + $0xc8] sm:$0xff] }
0x16de   :  { %13096 = vmatprep.subr.bf16.mxu0 %v17926_v27  ;;  %v15910_v27 = vpack.c.bf16 %v13391_v23, %v13390_v5 }
0x16e0   :  { %15911 = vmatprep.subr.bf16.mxu1 %v15910_v27 }
0x16e1   :  { %13097 = vmatpush1.bf16.msra.mxu0 %v17924_v15  ;;  %v13374_v15 = vld [vmem:[#allocation14 + $0x40] sm:$0xff] }
0x16e2   :  { %13098 = vmatprep.subr.bf16.mxu0 %v17929_v19  ;;  %v13375_v19 = vld [vmem:[#allocation14 + $0x48] sm:$0xff] }
0x16e5   :  { %13099 = vmatpush1.bf16.msra.mxu0 %v17927_v21  ;;  %v15912_v21 = vpack.c.bf16 %v13375_v19, %v13374_v15 }
0x16e6   :  { %13100 = vmatprep.subr.bf16.mxu0 %v17932_v26  ;;  %v13392_v26 = vld [vmem:[#allocation14 + $0xd0] sm:$0xff] }
0x16e7   :  { %15913 = vmatpush3.bf16.msra.mxu1 %v15912_v21 }
0x16e9   :  { %13101 = vmatpush1.bf16.msra.mxu0 %v17930_v41  ;;  %v13393_v41 = vld [vmem:[#allocation14 + $0xd8] sm:$0xff] }
0x16ea   :  { %13102 = vmatprep.subr.bf16.mxu0 %v17935_v53  ;;  %v15914_v53 = vpack.c.bf16 %v13393_v41, %v13392_v26 }
0x16ec   :  { %15915 = vmatprep.subr.bf16.mxu1 %v15914_v53 }
0x16ed   :  { %13103 = vmatpush1.bf16.msra.mxu0 %v17933_v51  ;;  %v13376_v51 = vld [vmem:[#allocation14 + $0x50] sm:$0xff] }
0x16f0   :  { %13105 = vmatmul.mubr.bf16.vlgmr.msra.gmra.mrb[160].mxu0 %v19494_v34 }
0x16f1   :  { %13114 = vmatprep.mubr.bf16.mxu0 %v19498_v24  ;;  %v18042_v24 = vld [vmem:[#allocation9 + $0xc0] sm:$0xff] }
0x16f8   :  { %13115 = vmatmul.mubr.bf16.gmra.mrb[164].mxu0 %v19506_v29  ;;  %v18043_v29 = vld [vmem:[#allocation9 + $0xc8] sm:$0xff] }
0x16f9   :  { %13193 = vmatprep.mubr.f32.mxu0 %v18483_v1 }
0x17c3   :  { %v13106_v49 = vpop.f32.mrb[160].mxu0 }
0x17c4   :  { %v13108_v55 = vpop.f32.mrb[161].mxu0 }
0x17c5   :  { %v13110_v7 = vpop.f32.mrb[162].mxu0 }
0x17c6   :  { %v15892_v13 = vpack.c.bf16 %v13110_v7, %v13106_v49  ;;  %v13112_v58 = vpop.f32.mrb[163].mxu0  ;;  %v13377_v49 = vld [vmem:[#allocation14 + $0x58] sm:$0xff]  ;;  %v13394_v7 = vld [vmem:[#allocation14 + $0xe0] sm:$0xff] }
0x17c7   :  { %v15890_v35 = vpack.c.bf16 %v13112_v58, %v13108_v55  ;;  %v15916_v55 = vpack.c.bf16 %v13377_v49, %v13376_v51 }
0x17c9   :  { %15891 = vmatprep.subr.bf16.mxu0 %v15890_v35  ;;  %15917 = vmatpush3.bf16.msra.mxu1 %v15916_v55  ;;  %v13378_v35 = vld [vmem:[#allocation14 + $0x60] sm:$0xff] }
0x17ca   :  { %15893 = vmatpush1.bf16.msra.mxu0 %v15892_v13  ;;  %v13395_v13 = vld [vmem:[#allocation14 + $0xe8] sm:$0xff] }
0x17cb   :  { %v13116_v43 = vpop.f32.mrb[164].mxu0  ;;  %v15918_v58 = vpack.c.bf16 %v13395_v13, %v13394_v7 }
0x17cc   :  { %v13118_v59 = vpop.f32.mrb[165].mxu0 }
0x17cd   :  { %v13120_v22 = vpop.f32.mrb[166].mxu0  ;;  %15563 = vmatprep.subr.msk.mxu0 %vm391_vm0, %v13118_v59  ;;  %15919 = vmatprep.subr.bf16.mxu1 %v15918_v58 }
0x17ce   :  { %v13121_v34 = vpop.f32.mrb[167].mxu0  ;;  %15564 = vmatpush1.msk.msra.mxu0 %vm391_vm0, %v13116_v43  ;;  %v13379_v43 = vld [vmem:[#allocation14 + $0x68] sm:$0xff]  ;;  %v13396_v22 = vld [vmem:[#allocation14 + $0xf0] sm:$0xff] }
0x17cf   :  { %15565 = vmatmul.mubr.msk.f32.vlgmr.msra.gmra.mrb[66].mxu0 %vm995_vm1, %v18042_v24  ;;  %v15920_v59 = vpack.c.bf16 %v13379_v43, %v13378_v35  ;;  %v13397_v34 = vld [vmem:[#allocation14 + $0xf8] sm:$0xff]  ;;  %v13380_v24 = vld [vmem:[#allocation14 + $0x70] sm:$0xff] }
0x17d0   :  { %13199 = vmatprep.mubr.f32.mxu0 %v18483_v1 }
0x17d1   :  { %15921 = vmatpush3.bf16.msra.mxu1 %v15920_v59 }
0x17d3   :  { %15566 = vmatmul.mubr.msk.f32.gmra.mrb[140].mxu0 %vm995_vm1, %v18043_v29  ;;  %v15922_v29 = vpack.c.bf16 %v13397_v34, %v13396_v22 }
0x17d4   :  { %13205 = vmatprep.mubr.f32.mxu0 %v18483_v1 }
0x17d5   :  { %15923 = vmatprep.subr.bf16.mxu1 %v15922_v29 }
0x17d7   :  { %15567 = vmatmul.mubr.msk.f32.gmra.mrb[142].mxu0 %vm995_vm1, %v18044_v45  ;;  %v13381_v45 = vld [vmem:[#allocation14 + $0x78] sm:$0xff] }
0x17d8   :  { %v15924_v14 = vpack.c.bf16 %v13381_v45, %v13380_v24  ;;  %15683 = vmatprep.mubr.msk.f32.mxu0 %vm18487_vm4, %v18483_v1 }
0x17da   :  { %15925 = vmatpush3.bf16.msra.mxu1 %v15924_v14 }
0x18a2   :  { %v13195_v60 = vpop.f32.mrb[66].mxu0 }
0x18a3   :  { %v13197_v63 = vpop.f32.mrb[67].mxu0  ;;  %v13237_v39 = vadd.f32 %v13232_v25, %v13195_v60 }
0x18a4   :  { %v13238_v46 = vadd.f32 %v13236_v38, %v13197_v63 }
0x18a6   :  { %v13201_v61 = vpop.f32.mrb[140].mxu0 }
0x18a7   :  { %v13239_v62 = vadd.f32 %v13232_v25, %v13201_v61  ;;  %v13203_v33 = vpop.f32.mrb[141].mxu0 }
0x18a8   :  { %v13240_v8 = vadd.f32 %v13236_v38, %v13203_v33 }
0x18a9   :  { %v13243_v57 = vadd.f32 %v13239_v62, %v13237_v39 }
0x18aa   :  { %v13252_v28 = vadd.f32 %v13240_v8, %v13238_v46  ;;  %v13207_v47 = vpop.f32.mrb[142].mxu0 }
0x18ab   :  { %v13241_v20 = vadd.f32 %v13232_v25, %v13207_v47  ;;  %v13209_v52 = vpop.f32.mrb[143].mxu0 }
0x18ac   :  { %v13242_v10 = vadd.f32 %v13236_v38, %v13209_v52 }
0x18ad   :  { %v13244_v48 = vsel %vm391_vm0, %v13241_v20, 0.0 }
0x18ae   :  { %v13245_v50 = vadd.f32 %v13244_v48, %v13243_v57  ;;  %v13253_v2 = vsel %vm391_vm0, %v13242_v10, 0.0 }
0x18af   :  { %v13254_v9 = vadd.f32 %v13253_v2, %v13252_v28 }
0x18b0   :  { %v13246_v42 = vrot.slane %v13245_v50, 4 }
0x18b1   :  { %v13255_v5 = vrot.slane %v13254_v9, 4 }
0x18b2   :  { %v13247_v23 = vadd.f32 %v13246_v42, %v13245_v50 }
0x18b3   :  { %v13256_v27 = vadd.f32 %v13255_v5, %v13254_v9  ;;  %v13308_v5 = vrot.slane %v19682_v44, %v18828_v56 }
0x18b4   :  { %v13248_v15 = vrot.slane %v13247_v23, 2 }
0x18b5   :  { %v13257_v19 = vrot.slane %v13256_v27, 2 }
0x18b6   :  { %v13249_v21 = vadd.f32 %v13248_v15, %v13247_v23  ;;  %v13312_v23 = vrot.slane %v19682_v44, %v19012_v30  ;;  %v13336_v15 = vrot.slane %v19682_v44, %v19018_v32 }
0x18b7   :  { %v13258_v26 = vadd.f32 %v13257_v19, %v13256_v27  ;;  %v13332_v27 = vrot.slane %v19682_v44, %v19015_v31  ;;  %v13318_v19 = vrot.slane %v13308_v5, %v18828_v56 }
0x18b8   :  { %v13250_v41 = vrot.slane %v13249_v21, 1  ;;  %v13346_v30 = vrot.slane %v13336_v15, %v19015_v31 }
0x18b9   :  { %v13259_v53 = vrot.slane %v13258_v26, 1 }
0x18ba   :  { %v13251_v51 = vadd.f32 %v13250_v41, %v13249_v21 }
0x18bb   :  { %v13260_v49 = vadd.f32 %v13259_v53, %v13258_v26  ;;  %v13322_v26 = vrot.slane %v13312_v23, %v18828_v56 }
0x18bc   :  { %v13261_v55 = vmul.f32 0.055555556, %v13251_v51 }
0x18bd   :  { %v13262_v7 = vmul.f32 0.055555556, %v13260_v49  ;;  %v13342_v49 = vrot.slane %v13332_v27, %v19015_v31 }
0x18be   :  { %v13263_v13 = vsub.f32 %v13237_v39, %v13261_v55  ;;  %v13265_v58 = vsub.f32 %v13239_v62, %v13261_v55  ;;  %v13267_v35 = vsub.f32 %v13241_v20, %v13261_v55 }
0x18bf   :  { %v13264_v43 = vsub.f32 %v13238_v46, %v13262_v7  ;;  %v13266_v59 = vsub.f32 %v13240_v8, %v13262_v7  ;;  %v13268_v22 = vsub.f32 %v13242_v10, %v13262_v7 }
0x18c0   :  { %v13269_v34 = vmul.f32 %v13263_v13, %v13263_v13  ;;  %v13271_v24 = vmul.f32 %v13265_v58, %v13265_v58  ;;  %v13273_v29 = vmul.f32 %v13267_v35, %v13267_v35 }
0x18c1   :  { %v13270_v45 = vmul.f32 %v13264_v43, %v13264_v43  ;;  %v13272_v14 = vmul.f32 %v13266_v59, %v13266_v59  ;;  %v13274_v37 = vmul.f32 %v13268_v22, %v13268_v22 }
0x18c2   :  { %v13275_v16 = vadd.f32 %v13271_v24, %v13269_v34  ;;  %v13276_v60 = vsel %vm391_vm0, %v13273_v29, 0.0 }
0x18c3   :  { %v13284_v25 = vadd.f32 %v13272_v14, %v13270_v45  ;;  %v13285_v63 = vsel %vm391_vm0, %v13274_v37, 0.0 }
0x18c4   :  { %v13277_v38 = vadd.f32 %v13276_v60, %v13275_v16 }
0x18c5   :  { %v13286_v61 = vadd.f32 %v13285_v63, %v13284_v25 }
0x18c6   :  { %v13278_v39 = vrot.slane %v13277_v38, 4 }
0x18c7   :  { %v13287_v62 = vrot.slane %v13286_v61, 4 }
0x18c8   :  { %v13279_v33 = vadd.f32 %v13278_v39, %v13277_v38 }
0x18c9   :  { %v13288_v46 = vadd.f32 %v13287_v62, %v13286_v61 }
0x18ca   :  { %v13280_v8 = vrot.slane %v13279_v33, 2 }
0x18cb   :  { %v13289_v57 = vrot.slane %v13288_v46, 2 }
0x18cc   :  { %v13281_v28 = vadd.f32 %v13280_v8, %v13279_v33  ;;  %v13401_v33 = vrot.slane %v13365_v4, %v18825_v54 }
0x18cd   :  { %v13290_v47 = vadd.f32 %v13289_v57, %v13288_v46 }
0x18ce   :  { %v13282_v20 = vrot.slane %v13281_v28, 1 }
0x18cf   :  { %v13291_v52 = vrot.slane %v13290_v47, 1 }
0x18d0   :  { %v13283_v10 = vadd.f32 %v13282_v20, %v13281_v28 }
0x18d1   :  { %v13292_v48 = vadd.f32 %v13291_v52, %v13290_v47 }
0x18d2   :  { %v13293_v50 = vmul.f32 0.055555556, %v13283_v10 }
0x18d3   :  { %v13294_v2 = vmul.f32 0.055555556, %v13292_v48 }
0x18d4   :  { %v13295_v9 = vadd.f32 1e-05, %v13293_v50 }
0x18d5   :  { %v13296_v42 = vadd.f32 1e-05, %v13294_v2 }
0x18d6   :  { %17952 = vrsqrt.f32 %v13295_v9 }
0x18d7   :  { %17954 = vrsqrt.f32 %v13296_v42 }
0x18e0   :  { %v17953_v21 = vpop.eup %17952 }
0x18e1   :  { %v17955_v41 = vpop.eup %17954  ;;  %v13299_v53 = vmul.f32 %v17953_v21, %v13263_v13  ;;  %v13303_v51 = vmul.f32 %v17953_v21, %v13267_v35  ;;  %v13301_v55 = vmul.f32 %v17953_v21, %v13265_v58 }
0x18e2   :  { %v13304_v7 = vmul.f32 %v17955_v41, %v13268_v22  ;;  %v13300_v34 = vmul.f32 %v17955_v41, %v13264_v43  ;;  %v13302_v24 = vmul.f32 %v17955_v41, %v13266_v59 }
0x18e3   :  { %v13323_v29 = vmul.f32 %v13318_v19, %v13299_v53  ;;  %v13325_v45 = vmul.f32 %v13318_v19, %v13301_v55  ;;  %v13327_v25 = vmul.f32 %v13318_v19, %v13303_v51 }
0x18e4   :  { %v13328_v14 = vmul.f32 %v13322_v26, %v13304_v7  ;;  %v13324_v32 = vmul.f32 %v13322_v26, %v13300_v34  ;;  %v13326_v44 = vmul.f32 %v13322_v26, %v13302_v24 }
0x18e5   :  { %v13347_v37 = vadd.f32 %v13342_v49, %v13323_v29  ;;  %v13349_v35 = vadd.f32 %v13342_v49, %v13325_v45  ;;  %v13351_v61 = vadd.f32 %v13342_v49, %v13327_v25 }
0x18e6   :  { %v13348_v16 = vadd.f32 %v13346_v30, %v13324_v32  ;;  %v13350_v60 = vadd.f32 %v13346_v30, %v13326_v44  ;;  %v13352_v59 = vadd.f32 %v13346_v30, %v13328_v14 }
0x18e7   :  { %v13353_v13 = vadd.f32 %v13347_v37, %v6981_v40  ;;  %v13355_v38 = vadd.f32 %v13349_v35, %v6983_v11  ;;  %v13357_v0 = vadd.f32 %v13351_v61, %v19289_v6  ;;  %v13522_v35 = vrot.slane %v13365_v4, %v18828_v56 }
0x18e8   :  { %v13354_v58 = vadd.f32 %v13348_v16, %v6982_v17  ;;  %v13356_v43 = vadd.f32 %v13350_v60, %v6984_v12  ;;  %v13358_v62 = vadd.f32 %v13352_v59, %v19265_v18  ;;  %v18484_v17 = vmov 0  }
0x18e9   :  { %v13359_v63 = vmax.f32 %v13353_v13, 0.0  ;;  %v13361_v36 = vmax.f32 %v13355_v38, 0.0  ;;  %v13363_v3 = vmax.f32 %v13357_v0, 0.0  ;;  %16203 = vset.pattern.permute.xlu1 %v18484_v17  ;;  %16202 = vset.pattern.permute.xlu0 %v18484_v17  ;;  %v13529_v59 = vrot.slane %v13365_v4, %v19015_v31 }
0x18ea   :  { %v13360_v22 = vmax.f32 %v13354_v58, 0.0  ;;  %v13362_v39 = vmax.f32 %v13356_v43, 0.0  ;;  %v13364_v40 = vmax.f32 %v13358_v62, 0.0  ;;  %v18488_v31 = vmov 2  }
0x18ec   :  { %13466 = vmatprep.mubr.f32.mxu1 %v13360_v22 }
0x18ed   :  { %13467 = vmatmul.mubr.f32.vlgmr.msra.gmra.mrb[156].mxu1 %v13359_v63 }
0x18ee   :  { %13471 = vmatprep.mubr.f32.mxu1 %v13362_v39 }
0x18f1   :  { %13472 = vmatmul.mubr.f32.gmra.mrb[158].mxu1 %v13361_v36 }
0x18f2   :  { %13476 = vmatprep.mubr.f32.mxu1 %v13364_v40 }
0x18f5   :  { %13477 = vmatmul.mubr.f32.gmra.mrb[160].mxu1 %v13363_v3 }
0x18f6   :  { %15692 = vmatprep.mubr.msk.f32.mxu1 %vm18487_vm4, %v18483_v1 }
0x19c0   :  { %v15615_v11 = vpop.f32.mrb[156].mxu1 }
0x19c1   :  { %v15616_v12 = vpop.f32.mrb[157].mxu1 }
0x19c2   :  { %v15617_v46 = vadd.f32 %v15616_v12, %v15615_v11  ;;  %v18485_v11 = vmov 1   ;;  %v18486_v12 = vmov 0.0|0.0  }
0x19c3   :  { %15926 = vmatprep.subr.bf16.mxu0 %v18486_v12  ;;  %15929 = vmatprep.subr.bf16.mxu1 %v18486_v12 }
0x19c4   :  { %v15618_v18 = vpop.f32.mrb[158].mxu1  ;;  %v13469_v57 = vadd.f32 %v15617_v46, %v13401_v33  ;;  %v13537_v46 = vld [vmem:[#allocation18] sm:$0xff] }
0x19c5   :  { %v15619_v8 = vpop.f32.mrb[159].mxu1 }
0x19c6   :  { %v15620_v28 = vadd.f32 %v15619_v8, %v15618_v18  ;;  %v13483_v52 = vsel %vm13482_vm2, %v13469_v57, 0.0  ;;  %v13538_v18 = vld [vmem:[#allocation18 + $0x8] sm:$0xff] }
0x19c8   :  { %v13474_v6 = vadd.f32 %v15620_v28, %v13401_v33  ;;  %v15621_v47 = vpop.f32.mrb[160].mxu1 }
0x19c9   :  { %v15622_v20 = vpop.f32.mrb[161].mxu1 }
0x19ca   :  { %v13484_v10 = vsel %vm13482_vm2, %v13474_v6, 0.0  ;;  %v15623_v48 = vadd.f32 %v15622_v20, %v15621_v47  ;;  %v13539_v20 = vld [vmem:[#allocation18 + $0x10] sm:$0x3] }
0x19cb   :  { %v13485_v50 = vadd.f32 %v13484_v10, %v13483_v52 }
0x19cc   :  { %v13479_v2 = vadd.f32 %v15623_v48, %v13401_v33 }
0x19ce   :  { %v13487_v9 = vsel %vm13486_vm3, %v13479_v2, 0.0 }
0x19cf   :  { %v13488_v42 = vadd.f32 %v13487_v9, %v13485_v50  ;;  %v13536_v9 = vld [vmem:[#allocation17] sm:$0x3] }
0x19d1   :  { %v13489_v5 = vrot.slane %v13488_v42, 4 }
0x19d3   :  { %v13490_v23 = vadd.f32 %v13489_v5, %v13488_v42  ;;  %v13811_v5 = vld [vmem:[#allocation20 + $0x8] sm:$0xff] }
0x19d5   :  { %v13491_v27 = vrot.slane %v13490_v23, 2 }
0x19d7   :  { %v13492_v15 = vadd.f32 %v13491_v27, %v13490_v23  ;;  %v13813_v23 = vld [vmem:[#allocation20 + $0x18] sm:$0x1] }
0x19d9   :  { %v13493_v19 = vrot.slane %v13492_v15, 1 }
0x19db   :  { %v13494_v21 = vadd.f32 %v13493_v19, %v13492_v15  ;;  %v13810_v19 = vld [vmem:[#allocation20] sm:$0xff] }
0x19dd   :  { %v13495_v26 = vmul.f32 0.055555556, %v13494_v21  ;;  %v13812_v21 = vld [vmem:[#allocation20 + $0x10] sm:$0x1] }
0x19df   :  { %v13496_v41 = vsub.f32 %v13469_v57, %v13495_v26  ;;  %v13497_v53 = vsub.f32 %v13474_v6, %v13495_v26  ;;  %v13498_v51 = vsub.f32 %v13479_v2, %v13495_v26 }
0x19e1   :  { %v13499_v49 = vmul.f32 %v13496_v41, %v13496_v41  ;;  %v13500_v55 = vmul.f32 %v13497_v53, %v13497_v53  ;;  %v13501_v7 = vmul.f32 %v13498_v51, %v13498_v51 }
0x19e3   :  { %v13502_v34 = vsel %vm13482_vm2, %v13499_v49, 0.0  ;;  %v13503_v30 = vsel %vm13482_vm2, %v13500_v55, 0.0  ;;  %v13505_v29 = vsel %vm13486_vm3, %v13501_v7, 0.0  ;;  %v15938_v7 = vpack.c.bf16 %v13812_v21, %v13810_v19  ;;  %v13940_v19 = vld [vmem:[#allocation23 + $0xf0] sm:$0xff]  ;;  %v13941_v21 = vld [vmem:[#allocation23 + $0xf8] sm:$0xff] }
0x19e4   :  { %v13504_v24 = vadd.f32 %v13503_v30, %v13502_v34 }
0x19e6   :  { %v13506_v45 = vadd.f32 %v13505_v29, %v13504_v24  ;;  %v13926_v24 = vld [vmem:[#allocation23 + $0x80] sm:$0xff]  ;;  %v13927_v29 = vld [vmem:[#allocation23 + $0x88] sm:$0xff] }
0x19e8   :  { %v13507_v14 = vrot.slane %v13506_v45, 4 }
0x19ea   :  { %v13508_v32 = vadd.f32 %v13507_v14, %v13506_v45  ;;  %v15941_v45 = vpack.c.bf16 %v13927_v29, %v13926_v24  ;;  %v13910_v14 = vld [vmem:[#allocation23] sm:$0xff] }
0x19ec   :  { %v13509_v44 = vrot.slane %v13508_v32, 2 }
0x19ee   :  { %v13510_v37 = vadd.f32 %v13509_v44, %v13508_v32  ;;  %v13911_v32 = vld [vmem:[#allocation23 + $0x8] sm:$0xff]  ;;  %v13928_v44 = vld [vmem:[#allocation23 + $0x90] sm:$0xff] }
0x19f0   :  { %v13511_v16 = vrot.slane %v13510_v37, 1 }
0x19f2   :  { %v13512_v60 = vadd.f32 %v13511_v16, %v13510_v37  ;;  %v13929_v37 = vld [vmem:[#allocation23 + $0x98] sm:$0xff]  ;;  %v15943_v16 = vpack.c.bf16 %v13911_v32, %v13910_v14  ;;  %v14024_v32 = vld [vmem:[#allocation26] sm:$0xff] }
0x19f4   :  { %v13513_v25 = vmul.f32 0.055555556, %v13512_v60  ;;  %v15945_v60 = vpack.c.bf16 %v13929_v37, %v13928_v44  ;;  %v14025_v44 = vld [vmem:[#allocation26 + $0x8] sm:$0x1] }
0x19f6   :  { %v13514_v13 = vadd.f32 1e-05, %v13513_v25  ;;  %v13912_v25 = vld [vmem:[#allocation23 + $0x10] sm:$0xff] }
0x19f8   :  { %17956 = vrsqrt.f32 %v13514_v13  ;;  %v13913_v13 = vld [vmem:[#allocation23 + $0x18] sm:$0xff] }
0x1a02   :  { %v17957_v58 = vpop.eup %17956 }
0x1a03   :  { %v13518_v43 = vmul.f32 %v17957_v58, %v13498_v51  ;;  %v13516_v22 = vmul.f32 %v17957_v58, %v13496_v41  ;;  %v13517_v63 = vmul.f32 %v17957_v58, %v13497_v53  ;;  %v15935_v51 = vpack.c.bf16 %v13813_v23, %v13811_v5  ;;  %v13930_v58 = vld [vmem:[#allocation23 + $0xa0] sm:$0xff] }
0x1a04   :  { %v13922_v23 = vld [vmem:[#allocation23 + $0x60] sm:$0xff] }
0x1a05   :  { %v13525_v38 = vmul.f32 %v13522_v35, %v13518_v43  ;;  %v13523_v61 = vmul.f32 %v13522_v35, %v13516_v22  ;;  %v13524_v39 = vmul.f32 %v13522_v35, %v13517_v63  ;;  %v13931_v43 = vld [vmem:[#allocation23 + $0xa8] sm:$0xff]  ;;  %v15947_v22 = vpack.c.bf16 %v13913_v13, %v13912_v25 }
0x1a06   :  { %v15949_v63 = vpack.c.bf16 %v13931_v43, %v13930_v58  ;;  %v15577_v13 = vld [vmem:[#allocation2] ss:$0 sm:$0xff] }
0x1a07   :  { %v13532_v62 = vadd.f32 %v13529_v59, %v13525_v38  ;;  %v13530_v36 = vadd.f32 %v13529_v59, %v13523_v61  ;;  %v13531_v3 = vadd.f32 %v13529_v59, %v13524_v39  ;;  %v13914_v38 = vld [vmem:[#allocation23 + $0x20] sm:$0xff]  ;;  %v13915_v61 = vld [vmem:[#allocation23 + $0x28] sm:$0xff]  ;;  %v13932_v39 = vld [vmem:[#allocation23 + $0xb0] sm:$0xff] }
0x1a09   :  { %v13535_v0 = vmax.f32 %v13532_v62, 0.0  ;;  %v13533_v40 = vmax.f32 %v13530_v36, 0.0  ;;  %v13534_v17 = vmax.f32 %v13531_v3, 0.0  ;;  %v13933_v62 = vld [vmem:[#allocation23 + $0xb8] sm:$0xff] }
0x1a0a   :  { %v15953_v3 = vpack.c.bf16 %v13933_v62, %v13932_v39 }
0x1a0b   :  { %13552 = vperm.xlu1 %16203, %v13535_v0   ;;  %13542 = vperm.xlu0 %16202, %v13533_v40  }
0x1a0f   :  { %16204 = vset.pattern.permute.xlu1 %v18485_v11  ;;  %13547 = vperm.xlu0 %16202, %v13534_v17  }
0x1a10   :  { %13635 = vperm.xlu1 %16204, %v13533_v40  }
0x1a13   :  { %16205 = vset.pattern.permute.xlu0 %v18485_v11  ;;  %v13917_v11 = vld [vmem:[#allocation23 + $0x38] sm:$0xff] }
0x1a14   :  { %13643 = vperm.xlu1 %16204, %v13535_v0   ;;  %13639 = vperm.xlu0 %16205, %v13534_v17  }
0x1a18   :  { %16206 = vset.pattern.permute.xlu1 %v18488_v31  ;;  %16207 = vset.pattern.permute.xlu0 %v18488_v31  ;;  %v13934_v31 = vld [vmem:[#allocation23 + $0xc0] sm:$0xff] }
0x1a19   :  { %13723 = vperm.xlu1 %16206, %v13533_v40   ;;  %13727 = vperm.xlu0 %16207, %v13534_v17   ;;  %v13916_v17 = vld [vmem:[#allocation23 + $0x30] sm:$0xff] }
0x1a1d   :  { %13731 = vperm.xlu1 %16206, %v13535_v0   ;;  %v15951_v0 = vpack.c.bf16 %v13915_v61, %v13914_v38 }
0x1a8a   :  { %v13553_v4 = vpop.permute.xlu1 %13552  ;;  %v13543_v33 = vpop.permute.xlu0 %13542 }
0x1a8b   :  { %v13555_v57 = vmul.f32 %v13543_v33, %v13537_v46  ;;  %v13557_v2 = vmul.f32 %v13553_v4, %v13539_v20  ;;  %v13935_v4 = vld [vmem:[#allocation23 + $0xc8] sm:$0xff]  ;;  %v15955_v33 = vpack.c.bf16 %v13917_v11, %v13916_v17 }
0x1a8e   :  { %v13548_v8 = vpop.permute.xlu0 %13547 }
0x1a8f   :  { %v13556_v28 = vmul.f32 %v13548_v8, %v13538_v18  ;;  %v13636_v6 = vpop.permute.xlu1 %13635  ;;  %v13919_v8 = vld [vmem:[#allocation23 + $0x48] sm:$0xff] }
0x1a90   :  { %v13646_v48 = vmul.f32 %v13636_v6, %v13537_v46 }
0x1a91   :  { %v15927_v47 = vpack.c.bf16 %v13556_v28, %v13555_v57  ;;  %v13936_v57 = vld [vmem:[#allocation23 + $0xd0] sm:$0xff]  ;;  %v13937_v28 = vld [vmem:[#allocation23 + $0xd8] sm:$0xff] }
0x1a93   :  { %v13644_v52 = vpop.permute.xlu1 %13643  ;;  %15928 = vmatpush3.bf16.msra.mxu0 %v15927_v47  ;;  %v13640_v10 = vpop.permute.xlu0 %13639  ;;  %v15961_v47 = vpack.c.bf16 %v13937_v28, %v13936_v57 }
0x1a94   :  { %v13647_v50 = vmul.f32 %v13640_v10, %v13538_v18  ;;  %15681 = vmatprep.subr.mxu0 %v18483_v1  ;;  %v13648_v53 = vmul.f32 %v13644_v52, %v13539_v20  ;;  %v13921_v52 = vld [vmem:[#allocation23 + $0x58] sm:$0xff]  ;;  %v13938_v10 = vld [vmem:[#allocation23 + $0xe0] sm:$0xff] }
0x1a96   :  { %v15930_v42 = vpack.c.bf16 %v13647_v50, %v13646_v48  ;;  %v13939_v48 = vld [vmem:[#allocation23 + $0xe8] sm:$0xff] }
0x1a97   :  { %15682 = vmatpush3.msk.msra.mxu0 %vm391_vm0, %v13557_v2  ;;  %v15965_v2 = vpack.c.bf16 %v13939_v48, %v13938_v10 }
0x1a98   :  { %v13724_v27 = vpop.permute.xlu1 %13723  ;;  %15684 = vmatmul.mubr.msk.f32.vlgmr.msra.gmra.mrb[168].mxu0 %vm995_vm1, %v13536_v9  ;;  %15931 = vmatpush3.bf16.msra.mxu1 %v15930_v42  ;;  %v13728_v15 = vpop.permute.xlu0 %13727  ;;  %v14023_v42 = vld [vmem:[#allocation24 + $0x8] sm:$0x1] }
0x1a99   :  { %v13734_v26 = vmul.f32 %v13724_v27, %v13537_v46  ;;  %v13735_v41 = vmul.f32 %v13728_v15, %v13538_v18  ;;  %15690 = vmatprep.subr.mxu1 %v18483_v1  ;;  %15932 = vmatprep.subr.bf16.mxu0 %v18486_v12  ;;  %v15957_v46 = vpack.c.bf16 %v13935_v4, %v13934_v31  ;;  %v13918_v18 = vld [vmem:[#allocation23 + $0x40] sm:$0xff]  ;;  %v13923_v27 = vld [vmem:[#allocation23 + $0x68] sm:$0xff] }
0x1a9a   :  { %15701 = vmatprep.mubr.msk.f32.mxu0 %vm18487_vm4, %v18483_v1  ;;  %v15959_v6 = vpack.c.bf16 %v13919_v8, %v13918_v18  ;;  %v15967_v15 = vpack.c.bf16 %v13923_v27, %v13922_v23 }
0x1a9b   :  { %v15933_v49 = vpack.c.bf16 %v13735_v41, %v13734_v26  ;;  %v15969_v26 = vpack.c.bf16 %v13941_v21, %v13940_v19  ;;  %v13924_v41 = vld [vmem:[#allocation23 + $0x70] sm:$0xff] }
0x1a9c   :  { %v13732_v34 = vpop.permute.xlu1 %13731  ;;  %15691 = vmatpush3.msk.msra.mxu1 %vm391_vm0, %v13648_v53  ;;  %v13925_v53 = vld [vmem:[#allocation23 + $0x78] sm:$0xff] }
0x1a9d   :  { %15934 = vmatpush3.bf16.msra.mxu0 %v15933_v49  ;;  %15693 = vmatmul.mubr.msk.f32.vlgmr.msra.gmra.mrb[162].mxu1 %vm995_vm1, %v13536_v9  ;;  %v13736_v30 = vmul.f32 %v13732_v34, %v13539_v20  ;;  %v13920_v20 = vld [vmem:[#allocation23 + $0x50] sm:$0xff]  ;;  %v13814_v34 = vld [vmem:[#allocation21] sm:$0x3] }
0x1a9e   :  { %15699 = vmatprep.subr.mxu0 %v18483_v1  ;;  %15937 = vmatprep.subr.msk.bf16.mxu1 %vm19738_vm7, %v15935_v51  ;;  %v15963_v50 = vpack.c.bf16 %v13921_v52, %v13920_v20  ;;  %v15971_v51 = vpack.c.bf16 %v13925_v53, %v13924_v41  ;;  %v13823_v24 = vrot.slane %v13814_v34, %v18828_v56 }
0x1a9f   :  { %15940 = vmatpush1.bf16.msk.msra.mxu1 %vm19738_vm7, %v15938_v7  ;;  %13901 = vmatprep.mubr.f32.mxu1 %v18483_v1 }
0x1aa0   :  { %15942 = vmatprep.subr.bf16.mxu1 %v15941_v45 }
0x1aa1   :  { %15700 = vmatpush3.msk.msra.mxu0 %vm391_vm0, %v13736_v30  ;;  %v13819_v30 = vrot.slane %v13814_v34, %v18825_v54 }
0x1aa2   :  { %15702 = vmatmul.mubr.msk.f32.vlgmr.msra.gmra.mrb[170].mxu0 %vm995_vm1, %v13536_v9  ;;  %15977 = vmatprep.subr.bf16.mxu0 %v18486_v12  ;;  %v14022_v9 = vld [vmem:[#allocation24] sm:$0xff] }
0x1aa3   :  { %15715 = vmatprep.mubr.msk.f32.mxu0 %vm18487_vm4, %v18483_v1  ;;  %v15978_v5 = vpack.c.bf16 %v14023_v42, %v14022_v9 }
0x1aa5   :  { %15980 = vmatpush3.bf16.msk.msra.mxu0 %vm19738_vm7, %v15978_v5 }
0x1b6b   :  { %v13630_v35 = vpop.f32.mrb[168].mxu0 }
0x1b6c   :  { %15576 = vmatmul.mubr.msk.f32.vlgmr.msra.gmra.mrb[164].mxu1 %vm13826_vm8, %v13630_v35  ;;  %v15685_v59 = vpop.f32.mrb[169].mxu0 }
0x1b6d   :  { %15944 = vmatpush3.bf16.msra.mxu1 %v15943_v16 }
0x1b6e   :  { %15946 = vmatprep.subr.bf16.mxu1 %v15945_v60  ;;  %v15974_v60 = vpack.c.bf16 %v14025_v44, %v14024_v32 }
0x1b70   :  { %v13718_v36 = vpop.f32.mrb[162].mxu1 }
0x1b71   :  { %15948 = vmatpush3.bf16.msra.mxu1 %v15947_v22  ;;  %v15694_v40 = vpop.f32.mrb[163].mxu1  ;;  %15716 = vmatmul.mubr.msk.f32.vlgmr.msra.gmra.mrb[172].mxu0 %vm13826_vm8, %v13718_v36  ;;  %v15582_v22 = vld [vmem:[#allocation27] ss:$0 sm:$0xff] }
0x1b72   :  { %15950 = vmatprep.subr.bf16.mxu1 %v15949_v63 }
0x1b75   :  { %15952 = vmatpush3.bf16.msra.mxu1 %v15951_v0  ;;  %v13806_v49 = vpop.f32.mrb[170].mxu0 }
0x1b76   :  { %15954 = vmatprep.subr.bf16.mxu1 %v15953_v3  ;;  %v15703_v7 = vpop.f32.mrb[171].mxu0 }
0x1b79   :  { %15956 = vmatpush3.bf16.msra.mxu1 %v15955_v33 }
0x1b7a   :  { %15958 = vmatprep.subr.bf16.mxu1 %v15957_v46 }
0x1b7d   :  { %15960 = vmatpush3.bf16.msra.mxu1 %v15959_v6 }
0x1b7e   :  { %15962 = vmatprep.subr.bf16.mxu1 %v15961_v47 }
0x1b81   :  { %15964 = vmatpush3.bf16.msra.mxu1 %v15963_v50 }
0x1b82   :  { %15966 = vmatprep.subr.bf16.mxu1 %v15965_v2 }
0x1b85   :  { %15968 = vmatpush3.bf16.msra.mxu1 %v15967_v15 }
0x1b86   :  { %15970 = vmatprep.subr.bf16.mxu1 %v15969_v26 }
0x1b89   :  { %15972 = vmatpush3.bf16.msra.mxu1 %v15971_v51 }
0x1b8a   :  { %15973 = vmatprep.subr.bf16.mxu1 %v18486_v12 }
0x1c3f   :  { %v13903_v29 = vpop.f32.mrb[164].mxu1 }
0x1c40   :  { %v13904_v45 = vadd.f32 %v13903_v29, %v13819_v30  ;;  %v13905_v14 = vpop.f32.mrb[165].mxu1 }
0x1c41   :  { %v13906_v37 = vadd.f32 %v13905_v14, %v13823_v24 }
0x1c42   :  { %v13908_v25 = vmax.f32 %v13904_v45, 0.0 }
0x1c43   :  { %v13909_v16 = vmax.f32 %v13906_v37, 0.0 }
0x1c44   :  { %v14174_v54 = vpop.f32.mrb[172].mxu0 }
0x1c45   :  { %14013 = vmatprep.mubr.f32.mxu1 %v13909_v16  ;;  %v15717_v56 = vpop.f32.mrb[173].mxu0 }
0x1c46   :  { %14014 = vmatmul.mubr.f32.vlgmr.msra.gmra.mrb[166].mxu1 %v13908_v25 }
0x1c47   :  { %15976 = vmatpush3.bf16.msk.msra.mxu1 %vm19738_vm7, %v15974_v60  ;;  %15708 = vmatprep.mubr.msk.f32.mxu1 %vm18487_vm4, %v18483_v1 }
0x1c4a   :  { %15709 = vmatmul.mubr.msk.f32.vlgmr.msra.gmra.mrb[168].mxu1 %vm13826_vm8, %v13806_v49 }
0x1d19   :  { %v15668_v12 = vpop.f32.mrb[166].mxu1 }
0x1d1a   :  { %v15669_v35 = vpop.f32.mrb[167].mxu1 }
0x1d1b   :  { %v15670_v58 = vadd.f32 %v15669_v35, %v15668_v12 }
0x1d1d   :  { %v14016_v43 = vadd.f32 %v15670_v58, %v15577_v13  ;;  %v14098_v59 = vpop.f32.mrb[168].mxu1 }
0x1d1e   :  { %v14175_v63 = vadd.f32 %v14174_v54, %v14098_v59  ;;  %v15710_v38 = vpop.f32.mrb[169].mxu1 }
0x1d1f   :  { %17958 = vtanh.f32 %v14016_v43 }
0x1d20   :  { %v14185_v55 = vadd.f32 %v15582_v22, %v14175_v63 }
0x1d22   :  { %v14187_v61 = vsel %vm14186_vm9, %v14185_v55, -inf }
0x1d23   :  { %14188 = vmax.xlane.f32.xlu1 %v14187_v61 }
0x1d29   :  { %v17959_v1 = vpop.eup %17958 }
0x1d2a   :  { %14021 = vst.msk [vmem:[#allocation30] sm:$0x3] %vm14020_vm10, %v17959_v1 }
0x1db0   :  { %v14189_v39 = vpop.xlane.xlu1 %14188 }
0x1db1   :  { %v14190_v62 = vsub.f32 %v14185_v55, %v14189_v39 }
0x1db3   :  { %v14191_v36 = vmul.f32 1.442695, %v14190_v62 }
0x1db5   :  { %17960 = vpow2.f32 %v14191_v36 }
0x1dbf   :  { %v17961_v0 = vpop.eup %17960 }
0x1dc0   :  { %v14193_v40 = vsel %vm14186_vm9, %v17961_v0, 0.0 }
0x1dc1   :  { %14194 = vadd.xlane.f32.xlu0 %v14193_v40 }
0x1dc2   :  { %18408 = shalt.err (!%p18405_p6)
}
0x1dc3   :  { %s18409_s24 = scalar_lea.hbm %s19812_s18, 32 }
0x1dc4   :  { %p18410_p7 = scmp.ne.s32.totalorder %s19812_s18, %s18409_s24  ;;  %p18413_p8 = scmp.lt.u32.totalorder %s18409_s24, %s19812_s18 }
0x1dc6   :  { %p18415_p9 = pnand %p18413_p8, %p18410_p7 }
0x1dc8   :  { %18418 = shalt.err (!%p18415_p9)
}
0x1dc9   :  { %14218 = dma.vmem_to_hbm [thread:$0]  %s14216_s13, 32, %s19812_s18, [#allocation31]  }
0x1dca   :  { %s18491_s14 = smov [#allocation29]  }
0x1dcb   :  { %s14205_s4 = sshll.u32 %s18491_s14, 4  ;;  %s14206_s4 = int_to_ptr.vmem [resolvable:$true] %s14205_s4 }
0x1dcc   :  { %s18419_s27 = scalar_lea.vmem %s14206_s4, 32  ;;  %p18424_p11 = scmp.lt.s32.totalorder %s14206_s4, %s14206_s4 }
0x1dcd   :  { %p18420_p10 = scmp.ne.s32.totalorder %s14206_s4, %s18419_s27  ;;  %p18425_p12 = scmp.lt.s32.totalorder %s18419_s27, %s18419_s27 }
0x1dcf   :  { %p18426_p13 = por %p18425_p12, %p18424_p11 }
0x1dd1   :  { %p18427_p0 = pnand %p18426_p13, %p18420_p10 }
0x1e4e   :  { %v14195_v3 = vpop.xlane.xlu0 %14194 }
0x1e4f   :  { %17962 = vrcp.f32 %v14195_v3 }
0x1e59   :  { %v17963_v17 = vpop.eup %17962 }
0x1e5a   :  { %v14197_v11 = vmul.f32 %v17963_v17, %v17961_v0 }
0x1e5c   :  { %14198 = vst.msk [vmem:[#allocation29] sm:$0x3] %vm14186_vm9, %v14197_v11 }
0x1e5d   :  { %18430 = shalt.err (!%p18427_p0)
}
0x1e5e   :  { %s19826_s8 = sld [smem:[#allocation46_spill]] }
0x1e64   :  { %s18431_s18 = scalar_lea.hbm %s19826_s8, 32 }
0x1e65   :  { %p18432_p1 = scmp.ne.s32.totalorder %s19826_s8, %s18431_s18  ;;  %p18435_p2 = scmp.lt.u32.totalorder %s18431_s18, %s19826_s8 }
0x1e67   :  { %p18437_p3 = pnand %p18435_p2, %p18432_p1 }
0x1e69   :  { %18440 = shalt.err (!%p18437_p3)
}
0x1e6a   :  { %14208 = dma.vmem_to_hbm [thread:$0]  %s14206_s4, 32, %s19826_s8, [#allocation5]  }
0x1e6b   :  { %18459 = dma.done.wait [#allocation5], 32  }
0x1e6c   :  { %18460 = vsyncadd [#allocation5], 4294967264 }
0x1e6d   :  { %18461 = dma.done.wait [#allocation31], 32  }
0x1e6e   :  { %18462 = vsyncadd [#allocation31], 4294967264 }
0x1e6f   :  { %14225 = vsyncpa [#allocation4], 1 }
0x1e70   :  { %14226 = vsyncpa [#allocation7], 1 }
0x1e71   :  { %14227 = vsyncpa [#allocation10], 1 }
0x1e72   :  { %14228 = vsyncpa [#allocation13], 1 }
0x1e73   :  { %14229 = vsyncpa [#allocation16], 1 }
0x1e74   :  { %14230 = vsyncpa [#allocation19], 1 }
0x1e75   :  { %14231 = vsyncpa [#allocation22], 1 }
0x1e76   :  { %14232 = vsyncpa [#allocation25], 1 }
0x1e77   :  { %14233 = vsyncpa [#allocation28], 1 }
0x1e78   :  { %14234 = vsyncpa [#allocation5], 1 }
0x1e79   :  { %14235 = vsyncpa [#allocation31], 1 }

</bundles_post_ra>
